<compile_context>
chip_gen: v6e
topology: v6e:2x2x1
jax: 0.10.0
libtpu: 0.0.40
codegen_flags: <defaults>
</compile_context>

<pallas_src>
import math
from collections import OrderedDict, namedtuple

import jax
import jax.numpy as jnp
from jax.experimental import pallas as pl
from jax.experimental.pallas import tpu as pltpu

# ---------------------------------------------------------------------------
# Config (defaults of the PyTorch SDF module)
# ---------------------------------------------------------------------------
DIM = 3                                   # raw coordinate dimension
HIDDEN = 512                              # hidden_size
N_LAYERS = 8                              # n_layers -> 9 linear layers total
SKIP_IN = (4,)                            # skip connection layer index
NUM_FREQ = 6                              # num_frequencies
BIAS = 0.6                                # final bias init is -bias
OUT_DIMS = OrderedDict(sdf=1)
OUT_DIM = sum(OUT_DIMS.values())
D_EMBED = DIM + 2 * DIM * NUM_FREQ        # 39 embedded features
N_STACK = N_LAYERS - 1                    # hidden layers 1..7, stored stacked
SOFTPLUS_BETA = 100.0
SOFTPLUS_THRESHOLD = 20.0                 # PyTorch nn.Softplus default

_fields = ('sdf', 'latent', 'rgb', 'occupancy')
Result = namedtuple('Result', _fields, defaults=(None,) * len(_fields))


def _round_up(a, b):
    return (a + b - 1) // b * b


def _softplus_beta100(z):
    """PyTorch nn.Softplus(beta=100): z if beta*z > 20 else log(1+exp(beta*z))/beta."""
    bz = z * SOFTPLUS_BETA
    return jnp.where(
        bz > SOFTPLUS_THRESHOLD, z,
        jnp.log(1.0 + jnp.exp(jnp.minimum(bz, SOFTPLUS_THRESHOLD))) / SOFTPLUS_BETA)


def positional_embed(x):
    """Embedder(include_input, 6 freqs, log sampling):
       [x, sin(2^0 x), cos(2^0 x), ..., sin(2^5 x), cos(2^5 x)] -> (..., 39)."""
    freqs = 2.0 ** jnp.arange(NUM_FREQ, dtype=jnp.float32)       # [1,2,4,8,16,32]
    xb = x[..., None, :] * freqs[:, None]                        # (..., F, 3)
    sc = jnp.stack([jnp.sin(xb), jnp.cos(xb)], axis=-2)          # (..., F, 2, 3)
    sc = sc.reshape(*x.shape[:-1], NUM_FREQ * 2 * DIM)
    return jnp.concatenate([x, sc], axis=-1)                     # (..., 39)


# ---------------------------------------------------------------------------
# Parameter initialization (mirrors the PyTorch __init__ init scheme; weight
# norm is a reparameterization only, so effective weights are used directly).
# Weights are stored as (in, out) so the kernel computes x @ W + b.
# ---------------------------------------------------------------------------
def init_sdf_params(key):
    dims = [D_EMBED] + [HIDDEN] * N_LAYERS + [OUT_DIM]
    n_lin = len(dims) - 1                                        # 9
    keys = jax.random.split(key, n_lin)
    params = []
    for l in range(n_lin):
        in_d = dims[l]
        out_d = dims[l + 1] - dims[0] if (l + 1) in SKIP_IN else dims[l + 1]
        k = keys[l]
        if l == n_lin - 1:
            # normal(mean=sqrt(pi)/sqrt(in), std=1e-4), bias = -bias
            w = (math.sqrt(math.pi) / math.sqrt(in_d)
                 + 1e-4 * jax.random.normal(k, (in_d, out_d), jnp.float32))
            b = jnp.full((out_d,), -BIAS, jnp.float32)
        elif l == 0:
            # only the raw xyz columns get nonzero weights
            w_xyz = (math.sqrt(2.0) / math.sqrt(out_d)) * \
                jax.random.normal(k, (DIM, out_d), jnp.float32)
            w = jnp.concatenate(
                [w_xyz, jnp.zeros((in_d - DIM, out_d), jnp.float32)], axis=0)
            b = jnp.zeros((out_d,), jnp.float32)
        elif l in SKIP_IN:
            w = (math.sqrt(2.0) / math.sqrt(out_d)) * \
                jax.random.normal(k, (in_d, out_d), jnp.float32)
            w = w.at[-(dims[0] - DIM):, :].set(0.0)
            b = jnp.zeros((out_d,), jnp.float32)
        else:
            w = (math.sqrt(2.0) / math.sqrt(out_d)) * \
                jax.random.normal(k, (in_d, out_d), jnp.float32)
            b = jnp.zeros((out_d,), jnp.float32)
        params.append((w, b))
    return params


# ---------------------------------------------------------------------------
# Pack raw per-layer params into kernel-friendly tensors:
#   * layer 3 output padded 473 -> 512 (zero cols; exact, matching zero rows in W4a)
#   * layer 4 split into W4a (h part, padded to 512 rows) and W4b (embed part),
#     both pre-scaled by 1/sqrt(2)
#   * wide matmul weights cast to bf16; biases and the final 512->1 layer stay f32
# ---------------------------------------------------------------------------
def pack_params(raw, use_bf16=True):
    wdt = jnp.bfloat16 if use_bf16 else jnp.float32
    inv_sqrt2 = 1.0 / math.sqrt(2.0)

    w0, b0 = raw[0]
    wh, bh = [], []
    wskip = None
    for l in range(1, N_LAYERS):                     # layers 1..7
        w, b = raw[l]
        if (l + 1) in SKIP_IN:                       # 473-wide output -> pad to 512
            w = jnp.pad(w, ((0, 0), (0, HIDDEN - w.shape[1])))
            b = jnp.pad(b, (0, HIDDEN - b.shape[0]))
        if l in SKIP_IN:                             # split cat([h, embed]) @ W
            h_d = HIDDEN - D_EMBED                   # 473
            wa = jnp.pad(w[:h_d] * inv_sqrt2, ((0, HIDDEN - h_d), (0, 0)))
            wskip = (w[h_d:] * inv_sqrt2).astype(wdt)
            w = wa
        wh.append(w.astype(wdt))
        bh.append(b.reshape(1, HIDDEN))
    assert wskip is not None

    wf, bf = raw[N_LAYERS]
    return dict(
        w0=w0.astype(wdt), b0=b0.reshape(1, HIDDEN),
        wh=jnp.stack(wh), bh=jnp.stack(bh),
        wskip=wskip,
        wf=wf.astype(jnp.float32), bf=bf.reshape(1, OUT_DIM),
    )


# ---------------------------------------------------------------------------
# Pallas kernel: whole SDF MLP for one tile of rows
# ---------------------------------------------------------------------------
def sdf_kernel(x_ref, w0_ref, b0_ref, wh_ref, bh_ref, wskip_ref, wf_ref, bf_ref,
               o_ref):
    e = x_ref[...]                                   # (tm, 39) f32 embedded coords
    e_lo = e.astype(w0_ref.dtype)                    # bf16 for the MXU

    # layer 0
    h = _softplus_beta100(
        jnp.dot(e_lo, w0_ref[...], preferred_element_type=jnp.float32)
        + b0_ref[...])

    # layers 1..7 (static unroll); skip-connection contribution added at l == 4
    for i in range(N_STACK):
        pre = jnp.dot(h.astype(wh_ref.dtype), wh_ref[i],
                      preferred_element_type=jnp.float32) + bh_ref[i]
        if (i + 1) in SKIP_IN:
            pre = pre + jnp.dot(e_lo, wskip_ref[...],
                                preferred_element_type=jnp.float32)
        h = _softplus_beta100(pre)

    # final 512 -> 1 linear stays f32 (init has a 1e-4-std structure), then tanh
    y = jnp.dot(h, wf_ref[...], preferred_element_type=jnp.float32) + bf_ref[...]
    o_ref[...] = jnp.tanh(y)


def sdf_mlp_pallas(x_embed, packed, tm=1024):
    """x_embed: (M, 39) f32 -> (M, 1) f32."""
    M, d_in = x_embed.shape

    # Large row tile for low per-grid-step overhead, but cap it so the grid has
    # at least 2 steps when M allows (v7x has 2 TensorCores). Keep tm a
    # multiple of 8 sublanes; pad rows instead of asserting divisibility.
    tm = int(max(8, min(tm, _round_up((M + 1) // 2, 8))))
    mp = _round_up(M, tm)
    if mp != M:
        x_embed = jnp.pad(x_embed, ((0, mp - M), (0, 0)))
    grid = (mp // tm,)

    out = pl.pallas_call(
        sdf_kernel,
        out_shape=jax.ShapeDtypeStruct((mp, OUT_DIM), jnp.float32),
        grid_spec=pltpu.PrefetchScalarGridSpec(
            num_scalar_prefetch=0,
            grid=grid,
            in_specs=[
                pl.BlockSpec((tm, d_in), lambda i: (i, 0)),
                pl.BlockSpec((d_in, HIDDEN), lambda i: (0, 0)),
                pl.BlockSpec((1, HIDDEN), lambda i: (0, 0)),
                pl.BlockSpec((N_STACK, HIDDEN, HIDDEN), lambda i: (0, 0, 0)),
                pl.BlockSpec((N_STACK, 1, HIDDEN), lambda i: (0, 0, 0)),
                pl.BlockSpec((d_in, HIDDEN), lambda i: (0, 0)),
                pl.BlockSpec((HIDDEN, OUT_DIM), lambda i: (0, 0)),
                pl.BlockSpec((1, OUT_DIM), lambda i: (0, 0)),
            ],
            out_specs=pl.BlockSpec((tm, OUT_DIM), lambda i: (i, 0)),
        ),
        compiler_params=pltpu.CompilerParams(
            dimension_semantics=("parallel",),
            vmem_limit_bytes=32 * 1024 * 1024),
    )(x_embed, packed["w0"], packed["b0"], packed["wh"], packed["bh"],
      packed["wskip"], packed["wf"], packed["bf"])
    return out[:M]


# ---------------------------------------------------------------------------
# SDF.forward equivalent (glue in plain JAX)
# ---------------------------------------------------------------------------
def sdf_forward(coords, packed, c=None, tm=1024):
    """coords: (N, P, 3). Returns Result namedtuple (BaseModel._parse_output)."""
    # TODO(synk): a non-empty latent code `c` is shape-incompatible with the default
    # SDF dims (lin0 expects 39 inputs), exactly as in the PyTorch module; unsupported.
    assert c is None or c.size == 0
    N, P, d = coords.shape
    x = coords.reshape(N * P, d).astype(jnp.float32)
    e = positional_embed(x)                                  # (M, 39)

    out = sdf_mlp_pallas(e, packed, tm=tm)                   # (M, 1)
    out = out.reshape(N, P, OUT_DIM)

    # _parse_output: split along the last dim by OUT_DIMS (scale_rgb=False).
    splits, start = [], 0
    for v in OUT_DIMS.values():
        splits.append(out[..., start:start + v])
        start += v
    results = Result(**dict(zip(OUT_DIMS.keys(), splits)))
    if results.rgb is not None:
        results = results._replace(rgb=jax.nn.sigmoid(results.rgb))
    return results


# Pure-JAX f32 reference (follows the PyTorch forward literally, incl. concat).
def sdf_forward_ref(coords, raw_params):
    x_flat = coords.reshape(-1, DIM).astype(jnp.float32)
    e = positional_embed(x_flat)
    x = e
    for l in range(N_LAYERS + 1):                            # layers 0..8
        w, b = raw_params[l]
        if l in SKIP_IN:
            x = jnp.concatenate([x, e], axis=-1) / math.sqrt(2.0)
        x = x @ w + b
        if l < N_LAYERS:
            x = _softplus_beta100(x)
    y = jnp.tanh(x)
    return y.reshape(*coords.shape[:-1], OUT_DIM)


if __name__ == "__main__":
    key = jax.random.PRNGKey(0)
    kp, kc = jax.random.split(key)

    raw_params = init_sdf_params(kp)
    packed = pack_params(raw_params, use_bf16=True)

    N, P = 2, 64                                             # M = 128 query points
    coords = jax.random.uniform(kc, (N, P, DIM), jnp.float32, -1.0, 1.0)

    result = sdf_forward(coords, packed)
    sdf = jax.block_until_ready(result.sdf)
    assert sdf.shape == (N, P, OUT_DIM)

    ref = jax.block_until_ready(sdf_forward_ref(coords, raw_params))
    err = float(jnp.max(jnp.abs(sdf - ref)))
    assert err < 2e-2, f"max abs error vs f32 reference: {err}"

    print("KERNEL_OK")
</pallas_src>

<mosaic_0001>
module attributes {stable_mosaic.version = 11 : i64} {
  func.func @sdf_kernel(%arg0: i32, %arg1: memref<64x39xf32, #tpu.memory_space<vmem>>, %arg2: memref<39x512xbf16, #tpu.memory_space<vmem>>, %arg3: memref<1x512xf32, #tpu.memory_space<vmem>>, %arg4: memref<7x512x512xbf16, #tpu.memory_space<vmem>>, %arg5: memref<7x1x512xf32, #tpu.memory_space<vmem>>, %arg6: memref<39x512xbf16, #tpu.memory_space<vmem>>, %arg7: memref<512x1xf32, #tpu.memory_space<vmem>>, %arg8: memref<1x1xf32, #tpu.memory_space<vmem>>, %arg9: memref<64x1xf32, #tpu.memory_space<vmem>>) attributes {dimension_semantics = [#tpu.dimension_semantics<parallel>], iteration_bounds = array<i64: 2>, scalar_prefetch = 0 : i64, scratch_operands = 0 : i64, tpu.core_type = #tpu.core_type<tc>, window_params = [{transform_indices = @transform_0, window_bounds = array<i64: 64, 39>}, {pipeline_mode = #tpu.pipeline_mode<synchronous>, transform_indices = @transform_1, window_bounds = array<i64: 39, 512>}, {pipeline_mode = #tpu.pipeline_mode<synchronous>, transform_indices = @transform_2, window_bounds = array<i64: 1, 512>}, {pipeline_mode = #tpu.pipeline_mode<synchronous>, transform_indices = @transform_3, window_bounds = array<i64: 7, 512, 512>}, {pipeline_mode = #tpu.pipeline_mode<synchronous>, transform_indices = @transform_4, window_bounds = array<i64: 7, 1, 512>}, {pipeline_mode = #tpu.pipeline_mode<synchronous>, transform_indices = @transform_5, window_bounds = array<i64: 39, 512>}, {pipeline_mode = #tpu.pipeline_mode<synchronous>, transform_indices = @transform_6, window_bounds = array<i64: 512, 1>}, {pipeline_mode = #tpu.pipeline_mode<synchronous>, transform_indices = @transform_7, window_bounds = array<i64: 1, 1>}, {transform_indices = @transform_8, window_bounds = array<i64: 64, 1>}]} {
    %c0 = arith.constant 0 : index
    %c0_0 = arith.constant 0 : index
    %0 = vector.load %arg1[%c0, %c0_0] : memref<64x39xf32, #tpu.memory_space<vmem>>, vector<64x39xf32>
    %1 = arith.truncf %0 : vector<64x39xf32> to vector<64x39xbf16>
    %c0_1 = arith.constant 0 : index
    %c0_2 = arith.constant 0 : index
    %2 = vector.load %arg2[%c0_1, %c0_2] : memref<39x512xbf16, #tpu.memory_space<vmem>>, vector<39x512xbf16>
    %cst = arith.constant dense<0.000000e+00> : vector<64x512xf32>
    %3 = tpu.matmul %1, %2, %cst {dimension_numbers = #tpu.dot_dimension_numbers<[1], [0], [0], [1], [0, 0, 1, 1], [], []>} : vector<64x39xbf16>, vector<39x512xbf16>, vector<64x512xf32> -> vector<64x512xf32>
    %c0_3 = arith.constant 0 : index
    %c0_4 = arith.constant 0 : index
    %4 = vector.load %arg3[%c0_3, %c0_4] : memref<1x512xf32, #tpu.memory_space<vmem>>, vector<1x512xf32>
    %5 = vector.broadcast %4 : vector<1x512xf32> to vector<64x512xf32>
    %6 = arith.addf %3, %5 : vector<64x512xf32>
    %cst_5 = arith.constant 1.000000e+02 : f32
    %7 = vector.broadcast %cst_5 : f32 to vector<64x512xf32>
    %8 = arith.mulf %6, %7 : vector<64x512xf32>
    %cst_6 = arith.constant 2.000000e+01 : f32
    %9 = vector.broadcast %cst_6 : f32 to vector<64x512xf32>
    %10 = arith.cmpf ogt, %8, %9 : vector<64x512xf32>
    %cst_7 = arith.constant 2.000000e+01 : f32
    %11 = vector.broadcast %cst_7 : f32 to vector<64x512xf32>
    %12 = arith.minimumf %8, %11 : vector<64x512xf32>
    %13 = math.exp %12 : vector<64x512xf32>
    %cst_8 = arith.constant 1.000000e+00 : f32
    %14 = vector.broadcast %cst_8 : f32 to vector<64x512xf32>
    %15 = arith.addf %14, %13 : vector<64x512xf32>
    %16 = math.log %15 : vector<64x512xf32>
    %cst_9 = arith.constant 1.000000e+02 : f32
    %17 = vector.broadcast %cst_9 : f32 to vector<64x512xf32>
    %18 = arith.divf %16, %17 : vector<64x512xf32>
    %19 = arith.select %10, %6, %18 : vector<64x512xi1>, vector<64x512xf32>
    %20 = arith.truncf %19 : vector<64x512xf32> to vector<64x512xbf16>
    %c0_10 = arith.constant 0 : index
    %c0_11 = arith.constant 0 : index
    %c0_12 = arith.constant 0 : index
    %21 = vector.load %arg4[%c0_10, %c0_11, %c0_12] : memref<7x512x512xbf16, #tpu.memory_space<vmem>>, vector<1x512x512xbf16>
    %22 = vector.shape_cast %21 : vector<1x512x512xbf16> to vector<512x512xbf16>
    %cst_13 = arith.constant dense<0.000000e+00> : vector<64x512xf32>
    %23 = tpu.matmul %20, %22, %cst_13 {dimension_numbers = #tpu.dot_dimension_numbers<[1], [0], [0], [1], [0, 0, 1, 1], [], []>} : vector<64x512xbf16>, vector<512x512xbf16>, vector<64x512xf32> -> vector<64x512xf32>
    %c0_14 = arith.constant 0 : index
    %c0_15 = arith.constant 0 : index
    %c0_16 = arith.constant 0 : index
    %24 = vector.load %arg5[%c0_14, %c0_15, %c0_16] : memref<7x1x512xf32, #tpu.memory_space<vmem>>, vector<1x1x512xf32>
    %25 = vector.shape_cast %24 : vector<1x1x512xf32> to vector<1x512xf32>
    %26 = vector.broadcast %25 : vector<1x512xf32> to vector<64x512xf32>
    %27 = arith.addf %23, %26 : vector<64x512xf32>
    %cst_17 = arith.constant 1.000000e+02 : f32
    %28 = vector.broadcast %cst_17 : f32 to vector<64x512xf32>
    %29 = arith.mulf %27, %28 : vector<64x512xf32>
    %cst_18 = arith.constant 2.000000e+01 : f32
    %30 = vector.broadcast %cst_18 : f32 to vector<64x512xf32>
    %31 = arith.cmpf ogt, %29, %30 : vector<64x512xf32>
    %cst_19 = arith.constant 2.000000e+01 : f32
    %32 = vector.broadcast %cst_19 : f32 to vector<64x512xf32>
    %33 = arith.minimumf %29, %32 : vector<64x512xf32>
    %34 = math.exp %33 : vector<64x512xf32>
    %cst_20 = arith.constant 1.000000e+00 : f32
    %35 = vector.broadcast %cst_20 : f32 to vector<64x512xf32>
    %36 = arith.addf %35, %34 : vector<64x512xf32>
    %37 = math.log %36 : vector<64x512xf32>
    %cst_21 = arith.constant 1.000000e+02 : f32
    %38 = vector.broadcast %cst_21 : f32 to vector<64x512xf32>
    %39 = arith.divf %37, %38 : vector<64x512xf32>
    %40 = arith.select %31, %27, %39 : vector<64x512xi1>, vector<64x512xf32>
    %41 = arith.truncf %40 : vector<64x512xf32> to vector<64x512xbf16>
    %c1 = arith.constant 1 : index
    %c0_22 = arith.constant 0 : index
    %c0_23 = arith.constant 0 : index
    %42 = vector.load %arg4[%c1, %c0_22, %c0_23] : memref<7x512x512xbf16, #tpu.memory_space<vmem>>, vector<1x512x512xbf16>
    %43 = vector.shape_cast %42 : vector<1x512x512xbf16> to vector<512x512xbf16>
    %cst_24 = arith.constant dense<0.000000e+00> : vector<64x512xf32>
    %44 = tpu.matmul %41, %43, %cst_24 {dimension_numbers = #tpu.dot_dimension_numbers<[1], [0], [0], [1], [0, 0, 1, 1], [], []>} : vector<64x512xbf16>, vector<512x512xbf16>, vector<64x512xf32> -> vector<64x512xf32>
    %c1_25 = arith.constant 1 : index
    %c0_26 = arith.constant 0 : index
    %c0_27 = arith.constant 0 : index
    %45 = vector.load %arg5[%c1_25, %c0_26, %c0_27] : memref<7x1x512xf32, #tpu.memory_space<vmem>>, vector<1x1x512xf32>
    %46 = vector.shape_cast %45 : vector<1x1x512xf32> to vector<1x512xf32>
    %47 = vector.broadcast %46 : vector<1x512xf32> to vector<64x512xf32>
    %48 = arith.addf %44, %47 : vector<64x512xf32>
    %cst_28 = arith.constant 1.000000e+02 : f32
    %49 = vector.broadcast %cst_28 : f32 to vector<64x512xf32>
    %50 = arith.mulf %48, %49 : vector<64x512xf32>
    %cst_29 = arith.constant 2.000000e+01 : f32
    %51 = vector.broadcast %cst_29 : f32 to vector<64x512xf32>
    %52 = arith.cmpf ogt, %50, %51 : vector<64x512xf32>
    %cst_30 = arith.constant 2.000000e+01 : f32
    %53 = vector.broadcast %cst_30 : f32 to vector<64x512xf32>
    %54 = arith.minimumf %50, %53 : vector<64x512xf32>
    %55 = math.exp %54 : vector<64x512xf32>
    %cst_31 = arith.constant 1.000000e+00 : f32
    %56 = vector.broadcast %cst_31 : f32 to vector<64x512xf32>
    %57 = arith.addf %56, %55 : vector<64x512xf32>
    %58 = math.log %57 : vector<64x512xf32>
    %cst_32 = arith.constant 1.000000e+02 : f32
    %59 = vector.broadcast %cst_32 : f32 to vector<64x512xf32>
    %60 = arith.divf %58, %59 : vector<64x512xf32>
    %61 = arith.select %52, %48, %60 : vector<64x512xi1>, vector<64x512xf32>
    %62 = arith.truncf %61 : vector<64x512xf32> to vector<64x512xbf16>
    %c2 = arith.constant 2 : index
    %c0_33 = arith.constant 0 : index
    %c0_34 = arith.constant 0 : index
    %63 = vector.load %arg4[%c2, %c0_33, %c0_34] : memref<7x512x512xbf16, #tpu.memory_space<vmem>>, vector<1x512x512xbf16>
    %64 = vector.shape_cast %63 : vector<1x512x512xbf16> to vector<512x512xbf16>
    %cst_35 = arith.constant dense<0.000000e+00> : vector<64x512xf32>
    %65 = tpu.matmul %62, %64, %cst_35 {dimension_numbers = #tpu.dot_dimension_numbers<[1], [0], [0], [1], [0, 0, 1, 1], [], []>} : vector<64x512xbf16>, vector<512x512xbf16>, vector<64x512xf32> -> vector<64x512xf32>
    %c2_36 = arith.constant 2 : index
    %c0_37 = arith.constant 0 : index
    %c0_38 = arith.constant 0 : index
    %66 = vector.load %arg5[%c2_36, %c0_37, %c0_38] : memref<7x1x512xf32, #tpu.memory_space<vmem>>, vector<1x1x512xf32>
    %67 = vector.shape_cast %66 : vector<1x1x512xf32> to vector<1x512xf32>
    %68 = vector.broadcast %67 : vector<1x512xf32> to vector<64x512xf32>
    %69 = arith.addf %65, %68 : vector<64x512xf32>
    %cst_39 = arith.constant 1.000000e+02 : f32
    %70 = vector.broadcast %cst_39 : f32 to vector<64x512xf32>
    %71 = arith.mulf %69, %70 : vector<64x512xf32>
    %cst_40 = arith.constant 2.000000e+01 : f32
    %72 = vector.broadcast %cst_40 : f32 to vector<64x512xf32>
    %73 = arith.cmpf ogt, %71, %72 : vector<64x512xf32>
    %cst_41 = arith.constant 2.000000e+01 : f32
    %74 = vector.broadcast %cst_41 : f32 to vector<64x512xf32>
    %75 = arith.minimumf %71, %74 : vector<64x512xf32>
    %76 = math.exp %75 : vector<64x512xf32>
    %cst_42 = arith.constant 1.000000e+00 : f32
    %77 = vector.broadcast %cst_42 : f32 to vector<64x512xf32>
    %78 = arith.addf %77, %76 : vector<64x512xf32>
    %79 = math.log %78 : vector<64x512xf32>
    %cst_43 = arith.constant 1.000000e+02 : f32
    %80 = vector.broadcast %cst_43 : f32 to vector<64x512xf32>
    %81 = arith.divf %79, %80 : vector<64x512xf32>
    %82 = arith.select %73, %69, %81 : vector<64x512xi1>, vector<64x512xf32>
    %83 = arith.truncf %82 : vector<64x512xf32> to vector<64x512xbf16>
    %c3 = arith.constant 3 : index
    %c0_44 = arith.constant 0 : index
    %c0_45 = arith.constant 0 : index
    %84 = vector.load %arg4[%c3, %c0_44, %c0_45] : memref<7x512x512xbf16, #tpu.memory_space<vmem>>, vector<1x512x512xbf16>
    %85 = vector.shape_cast %84 : vector<1x512x512xbf16> to vector<512x512xbf16>
    %cst_46 = arith.constant dense<0.000000e+00> : vector<64x512xf32>
    %86 = tpu.matmul %83, %85, %cst_46 {dimension_numbers = #tpu.dot_dimension_numbers<[1], [0], [0], [1], [0, 0, 1, 1], [], []>} : vector<64x512xbf16>, vector<512x512xbf16>, vector<64x512xf32> -> vector<64x512xf32>
    %c3_47 = arith.constant 3 : index
    %c0_48 = arith.constant 0 : index
    %c0_49 = arith.constant 0 : index
    %87 = vector.load %arg5[%c3_47, %c0_48, %c0_49] : memref<7x1x512xf32, #tpu.memory_space<vmem>>, vector<1x1x512xf32>
    %88 = vector.shape_cast %87 : vector<1x1x512xf32> to vector<1x512xf32>
    %89 = vector.broadcast %88 : vector<1x512xf32> to vector<64x512xf32>
    %90 = arith.addf %86, %89 : vector<64x512xf32>
    %c0_50 = arith.constant 0 : index
    %c0_51 = arith.constant 0 : index
    %91 = vector.load %arg6[%c0_50, %c0_51] : memref<39x512xbf16, #tpu.memory_space<vmem>>, vector<39x512xbf16>
    %cst_52 = arith.constant dense<0.000000e+00> : vector<64x512xf32>
    %92 = tpu.matmul %1, %91, %cst_52 {dimension_numbers = #tpu.dot_dimension_numbers<[1], [0], [0], [1], [0, 0, 1, 1], [], []>} : vector<64x39xbf16>, vector<39x512xbf16>, vector<64x512xf32> -> vector<64x512xf32>
    %93 = arith.addf %90, %92 : vector<64x512xf32>
    %cst_53 = arith.constant 1.000000e+02 : f32
    %94 = vector.broadcast %cst_53 : f32 to vector<64x512xf32>
    %95 = arith.mulf %93, %94 : vector<64x512xf32>
    %cst_54 = arith.constant 2.000000e+01 : f32
    %96 = vector.broadcast %cst_54 : f32 to vector<64x512xf32>
    %97 = arith.cmpf ogt, %95, %96 : vector<64x512xf32>
    %cst_55 = arith.constant 2.000000e+01 : f32
    %98 = vector.broadcast %cst_55 : f32 to vector<64x512xf32>
    %99 = arith.minimumf %95, %98 : vector<64x512xf32>
    %100 = math.exp %99 : vector<64x512xf32>
    %cst_56 = arith.constant 1.000000e+00 : f32
    %101 = vector.broadcast %cst_56 : f32 to vector<64x512xf32>
    %102 = arith.addf %101, %100 : vector<64x512xf32>
    %103 = math.log %102 : vector<64x512xf32>
    %cst_57 = arith.constant 1.000000e+02 : f32
    %104 = vector.broadcast %cst_57 : f32 to vector<64x512xf32>
    %105 = arith.divf %103, %104 : vector<64x512xf32>
    %106 = arith.select %97, %93, %105 : vector<64x512xi1>, vector<64x512xf32>
    %107 = arith.truncf %106 : vector<64x512xf32> to vector<64x512xbf16>
    %c4 = arith.constant 4 : index
    %c0_58 = arith.constant 0 : index
    %c0_59 = arith.constant 0 : index
    %108 = vector.load %arg4[%c4, %c0_58, %c0_59] : memref<7x512x512xbf16, #tpu.memory_space<vmem>>, vector<1x512x512xbf16>
    %109 = vector.shape_cast %108 : vector<1x512x512xbf16> to vector<512x512xbf16>
    %cst_60 = arith.constant dense<0.000000e+00> : vector<64x512xf32>
    %110 = tpu.matmul %107, %109, %cst_60 {dimension_numbers = #tpu.dot_dimension_numbers<[1], [0], [0], [1], [0, 0, 1, 1], [], []>} : vector<64x512xbf16>, vector<512x512xbf16>, vector<64x512xf32> -> vector<64x512xf32>
    %c4_61 = arith.constant 4 : index
    %c0_62 = arith.constant 0 : index
    %c0_63 = arith.constant 0 : index
    %111 = vector.load %arg5[%c4_61, %c0_62, %c0_63] : memref<7x1x512xf32, #tpu.memory_space<vmem>>, vector<1x1x512xf32>
    %112 = vector.shape_cast %111 : vector<1x1x512xf32> to vector<1x512xf32>
    %113 = vector.broadcast %112 : vector<1x512xf32> to vector<64x512xf32>
    %114 = arith.addf %110, %113 : vector<64x512xf32>
    %cst_64 = arith.constant 1.000000e+02 : f32
    %115 = vector.broadcast %cst_64 : f32 to vector<64x512xf32>
    %116 = arith.mulf %114, %115 : vector<64x512xf32>
    %cst_65 = arith.constant 2.000000e+01 : f32
    %117 = vector.broadcast %cst_65 : f32 to vector<64x512xf32>
    %118 = arith.cmpf ogt, %116, %117 : vector<64x512xf32>
    %cst_66 = arith.constant 2.000000e+01 : f32
    %119 = vector.broadcast %cst_66 : f32 to vector<64x512xf32>
    %120 = arith.minimumf %116, %119 : vector<64x512xf32>
    %121 = math.exp %120 : vector<64x512xf32>
    %cst_67 = arith.constant 1.000000e+00 : f32
    %122 = vector.broadcast %cst_67 : f32 to vector<64x512xf32>
    %123 = arith.addf %122, %121 : vector<64x512xf32>
    %124 = math.log %123 : vector<64x512xf32>
    %cst_68 = arith.constant 1.000000e+02 : f32
    %125 = vector.broadcast %cst_68 : f32 to vector<64x512xf32>
    %126 = arith.divf %124, %125 : vector<64x512xf32>
    %127 = arith.select %118, %114, %126 : vector<64x512xi1>, vector<64x512xf32>
    %128 = arith.truncf %127 : vector<64x512xf32> to vector<64x512xbf16>
    %c5 = arith.constant 5 : index
    %c0_69 = arith.constant 0 : index
    %c0_70 = arith.constant 0 : index
    %129 = vector.load %arg4[%c5, %c0_69, %c0_70] : memref<7x512x512xbf16, #tpu.memory_space<vmem>>, vector<1x512x512xbf16>
    %130 = vector.shape_cast %129 : vector<1x512x512xbf16> to vector<512x512xbf16>
    %cst_71 = arith.constant dense<0.000000e+00> : vector<64x512xf32>
    %131 = tpu.matmul %128, %130, %cst_71 {dimension_numbers = #tpu.dot_dimension_numbers<[1], [0], [0], [1], [0, 0, 1, 1], [], []>} : vector<64x512xbf16>, vector<512x512xbf16>, vector<64x512xf32> -> vector<64x512xf32>
    %c5_72 = arith.constant 5 : index
    %c0_73 = arith.constant 0 : index
    %c0_74 = arith.constant 0 : index
    %132 = vector.load %arg5[%c5_72, %c0_73, %c0_74] : memref<7x1x512xf32, #tpu.memory_space<vmem>>, vector<1x1x512xf32>
    %133 = vector.shape_cast %132 : vector<1x1x512xf32> to vector<1x512xf32>
    %134 = vector.broadcast %133 : vector<1x512xf32> to vector<64x512xf32>
    %135 = arith.addf %131, %134 : vector<64x512xf32>
    %cst_75 = arith.constant 1.000000e+02 : f32
    %136 = vector.broadcast %cst_75 : f32 to vector<64x512xf32>
    %137 = arith.mulf %135, %136 : vector<64x512xf32>
    %cst_76 = arith.constant 2.000000e+01 : f32
    %138 = vector.broadcast %cst_76 : f32 to vector<64x512xf32>
    %139 = arith.cmpf ogt, %137, %138 : vector<64x512xf32>
    %cst_77 = arith.constant 2.000000e+01 : f32
    %140 = vector.broadcast %cst_77 : f32 to vector<64x512xf32>
    %141 = arith.minimumf %137, %140 : vector<64x512xf32>
    %142 = math.exp %141 : vector<64x512xf32>
    %cst_78 = arith.constant 1.000000e+00 : f32
    %143 = vector.broadcast %cst_78 : f32 to vector<64x512xf32>
    %144 = arith.addf %143, %142 : vector<64x512xf32>
    %145 = math.log %144 : vector<64x512xf32>
    %cst_79 = arith.constant 1.000000e+02 : f32
    %146 = vector.broadcast %cst_79 : f32 to vector<64x512xf32>
    %147 = arith.divf %145, %146 : vector<64x512xf32>
    %148 = arith.select %139, %135, %147 : vector<64x512xi1>, vector<64x512xf32>
    %149 = arith.truncf %148 : vector<64x512xf32> to vector<64x512xbf16>
    %c6 = arith.constant 6 : index
    %c0_80 = arith.constant 0 : index
    %c0_81 = arith.constant 0 : index
    %150 = vector.load %arg4[%c6, %c0_80, %c0_81] : memref<7x512x512xbf16, #tpu.memory_space<vmem>>, vector<1x512x512xbf16>
    %151 = vector.shape_cast %150 : vector<1x512x512xbf16> to vector<512x512xbf16>
    %cst_82 = arith.constant dense<0.000000e+00> : vector<64x512xf32>
    %152 = tpu.matmul %149, %151, %cst_82 {dimension_numbers = #tpu.dot_dimension_numbers<[1], [0], [0], [1], [0, 0, 1, 1], [], []>} : vector<64x512xbf16>, vector<512x512xbf16>, vector<64x512xf32> -> vector<64x512xf32>
    %c6_83 = arith.constant 6 : index
    %c0_84 = arith.constant 0 : index
    %c0_85 = arith.constant 0 : index
    %153 = vector.load %arg5[%c6_83, %c0_84, %c0_85] : memref<7x1x512xf32, #tpu.memory_space<vmem>>, vector<1x1x512xf32>
    %154 = vector.shape_cast %153 : vector<1x1x512xf32> to vector<1x512xf32>
    %155 = vector.broadcast %154 : vector<1x512xf32> to vector<64x512xf32>
    %156 = arith.addf %152, %155 : vector<64x512xf32>
    %cst_86 = arith.constant 1.000000e+02 : f32
    %157 = vector.broadcast %cst_86 : f32 to vector<64x512xf32>
    %158 = arith.mulf %156, %157 : vector<64x512xf32>
    %cst_87 = arith.constant 2.000000e+01 : f32
    %159 = vector.broadcast %cst_87 : f32 to vector<64x512xf32>
    %160 = arith.cmpf ogt, %158, %159 : vector<64x512xf32>
    %cst_88 = arith.constant 2.000000e+01 : f32
    %161 = vector.broadcast %cst_88 : f32 to vector<64x512xf32>
    %162 = arith.minimumf %158, %161 : vector<64x512xf32>
    %163 = math.exp %162 : vector<64x512xf32>
    %cst_89 = arith.constant 1.000000e+00 : f32
    %164 = vector.broadcast %cst_89 : f32 to vector<64x512xf32>
    %165 = arith.addf %164, %163 : vector<64x512xf32>
    %166 = math.log %165 : vector<64x512xf32>
    %cst_90 = arith.constant 1.000000e+02 : f32
    %167 = vector.broadcast %cst_90 : f32 to vector<64x512xf32>
    %168 = arith.divf %166, %167 : vector<64x512xf32>
    %169 = arith.select %160, %156, %168 : vector<64x512xi1>, vector<64x512xf32>
    %c0_91 = arith.constant 0 : index
    %c0_92 = arith.constant 0 : index
    %170 = vector.load %arg7[%c0_91, %c0_92] : memref<512x1xf32, #tpu.memory_space<vmem>>, vector<512x1xf32>
    %cst_93 = arith.constant dense<0.000000e+00> : vector<64x1xf32>
    %171 = tpu.matmul %169, %170, %cst_93 {dimension_numbers = #tpu.dot_dimension_numbers<[1], [0], [0], [1], [0, 0, 1, 1], [], []>} : vector<64x512xf32>, vector<512x1xf32>, vector<64x1xf32> -> vector<64x1xf32>
    %c0_94 = arith.constant 0 : index
    %c0_95 = arith.constant 0 : index
    %172 = vector.load %arg8[%c0_94, %c0_95] : memref<1x1xf32, #tpu.memory_space<vmem>>, vector<1x1xf32>
    %173 = vector.broadcast %172 : vector<1x1xf32> to vector<64x1xf32>
    %174 = arith.addf %171, %173 : vector<64x1xf32>
    %175 = math.tanh %174 : vector<64x1xf32>
    %c0_96 = arith.constant 0 : index
    %c0_97 = arith.constant 0 : index
    %176 = vector.load %arg9[%c0_96, %c0_97] : memref<64x1xf32, #tpu.memory_space<vmem>>, vector<64x1xf32>
    tpu.vector_store %arg9[%c0_96, %c0_97], %175 {strides = array<i32>} : memref<64x1xf32, #tpu.memory_space<vmem>>, vector<64x1xf32>,
    return
  }
  func.func @transform_0(%arg0: i32) -> (i32, i32) {
    %c0_i32 = arith.constant 0 : i32
    %c0_i32_0 = arith.constant 0 : i32
    return %arg0, %c0_i32 : i32, i32
  }
  func.func @transform_1(%arg0: i32) -> (i32, i32) {
    %c0_i32 = arith.constant 0 : i32
    %c0_i32_0 = arith.constant 0 : i32
    %c0_i32_1 = arith.constant 0 : i32
    return %c0_i32, %c0_i32_0 : i32, i32
  }
  func.func @transform_2(%arg0: i32) -> (i32, i32) {
    %c0_i32 = arith.constant 0 : i32
    %c0_i32_0 = arith.constant 0 : i32
    %c0_i32_1 = arith.constant 0 : i32
    return %c0_i32, %c0_i32_0 : i32, i32
  }
  func.func @transform_3(%arg0: i32) -> (i32, i32, i32) {
    %c0_i32 = arith.constant 0 : i32
    %c0_i32_0 = arith.constant 0 : i32
    %c0_i32_1 = arith.constant 0 : i32
    %c0_i32_2 = arith.constant 0 : i32
    return %c0_i32, %c0_i32_0, %c0_i32_1 : i32, i32, i32
  }
  func.func @transform_4(%arg0: i32) -> (i32, i32, i32) {
    %c0_i32 = arith.constant 0 : i32
    %c0_i32_0 = arith.constant 0 : i32
    %c0_i32_1 = arith.constant 0 : i32
    %c0_i32_2 = arith.constant 0 : i32
    return %c0_i32, %c0_i32_0, %c0_i32_1 : i32, i32, i32
  }
  func.func @transform_5(%arg0: i32) -> (i32, i32) {
    %c0_i32 = arith.constant 0 : i32
    %c0_i32_0 = arith.constant 0 : i32
    %c0_i32_1 = arith.constant 0 : i32
    return %c0_i32, %c0_i32_0 : i32, i32
  }
  func.func @transform_6(%arg0: i32) -> (i32, i32) {
    %c0_i32 = arith.constant 0 : i32
    %c0_i32_0 = arith.constant 0 : i32
    %c0_i32_1 = arith.constant 0 : i32
    return %c0_i32, %c0_i32_0 : i32, i32
  }
  func.func @transform_7(%arg0: i32) -> (i32, i32) {
    %c0_i32 = arith.constant 0 : i32
    %c0_i32_0 = arith.constant 0 : i32
    %c0_i32_1 = arith.constant 0 : i32
    return %c0_i32, %c0_i32_0 : i32, i32
  }
  func.func @transform_8(%arg0: i32) -> (i32, i32) {
    %c0_i32 = arith.constant 0 : i32
    %c0_i32_0 = arith.constant 0 : i32
    return %arg0, %c0_i32 : i32, i32
  }
}

</mosaic_0001>

<bundles_post_ra>
// kernel: tpu_custom_call.1
= control target key start
LH: loop header
LB: loop body
LE: loop exit
PB: predicated region body
PF: predicated region fallthrough
CT: control target
= control target key end

     0   :  { %s19118_s0 = inlined_call_operand.vmem [shape: f32[128,39], index: 0, kind: input, shape index: {}]   ;;  %s19119_s1 = inlined_call_operand.hbm [shape: bf16[39,512], index: 1, kind: input, shape index: {}]   ;;  %s19120_s2 = inlined_call_operand.hbm [shape: f32[1,512], index: 2, kind: input, shape index: {}]   ;;  %s19121_s3 = inlined_call_operand.hbm [shape: bf16[7,512,512], index: 3, kind: input, shape index: {}]   ;;  %s19122_s4 = inlined_call_operand.hbm [shape: f32[7,1,512], index: 4, kind: input, shape index: {}]   ;;  %s19123_s5 = inlined_call_operand.hbm [shape: bf16[39,512], index: 5, kind: input, shape index: {}]   ;;  %s19124_s6 = inlined_call_operand.vmem [shape: f32[512,1], index: 6, kind: input, shape index: {}]   ;;  %s19125_s7 = inlined_call_operand.<no memory space> [shape: f32[1,1], index: 7, kind: input, shape index: {}]   ;;  %s19126_s8 = inlined_call_operand.vmem [shape: f32[128,1], index: 8, kind: output, shape index: {}]  }
   0x1   :  { %v13_v0 = vstv %s19125_s7 }
   0x2   :  { %14 = vst [vmem:[#allocation2] sm:$0x1] %v13_v0 }
   0x3   :  { %15 = vsyncpa [#allocation4], 0 }
   0x4   :  { %16 = vsyncpa [#allocation6], 0 }
   0x5   :  { %17 = vsyncpa [#allocation9], 0  ;;  %s15325_s29 = smov 0  }
   0x6 LB: > { %s15266_s30 = smov [#allocation5]   ;;  %s11565_s10 = sadd.s32 4294967295, %s15264_s29   ;;  %s15264_s29 = sphi %s15325_s29, %s23_s29  }
   0x7   : > { %s253_s9 = sshll.u32 %s15266_s30, 4  ;;  %p11567_p0 = scmp.ge.s32.totalorder %s15264_s29, 1  ;;  %s254_s9 = int_to_ptr.vmem [resolvable:$true] %s253_s9 }
   0x8   : > { %p227_p1 = scmp.lt.s32.totalorder %s15264_s29, 3  ;;  %p15335_p2 = scmp.eq.s32.totalorder %s11565_s10, 0 }
   0x9   : > { %s15267_s12 = smov [#allocation8]   ;;  %s15268_s15 = smov [#allocation3]  }
   0xa   : > { %p15339_p3 = pnand %p11567_p0, %p227_p1  ;;  %s276_s13 = sshll.u32 %s15267_s12, 4  ;;  %s15345_s13 = int_to_ptr.vmem [resolvable:$true] %s276_s13 }
   0xb   : > { %s239_s16 = sshll.u32 %s15268_s15, 4  ;;  %s15127_s18 = scalar_lea.vmem %s254_s9, 64  ;;  %s15353_s16 = int_to_ptr.vmem [resolvable:$true] %s239_s16 }
   0xc   : > { %p12655_p4 = pneg %p15339_p3  ;;  %p15128_p7 = scmp.ne.s32.totalorder %s254_s9, %s15127_s18 }
   0xd   : > { %p15135_p10 = scmp.lt.s32.totalorder %s254_s9, %s254_s9  ;;  %p15136_p11 = scmp.lt.s32.totalorder %s15127_s18, %s15127_s18 }
   0xe   : > { %p15349_p5 = pnand %p15335_p2, %p12655_p4 }
   0xf   : > { %p15137_p12 = por %p15136_p11, %p15135_p10 }
  0x10   : > { %p15357_p6 = pneg %p15349_p5 }
  0x12   : > { %p15130_p8 = pnand %p15128_p7, %p15357_p6 }
  0x14   : > { %p15131_p9 = pneg %p15130_p8 }
  0x16   : > { %p15138_p13 = pnand %p15137_p12, %p15131_p9 }
  0x18   : > { %15141 = shalt.err (!%p15138_p13)
}
  0x19   : > { %12661 = dma.hbm_to_vmem [thread:$0]  (!%p15349_p5), %s19120_s2, 64, %s254_s9, [#allocation6]  }
  0x1a   : > { %s15153_s21 = scalar_lea.vmem %s15345_s13, 448  ;;  %p15161_p7 = scmp.lt.s32.totalorder %s15345_s13, %s15345_s13 }
  0x1b   : > { %p15154_p0 = scmp.ne.s32.totalorder %s15345_s13, %s15153_s21  ;;  %p15162_p8 = scmp.lt.s32.totalorder %s15153_s21, %s15153_s21 }
  0x1d   : > { %p15156_p1 = pnand %p15154_p0, %p15357_p6  ;;  %p15163_p9 = por %p15162_p8, %p15161_p7 }
  0x1f   : > { %p15157_p4 = pneg %p15156_p1 }
  0x21   : > { %p15164_p10 = pnand %p15163_p9, %p15157_p4 }
  0x23   : > { %15167 = shalt.err (!%p15164_p10)
}
  0x24   : > { %s15269_s22 = smov 64   ;;  %s15270_s23 = smov 4  }
  0x25   : > { %12667 = dma.hbm_to_vmem [thread:$0]  (!%p15349_p5), %s19122_s4, 448, %s15345_s13, [#allocation9], %s15269_s22, %s15269_s22, %s15270_s23  }
  0x26   : > { %s15179_s26 = scalar_lea.vmem %s15353_s16, 1280  ;;  %p15187_p0 = scmp.lt.s32.totalorder %s15353_s16, %s15353_s16 }
  0x27   : > { %p15180_p11 = scmp.ne.s32.totalorder %s15353_s16, %s15179_s26  ;;  %p15188_p1 = scmp.lt.s32.totalorder %s15179_s26, %s15179_s26 }
  0x29   : > { %p15182_p12 = pnand %p15180_p11, %p15357_p6  ;;  %p15189_p4 = por %p15188_p1, %p15187_p0 }
  0x2b   : > { %p15183_p13 = pneg %p15182_p12 }
  0x2d   : > { %p15190_p7 = pnand %p15189_p4, %p15183_p13 }
  0x2f   : > { %15193 = shalt.err (!%p15190_p7)
}
  0x30   : > { %s15271_s27 = smov 256   ;;  %s15272_s28 = smov 16  }
  0x31   : > { %12658 = dma.hbm_to_vmem [thread:$0]  (!%p15349_p5), %s19119_s1, 1280, %s15353_s16, [#allocation4], %s15271_s27, %s15271_s27, %s15272_s28  }
  0x32   : > { %s15273_s12 = smov [#allocation7]   ;;  %s15274_s15 = smov [#allocation10]  }
  0x33   : > { %s263_s13 = sshll.u32 %s15273_s12, 4  ;;  %s289_s18 = sshll.u32 %s15274_s15, 4  ;;  %s264_s13 = int_to_ptr.vmem [resolvable:$true] %s263_s13  ;;  %s290_s18 = int_to_ptr.vmem [resolvable:$true] %s289_s18 }
  0x34   : > { %s15205_s19 = scalar_lea.vmem %s264_s13, 114688  ;;  %p15213_p11 = scmp.lt.s32.totalorder %s264_s13, %s264_s13 }
  0x35   : > { %p15206_p8 = scmp.ne.s32.totalorder %s264_s13, %s15205_s19  ;;  %p15214_p12 = scmp.lt.s32.totalorder %s15205_s19, %s15205_s19 }
  0x37   : > { %p15208_p9 = pnand %p15206_p8, %p15357_p6  ;;  %p15215_p13 = por %p15214_p12, %p15213_p11 }
  0x39   : > { %p15209_p10 = pneg %p15208_p9 }
  0x3b   : > { %p15216_p0 = pnand %p15215_p13, %p15209_p10 }
  0x3d   : > { %15219 = shalt.err (!%p15216_p0)
}
  0x3e   : > { %12664 = dma.hbm_to_vmem [thread:$0]  (!%p15349_p5), %s19121_s3, 114688, %s264_s13, [#allocation6], %s15271_s27, %s15271_s27, %s15272_s28  }
  0x3f   : > { %s15231_s21 = scalar_lea.vmem %s290_s18, 1280  ;;  %p15239_p8 = scmp.lt.s32.totalorder %s290_s18, %s290_s18 }
  0x40   : > { %p15232_p1 = scmp.ne.s32.totalorder %s290_s18, %s15231_s21  ;;  %p15240_p9 = scmp.lt.s32.totalorder %s15231_s21, %s15231_s21 }
  0x42   : > { %p15234_p4 = pnand %p15232_p1, %p15357_p6  ;;  %p15241_p11 = por %p15240_p9, %p15239_p8 }
  0x44   : > { %p15235_p7 = pneg %p15234_p4 }
  0x46   : > { %p15242_p10 = pnand %p15241_p11, %p15235_p7 }
  0x48   : > { %15245 = shalt.err (!%p15242_p10)
}
  0x49   : > { %12670 = dma.hbm_to_vmem [thread:$0]  (!%p15349_p5), %s19123_s5, 1280, %s290_s18, [#allocation9], %s15271_s27, %s15271_s27, %s15272_s28  }
  0x4a   : > { %320 = sbr.rel (%p15339_p3) target bundleno = 2810 (0xafa), region = 52 }
  0x4f   : > { %15251 = dma.done.wait (%p15335_p2), [#allocation4], 1280  }
  0x50   : > { %15253 = vsyncadd (%p15335_p2), [#allocation4], 4294966016 }
  0x51   : > { %15255 = dma.done.wait (%p15335_p2), [#allocation6], 114752  }
  0x52   : > { %15257 = vsyncadd (%p15335_p2), [#allocation6], 4294852544 }
  0x53   : > { %15259 = dma.done.wait (%p15335_p2), [#allocation9], 1728  }
  0x54   : > { %15261 = vsyncadd (%p15335_p2), [#allocation9], 4294965568  ;;  %vm490_vm0 = vcmask 1042432   ;;  %v19127_v1 = vmov 0   ;;  %s11580_s11 = sshll.u32 %s11565_s10, 3  ;;  %vm491_vm1 = vcmask 1043456  }
  0x55   : > { %538 = vmatprep.mubr.bf16.mxu0 %v19127_v1  ;;  %611 = vmatprep.mubr.bf16.mxu1 %v19127_v1  ;;  %p371_p3 = scmp.lt.s32.totalorder %s11580_s11, 15  ;;  %v15276_v2 = vmov 65535   ;;  %v403_v4 = vld [vmem:[#allocation3 + $0x40] sm:$0xff]  ;;  %v404_v6 = vld [vmem:[#allocation3 + $0x48] sm:$0xff]  ;;  %vm477_vm2 = vcmask 318464  }
  0x56   : > { %v492_v3 = vsel %vm490_vm0, 4294967295, %v15276_v2  ;;  %v11593_v7 = vcombine.high %v403_v4, %v403_v4  ;;  %v11595_v8 = vcombine.high %v404_v6, %v404_v6  ;;  %v11592_v9 = vcombine.low %v403_v4, %v403_v4  ;;  %v12704_v11 = vld [vmem:[#allocation3 + $0x24] ss:$16 sps:$4 sm:$0xff]   ;;  %v12706_v16 = vld [vmem:[#allocation3 + $0x2c] ss:$16 sps:$4 sm:$0xff]  }
  0x57   : > { %s19278_s11 = smov (!%p371_p3, %s11580_s11), 15  ;;  %v15435_v5 = vsel %vm491_vm1, %v492_v3, 0  ;;  %v11594_v10 = vcombine.low %v404_v6, %v404_v6  ;;  %v12708_v17 = vld [vmem:[#allocation3 + $0x20] ss:$16 sps:$4 sm:$0xff]   ;;  %v12709_v18 = vld [vmem:[#allocation3 + $0x28] ss:$16 sps:$4 sm:$0xff]  }
  0x58   : > { %19183 = vst [vmem:[#allocation14_spill] sm:$0xff] %v15435_v5  ;;  %v498_v12 = vand.u32 %v11593_v7, %v15435_v5  ;;  %v504_v13 = vand.u32 %v11595_v8, %v15435_v5  ;;  %v495_v14 = vand.u32 %v11592_v9, %v15435_v5  ;;  %s11581_s10 = sshll.u32 %s19278_s11, 3  ;;  %v12710_v19 = vld [vmem:[#allocation3 + $0x4] ss:$16 sps:$4 sm:$0xff]   ;;  %v12712_v20 = vld [vmem:[#allocation3 + $0xc] ss:$16 sps:$4 sm:$0xff]  }
  0x59   : > { %v501_v15 = vand.u32 %v11594_v10, %v15435_v5  ;;  %s15447_s17 = scalar_lea.vmem %s19118_s0, %s11581_s10  ;;  %v12714_v21 = vld [vmem:[#allocation3] ss:$16 sps:$4 sm:$0xff]   ;;  %v12715_v22 = vld [vmem:[#allocation3 + $0x8] ss:$16 sps:$4 sm:$0xff]   ;;  %v12716_v28 = vld [vmem:[#allocation7 + $0xe0] ss:$16 sps:$4 sm:$0xff]   ;;  %s19093_s18 = scalar_lea.vmem %s19126_s8, %s11581_s10 }
  0x5a   : > { %516 = vmatprep.subr.bf16.mxu0 %v498_v12  ;;  %589 = vmatprep.subr.bf16.mxu1 %v504_v13  ;;  %v383_v23 = vld [vmem:[%s15447_s17] sm:$0xff]  ;;  %v384_v24 = vld [vmem:[%s15447_s17 + $0x8] sm:$0xff]  ;;  %v385_v30 = vld [vmem:[%s15447_s17 + $0x10] sm:$0xff] }
  0x5b   : > { %517 = vmatpush1.bf16.msra.mxu0 %v495_v14  ;;  %590 = vmatpush1.bf16.msra.mxu1 %v501_v15  ;;  %v12718_v25 = vld [vmem:[#allocation7 + $0xe4] ss:$16 sps:$4 sm:$0xff]   ;;  %v15451_v27 = vpack.c.bf16 %v384_v24, %v383_v23  ;;  %v12719_v29 = vld [vmem:[#allocation7 + $0x2e0] ss:$16 sps:$4 sm:$0xff]  }
  0x5c   : > { %518 = vmatprep.subr.bf16.mxu0 %v12704_v11  ;;  %591 = vmatprep.subr.bf16.mxu1 %v12706_v16  ;;  %v12721_v26 = vld [vmem:[#allocation7 + $0x2e4] ss:$16 sps:$4 sm:$0xff]   ;;  %v12722_v34 = vld [vmem:[#allocation7 + $0xc0] ss:$16 sps:$4 sm:$0xff]  }
  0x5d   : > { %19184 = vst [vmem:[#allocation15_spill] sm:$0xff] %v15451_v27  ;;  %v386_v31 = vld [vmem:[%s15447_s17 + $0x18] sm:$0xff]  ;;  %v387_v41 = vld [vmem:[%s15447_s17 + $0x20] sm:$0xff]  ;;  %v388_v42 = vld [vmem:[%s15447_s17 + $0x28] sm:$0xff] }
  0x5e   : > { %v12724_v32 = vld [vmem:[#allocation7 + $0xc4] ss:$16 sps:$4 sm:$0xff]   ;;  %v12725_v35 = vld [vmem:[#allocation7 + $0x2c0] ss:$16 sps:$4 sm:$0xff]   ;;  %v15461_v38 = vpack.c.bf16 %v386_v31, %v385_v30  ;;  %v15471_v43 = vpack.c.bf16 %v388_v42, %v387_v41  ;;  %v407_v41 = vlaneseq }
  0x5f   : > { %519 = vmatpush1.bf16.msra.mxu0 %v12708_v17  ;;  %592 = vmatpush1.bf16.msra.mxu1 %v12709_v18  ;;  %v12727_v33 = vld [vmem:[#allocation7 + $0x2c4] ss:$16 sps:$4 sm:$0xff]   ;;  %v12728_v39 = vld [vmem:[#allocation7 + $0xa0] ss:$16 sps:$4 sm:$0xff]  }
  0x60   : > { %520 = vmatprep.subr.bf16.mxu0 %v12710_v19  ;;  %593 = vmatprep.subr.bf16.mxu1 %v12712_v20  ;;  %v12730_v36 = vld [vmem:[#allocation7 + $0xa4] ss:$16 sps:$4 sm:$0xff]   ;;  %19185 = vst [vmem:[#allocation16_spill] sm:$0xff] %v15461_v38  ;;  %v12731_v40 = vld [vmem:[#allocation7 + $0x2a0] ss:$16 sps:$4 sm:$0xff]   ;;  %19186 = vst [vmem:[#allocation17_spill] sm:$0xff] %v15471_v43 }
  0x61   : > { %v12733_v37 = vld [vmem:[#allocation7 + $0x2a4] ss:$16 sps:$4 sm:$0xff]   ;;  %v389_v44 = vld [vmem:[%s15447_s17 + $0x30] sm:$0xff]  ;;  %v408_v42 = vshrl.u32 %v407_v41, 7 }
  0x62   : > { %v390_v45 = vld [vmem:[%s15447_s17 + $0x38] sm:$0xff] }
  0x63   : > { %521 = vmatpush1.bf16.msra.mxu0 %v12714_v21  ;;  %594 = vmatpush1.bf16.msra.mxu1 %v12715_v22  ;;  %v15481_v46 = vpack.c.bf16 %v390_v45, %v389_v44  ;;  %v12736_v47 = vld [vmem:[#allocation7 + $0x84] ss:$16 sps:$4 sm:$0xff]   ;;  %v12734_v49 = vld [vmem:[#allocation7 + $0x80] ss:$16 sps:$4 sm:$0xff]   ;;  %v405_v44 = vld [vmem:[#allocation5] sm:$0xf] }
  0x64   : > { %1779 = vmatprep.subr.bf16.mxu0 %v12718_v25  ;;  %1852 = vmatprep.subr.bf16.mxu1 %v12721_v26  ;;  %v12739_v48 = vld [vmem:[#allocation7 + $0x284] ss:$16 sps:$4 sm:$0xff]   ;;  %v12737_v50 = vld [vmem:[#allocation7 + $0x280] ss:$16 sps:$4 sm:$0xff]   ;;  %v15487_v45 = vsub.s32 0, %v408_v42 }
  0x65   : > { %19187 = vst [vmem:[#allocation18_spill] sm:$0xff] %v15481_v46  ;;  %v12742_v51 = vld [vmem:[#allocation7 + $0x64] ss:$16 sps:$4 sm:$0xff]   ;;  %v12740_v53 = vld [vmem:[#allocation7 + $0x60] ss:$16 sps:$4 sm:$0xff]  }
  0x66   : > { %11596 = vmatmul.mubr.msk.bf16.vlgmr.msra.gmra.mxu0 %vm477_vm2, %v15451_v27  ;;  %11600 = vmatmul.mubr.msk.bf16.vlgmr.msra.gmra.mxu1 %vm477_vm2, %v15451_v27  ;;  %v12745_v52 = vld [vmem:[#allocation7 + $0x264] ss:$16 sps:$4 sm:$0xff]   ;;  %v12743_v54 = vld [vmem:[#allocation7 + $0x260] ss:$16 sps:$4 sm:$0xff]   ;;  %19188 = vst [vmem:[#allocation19_spill] sm:$0xff] %v15487_v45 }
  0x67   : > { %548 = vmatprep.mubr.bf16.mxu0 %v19127_v1  ;;  %621 = vmatprep.mubr.bf16.mxu1 %v19127_v1  ;;  %v12748_v55 = vld [vmem:[#allocation7 + $0x44] ss:$16 sps:$4 sm:$0xff]   ;;  %v12746_v57 = vld [vmem:[#allocation7 + $0x40] ss:$16 sps:$4 sm:$0xff]  }
  0x68   : > { %1780 = vmatpush1.bf16.msra.mxu0 %v12716_v28  ;;  %1853 = vmatpush1.bf16.msra.mxu1 %v12719_v29  ;;  %v12751_v56 = vld [vmem:[#allocation7 + $0x244] ss:$16 sps:$4 sm:$0xff]   ;;  %v12749_v58 = vld [vmem:[#allocation7 + $0x240] ss:$16 sps:$4 sm:$0xff]  }
  0x69   : > { %1781 = vmatprep.subr.bf16.mxu0 %v12724_v32  ;;  %1854 = vmatprep.subr.bf16.mxu1 %v12727_v33  ;;  %v12754_v59 = vld [vmem:[#allocation7 + $0x24] ss:$16 sps:$4 sm:$0xff]   ;;  %v12752_v61 = vld [vmem:[#allocation7 + $0x20] ss:$16 sps:$4 sm:$0xff]  }
  0x6a   : > { %v12757_v60 = vld [vmem:[#allocation7 + $0x224] ss:$16 sps:$4 sm:$0xff]   ;;  %v12755_v62 = vld [vmem:[#allocation7 + $0x220] ss:$16 sps:$4 sm:$0xff]  }
  0x6b   : > { %v12760_v63 = vld [vmem:[#allocation7 + $0x4] ss:$16 sps:$4 sm:$0xff]   ;;  %v12758_v2 = vld [vmem:[#allocation7] ss:$16 sps:$4 sm:$0xff]  }
  0x6c   : > { %1782 = vmatpush1.bf16.msra.mxu0 %v12722_v34  ;;  %1855 = vmatpush1.bf16.msra.mxu1 %v12725_v35  ;;  %v12763_v0 = vld [vmem:[#allocation7 + $0x204] ss:$16 sps:$4 sm:$0xff]   ;;  %v12761_v3 = vld [vmem:[#allocation7 + $0x200] ss:$16 sps:$4 sm:$0xff]  }
  0x6d   : > { %1783 = vmatprep.subr.bf16.mxu0 %v12730_v36  ;;  %1856 = vmatprep.subr.bf16.mxu1 %v12733_v37  ;;  %v12766_v4 = vld [vmem:[#allocation7 + $0x1e4] ss:$16 sps:$4 sm:$0xff]   ;;  %v12764_v7 = vld [vmem:[#allocation7 + $0x1e0] ss:$16 sps:$4 sm:$0xff]  }
  0x6e   : > { %11597 = vmatmul.mubr.msk.bf16.gmra.mxu0 %vm477_vm2, %v15461_v38  ;;  %11601 = vmatmul.mubr.msk.bf16.gmra.mxu1 %vm477_vm2, %v15461_v38  ;;  %v12769_v6 = vld [vmem:[#allocation7 + $0x3e4] ss:$16 sps:$4 sm:$0xff]   ;;  %v12767_v8 = vld [vmem:[#allocation7 + $0x3e0] ss:$16 sps:$4 sm:$0xff]  }
  0x6f   : > { %558 = vmatprep.mubr.bf16.mxu0 %v19127_v1  ;;  %631 = vmatprep.mubr.bf16.mxu1 %v19127_v1  ;;  %v12772_v9 = vld [vmem:[#allocation7 + $0x1c4] ss:$16 sps:$4 sm:$0xff]   ;;  %v12770_v11 = vld [vmem:[#allocation7 + $0x1c0] ss:$16 sps:$4 sm:$0xff]  }
  0x70   : > { %1784 = vmatpush1.bf16.msra.mxu0 %v12728_v39  ;;  %1857 = vmatpush1.bf16.msra.mxu1 %v12731_v40  ;;  %v12775_v10 = vld [vmem:[#allocation7 + $0x3c4] ss:$16 sps:$4 sm:$0xff]   ;;  %v12773_v12 = vld [vmem:[#allocation7 + $0x3c0] ss:$16 sps:$4 sm:$0xff]   ;;  %v12814_v39 = vld [vmem:[#allocation7 + $0xec] ss:$16 sps:$4 sm:$0xff]  }
  0x71   : > { %1785 = vmatprep.subr.bf16.mxu0 %v12736_v47  ;;  %1858 = vmatprep.subr.bf16.mxu1 %v12739_v48  ;;  %v12778_v13 = vld [vmem:[#allocation7 + $0x1a4] ss:$16 sps:$4 sm:$0xff]   ;;  %v12776_v15 = vld [vmem:[#allocation7 + $0x1a0] ss:$16 sps:$4 sm:$0xff]   ;;  %v12817_v40 = vld [vmem:[#allocation7 + $0x2ec] ss:$16 sps:$4 sm:$0xff]  }
  0x72   : > { %v12781_v14 = vld [vmem:[#allocation7 + $0x3a4] ss:$16 sps:$4 sm:$0xff]   ;;  %v12779_v16 = vld [vmem:[#allocation7 + $0x3a0] ss:$16 sps:$4 sm:$0xff]   ;;  %v15489_v47 = vsub.s32 2, %v408_v42  ;;  %v15491_v48 = vsub.s32 1, %v408_v42 }
  0x73   : > { %v12784_v17 = vld [vmem:[#allocation7 + $0x184] ss:$16 sps:$4 sm:$0xff]   ;;  %v12782_v19 = vld [vmem:[#allocation7 + $0x180] ss:$16 sps:$4 sm:$0xff]  }
  0x74   : > { %1786 = vmatpush1.bf16.msra.mxu0 %v12734_v49  ;;  %1859 = vmatpush1.bf16.msra.mxu1 %v12737_v50  ;;  %v12787_v18 = vld [vmem:[#allocation7 + $0x384] ss:$16 sps:$4 sm:$0xff]   ;;  %v12785_v20 = vld [vmem:[#allocation7 + $0x380] ss:$16 sps:$4 sm:$0xff]   ;;  %19189 = vst [vmem:[#allocation20_spill] sm:$0xff] %v15489_v47  ;;  %19190 = vst [vmem:[#allocation21_spill] sm:$0xff] %v15491_v48  ;;  %v15496_v50 = vrot.slane %v405_v44, %v15487_v45 }
  0x75   : > { %1787 = vmatprep.subr.bf16.mxu0 %v12742_v51  ;;  %1860 = vmatprep.subr.bf16.mxu1 %v12745_v52  ;;  %v12790_v21 = vld [vmem:[#allocation7 + $0x164] ss:$16 sps:$4 sm:$0xff]   ;;  %v12788_v23 = vld [vmem:[#allocation7 + $0x160] ss:$16 sps:$4 sm:$0xff]   ;;  %v15493_v49 = vsub.s32 3, %v408_v42  ;;  %v15499_v51 = vrot.slane %v405_v44, %v15489_v47  ;;  %v15502_v52 = vrot.slane %v405_v44, %v15491_v48 }
  0x76   : > { %11598 = vmatmul.mubr.msk.bf16.gmra.mxu0 %vm477_vm2, %v15471_v43  ;;  %11602 = vmatmul.mubr.msk.bf16.gmra.mxu1 %vm477_vm2, %v15471_v43  ;;  %v12793_v22 = vld [vmem:[#allocation7 + $0x364] ss:$16 sps:$4 sm:$0xff]   ;;  %v12791_v24 = vld [vmem:[#allocation7 + $0x360] ss:$16 sps:$4 sm:$0xff]  }
  0x77   : > { %568 = vmatprep.mubr.bf16.mxu0 %v19127_v1  ;;  %641 = vmatprep.mubr.bf16.mxu1 %v19127_v1  ;;  %v12796_v25 = vld [vmem:[#allocation7 + $0x144] ss:$16 sps:$4 sm:$0xff]   ;;  %v12794_v28 = vld [vmem:[#allocation7 + $0x140] ss:$16 sps:$4 sm:$0xff]   ;;  %19191 = vst [vmem:[#allocation22_spill] sm:$0xff] %v15493_v49 }
  0x78   : > { %1788 = vmatpush1.bf16.msra.mxu0 %v12740_v53  ;;  %1861 = vmatpush1.bf16.msra.mxu1 %v12743_v54  ;;  %v12799_v26 = vld [vmem:[#allocation7 + $0x344] ss:$16 sps:$4 sm:$0xff]   ;;  %v12797_v29 = vld [vmem:[#allocation7 + $0x340] ss:$16 sps:$4 sm:$0xff]   ;;  %v15505_v53 = vrot.slane %v405_v44, %v15493_v49 }
  0x79   : > { %1789 = vmatprep.subr.bf16.mxu0 %v12748_v55  ;;  %1862 = vmatprep.subr.bf16.mxu1 %v12751_v56  ;;  %v12802_v30 = vld [vmem:[#allocation7 + $0x124] ss:$16 sps:$4 sm:$0xff]   ;;  %v12800_v32 = vld [vmem:[#allocation7 + $0x120] ss:$16 sps:$4 sm:$0xff]  }
  0x7a   : > { %v12805_v31 = vld [vmem:[#allocation7 + $0x324] ss:$16 sps:$4 sm:$0xff]   ;;  %v12803_v33 = vld [vmem:[#allocation7 + $0x320] ss:$16 sps:$4 sm:$0xff]  }
  0x7b   : > { %v12808_v34 = vld [vmem:[#allocation7 + $0x104] ss:$16 sps:$4 sm:$0xff]   ;;  %v12806_v36 = vld [vmem:[#allocation7 + $0x100] ss:$16 sps:$4 sm:$0xff]  }
  0x7c   : > { %1790 = vmatpush1.bf16.msra.mxu0 %v12746_v57  ;;  %1863 = vmatpush1.bf16.msra.mxu1 %v12749_v58  ;;  %v12811_v35 = vld [vmem:[#allocation7 + $0x304] ss:$16 sps:$4 sm:$0xff]   ;;  %v12809_v37 = vld [vmem:[#allocation7 + $0x300] ss:$16 sps:$4 sm:$0xff]  }
  0x7d   : > { %1791 = vmatprep.subr.bf16.mxu0 %v12754_v59  ;;  %1864 = vmatprep.subr.bf16.mxu1 %v12757_v60 }
  0x7e   : > { %11599 = vmatmul.mubr.msk.bf16.gmra.mxu0 %vm477_vm2, %v15481_v46  ;;  %11603 = vmatmul.mubr.msk.bf16.gmra.mxu1 %vm477_vm2, %v15481_v46 }
  0x80   : > { %1792 = vmatpush1.bf16.msra.mxu0 %v12752_v61  ;;  %1865 = vmatpush1.bf16.msra.mxu1 %v12755_v62 }
  0x81   : > { %1793 = vmatprep.subr.bf16.mxu0 %v12760_v63  ;;  %1866 = vmatprep.subr.bf16.mxu1 %v12763_v0 }
  0x84   : > { %1794 = vmatpush1.bf16.msra.mxu0 %v12758_v2  ;;  %1867 = vmatpush1.bf16.msra.mxu1 %v12761_v3 }
  0x85   : > { %1795 = vmatprep.subr.bf16.mxu0 %v12766_v4  ;;  %1868 = vmatprep.subr.bf16.mxu1 %v12769_v6 }
  0x88   : > { %1796 = vmatpush2.bf16.msra.mxu0 %v12764_v7  ;;  %1869 = vmatpush2.bf16.msra.mxu1 %v12767_v8 }
  0x89   : > { %1797 = vmatprep.subr.bf16.mxu0 %v12772_v9  ;;  %1870 = vmatprep.subr.bf16.mxu1 %v12775_v10 }
  0x8c   : > { %1798 = vmatpush2.bf16.msra.mxu0 %v12770_v11  ;;  %1871 = vmatpush2.bf16.msra.mxu1 %v12773_v12 }
  0x8d   : > { %1799 = vmatprep.subr.bf16.mxu0 %v12778_v13  ;;  %1872 = vmatprep.subr.bf16.mxu1 %v12781_v14 }
  0x90   : > { %1800 = vmatpush2.bf16.msra.mxu0 %v12776_v15  ;;  %1873 = vmatpush2.bf16.msra.mxu1 %v12779_v16 }
  0x91   : > { %1801 = vmatprep.subr.bf16.mxu0 %v12784_v17  ;;  %1874 = vmatprep.subr.bf16.mxu1 %v12787_v18 }
  0x94   : > { %1802 = vmatpush2.bf16.msra.mxu0 %v12782_v19  ;;  %1875 = vmatpush2.bf16.msra.mxu1 %v12785_v20 }
  0x95   : > { %1803 = vmatprep.subr.bf16.mxu0 %v12790_v21  ;;  %1876 = vmatprep.subr.bf16.mxu1 %v12793_v22 }
  0x98   : > { %1804 = vmatpush2.bf16.msra.mxu0 %v12788_v23  ;;  %1877 = vmatpush2.bf16.msra.mxu1 %v12791_v24 }
  0x99   : > { %1805 = vmatprep.subr.bf16.mxu0 %v12796_v25  ;;  %1878 = vmatprep.subr.bf16.mxu1 %v12799_v26 }
  0x9c   : > { %1806 = vmatpush2.bf16.msra.mxu0 %v12794_v28  ;;  %1879 = vmatpush2.bf16.msra.mxu1 %v12797_v29 }
  0x9d   : > { %1807 = vmatprep.subr.bf16.mxu0 %v12802_v30  ;;  %1880 = vmatprep.subr.bf16.mxu1 %v12805_v31 }
  0xa0   : > { %1808 = vmatpush2.bf16.msra.mxu0 %v12800_v32  ;;  %1881 = vmatpush2.bf16.msra.mxu1 %v12803_v33 }
  0xa1   : > { %1809 = vmatprep.subr.bf16.mxu0 %v12808_v34  ;;  %1882 = vmatprep.subr.bf16.mxu1 %v12811_v35 }
  0xa4   : > { %1810 = vmatpush2.bf16.msra.mxu0 %v12806_v36  ;;  %1883 = vmatpush2.bf16.msra.mxu1 %v12809_v37 }
  0xa5   : > { %1925 = vmatprep.subr.bf16.mxu0 %v12814_v39  ;;  %1998 = vmatprep.subr.bf16.mxu1 %v12817_v40 }
 0x126   : > { %v540_v54 = vpop.f32.mrf.mxu0  ;;  %v613_v55 = vpop.f32.mrf.mxu1 }
 0x127   : > { %v15508_v56 = vadd.f32 %v540_v54, %v15496_v50  ;;  %v15511_v57 = vadd.f32 %v613_v55, %v15499_v51 }
 0x128   : > { %v542_v58 = vpop.f32.mrf.mxu0  ;;  %v615_v59 = vpop.f32.mrf.mxu1 }
 0x129   : > { %v15514_v60 = vmul.f32 100.0, %v15508_v56  ;;  %v15517_v61 = vmul.f32 100.0, %v15511_v57  ;;  %v15520_v62 = vadd.f32 %v542_v58, %v15502_v52  ;;  %v15523_v63 = vadd.f32 %v615_v59, %v15505_v53 }
 0x12a   : > { %v544_v0 = vpop.f32.mrf.mxu0  ;;  %v617_v2 = vpop.f32.mrf.mxu1 }
 0x12b   : > { %v716_v3 = vmin.f32 %v15514_v60, 20.0  ;;  %v718_v4 = vmin.f32 %v15517_v61, 20.0  ;;  %v15528_v6 = vmul.f32 100.0, %v15520_v62  ;;  %v15531_v7 = vmul.f32 100.0, %v15523_v63 }
 0x12c   : > { %v15534_v8 = vadd.f32 %v544_v0, %v15496_v50  ;;  %v15537_v9 = vadd.f32 %v617_v2, %v15499_v51  ;;  %v546_v10 = vpop.f32.mrf.mxu0  ;;  %v619_v11 = vpop.f32.mrf.mxu1  ;;  %vm684_vm3 = vcmp.gt.f32.partialorder %v15514_v60, 20.0  ;;  %vm686_vm4 = vcmp.gt.f32.partialorder %v15517_v61, 20.0 }
 0x12d   : > { %v748_v12 = vmul.f32 1.442695, %v716_v3  ;;  %v752_v13 = vmul.f32 1.442695, %v718_v4  ;;  %v15540_v14 = vadd.f32 %v546_v10, %v15502_v52  ;;  %v15543_v15 = vadd.f32 %v619_v11, %v15505_v53 }
 0x12e   : > { %v717_v16 = vmin.f32 %v15528_v6, 20.0  ;;  %v719_v17 = vmin.f32 %v15531_v7, 20.0  ;;  %v550_v18 = vpop.f32.mrf.mxu0  ;;  %v623_v19 = vpop.f32.mrf.mxu1  ;;  %v15548_v20 = vmul.f32 100.0, %v15534_v8  ;;  %v15551_v21 = vmul.f32 100.0, %v15537_v9 }
 0x12f   : > { %14076 = vpow2.f32 %v748_v12  ;;  %v15554_v22 = vmul.f32 100.0, %v15540_v14  ;;  %v15557_v25 = vmul.f32 100.0, %v15543_v15  ;;  %v15564_v37 = vadd.f32 %v550_v18, %v15496_v50 }
 0x130   : > { %14078 = vpow2.f32 %v752_v13  ;;  %v750_v23 = vmul.f32 1.442695, %v717_v16  ;;  %v754_v24 = vmul.f32 1.442695, %v719_v17  ;;  %v552_v26 = vpop.f32.mrf.mxu0  ;;  %v625_v28 = vpop.f32.mrf.mxu1  ;;  %v720_v29 = vmin.f32 %v15548_v20, 20.0 }
 0x131   : > { %v722_v30 = vmin.f32 %v15551_v21, 20.0  ;;  %v721_v31 = vmin.f32 %v15554_v22, 20.0  ;;  %v723_v35 = vmin.f32 %v15557_v25, 20.0  ;;  %19192 = vst [vmem:[#allocation23_spill] sm:$0xff] %v15564_v37  ;;  %v15567_v39 = vadd.f32 %v623_v19, %v15499_v51 }
 0x132   : > { %14080 = vpow2.f32 %v750_v23  ;;  %v554_v32 = vpop.f32.mrf.mxu0  ;;  %v756_v33 = vmul.f32 1.442695, %v720_v29  ;;  %v15570_v40 = vadd.f32 %v552_v26, %v15502_v52  ;;  %v627_v41 = vpop.f32.mrf.mxu1  ;;  %v15573_v44 = vadd.f32 %v625_v28, %v15505_v53 }
 0x133   : > { %14082 = vpow2.f32 %v754_v24  ;;  %v760_v34 = vmul.f32 1.442695, %v722_v30  ;;  %v758_v36 = vmul.f32 1.442695, %v721_v31  ;;  %19193 = vst [vmem:[#allocation24_spill] sm:$0xff] %v15567_v39  ;;  %v15576_v54 = vadd.f32 %v554_v32, %v15496_v50 }
 0x134   : > { %14084 = vpow2.f32 %v756_v33  ;;  %v762_v42 = vmul.f32 1.442695, %v723_v35  ;;  %v15579_v55 = vmul.f32 100.0, %v15564_v37  ;;  %v15582_v58 = vmul.f32 100.0, %v15567_v39  ;;  %v556_v10 = vpop.f32.mrf.mxu0  ;;  %v629_v13 = vpop.f32.mrf.mxu1 }
 0x135   : > { %19194 = vst [vmem:[#allocation25_spill] sm:$0xff] %v15576_v54  ;;  %14086 = vpow2.f32 %v760_v34  ;;  %v15585_v59 = vmul.f32 100.0, %v15570_v40  ;;  %v15588_v0 = vmul.f32 100.0, %v15573_v44  ;;  %v15591_v2 = vadd.f32 %v627_v41, %v15499_v51 }
 0x136   : > { %14088 = vpow2.f32 %v758_v36  ;;  %v724_v3 = vmin.f32 %v15579_v55, 20.0  ;;  %v15595_v4 = vmul.f32 100.0, %v15576_v54  ;;  %v726_v11 = vmin.f32 %v15582_v58, 20.0  ;;  %v560_v31 = vpop.f32.mrf.mxu0  ;;  %v633_v35 = vpop.f32.mrf.mxu1 }
 0x137   : > { %19195 = vst [vmem:[#allocation26_spill] sm:$0xff] %v15591_v2  ;;  %14090 = vpow2.f32 %v762_v42  ;;  %v725_v12 = vmin.f32 %v15585_v59, 20.0  ;;  %v727_v17 = vmin.f32 %v15588_v0, 20.0  ;;  %v15601_v23 = vmul.f32 100.0, %v15591_v2 }
 0x138   : > { %v764_v16 = vmul.f32 1.442695, %v724_v3  ;;  %v768_v18 = vmul.f32 1.442695, %v726_v11  ;;  %v15604_v24 = vadd.f32 %v556_v10, %v15502_v52  ;;  %v728_v29 = vmin.f32 %v15595_v4, 20.0 }
 0x139   : > { %v766_v19 = vmul.f32 1.442695, %v725_v12  ;;  %v770_v28 = vmul.f32 1.442695, %v727_v17  ;;  %v15608_v30 = vadd.f32 %v629_v13, %v15505_v53  ;;  %v730_v34 = vmin.f32 %v15601_v23, 20.0  ;;  %v562_v17 = vpop.f32.mrf.mxu0 }
 0x13a   : > { %14092 = vpow2.f32 %v764_v16  ;;  %v15612_v41 = vmul.f32 100.0, %v15604_v24  ;;  %v15618_v10 = vadd.f32 %v560_v31, %v15496_v50  ;;  %v772_v13 = vmul.f32 1.442695, %v728_v29 }
 0x13b   : > { %14094 = vpow2.f32 %v768_v18  ;;  %v15615_v3 = vmul.f32 100.0, %v15608_v30  ;;  %v15621_v16 = vadd.f32 %v633_v35, %v15499_v51  ;;  %v776_v18 = vmul.f32 1.442695, %v730_v34  ;;  %v564_v34 = vpop.f32.mrf.mxu0 }
 0x13c   : > { %v14077_v26 = vpop.eup %14076  ;;  %14096 = vpow2.f32 %v766_v19  ;;  %19196 = vst [vmem:[#allocation27_spill] sm:$0xff] %v15618_v10  ;;  %v635_v19 = vpop.f32.mrf.mxu1  ;;  %v15625_v1 = vmul.f32 100.0, %v15618_v10  ;;  %v15629_v29 = vadd.f32 %v562_v17, %v15502_v52  ;;  %vm688_vm5 = vcmp.gt.f32.partialorder %v15548_v20, 20.0 }
 0x13d   : > { %v14079_v32 = vpop.eup %14078  ;;  %v812_v33 = vadd.f32 1.0, %v14077_v26  ;;  %19197 = vst [vmem:[#allocation28_spill] sm:$0xff] %v15621_v16  ;;  %vm690_vm6 = vcmp.gt.f32.partialorder %v15551_v21, 20.0  ;;  %vm685_vm7 = vcmp.gt.f32.partialorder %v15528_v6, 20.0  ;;  %vm689_vm8 = vcmp.gt.f32.partialorder %v15554_v22, 20.0 }
 0x13e   : > { %v814_v36 = vadd.f32 1.0, %v14079_v32  ;;  %19198 = vst [vmem:[#allocation29_spill] sm:$0xff] %v15625_v1  ;;  %19199 = vst [vmem:[#allocation30_spill] sm:$0xff] %v15629_v29  ;;  %v732_v38 = vmin.f32 %v15625_v1, 20.0  ;;  %v637_v27 = vpop.f32.mrf.mxu1  ;;  %vm687_vm9 = vcmp.gt.f32.partialorder %v15531_v7, 20.0  ;;  %vm691_vm10 = vcmp.gt.f32.partialorder %v15557_v25, 20.0 }
 0x13f   : > { %v14081_v42 = vpop.eup %14080  ;;  %14098 = vlog2.f32 %v812_v33  ;;  %v729_v33 = vmin.f32 %v15612_v41, 20.0  ;;  %vm693_vm11 = vcmp.gt.f32.partialorder %v15585_v59, 20.0  ;;  %vm697_vm12 = vcmp.gt.f32.partialorder %v15612_v41, 20.0 }
 0x140   : > { %v14083_v11 = vpop.eup %14082  ;;  %14100 = vlog2.f32 %v814_v36  ;;  %v813_v12 = vadd.f32 1.0, %v14081_v42  ;;  %v731_v36 = vmin.f32 %v15615_v3, 20.0  ;;  %v780_v49 = vmul.f32 1.442695, %v732_v38 }
 0x141   : > { %14102 = vpow2.f32 %v770_v28  ;;  %v14085_v26 = vpop.eup %14084  ;;  %v815_v32 = vadd.f32 1.0, %v14083_v11  ;;  %v15632_v28 = vmul.f32 100.0, %v15621_v16  ;;  %vm695_vm13 = vcmp.gt.f32.partialorder %v15588_v0, 20.0 }
 0x142   : > { %v14087_v31 = vpop.eup %14086  ;;  %14104 = vlog2.f32 %v813_v12  ;;  %v816_v46 = vadd.f32 1.0, %v14085_v26  ;;  %v774_v12 = vmul.f32 1.442695, %v729_v33  ;;  %v15636_v26 = vmul.f32 100.0, %v15629_v29 }
 0x143   : > { %v14089_v35 = vpop.eup %14088  ;;  %v818_v42 = vadd.f32 1.0, %v14087_v31  ;;  %14106 = vpow2.f32 %v772_v13  ;;  %19200 = vst [vmem:[#allocation31_spill] sm:$0xff] %v15632_v28  ;;  %v778_v17 = vmul.f32 1.442695, %v731_v36  ;;  %v15639_v31 = vadd.f32 %v635_v19, %v15505_v53 }
 0x144   : > { %v14091_v11 = vpop.eup %14090  ;;  %14108 = vlog2.f32 %v816_v46  ;;  %v817_v43 = vadd.f32 1.0, %v14089_v35  ;;  %v15642_v13 = vadd.f32 %v564_v34, %v15496_v50  ;;  %v734_v46 = vmin.f32 %v15632_v28, 20.0 }
 0x145   : > { %14110 = vlog2.f32 %v815_v32  ;;  %19201 = vst [vmem:[#allocation32_spill] sm:$0xff] %v15639_v31  ;;  %v819_v5 = vadd.f32 1.0, %v14091_v11  ;;  %v15646_v35 = vadd.f32 %v637_v27, %v15499_v51  ;;  %v566_v32 = vpop.f32.mrf.mxu0  ;;  %vm699_vm14 = vcmp.gt.f32.partialorder %v15615_v3, 20.0 }
 0x146   : > { %14112 = vlog2.f32 %v818_v42  ;;  %19202 = vst [vmem:[#allocation33_spill] sm:$0xff] %v15642_v13  ;;  %v15649_v42 = vmul.f32 100.0, %v15639_v31  ;;  %v15652_v19 = vmul.f32 100.0, %v15642_v13  ;;  %v15660_v38 = vadd.f32 %v566_v32, %v15502_v52 }
 0x147   : > { %14114 = vlog2.f32 %v817_v43  ;;  %19203 = vst [vmem:[#allocation34_spill] sm:$0xff] %v15646_v35  ;;  %v14093_v33 = vpop.eup %14092  ;;  %v733_v43 = vmin.f32 %v15636_v26, 20.0  ;;  %v15656_v11 = vmul.f32 100.0, %v15646_v35  ;;  %v784_v45 = vmul.f32 1.442695, %v734_v46 }
 0x148   : > { %14116 = vpow2.f32 %v776_v18  ;;  %v14095_v36 = vpop.eup %14094  ;;  %v820_v34 = vadd.f32 1.0, %v14093_v33  ;;  %v735_v18 = vmin.f32 %v15649_v42, 20.0  ;;  %19205 = vst [vmem:[#allocation36_spill] sm:$0xff] %v15660_v38  ;;  %v736_v16 = vmin.f32 %v15652_v19, 20.0  ;;  %v639_v33 = vpop.f32.mrf.mxu1 }
 0x149   : > { %14118 = vpow2.f32 %v774_v12  ;;  %19204 = vst [vmem:[#allocation35_spill] sm:$0xff] %v15656_v11  ;;  %v14097_v27 = vpop.eup %14096  ;;  %v822_v47 = vadd.f32 1.0, %v14095_v36  ;;  %v782_v13 = vmul.f32 1.442695, %v733_v43  ;;  %v15665_v32 = vmul.f32 100.0, %v15660_v38 }
 0x14a   : > { %14120 = vpow2.f32 %v778_v17  ;;  %v821_v10 = vadd.f32 1.0, %v14097_v27  ;;  %v738_v17 = vmin.f32 %v15656_v11, 20.0  ;;  %v786_v31 = vmul.f32 1.442695, %v735_v18 }
 0x14b   : > { %14122 = vlog2.f32 %v819_v5  ;;  %v570_v5 = vpop.f32.mrf.mxu0  ;;  %v788_v39 = vmul.f32 1.442695, %v736_v16  ;;  %v737_v27 = vmin.f32 %v15665_v32, 20.0  ;;  %vm692_vm15 = vcmp.gt.f32.partialorder %v15579_v55, 20.0 }
 0x14c   : > { %v14099_v48 = vpop.eup %14098  ;;  %14124 = vlog2.f32 %v820_v34  ;;  %v643_v34 = vpop.f32.mrf.mxu1  ;;  %v792_v18 = vmul.f32 1.442695, %v738_v17  ;;  %v15681_v16 = vadd.f32 %v570_v5, %v15496_v50  ;;  %vm696_vm0 = vcmp.gt.f32.partialorder %v15595_v4, 20.0 }
 0x14d   : > { %v14101_v12 = vpop.eup %14100  ;;  %v845_v28 = vmul.f32 0.6931472, %v14099_v48  ;;  %14126 = vlog2.f32 %v822_v47  ;;  %v15670_v48 = vadd.f32 %v639_v33, %v15505_v53  ;;  %v572_v33 = vpop.f32.mrf.mxu0  ;;  %vm698_vm1 = vcmp.gt.f32.partialorder %v15601_v23, 20.0 }
 0x14e   : > { %v14103_v35 = vpop.eup %14102  ;;  %v849_v36 = vmul.f32 0.6931472, %v14101_v12  ;;  %14128 = vpow2.f32 %v780_v49  ;;  %19207 = vst [vmem:[#allocation38_spill] sm:$0xff] %v15681_v16 }
 0x14f   : > { %v15667_v46 = vpop.eup %14104  ;;  %v823_v29 = vadd.f32 1.0, %v14103_v35  ;;  %14130 = vpow2.f32 %v784_v45  ;;  %19206 = vst [vmem:[#allocation37_spill] sm:$0xff] %v15670_v48  ;;  %v909_v43 = vmul.f32 0.01, %v845_v28  ;;  %v15674_v12 = vmul.f32 100.0, %v15670_v48  ;;  %v574_v54 = vpop.f32.mrf.mxu0 }
 0x150   : > { %v14107_v47 = vpop.eup %14106  ;;  %14132 = vlog2.f32 %v821_v10  ;;  %v15678_v35 = vmul.f32 0.01, %v849_v36  ;;  %v790_v45 = vmul.f32 1.442695, %v737_v27  ;;  %v15688_v36 = vmul.f32 100.0, %v15681_v16 }
 0x151   : > { %v14109_v49 = vpop.eup %14108  ;;  %14134 = vpow2.f32 %v782_v13  ;;  %v739_v38 = vmin.f32 %v15674_v12, 20.0  ;;  %v645_v13 = vpop.f32.mrf.mxu1  ;;  %v824_v48 = vadd.f32 1.0, %v14107_v47  ;;  %v15692_v27 = vadd.f32 %v643_v34, %v15499_v51 }
 0x152   : > { %v15676_v11 = vpop.eup %14110  ;;  %14136 = vpow2.f32 %v786_v31  ;;  %v853_v10 = vmul.f32 0.6931472, %v14109_v49  ;;  %v15720_v60 = vadd.f32 %v574_v54, %v15496_v50 }
 0x153   : > { %v14113_v28 = vpop.eup %14112  ;;  %14138 = vlog2.f32 %v823_v29  ;;  %v794_v5 = vmul.f32 1.442695, %v739_v38  ;;  %19208 = vst [vmem:[#allocation39_spill] sm:$0xff] %v15692_v27  ;;  %v15695_v29 = vadd.f32 %v572_v33, %v15502_v52  ;;  %v647_v37 = vpop.f32.mrf.mxu1  ;;  %v15703_v38 = vsel %vm684_vm3, %v15508_v56, %v909_v43 }
 0x154   : > { %v15684_v17 = vpop.eup %14114  ;;  %14140 = vpow2.f32 %v788_v39  ;;  %v857_v2 = vmul.f32 0.6931472, %v14113_v28  ;;  %v913_v47 = vmul.f32 0.01, %v853_v10  ;;  %v15709_v28 = vmul.f32 100.0, %v15692_v27  ;;  %19212 = vst [vmem:[#allocation43_spill] sm:$0xff] %v15720_v60 }
 0x155   : > { %v14117_v31 = vpop.eup %14116  ;;  %14142 = vpow2.f32 %v792_v18  ;;  %19209 = vst [vmem:[#allocation40_spill] sm:$0xff] %v15695_v29  ;;  %v740_v18 = vmin.f32 %v15688_v36, 20.0  ;;  %v15712_v10 = vmul.f32 100.0, %v15695_v29  ;;  %v15733_v50 = vmul.f32 100.0, %v15720_v60 }
 0x156   : > { %v14119_v49 = vpop.eup %14118  ;;  %14144 = vpow2.f32 %v790_v45  ;;  %v826_v45 = vadd.f32 1.0, %v14117_v31  ;;  %19210 = vst [vmem:[#allocation41_spill] sm:$0xff] %v15709_v28  ;;  %v15725_v31 = vmul.f32 0.01, %v857_v2  ;;  %vm694_vm3 = vcmp.gt.f32.partialorder %v15582_v58, 20.0 }
 0x157   : > { %v14121_v39 = vpop.eup %14120  ;;  %v825_v16 = vadd.f32 1.0, %v14119_v49  ;;  %14146 = vpow2.f32 %v794_v5  ;;  %v15715_v5 = vadd.f32 %v645_v13, %v15505_v53  ;;  %v796_v56 = vmul.f32 1.442695, %v740_v18 }
 0x158   : > { %v15698_v1 = vpop.eup %14122  ;;  %14148 = vlog2.f32 %v824_v48  ;;  %v827_v34 = vadd.f32 1.0, %v14121_v39  ;;  %v15723_v48 = vadd.f32 %v647_v37, %v15499_v51  ;;  %v742_v39 = vmin.f32 %v15709_v28, 20.0 }
 0x159   : > { %v15706_v33 = vpop.eup %14124  ;;  %19211 = vst [vmem:[#allocation42_spill] sm:$0xff] %v15715_v5  ;;  %14150 = vlog2.f32 %v825_v16  ;;  %v741_v27 = vmin.f32 %v15712_v10, 20.0  ;;  %v15730_v16 = vmul.f32 100.0, %v15715_v5  ;;  %v15745_v18 = vsel %vm686_vm4, %v15511_v57, %v15678_v35  ;;  %v576_v5 = vpop.f32.mrf.mxu0 }
 0x15a   : > { %v15717_v49 = vpop.eup %14126  ;;  %19213 = vst [vmem:[#allocation44_spill] sm:$0xff] %v15723_v48  ;;  %14152 = vlog2.f32 %v827_v34  ;;  %v800_v37 = vmul.f32 1.442695, %v742_v39  ;;  %v15739_v2 = vmul.f32 100.0, %v15723_v48  ;;  %v945_v39 = vsel %vm688_vm5, %v15534_v8, %v913_v47 }
 0x15b   : > { %v14129_v43 = vpop.eup %14128  ;;  %14154 = vpow2.f32 %v796_v56  ;;  %19214 = vst [vmem:[#allocation45_spill] sm:$0xff] %v15730_v16  ;;  %v798_v56 = vmul.f32 1.442695, %v741_v27  ;;  %v744_v57 = vmin.f32 %v15733_v50, 20.0  ;;  %vm701_vm4 = vcmp.gt.f32.partialorder %v15636_v26, 20.0 }
 0x15c   : > { %v14131_v13 = vpop.eup %14130  ;;  %v828_v29 = vadd.f32 1.0, %v14129_v43  ;;  %14156 = vlog2.f32 %v826_v45  ;;  %v743_v43 = vmin.f32 %v15730_v16, 20.0  ;;  %v649_v45 = vpop.f32.mrf.mxu1  ;;  %v15758_v16 = vadd.f32 %v576_v5, %v15502_v52 }
 0x15d   : > { %v15735_v54 = vpop.eup %14132  ;;  %v830_v51 = vadd.f32 1.0, %v14131_v13  ;;  %v804_v60 = vmul.f32 1.442695, %v744_v57  ;;  %v15761_v8 = vadd.f32 %v649_v45, %v15505_v53  ;;  %v15777_v45 = vpack.c.bf16 %v945_v39, %v15703_v38 }
 0x15e   : > { %v14135_v34 = vpop.eup %14134  ;;  %14158 = vlog2.f32 %v828_v29  ;;  %v802_v27 = vmul.f32 1.442695, %v743_v43  ;;  %v746_v29 = vmin.f32 %v15739_v2, 20.0  ;;  %vm703_vm5 = vcmp.gt.f32.partialorder %v15649_v42, 20.0  ;;  %v19224_v42 = vld [vmem:[#allocation33_spill] sm:$0xff] }
 0x15f   : > { %v14137_v13 = vpop.eup %14136  ;;  %14160 = vlog2.f32 %v830_v51  ;;  %v829_v28 = vadd.f32 1.0, %v14135_v34  ;;  %v847_v34 = vmul.f32 0.6931472, %v15667_v46  ;;  %v15770_v52 = vmul.f32 100.0, %v15761_v8 }
 0x160   : > { %v15754_v61 = vpop.eup %14138  ;;  %v831_v35 = vadd.f32 1.0, %v14137_v13  ;;  %14162 = vpow2.f32 %v800_v37  ;;  %v808_v51 = vmul.f32 1.442695, %v746_v29  ;;  %v855_v46 = vmul.f32 0.6931472, %v15684_v17 }
 0x161   : > { %v14141_v48 = vpop.eup %14140  ;;  %14164 = vlog2.f32 %v829_v28  ;;  %v15767_v28 = vmul.f32 100.0, %v15758_v16  ;;  %v747_v17 = vmin.f32 %v15770_v52, 20.0  ;;  %v865_v41 = vmul.f32 0.6931472, %v15717_v49 }
 0x162   : > { %v14143_v20 = vpop.eup %14142  ;;  %14166 = vlog2.f32 %v831_v35  ;;  %v832_v47 = vadd.f32 1.0, %v14141_v48  ;;  %v910_v48 = vmul.f32 0.01, %v847_v34  ;;  %v947_v35 = vsel %vm690_vm6, %v15537_v9, %v15725_v31  ;;  %v12812_v34 = vld [vmem:[#allocation7 + $0xe8] ss:$16 sps:$4 sm:$0xff]  }
 0x163   : > { %v14145_v13 = vpop.eup %14144  ;;  %v834_v37 = vadd.f32 1.0, %v14143_v20  ;;  %14168 = vpow2.f32 %v798_v56  ;;  %v745_v57 = vmin.f32 %v15767_v28, 20.0  ;;  %v914_v29 = vmul.f32 0.01, %v855_v46 }
 0x164   : > { %v14147_v53 = vpop.eup %14146  ;;  %14170 = vlog2.f32 %v832_v47  ;;  %v833_v5 = vadd.f32 1.0, %v14145_v13  ;;  %v942_v39 = vsel %vm685_vm7, %v15520_v62, %v910_v48  ;;  %v851_v47 = vmul.f32 0.6931472, %v15676_v11 }
 0x165   : > { %v15774_v43 = vpop.eup %14148  ;;  %14172 = vlog2.f32 %v834_v37  ;;  %v835_v56 = vadd.f32 1.0, %v14147_v53  ;;  %v806_v38 = vmul.f32 1.442695, %v745_v57  ;;  %v810_v9 = vmul.f32 1.442695, %v747_v17 }
 0x166   : > { %14174 = vlog2.f32 %v833_v5  ;;  %v14151_v20 = vpop.eup %14150  ;;  %v946_v31 = vsel %vm689_vm8, %v15540_v14, %v914_v29  ;;  %v859_v13 = vmul.f32 0.6931472, %v15698_v1  ;;  %v12820_v37 = vld [vmem:[#allocation7 + $0xcc] ss:$16 sps:$4 sm:$0xff]   ;;  %v912_v46 = vmul.f32 0.01, %v851_v47 }
 0x167   : > { %14176 = vlog2.f32 %v835_v56  ;;  %v14153_v21 = vpop.eup %14152  ;;  %v15796_v5 = vpack.c.bf16 %v946_v31, %v942_v39  ;;  %v863_v62 = vmul.f32 0.6931472, %v15735_v54  ;;  %v871_v22 = vmul.f32 0.6931472, %v14151_v20  ;;  %v12818_v54 = vld [vmem:[#allocation7 + $0xc8] ss:$16 sps:$4 sm:$0xff]  }
 0x168   : > { %14178 = vpow2.f32 %v802_v27  ;;  %v14155_v53 = vpop.eup %14154  ;;  %v916_v27 = vmul.f32 0.01, %v859_v13  ;;  %v15804_v1 = vpack.c.bf16 %v947_v35, %v15745_v18  ;;  %v867_v56 = vmul.f32 0.6931472, %v15754_v61  ;;  %v12823_v35 = vld [vmem:[#allocation7 + $0x2cc] ss:$16 sps:$4 sm:$0xff]  }
 0x169   : > { %14180 = vpow2.f32 %v804_v60  ;;  %v14157_v6 = vpop.eup %14156  ;;  %v836_v11 = vadd.f32 1.0, %v14155_v53  ;;  %1811 = vmatprep.mubr.bf16.mxu0 %v15796_v5  ;;  %v12815_v60 = vld [vmem:[#allocation7 + $0x2e8] ss:$16 sps:$4 sm:$0xff]   ;;  %v918_v48 = vmul.f32 0.01, %v863_v62  ;;  %vm705_vm6 = vcmp.gt.f32.partialorder %v15665_v32, 20.0 }
 0x16a   : > { %14182 = vpow2.f32 %v808_v51  ;;  %v944_v51 = vsel %vm687_vm9, %v15523_v63, %v912_v46  ;;  %v948_v18 = vsel %vm691_vm10, %v15543_v15, %v916_v27  ;;  %1812 = vmatmul.mubr.bf16.vlgmr.msra.gmra.mxu0 %v15777_v45  ;;  %v922_v17 = vmul.f32 0.01, %v871_v22  ;;  %v12826_v63 = vld [vmem:[#allocation7 + $0xac] ss:$16 sps:$4 sm:$0xff]  }
 0x16b   : > { %v15801_v14 = vpop.eup %14158  ;;  %14184 = vpow2.f32 %v806_v38  ;;  %v875_v29 = vmul.f32 0.6931472, %v14153_v21  ;;  %v15819_v61 = vpack.c.bf16 %v948_v18, %v944_v51  ;;  %1926 = vmatpush1.bf16.msra.mxu0 %v12812_v34  ;;  %v950_v38 = vsel %vm693_vm11, %v15570_v40, %v918_v48  ;;  %v12821_v40 = vld [vmem:[#allocation7 + $0x2c8] ss:$16 sps:$4 sm:$0xff]   ;;  %v12832_v22 = vld [vmem:[#allocation7 + $0x8c] ss:$16 sps:$4 sm:$0xff]  }
 0x16c   : > { %v15809_v57 = vpop.eup %14160  ;;  %14186 = vpow2.f32 %v810_v9  ;;  %v920_v7 = vmul.f32 0.01, %v867_v56  ;;  %1927 = vmatprep.subr.bf16.mxu0 %v12820_v37  ;;  %v954_v25 = vsel %vm697_vm12, %v15604_v24, %v922_v17  ;;  %v861_v21 = vmul.f32 0.6931472, %v15706_v33  ;;  %v12824_v34 = vld [vmem:[#allocation7 + $0xa8] ss:$16 sps:$4 sm:$0xff]  }
 0x16d   : > { %v14163_v20 = vpop.eup %14162  ;;  %v924_v47 = vmul.f32 0.01, %v875_v29  ;;  %14188 = vlog2.f32 %v836_v11  ;;  %1884 = vmatprep.mubr.bf16.mxu1 %v15819_v61  ;;  %v15832_v59 = vpack.c.bf16 %v954_v25, %v950_v38  ;;  %v869_v31 = vmul.f32 0.6931472, %v15774_v43  ;;  %v12829_v37 = vld [vmem:[#allocation7 + $0x2ac] ss:$16 sps:$4 sm:$0xff]  }
 0x16e   : > { %v14165_v39 = vpop.eup %14164  ;;  %v838_v15 = vadd.f32 1.0, %v14163_v20  ;;  %vm707_vm7 = vcmp.gt.f32.partialorder %v15674_v12, 20.0  ;;  %1885 = vmatmul.mubr.bf16.vlgmr.msra.gmra.mxu1 %v15804_v1  ;;  %v952_v33 = vsel %vm695_vm13, %v15573_v44, %v920_v7  ;;  %v917_v53 = vmul.f32 0.01, %v861_v21  ;;  %v19215_v44 = vld [vmem:[#allocation29_spill] sm:$0xff]  ;;  %v19218_v38 = vld [vmem:[#allocation26_spill] sm:$0xff] }
 0x16f   : > { %v14167_v9 = vpop.eup %14166  ;;  %v956_v13 = vsel %vm699_vm14, %v15608_v30, %v924_v47  ;;  %v873_v46 = vmul.f32 0.6931472, %v14157_v6  ;;  %vm704_vm8 = vcmp.gt.f32.partialorder %v15652_v19, 20.0  ;;  %1999 = vmatpush1.bf16.msra.mxu1 %v12815_v60  ;;  %1928 = vmatpush1.bf16.msra.mxu0 %v12818_v54  ;;  %v921_v11 = vmul.f32 0.01, %v869_v31  ;;  %v19216_v54 = vld [vmem:[#allocation23_spill] sm:$0xff] }
 0x170   : > { %v14169_v24 = vpop.eup %14168  ;;  %v15845_v43 = vpack.c.bf16 %v956_v13, %v952_v33  ;;  %v919_v27 = vmul.f32 0.01, %v865_v41  ;;  %vm700_vm9 = vcmp.gt.f32.partialorder %v19215_v44, 20.0  ;;  %14190 = vlog2.f32 %v838_v15  ;;  %2000 = vmatprep.subr.bf16.mxu1 %v12823_v35  ;;  %1821 = vmatprep.mubr.bf16.mxu0 %v15832_v59  ;;  %v12827_v60 = vld [vmem:[#allocation7 + $0x2a8] ss:$16 sps:$4 sm:$0xff]   ;;  %v19219_v47 = vld [vmem:[#allocation24_spill] sm:$0xff] }
 0x171   : > { %v14171_v62 = vpop.eup %14170  ;;  %v837_v49 = vadd.f32 1.0, %v14169_v24  ;;  %v923_v30 = vmul.f32 0.01, %v873_v46  ;;  %v879_v3 = vmul.f32 0.6931472, %v14165_v39  ;;  %1929 = vmatprep.subr.bf16.mxu0 %v12826_v63  ;;  %v949_v56 = vsel %vm692_vm15, %v19216_v54, %v917_v53  ;;  %v19217_v51 = vld [vmem:[#allocation25_spill] sm:$0xff] }
 0x172   : > { %v15847_v0 = vpop.eup %14172  ;;  %v883_v6 = vmul.f32 0.6931472, %v14167_v9  ;;  %1894 = vmatprep.mubr.bf16.mxu1 %v15845_v43  ;;  %v953_v18 = vsel %vm696_vm0, %v19217_v51, %v921_v11  ;;  %v12830_v35 = vld [vmem:[#allocation7 + $0x88] ss:$16 sps:$4 sm:$0xff]   ;;  %v877_v17 = vmul.f32 0.6931472, %v15801_v14  ;;  %v951_v4 = vsel %vm694_vm3, %v19219_v47, %v919_v27 }
 0x173   : > { %v14175_v48 = vpop.eup %14174  ;;  %14192 = vlog2.f32 %v837_v49  ;;  %v15859_v20 = vpack.c.bf16 %v953_v18, %v949_v56  ;;  %v955_v7 = vsel %vm698_vm1, %v19218_v38, %v923_v30  ;;  %v12835_v63 = vld [vmem:[#allocation7 + $0x28c] ss:$16 sps:$4 sm:$0xff]   ;;  %v926_v15 = vmul.f32 0.01, %v879_v3  ;;  %2001 = vmatpush1.bf16.msra.mxu1 %v12821_v40  ;;  %1930 = vmatpush1.bf16.msra.mxu0 %v12824_v34  ;;  %v12833_v40 = vld [vmem:[#allocation7 + $0x288] ss:$16 sps:$4 sm:$0xff]  }
 0x174   : > { %v14177_v29 = vpop.eup %14176  ;;  %v887_v39 = vmul.f32 0.6931472, %v14175_v48  ;;  %v12838_v25 = vld [vmem:[#allocation7 + $0x6c] ss:$16 sps:$4 sm:$0xff]   ;;  %v928_v14 = vmul.f32 0.01, %v883_v6  ;;  %2002 = vmatprep.subr.bf16.mxu1 %v12829_v37  ;;  %v15868_v23 = vpack.c.bf16 %v955_v7, %v951_v4  ;;  %1931 = vmatprep.subr.bf16.mxu0 %v12832_v22 }
 0x175   : > { %v14179_v55 = vpop.eup %14178  ;;  %v891_v21 = vmul.f32 0.6931472, %v14177_v29  ;;  %v885_v9 = vmul.f32 0.6931472, %v14171_v62  ;;  %1822 = vmatmul.mubr.bf16.gmra.mxu0 %v15859_v20  ;;  %v925_v33 = vmul.f32 0.01, %v877_v17 }
 0x176   : > { %v14181_v31 = vpop.eup %14180  ;;  %v839_v41 = vadd.f32 1.0, %v14179_v55  ;;  %v930_v24 = vmul.f32 0.01, %v887_v39  ;;  %v19220_v46 = vld [vmem:[#allocation30_spill] sm:$0xff]  ;;  %v12836_v49 = vld [vmem:[#allocation7 + $0x68] ss:$16 sps:$4 sm:$0xff]   ;;  %1895 = vmatmul.mubr.bf16.gmra.mxu1 %v15868_v23 }
 0x177   : > { %v14183_v13 = vpop.eup %14182  ;;  %v840_v53 = vadd.f32 1.0, %v14181_v31  ;;  %v958_v58 = vsel %vm701_vm4, %v19220_v46, %v926_v15  ;;  %v932_v34 = vmul.f32 0.01, %v891_v21  ;;  %v929_v62 = vmul.f32 0.01, %v885_v9  ;;  %v19221_v27 = vld [vmem:[#allocation36_spill] sm:$0xff]  ;;  %2003 = vmatpush1.bf16.msra.mxu1 %v12827_v60  ;;  %1932 = vmatpush1.bf16.msra.mxu0 %v12830_v35 }
 0x178   : > { %v14185_v11 = vpop.eup %14184  ;;  %14194 = vlog2.f32 %v839_v41  ;;  %v842_v37 = vadd.f32 1.0, %v14183_v13  ;;  %v962_v30 = vsel %vm705_vm6, %v19221_v27, %v930_v24  ;;  %v19222_v3 = vld [vmem:[#allocation32_spill] sm:$0xff]  ;;  %v19223_v54 = vld [vmem:[#allocation37_spill] sm:$0xff]  ;;  %2004 = vmatprep.subr.bf16.mxu1 %v12835_v63  ;;  %1933 = vmatprep.subr.bf16.mxu0 %v12838_v25  ;;  %v881_v60 = vmul.f32 0.6931472, %v15809_v57  ;;  %v19225_v12 = vld [vmem:[#allocation27_spill] sm:$0xff] }
 0x179   : > { %v960_v22 = vsel %vm703_vm5, %v19222_v3, %v928_v14  ;;  %v12841_v6 = vld [vmem:[#allocation7 + $0x26c] ss:$16 sps:$4 sm:$0xff]   ;;  %14196 = vlog2.f32 %v840_v53  ;;  %v841_v26 = vadd.f32 1.0, %v14185_v11  ;;  %v15880_v48 = vpack.c.bf16 %v962_v30, %v958_v58  ;;  %v14187_v18 = vpop.eup %14186  ;;  %v12839_v29 = vld [vmem:[#allocation7 + $0x268] ss:$16 sps:$4 sm:$0xff]  }
 0x17a   : > { %v964_v56 = vsel %vm707_vm7, %v19223_v54, %v932_v34  ;;  %v12844_v51 = vld [vmem:[#allocation7 + $0x4c] ss:$16 sps:$4 sm:$0xff]   ;;  %14198 = vlog2.f32 %v842_v37  ;;  %v961_v17 = vsel %vm704_vm8, %v19224_v42, %v929_v62  ;;  %v843_v35 = vadd.f32 1.0, %v14187_v18  ;;  %v12842_v63 = vld [vmem:[#allocation7 + $0x48] ss:$16 sps:$4 sm:$0xff]   ;;  %v14189_v39 = vpop.eup %14188 }
 0x17b   : > { %v15885_v32 = vpack.c.bf16 %v964_v56, %v960_v22  ;;  %14200 = vlog2.f32 %v841_v26  ;;  %1831 = vmatprep.mubr.bf16.mxu0 %v15880_v48  ;;  %v957_v38 = vsel %vm700_vm9, %v19225_v12, %v925_v33  ;;  %v889_v7 = vmul.f32 0.6931472, %v15847_v0  ;;  %v12847_v25 = vld [vmem:[#allocation7 + $0x24c] ss:$16 sps:$4 sm:$0xff]   ;;  %2005 = vmatpush1.bf16.msra.mxu1 %v12833_v40  ;;  %v19226_v55 = vld [vmem:[#allocation31_spill] sm:$0xff]  ;;  %v19230_v26 = vld [vmem:[#allocation45_spill] sm:$0xff] }
 0x17c   : > { %v15897_v15 = vpack.c.bf16 %v961_v17, %v957_v38  ;;  %v927_v19 = vmul.f32 0.01, %v881_v60  ;;  %14202 = vlog2.f32 %v843_v35  ;;  %1934 = vmatpush1.bf16.msra.mxu0 %v12836_v49  ;;  %vm702_vm10 = vcmp.gt.f32.partialorder %v19226_v55, 20.0  ;;  %v19227_v47 = vld [vmem:[#allocation35_spill] sm:$0xff]  ;;  %2006 = vmatprep.subr.bf16.mxu1 %v12841_v6  ;;  %v12850_v0 = vld [vmem:[#allocation7 + $0x2c] ss:$16 sps:$4 sm:$0xff]  }
 0x17d   : > { %1904 = vmatprep.mubr.bf16.mxu1 %v15885_v32  ;;  %v931_v57 = vmul.f32 0.01, %v889_v7  ;;  %vm706_vm11 = vcmp.gt.f32.partialorder %v19227_v47, 20.0  ;;  %v14191_v44 = vpop.eup %14190  ;;  %v19228_v4 = vld [vmem:[#allocation28_spill] sm:$0xff]  ;;  %v19229_v14 = vld [vmem:[#allocation34_spill] sm:$0xff]  ;;  %1935 = vmatprep.subr.bf16.mxu0 %v12844_v51  ;;  %vm708_vm12 = vcmp.gt.f32.partialorder %v15688_v36, 20.0 }
 0x17e   : > { %1832 = vmatmul.mubr.bf16.gmra.mxu0 %v15897_v15  ;;  %v959_v21 = vsel %vm702_vm10, %v19228_v4, %v927_v19  ;;  %v12845_v31 = vld [vmem:[#allocation7 + $0x248] ss:$16 sps:$4 sm:$0xff]   ;;  %v893_v24 = vmul.f32 0.6931472, %v14189_v39  ;;  %v12853_v53 = vld [vmem:[#allocation7 + $0x22c] ss:$16 sps:$4 sm:$0xff]  }
 0x17f   : > { %v963_v9 = vsel %vm706_vm11, %v19229_v14, %v931_v57  ;;  %v12848_v41 = vld [vmem:[#allocation7 + $0x28] ss:$16 sps:$4 sm:$0xff]   ;;  %v12856_v40 = vld [vmem:[#allocation7 + $0xc] ss:$16 sps:$4 sm:$0xff]   ;;  %2007 = vmatpush1.bf16.msra.mxu1 %v12839_v29  ;;  %v897_v62 = vmul.f32 0.6931472, %v14191_v44 }
 0x180   : > { %v14193_v33 = vpop.eup %14192  ;;  %v15904_v13 = vpack.c.bf16 %v963_v9, %v959_v21  ;;  %1936 = vmatpush1.bf16.msra.mxu0 %v12842_v63  ;;  %2008 = vmatprep.subr.bf16.mxu1 %v12847_v25  ;;  %v12851_v58 = vld [vmem:[#allocation7 + $0x228] ss:$16 sps:$4 sm:$0xff]   ;;  %v933_v34 = vmul.f32 0.01, %v893_v24  ;;  %v12859_v11 = vld [vmem:[#allocation7 + $0x20c] ss:$16 sps:$4 sm:$0xff]  }
 0x181   : > { %v895_v46 = vmul.f32 0.6931472, %v14193_v33  ;;  %1937 = vmatprep.subr.bf16.mxu0 %v12850_v0  ;;  %v12854_v49 = vld [vmem:[#allocation7 + $0x8] ss:$16 sps:$4 sm:$0xff]   ;;  %v12862_v37 = vld [vmem:[#allocation7 + $0x1ec] ss:$16 sps:$4 sm:$0xff]  }
 0x182   : > { %1905 = vmatmul.mubr.bf16.gmra.mxu1 %v15904_v13  ;;  %vm709_vm13 = vcmp.gt.f32.partialorder %v15712_v10, 20.0  ;;  %vm711_vm14 = vcmp.gt.f32.partialorder %v19230_v26, 20.0  ;;  %v12857_v56 = vld [vmem:[#allocation7 + $0x208] ss:$16 sps:$4 sm:$0xff]   ;;  %v12865_v60 = vld [vmem:[#allocation7 + $0x3ec] ss:$16 sps:$4 sm:$0xff]  }
 0x183   : > { %2009 = vmatpush1.bf16.msra.mxu1 %v12845_v31  ;;  %v934_v30 = vmul.f32 0.01, %v895_v46  ;;  %v12860_v51 = vld [vmem:[#allocation7 + $0x1e8] ss:$16 sps:$4 sm:$0xff]   ;;  %v12868_v35 = vld [vmem:[#allocation7 + $0x1cc] ss:$16 sps:$4 sm:$0xff]  }
 0x184   : > { %1938 = vmatpush1.bf16.msra.mxu0 %v12848_v41  ;;  %2010 = vmatprep.subr.bf16.mxu1 %v12853_v53  ;;  %vm712_vm15 = vcmp.gt.f32.partialorder %v15733_v50, 20.0  ;;  %v12863_v19 = vld [vmem:[#allocation7 + $0x3e8] ss:$16 sps:$4 sm:$0xff]   ;;  %vm713_vm0 = vcmp.gt.f32.partialorder %v15767_v28, 20.0  ;;  %v935_v55 = vmul.f32 0.01, %v897_v62 }
 0x185   : > { %v14195_v27 = vpop.eup %14194  ;;  %1939 = vmatprep.subr.bf16.mxu0 %v12856_v40  ;;  %v19231_v25 = vld [vmem:[#allocation43_spill] sm:$0xff]  ;;  %vm714_vm1 = vcmp.gt.f32.partialorder %v15739_v2, 20.0  ;;  %v19232_v47 = vld [vmem:[#allocation40_spill] sm:$0xff]  ;;  %vm715_vm3 = vcmp.gt.f32.partialorder %v15770_v52, 20.0  ;;  %v19233_v28 = vld [vmem:[#allocation38_spill] sm:$0xff] }
 0x186   : > { %v14197_v3 = vpop.eup %14196  ;;  %v899_v22 = vmul.f32 0.6931472, %v14195_v27  ;;  %v966_v0 = vsel %vm709_vm13, %v19232_v47, %v934_v30  ;;  %v12871_v4 = vld [vmem:[#allocation7 + $0x3cc] ss:$16 sps:$4 sm:$0xff]   ;;  %v965_v14 = vsel %vm708_vm12, %v19233_v28, %v933_v34  ;;  %v12866_v31 = vld [vmem:[#allocation7 + $0x1c8] ss:$16 sps:$4 sm:$0xff]  }
 0x187   : > { %v14199_v6 = vpop.eup %14198  ;;  %v901_v54 = vmul.f32 0.6931472, %v14197_v3  ;;  %2011 = vmatpush1.bf16.msra.mxu1 %v12851_v58  ;;  %v19234_v9 = vld [vmem:[#allocation44_spill] sm:$0xff]  ;;  %v19235_v10 = vld [vmem:[#allocation41_spill] sm:$0xff]  ;;  %v19237_v40 = vld [vmem:[#allocation39_spill] sm:$0xff] }
 0x188   : > { %v14201_v18 = vpop.eup %14200  ;;  %v936_v42 = vmul.f32 0.01, %v899_v22  ;;  %v905_v17 = vmul.f32 0.6931472, %v14199_v6  ;;  %1940 = vmatpush1.bf16.msra.mxu0 %v12854_v49  ;;  %2012 = vmatprep.subr.bf16.mxu1 %v12859_v11  ;;  %vm710_vm4 = vcmp.gt.f32.partialorder %v19235_v10, 20.0 }
 0x189   : > { %v903_v29 = vmul.f32 0.6931472, %v14201_v18  ;;  %v937_v12 = vmul.f32 0.01, %v901_v54  ;;  %v14203_v38 = vpop.eup %14202  ;;  %1941 = vmatprep.subr.bf16.mxu0 %v12862_v37  ;;  %v12869_v33 = vld [vmem:[#allocation7 + $0x3c8] ss:$16 sps:$4 sm:$0xff]   ;;  %v967_v46 = vsel %vm710_vm4, %v19237_v40, %v935_v55 }
 0x18a   : > { %v939_v7 = vmul.f32 0.01, %v905_v17  ;;  %v907_v39 = vmul.f32 0.6931472, %v14203_v38  ;;  %v12874_v53 = vld [vmem:[#allocation7 + $0x1ac] ss:$16 sps:$4 sm:$0xff]  }
 0x18b   : > { %v938_v63 = vmul.f32 0.01, %v903_v29  ;;  %v969_v57 = vsel %vm712_vm15, %v19231_v25, %v937_v12  ;;  %2013 = vmatpush1.bf16.msra.mxu1 %v12857_v56  ;;  %v12877_v58 = vld [vmem:[#allocation7 + $0x3ac] ss:$16 sps:$4 sm:$0xff]   ;;  %v12875_v49 = vld [vmem:[#allocation7 + $0x3a8] ss:$16 sps:$4 sm:$0xff]  }
 0x18c   : > { %v940_v50 = vmul.f32 0.01, %v907_v39  ;;  %1942 = vmatpush2.bf16.msra.mxu0 %v12860_v51  ;;  %v971_v2 = vsel %vm714_vm1, %v19234_v9, %v939_v7  ;;  %2014 = vmatprep.subr.bf16.mxu1 %v12865_v60  ;;  %v15930_v52 = vpack.c.bf16 %v969_v57, %v965_v14  ;;  %v12880_v62 = vld [vmem:[#allocation7 + $0x18c] ss:$16 sps:$4 sm:$0xff]   ;;  %v12878_v37 = vld [vmem:[#allocation7 + $0x188] ss:$16 sps:$4 sm:$0xff]  }
 0x18d   : > { %v970_v44 = vsel %vm713_vm0, %v15758_v16, %v938_v63  ;;  %1943 = vmatprep.subr.bf16.mxu0 %v12868_v35  ;;  %v19236_v16 = vld [vmem:[#allocation42_spill] sm:$0xff]  ;;  %v15937_v34 = vpack.c.bf16 %v971_v2, %v967_v46  ;;  %v12881_v27 = vld [vmem:[#allocation7 + $0x388] ss:$16 sps:$4 sm:$0xff]   ;;  %v12910_v12 = vld [vmem:[#allocation7 + $0x4e4] ss:$16 sps:$4 sm:$0xff]  }
 0x18e   : > { %v15919_v21 = vpack.c.bf16 %v970_v44, %v966_v0  ;;  %v968_v41 = vsel %vm711_vm14, %v19236_v16, %v936_v42  ;;  %v972_v24 = vsel %vm715_vm3, %v15761_v8, %v940_v50  ;;  %v12872_v8 = vld [vmem:[#allocation7 + $0x1a8] ss:$16 sps:$4 sm:$0xff]   ;;  %v12883_v11 = vld [vmem:[#allocation7 + $0x38c] ss:$16 sps:$4 sm:$0xff]   ;;  %v12908_v38 = vld [vmem:[#allocation7 + $0x4e0] ss:$16 sps:$4 sm:$0xff]  }
 0x18f   : > { %v15933_v36 = vpack.c.bf16 %v972_v24, %v968_v41  ;;  %2015 = vmatpush2.bf16.msra.mxu1 %v12863_v19  ;;  %v12886_v30 = vld [vmem:[#allocation7 + $0x16c] ss:$16 sps:$4 sm:$0xff]   ;;  %v12887_v22 = vld [vmem:[#allocation7 + $0x368] ss:$16 sps:$4 sm:$0xff]   ;;  %v12913_v7 = vld [vmem:[#allocation7 + $0x4c4] ss:$16 sps:$4 sm:$0xff]  }
 0x190   : > { %1841 = vmatprep.mubr.bf16.mxu0 %v15919_v21  ;;  %2016 = vmatprep.subr.bf16.mxu1 %v12871_v4  ;;  %v12889_v3 = vld [vmem:[#allocation7 + $0x36c] ss:$16 sps:$4 sm:$0xff]   ;;  %v12893_v54 = vld [vmem:[#allocation7 + $0x348] ss:$16 sps:$4 sm:$0xff]   ;;  %v12911_v63 = vld [vmem:[#allocation7 + $0x4c0] ss:$16 sps:$4 sm:$0xff]  }
 0x191   : > { %1842 = vmatmul.mubr.bf16.gmra.mxu0 %v15930_v52  ;;  %1914 = vmatprep.mubr.bf16.mxu1 %v15933_v36  ;;  %v12892_v6 = vld [vmem:[#allocation7 + $0x14c] ss:$16 sps:$4 sm:$0xff]   ;;  %v12896_v18 = vld [vmem:[#allocation7 + $0x128] ss:$16 sps:$4 sm:$0xff]   ;;  %v12916_v39 = vld [vmem:[#allocation7 + $0x4a4] ss:$16 sps:$4 sm:$0xff]  }
 0x192   : > { %1957 = vmatprep.mubr.bf16.mxu0 %v15796_v5  ;;  %1915 = vmatmul.mubr.bf16.gmra.mxu1 %v15937_v34  ;;  %v12884_v5 = vld [vmem:[#allocation7 + $0x168] ss:$16 sps:$4 sm:$0xff]   ;;  %v12895_v26 = vld [vmem:[#allocation7 + $0x34c] ss:$16 sps:$4 sm:$0xff]   ;;  %v12914_v19 = vld [vmem:[#allocation7 + $0x4a0] ss:$16 sps:$4 sm:$0xff]  }
 0x193   : > { %2030 = vmatprep.mubr.bf16.mxu1 %v15819_v61  ;;  %1944 = vmatpush2.bf16.msra.mxu0 %v12866_v31  ;;  %v12890_v61 = vld [vmem:[#allocation7 + $0x148] ss:$16 sps:$4 sm:$0xff]   ;;  %v12898_v56 = vld [vmem:[#allocation7 + $0x12c] ss:$16 sps:$4 sm:$0xff]   ;;  %v12934_v25 = vld [vmem:[#allocation7 + $0x5e4] ss:$16 sps:$4 sm:$0xff]  }
 0x194   : > { %2017 = vmatpush2.bf16.msra.mxu1 %v12869_v33  ;;  %1945 = vmatprep.subr.bf16.mxu0 %v12874_v53  ;;  %v12901_v51 = vld [vmem:[#allocation7 + $0x32c] ss:$16 sps:$4 sm:$0xff]   ;;  %v12899_v42 = vld [vmem:[#allocation7 + $0x328] ss:$16 sps:$4 sm:$0xff]   ;;  %v12932_v57 = vld [vmem:[#allocation7 + $0x5e0] ss:$16 sps:$4 sm:$0xff]  }
 0x195   : > { %2018 = vmatprep.subr.bf16.mxu1 %v12877_v58  ;;  %v12904_v17 = vld [vmem:[#allocation7 + $0x10c] ss:$16 sps:$4 sm:$0xff]   ;;  %v12902_v35 = vld [vmem:[#allocation7 + $0x108] ss:$16 sps:$4 sm:$0xff]   ;;  %v12937_v55 = vld [vmem:[#allocation7 + $0x5c4] ss:$16 sps:$4 sm:$0xff]  }
 0x196   : > { %v12907_v60 = vld [vmem:[#allocation7 + $0x30c] ss:$16 sps:$4 sm:$0xff]   ;;  %v12905_v29 = vld [vmem:[#allocation7 + $0x308] ss:$16 sps:$4 sm:$0xff]   ;;  %v12935_v47 = vld [vmem:[#allocation7 + $0x5c0] ss:$16 sps:$4 sm:$0xff]  }
 0x197   : > { %1946 = vmatpush2.bf16.msra.mxu0 %v12872_v8  ;;  %v12940_v0 = vld [vmem:[#allocation7 + $0x5a4] ss:$16 sps:$4 sm:$0xff]   ;;  %v12938_v44 = vld [vmem:[#allocation7 + $0x5a0] ss:$16 sps:$4 sm:$0xff]  }
 0x198   : > { %2019 = vmatpush2.bf16.msra.mxu1 %v12875_v49  ;;  %1947 = vmatprep.subr.bf16.mxu0 %v12880_v62  ;;  %v12943_v50 = vld [vmem:[#allocation7 + $0x584] ss:$16 sps:$4 sm:$0xff]   ;;  %v12941_v4 = vld [vmem:[#allocation7 + $0x580] ss:$16 sps:$4 sm:$0xff]  }
 0x199   : > { %2020 = vmatprep.subr.bf16.mxu1 %v12883_v11  ;;  %v12944_v28 = vld [vmem:[#allocation7 + $0x560] ss:$16 sps:$4 sm:$0xff]   ;;  %v12949_v14 = vld [vmem:[#allocation7 + $0x544] ss:$16 sps:$4 sm:$0xff]  }
 0x19a   : > { %v12947_v9 = vld [vmem:[#allocation7 + $0x540] ss:$16 sps:$4 sm:$0xff]   ;;  %v12952_v2 = vld [vmem:[#allocation7 + $0x524] ss:$16 sps:$4 sm:$0xff]  }
 0x19b   : > { %1948 = vmatpush2.bf16.msra.mxu0 %v12878_v37  ;;  %v12950_v31 = vld [vmem:[#allocation7 + $0x520] ss:$16 sps:$4 sm:$0xff]   ;;  %v12955_v10 = vld [vmem:[#allocation7 + $0x504] ss:$16 sps:$4 sm:$0xff]  }
 0x19c   : > { %2021 = vmatpush2.bf16.msra.mxu1 %v12881_v27  ;;  %1949 = vmatprep.subr.bf16.mxu0 %v12886_v30  ;;  %v12953_v16 = vld [vmem:[#allocation7 + $0x500] ss:$16 sps:$4 sm:$0xff]   ;;  %v12958_v41 = vld [vmem:[#allocation7 + $0x6e4] ss:$16 sps:$4 sm:$0xff]  }
 0x19d   : > { %2022 = vmatprep.subr.bf16.mxu1 %v12889_v3  ;;  %v12956_v24 = vld [vmem:[#allocation7 + $0x6e0] ss:$16 sps:$4 sm:$0xff]   ;;  %v12964_v33 = vld [vmem:[#allocation7 + $0x6c4] ss:$16 sps:$4 sm:$0xff]  }
 0x19e   : > { %v12962_v53 = vld [vmem:[#allocation7 + $0x6c0] ss:$16 sps:$4 sm:$0xff]   ;;  %v12976_v46 = vld [vmem:[#allocation7 + $0x684] ss:$16 sps:$4 sm:$0xff]  }
 0x19f   : > { %1950 = vmatpush2.bf16.msra.mxu0 %v12884_v5  ;;  %v12968_v40 = vld [vmem:[#allocation7 + $0x6a0] ss:$16 sps:$4 sm:$0xff]   ;;  %v12988_v49 = vld [vmem:[#allocation7 + $0x644] ss:$16 sps:$4 sm:$0xff]  }
 0x1a0   : > { %2023 = vmatpush2.bf16.msra.mxu1 %v12887_v22  ;;  %1951 = vmatprep.subr.bf16.mxu0 %v12892_v6  ;;  %v12974_v58 = vld [vmem:[#allocation7 + $0x680] ss:$16 sps:$4 sm:$0xff]   ;;  %v12994_v11 = vld [vmem:[#allocation7 + $0x624] ss:$16 sps:$4 sm:$0xff]  }
 0x1a1   : > { %2024 = vmatprep.subr.bf16.mxu1 %v12895_v26  ;;  %v12980_v8 = vld [vmem:[#allocation7 + $0x660] ss:$16 sps:$4 sm:$0xff]   ;;  %v13000_v27 = vld [vmem:[#allocation7 + $0x604] ss:$16 sps:$4 sm:$0xff]  }
 0x1a2   : > { %v12986_v62 = vld [vmem:[#allocation7 + $0x640] ss:$16 sps:$4 sm:$0xff]   ;;  %v13006_v3 = vld [vmem:[#allocation7 + $0x7e4] ss:$16 sps:$4 sm:$0xff]  }
 0x1a3   : > { %1952 = vmatpush2.bf16.msra.mxu0 %v12890_v61  ;;  %v12992_v37 = vld [vmem:[#allocation7 + $0x620] ss:$16 sps:$4 sm:$0xff]   ;;  %v13012_v22 = vld [vmem:[#allocation7 + $0x7c4] ss:$16 sps:$4 sm:$0xff]  }
 0x1a4   : > { %2025 = vmatpush2.bf16.msra.mxu1 %v12893_v54  ;;  %1953 = vmatprep.subr.bf16.mxu0 %v12898_v56  ;;  %v12998_v30 = vld [vmem:[#allocation7 + $0x600] ss:$16 sps:$4 sm:$0xff]   ;;  %v13018_v26 = vld [vmem:[#allocation7 + $0x7a4] ss:$16 sps:$4 sm:$0xff]  }
 0x1a5   : > { %2026 = vmatprep.subr.bf16.mxu1 %v12901_v51  ;;  %v13004_v5 = vld [vmem:[#allocation7 + $0x7e0] ss:$16 sps:$4 sm:$0xff]   ;;  %v13024_v54 = vld [vmem:[#allocation7 + $0x784] ss:$16 sps:$4 sm:$0xff]  }
 0x1a6   : > { %v13010_v6 = vld [vmem:[#allocation7 + $0x7c0] ss:$16 sps:$4 sm:$0xff]  }
 0x1a7   : > { %1954 = vmatpush2.bf16.msra.mxu0 %v12896_v18  ;;  %v13016_v61 = vld [vmem:[#allocation7 + $0x7a0] ss:$16 sps:$4 sm:$0xff]   ;;  %v13030_v18 = vld [vmem:[#allocation7 + $0x764] ss:$16 sps:$4 sm:$0xff]  }
 0x1a8   : > { %2027 = vmatpush2.bf16.msra.mxu1 %v12899_v42  ;;  %1955 = vmatprep.subr.bf16.mxu0 %v12904_v17  ;;  %v13022_v56 = vld [vmem:[#allocation7 + $0x780] ss:$16 sps:$4 sm:$0xff]   ;;  %v19238_v17 = vld [vmem:[#allocation19_spill] sm:$0xff] }
 0x1a9   : > { %2028 = vmatprep.subr.bf16.mxu1 %v12907_v60  ;;  %v15957_v51 = vld [vmem:[#allocation8] sm:$0xf] }
 0x1aa   : > { %v13028_v42 = vld [vmem:[#allocation7 + $0x760] ss:$16 sps:$4 sm:$0xff]   ;;  %v15961_v60 = vrot.slane %v15957_v51, %v19238_v17 }
 0x1ab   : > { %1956 = vmatpush2.bf16.msra.mxu0 %v12902_v35  ;;  %v13036_v35 = vld [vmem:[#allocation7 + $0x744] ss:$16 sps:$4 sm:$0xff]  }
 0x1ac   : > { %2029 = vmatpush2.bf16.msra.mxu1 %v12905_v29  ;;  %3199 = vmatprep.subr.bf16.mxu0 %v12910_v12  ;;  %v19239_v29 = vld [vmem:[#allocation21_spill] sm:$0xff] }
 0x1ad   : > { %3272 = vmatprep.subr.bf16.mxu1 %v12958_v41  ;;  %v15965_v12 = vrot.slane %v15957_v51, %v19239_v29 }
 0x1ae   : > { %1958 = vmatmul.mubr.bf16.vlgmr.msra.gmra.mxu0 %v15777_v45  ;;  %v12919_v45 = vld [vmem:[#allocation7 + $0x484] ss:$16 sps:$4 sm:$0xff]  }
 0x1af   : > { %2031 = vmatmul.mubr.bf16.vlgmr.msra.gmra.mxu1 %v15804_v1  ;;  %1967 = vmatprep.mubr.bf16.mxu0 %v15832_v59  ;;  %v12917_v1 = vld [vmem:[#allocation7 + $0x480] ss:$16 sps:$4 sm:$0xff]   ;;  %v12922_v59 = vld [vmem:[#allocation7 + $0x464] ss:$16 sps:$4 sm:$0xff]  }
 0x1b0   : > { %2040 = vmatprep.mubr.bf16.mxu1 %v15845_v43  ;;  %3200 = vmatpush1.bf16.msra.mxu0 %v12908_v38  ;;  %v12920_v43 = vld [vmem:[#allocation7 + $0x460] ss:$16 sps:$4 sm:$0xff]  }
 0x1b1   : > { %3201 = vmatprep.subr.bf16.mxu0 %v12913_v7  ;;  %3273 = vmatpush1.bf16.msra.mxu1 %v12956_v24  ;;  %v13034_v38 = vld [vmem:[#allocation7 + $0x740] ss:$16 sps:$4 sm:$0xff]  }
 0x1b2   : > { %3274 = vmatprep.subr.bf16.mxu1 %v12964_v33 }
 0x1b4   : > { %3202 = vmatpush1.bf16.msra.mxu0 %v12911_v63 }
 0x1b5   : > { %3203 = vmatprep.subr.bf16.mxu0 %v12916_v39  ;;  %3275 = vmatpush1.bf16.msra.mxu1 %v12962_v53  ;;  %v13040_v39 = vld [vmem:[#allocation7 + $0x720] ss:$16 sps:$4 sm:$0xff]  }
 0x1b6   : > { %1968 = vmatmul.mubr.bf16.gmra.mxu0 %v15859_v20  ;;  %v12925_v20 = vld [vmem:[#allocation7 + $0x444] ss:$16 sps:$4 sm:$0xff]  }
 0x1b7   : > { %2041 = vmatmul.mubr.bf16.gmra.mxu1 %v15868_v23  ;;  %1977 = vmatprep.mubr.bf16.mxu0 %v15880_v48  ;;  %v12923_v23 = vld [vmem:[#allocation7 + $0x440] ss:$16 sps:$4 sm:$0xff]   ;;  %v12928_v48 = vld [vmem:[#allocation7 + $0x424] ss:$16 sps:$4 sm:$0xff]  }
 0x1b8   : > { %2050 = vmatprep.mubr.bf16.mxu1 %v15885_v32  ;;  %3204 = vmatpush1.bf16.msra.mxu0 %v12914_v19  ;;  %v12926_v32 = vld [vmem:[#allocation7 + $0x420] ss:$16 sps:$4 sm:$0xff]   ;;  %v13042_v19 = vld [vmem:[#allocation7 + $0x724] ss:$16 sps:$4 sm:$0xff]  }
 0x1b9   : > { %3205 = vmatprep.subr.bf16.mxu0 %v12919_v45 }
 0x1bc   : > { %3206 = vmatpush1.bf16.msra.mxu0 %v12917_v1  ;;  %v13048_v1 = vld [vmem:[#allocation7 + $0x704] ss:$16 sps:$4 sm:$0xff]  }
 0x1bd   : > { %3207 = vmatprep.subr.bf16.mxu0 %v12922_v59 }
 0x1be   : > { %1978 = vmatmul.mubr.bf16.gmra.mxu0 %v15897_v15  ;;  %v12931_v15 = vld [vmem:[#allocation7 + $0x404] ss:$16 sps:$4 sm:$0xff]  }
 0x1bf   : > { %2051 = vmatmul.mubr.bf16.gmra.mxu1 %v15904_v13  ;;  %1987 = vmatprep.mubr.bf16.mxu0 %v15919_v21  ;;  %v12929_v13 = vld [vmem:[#allocation7 + $0x400] ss:$16 sps:$4 sm:$0xff]   ;;  %v12946_v21 = vld [vmem:[#allocation7 + $0x564] ss:$16 sps:$4 sm:$0xff]  }
 0x1c0   : > { %2060 = vmatprep.mubr.bf16.mxu1 %v15933_v36  ;;  %3208 = vmatpush1.bf16.msra.mxu0 %v12920_v43  ;;  %v12970_v36 = vld [vmem:[#allocation7 + $0x6a4] ss:$16 sps:$4 sm:$0xff]  }
 0x1c1   : > { %3209 = vmatprep.subr.bf16.mxu0 %v12925_v20  ;;  %3276 = vmatprep.subr.bf16.mxu1 %v12970_v36 }
 0x1c2   : > { %3277 = vmatpush1.bf16.msra.mxu1 %v12968_v40 }
 0x1c3   : > { %3278 = vmatprep.subr.bf16.mxu1 %v12976_v46 }
 0x1c4   : > { %3210 = vmatpush1.bf16.msra.mxu0 %v12923_v23 }
 0x1c5   : > { %3211 = vmatprep.subr.bf16.mxu0 %v12928_v48 }
 0x1c6   : > { %1988 = vmatmul.mubr.bf16.gmra.mxu0 %v15930_v52  ;;  %v12961_v52 = vld [vmem:[#allocation7 + $0x4ec] ss:$16 sps:$4 sm:$0xff]   ;;  %3279 = vmatpush1.bf16.msra.mxu1 %v12974_v58 }
 0x1c7   : > { %2061 = vmatmul.mubr.bf16.gmra.mxu1 %v15937_v34  ;;  %v12982_v34 = vld [vmem:[#allocation7 + $0x664] ss:$16 sps:$4 sm:$0xff]  }
 0x1c8   : > { %3212 = vmatpush1.bf16.msra.mxu0 %v12926_v32  ;;  %3280 = vmatprep.subr.bf16.mxu1 %v12982_v34  ;;  %v13046_v32 = vld [vmem:[#allocation7 + $0x700] ss:$16 sps:$4 sm:$0xff]  }
 0x1c9   : > { %3213 = vmatprep.subr.bf16.mxu0 %v12931_v15 }
 0x1ca   : > { %3281 = vmatpush1.bf16.msra.mxu1 %v12980_v8 }
 0x1cb   : > { %3282 = vmatprep.subr.bf16.mxu1 %v12988_v49 }
 0x1cc   : > { %3214 = vmatpush1.bf16.msra.mxu0 %v12929_v13 }
 0x1cd   : > { %3215 = vmatprep.subr.bf16.mxu0 %v12934_v25  ;;  %v13054_v25 = vld [vmem:[#allocation7 + $0x6ec] ss:$16 sps:$4 sm:$0xff]  }
 0x1ce   : > { %3283 = vmatpush1.bf16.msra.mxu1 %v12986_v62 }
 0x1cf   : > { %3284 = vmatprep.subr.bf16.mxu1 %v12994_v11 }
 0x1d0   : > { %3216 = vmatpush2.bf16.msra.mxu0 %v12932_v57 }
 0x1d1   : > { %3217 = vmatprep.subr.bf16.mxu0 %v12937_v55 }
 0x1d2   : > { %3285 = vmatpush1.bf16.msra.mxu1 %v12992_v37 }
 0x1d3   : > { %3286 = vmatprep.subr.bf16.mxu1 %v13000_v27 }
 0x1d4   : > { %3218 = vmatpush2.bf16.msra.mxu0 %v12935_v47 }
 0x1d5   : > { %3219 = vmatprep.subr.bf16.mxu0 %v12940_v0 }
 0x1d6   : > { %3287 = vmatpush1.bf16.msra.mxu1 %v12998_v30 }
 0x1d7   : > { %3288 = vmatprep.subr.bf16.mxu1 %v13006_v3 }
 0x1d8   : > { %3220 = vmatpush2.bf16.msra.mxu0 %v12938_v44 }
 0x1d9   : > { %3221 = vmatprep.subr.bf16.mxu0 %v12943_v50 }
 0x1da   : > { %3289 = vmatpush2.bf16.msra.mxu1 %v13004_v5 }
 0x1db   : > { %3290 = vmatprep.subr.bf16.mxu1 %v13012_v22 }
 0x1dc   : > { %3222 = vmatpush2.bf16.msra.mxu0 %v12941_v4 }
 0x1dd   : > { %3223 = vmatprep.subr.bf16.mxu0 %v12946_v21 }
 0x1de   : > { %3291 = vmatpush2.bf16.msra.mxu1 %v13010_v6 }
 0x1df   : > { %3292 = vmatprep.subr.bf16.mxu1 %v13018_v26 }
 0x1e0   : > { %3224 = vmatpush2.bf16.msra.mxu0 %v12944_v28 }
 0x1e1   : > { %3225 = vmatprep.subr.bf16.mxu0 %v12949_v14 }
 0x1e2   : > { %3293 = vmatpush2.bf16.msra.mxu1 %v13016_v61 }
 0x1e3   : > { %3294 = vmatprep.subr.bf16.mxu1 %v13024_v54 }
 0x1e4   : > { %3226 = vmatpush2.bf16.msra.mxu0 %v12947_v9 }
 0x1e5   : > { %3227 = vmatprep.subr.bf16.mxu0 %v12952_v2 }
 0x1e6   : > { %3295 = vmatpush2.bf16.msra.mxu1 %v13022_v56 }
 0x1e7   : > { %3296 = vmatprep.subr.bf16.mxu1 %v13030_v18 }
 0x1e8   : > { %3228 = vmatpush2.bf16.msra.mxu0 %v12950_v31 }
 0x1e9   : > { %3229 = vmatprep.subr.bf16.mxu0 %v12955_v10 }
 0x1ea   : > { %3297 = vmatpush2.bf16.msra.mxu1 %v13028_v42 }
 0x1eb   : > { %3298 = vmatprep.subr.bf16.mxu1 %v13036_v35 }
 0x1ec   : > { %3230 = vmatpush2.bf16.msra.mxu0 %v12953_v16 }
 0x1ed   : > { %3345 = vmatprep.subr.bf16.mxu0 %v12961_v52 }
 0x1ee   : > { %3299 = vmatpush2.bf16.msra.mxu1 %v13034_v38 }
 0x1ef   : > { %3300 = vmatprep.subr.bf16.mxu1 %v13042_v19 }
 0x1f2   : > { %3301 = vmatpush2.bf16.msra.mxu1 %v13040_v39 }
 0x1f3   : > { %3302 = vmatprep.subr.bf16.mxu1 %v13048_v1 }
 0x1f6   : > { %3303 = vmatpush2.bf16.msra.mxu1 %v13046_v32 }
 0x1f7   : > { %3418 = vmatprep.subr.bf16.mxu1 %v13054_v25 }
 0x22a   : > { %v1813_v7 = vpop.f32.mrf.mxu0 }
 0x22b   : > { %v1814_v63 = vadd.f32 %v1813_v7, %v15961_v60 }
 0x22c   : > { %v1815_v45 = vpop.f32.mrf.mxu0 }
 0x22d   : > { %v1816_v59 = vadd.f32 %v1815_v45, %v15965_v12 }
 0x22e   : > { %v1886_v43 = vpop.f32.mrf.mxu1  ;;  %v1817_v20 = vpop.f32.mrf.mxu0 }
 0x22f   : > { %v15969_v23 = vadd.f32 %v1886_v43, %v1814_v63  ;;  %v1818_v48 = vadd.f32 %v1817_v20, %v15961_v60 }
 0x230   : > { %v1888_v15 = vpop.f32.mrf.mxu1  ;;  %v1819_v13 = vpop.f32.mrf.mxu0 }
 0x231   : > { %v15973_v57 = vmul.f32 100.0, %v15969_v23  ;;  %v15975_v55 = vadd.f32 %v1888_v15, %v1816_v59  ;;  %v1820_v0 = vadd.f32 %v1819_v13, %v15965_v12 }
 0x232   : > { %v1890_v47 = vpop.f32.mrf.mxu1 }
 0x233   : > { %v2135_v44 = vmin.f32 %v15973_v57, 20.0  ;;  %v15980_v50 = vmul.f32 100.0, %v15975_v55  ;;  %v15982_v4 = vadd.f32 %v1890_v47, %v1818_v48  ;;  %vm2103_vm5 = vcmp.gt.f32.partialorder %v15973_v57, 20.0 }
 0x234   : > { %v1892_v21 = vpop.f32.mrf.mxu1 }
 0x235   : > { %v1823_v28 = vpop.f32.mrf.mxu0  ;;  %v2167_v14 = vmul.f32 1.442695, %v2135_v44  ;;  %v2136_v9 = vmin.f32 %v15980_v50, 20.0  ;;  %v15986_v2 = vmul.f32 100.0, %v15982_v4  ;;  %v15988_v31 = vadd.f32 %v1892_v21, %v1820_v0 }
 0x236   : > { %v1824_v10 = vadd.f32 %v1823_v28, %v15961_v60  ;;  %v1896_v16 = vpop.f32.mrf.mxu1  ;;  %vm2104_vm6 = vcmp.gt.f32.partialorder %v15980_v50, 20.0 }
 0x237   : > { %v1825_v41 = vpop.f32.mrf.mxu0  ;;  %14204 = vpow2.f32 %v2167_v14  ;;  %v2169_v24 = vmul.f32 1.442695, %v2136_v9  ;;  %v2139_v52 = vmin.f32 %v15986_v2, 20.0  ;;  %v15993_v33 = vmul.f32 100.0, %v15988_v31 }
 0x238   : > { %v15995_v53 = vadd.f32 %v1896_v16, %v1824_v10  ;;  %v1826_v36 = vadd.f32 %v1825_v41, %v15965_v12  ;;  %v1898_v40 = vpop.f32.mrf.mxu1  ;;  %vm2107_vm7 = vcmp.gt.f32.partialorder %v15986_v2, 20.0 }
 0x239   : > { %v1827_v46 = vpop.f32.mrf.mxu0  ;;  %14206 = vpow2.f32 %v2169_v24  ;;  %v2175_v58 = vmul.f32 1.442695, %v2139_v52  ;;  %v2140_v8 = vmin.f32 %v15993_v33, 20.0  ;;  %vm2108_vm8 = vcmp.gt.f32.partialorder %v15993_v33, 20.0 }
 0x23a   : > { %v1828_v34 = vadd.f32 %v1827_v46, %v15961_v60  ;;  %v16001_v49 = vmul.f32 100.0, %v15995_v53  ;;  %v16003_v62 = vadd.f32 %v1898_v40, %v1826_v36  ;;  %v1900_v11 = vpop.f32.mrf.mxu1 }
 0x23b   : > { %v1829_v37 = vpop.f32.mrf.mxu0  ;;  %14208 = vpow2.f32 %v2175_v58  ;;  %v2177_v3 = vmul.f32 1.442695, %v2140_v8 }
 0x23c   : > { %v16005_v27 = vadd.f32 %v1900_v11, %v1828_v34  ;;  %v1830_v30 = vadd.f32 %v1829_v37, %v15965_v12  ;;  %v2143_v5 = vmin.f32 %v16001_v49, 20.0  ;;  %v16010_v22 = vmul.f32 100.0, %v16003_v62  ;;  %v1902_v6 = vpop.f32.mrf.mxu1 }
 0x23d   : > { %14210 = vpow2.f32 %v2177_v3  ;;  %vm2111_vm12 = vcmp.gt.f32.partialorder %v16001_v49, 20.0 }
 0x23e   : > { %v1833_v26 = vpop.f32.mrf.mxu0  ;;  %v16013_v61 = vmul.f32 100.0, %v16005_v27  ;;  %v16015_v54 = vadd.f32 %v1902_v6, %v1830_v30  ;;  %v2183_v18 = vmul.f32 1.442695, %v2143_v5  ;;  %v2144_v42 = vmin.f32 %v16010_v22, 20.0 }
 0x23f   : > { %v1834_v56 = vadd.f32 %v1833_v26, %v15961_v60  ;;  %vm2112_vm9 = vcmp.gt.f32.partialorder %v16010_v22, 20.0  ;;  %v12971_v22 = vld [vmem:[#allocation7 + $0x4a8] ss:$16 sps:$4 sm:$0xff]  }
 0x240   : > { %v1835_v35 = vpop.f32.mrf.mxu0  ;;  %v2147_v38 = vmin.f32 %v16013_v61, 20.0  ;;  %v16021_v7 = vmul.f32 100.0, %v16015_v54  ;;  %14212 = vpow2.f32 %v2183_v18  ;;  %v2185_v39 = vmul.f32 1.442695, %v2144_v42 }
 0x241   : > { %v1836_v63 = vadd.f32 %v1835_v35, %v15965_v12  ;;  %vm2115_vm10 = vcmp.gt.f32.partialorder %v16013_v61, 20.0 }
 0x242   : > { %v1906_v19 = vpop.f32.mrf.mxu1  ;;  %v1837_v45 = vpop.f32.mrf.mxu0  ;;  %v2191_v1 = vmul.f32 1.442695, %v2147_v38  ;;  %v2148_v59 = vmin.f32 %v16021_v7, 20.0  ;;  %14214 = vpow2.f32 %v2185_v39  ;;  %vm2116_vm11 = vcmp.gt.f32.partialorder %v16021_v7, 20.0 }
 0x243   : > { %v16025_v43 = vadd.f32 %v1906_v19, %v1834_v56  ;;  %v1838_v48 = vadd.f32 %v1837_v45, %v15961_v60 }
 0x244   : > { %v1908_v20 = vpop.f32.mrf.mxu1  ;;  %v1839_v32 = vpop.f32.mrf.mxu0  ;;  %14216 = vpow2.f32 %v2191_v1  ;;  %v2193_v15 = vmul.f32 1.442695, %v2148_v59 }
 0x245   : > { %v16029_v13 = vmul.f32 100.0, %v16025_v43  ;;  %v16031_v25 = vadd.f32 %v1908_v20, %v1836_v63  ;;  %v14205_v47 = vpop.eup %14204  ;;  %v1840_v44 = vadd.f32 %v1839_v32, %v15965_v12 }
 0x246   : > { %v1910_v0 = vpop.f32.mrf.mxu1  ;;  %v2231_v21 = vadd.f32 1.0, %v14205_v47  ;;  %14218 = vpow2.f32 %v2193_v15  ;;  %v14207_v14 = vpop.eup %14206 }
 0x247   : > { %v2151_v28 = vmin.f32 %v16029_v13, 20.0  ;;  %v16036_v9 = vmul.f32 100.0, %v16031_v25  ;;  %v16038_v10 = vadd.f32 %v1910_v0, %v1838_v48  ;;  %v2232_v41 = vadd.f32 1.0, %v14207_v14 }
 0x248   : > { %v1912_v16 = vpop.f32.mrf.mxu1  ;;  %14220 = vlog2.f32 %v2231_v21  ;;  %v14209_v36 = vpop.eup %14208  ;;  %vm2119_vm13 = vcmp.gt.f32.partialorder %v16029_v13, 20.0 }
 0x249   : > { %v2199_v24 = vmul.f32 1.442695, %v2151_v28  ;;  %v16040_v52 = vadd.f32 %v1912_v16, %v1840_v44  ;;  %v2152_v40 = vmin.f32 %v16036_v9, 20.0  ;;  %v16044_v46 = vmul.f32 100.0, %v16038_v10 }
 0x24a   : > { %14222 = vlog2.f32 %v2232_v41  ;;  %v2235_v58 = vadd.f32 1.0, %v14209_v36  ;;  %v14211_v37 = vpop.eup %14210  ;;  %vm2120_vm0 = vcmp.gt.f32.partialorder %v16036_v9, 20.0 }
 0x24b   : > { %v16047_v34 = vmul.f32 100.0, %v16040_v52  ;;  %14224 = vpow2.f32 %v2199_v24  ;;  %v2201_v8 = vmul.f32 1.442695, %v2152_v40  ;;  %v2155_v11 = vmin.f32 %v16044_v46, 20.0 }
 0x24c   : > { %14226 = vlog2.f32 %v2235_v58  ;;  %v2236_v3 = vadd.f32 1.0, %v14211_v37  ;;  %vm2123_vm14 = vcmp.gt.f32.partialorder %v16044_v46, 20.0 }
 0x24d   : > { %v2156_v30 = vmin.f32 %v16047_v34, 20.0  ;;  %14228 = vpow2.f32 %v2201_v8  ;;  %v2207_v5 = vmul.f32 1.442695, %v2155_v11  ;;  %v14213_v6 = vpop.eup %14212  ;;  %vm2124_vm15 = vcmp.gt.f32.partialorder %v16047_v34, 20.0 }
 0x24e   : > { %14230 = vlog2.f32 %v2236_v3  ;;  %v2239_v56 = vadd.f32 1.0, %v14213_v6 }
 0x24f   : > { %v2209_v26 = vmul.f32 1.442695, %v2156_v30  ;;  %v14215_v18 = vpop.eup %14214  ;;  %14232 = vpow2.f32 %v2207_v5 }
 0x250   : > { %14234 = vlog2.f32 %v2239_v56  ;;  %v2240_v38 = vadd.f32 1.0, %v14215_v18 }
 0x251   : > { %v1843_v42 = vpop.f32.mrf.mxu0  ;;  %v14217_v35 = vpop.eup %14216  ;;  %14236 = vpow2.f32 %v2209_v26 }
 0x252   : > { %v1844_v63 = vadd.f32 %v1843_v42, %v15961_v60  ;;  %v2243_v39 = vadd.f32 1.0, %v14217_v35  ;;  %v1916_v19 = vpop.f32.mrf.mxu1  ;;  %14238 = vlog2.f32 %v2240_v38 }
 0x253   : > { %v1845_v45 = vpop.f32.mrf.mxu0  ;;  %v14219_v1 = vpop.eup %14218 }
 0x254   : > { %v16052_v59 = vadd.f32 %v1916_v19, %v1844_v63  ;;  %v1846_v20 = vadd.f32 %v1845_v45, %v15965_v12  ;;  %14240 = vlog2.f32 %v2243_v39  ;;  %v2244_v48 = vadd.f32 1.0, %v14219_v1  ;;  %v1918_v32 = vpop.f32.mrf.mxu1 }
 0x255   : > { %v1847_v15 = vpop.f32.mrf.mxu0  ;;  %v14221_v47 = vpop.eup %14220 }
 0x256   : > { %v16056_v0 = vmul.f32 100.0, %v16052_v59  ;;  %v16058_v44 = vadd.f32 %v1918_v32, %v1846_v20  ;;  %v1848_v21 = vadd.f32 %v1847_v15, %v15961_v60  ;;  %14242 = vlog2.f32 %v2244_v48  ;;  %v1920_v28 = vpop.f32.mrf.mxu1 }
 0x257   : > { %v1849_v14 = vpop.f32.mrf.mxu0  ;;  %v14223_v16 = vpop.eup %14222  ;;  %v2264_v41 = vmul.f32 0.6931472, %v14221_v47 }
 0x258   : > { %v2159_v24 = vmin.f32 %v16056_v0, 20.0  ;;  %v16063_v36 = vmul.f32 100.0, %v16058_v44  ;;  %v16065_v40 = vadd.f32 %v1920_v28, %v1848_v21  ;;  %v14225_v58 = vpop.eup %14224  ;;  %v1850_v8 = vadd.f32 %v1849_v14, %v15965_v12  ;;  %v1922_v5 = vpop.f32.mrf.mxu1 }
 0x259   : > { %v2266_v11 = vmul.f32 0.6931472, %v14223_v16  ;;  %v14227_v37 = vpop.eup %14226  ;;  %v2247_v30 = vadd.f32 1.0, %v14225_v58  ;;  %v2327_v42 = vmul.f32 0.01, %v2264_v41  ;;  %vm2127_vm1 = vcmp.gt.f32.partialorder %v16056_v0, 20.0 }
 0x25a   : > { %v2215_v3 = vmul.f32 1.442695, %v2159_v24  ;;  %v2160_v60 = vmin.f32 %v16063_v36, 20.0  ;;  %v14229_v6 = vpop.eup %14228  ;;  %v2272_v26 = vmul.f32 0.6931472, %v14227_v37  ;;  %v16071_v56 = vmul.f32 100.0, %v16065_v40 }
 0x25b   : > { %v16073_v18 = vadd.f32 %v1922_v5, %v1850_v8  ;;  %14244 = vlog2.f32 %v2247_v30  ;;  %v2248_v35 = vadd.f32 1.0, %v14229_v6  ;;  %v14231_v38 = vpop.eup %14230  ;;  %v2328_v19 = vmul.f32 0.01, %v2266_v11  ;;  %v12959_v11 = vld [vmem:[#allocation7 + $0x4e8] ss:$16 sps:$4 sm:$0xff]  }
 0x25c   : > { %v2217_v12 = vmul.f32 1.442695, %v2160_v60  ;;  %v2331_v63 = vmul.f32 0.01, %v2272_v26  ;;  %14246 = vpow2.f32 %v2215_v3  ;;  %v2163_v39 = vmin.f32 %v16071_v56, 20.0  ;;  %v14233_v45 = vpop.eup %14232 }
 0x25d   : > { %14248 = vlog2.f32 %v2248_v35  ;;  %v16078_v1 = vmul.f32 100.0, %v16073_v18  ;;  %v2274_v20 = vmul.f32 0.6931472, %v14231_v38  ;;  %v14235_v48 = vpop.eup %14234  ;;  %v2251_v32 = vadd.f32 1.0, %v14233_v45  ;;  %v12967_v60 = vld [vmem:[#allocation7 + $0x4cc] ss:$16 sps:$4 sm:$0xff]  }
 0x25e   : > { %14250 = vpow2.f32 %v2217_v12  ;;  %v2223_v15 = vmul.f32 1.442695, %v2163_v39  ;;  %v14237_v47 = vpop.eup %14236  ;;  %v2359_v21 = vsel %vm2103_vm5, %v15969_v23, %v2327_v42  ;;  %v2363_v41 = vsel %vm2107_vm7, %v15982_v4, %v2331_v63  ;;  %v12973_v42 = vld [vmem:[#allocation7 + $0x4ac] ss:$16 sps:$4 sm:$0xff]  }
 0x25f   : > { %v2164_v28 = vmin.f32 %v16078_v1, 20.0  ;;  %v2332_v14 = vmul.f32 0.01, %v2274_v20  ;;  %v14239_v16 = vpop.eup %14238  ;;  %14252 = vlog2.f32 %v2251_v32  ;;  %v2252_v24 = vadd.f32 1.0, %v14237_v47  ;;  %v19240_v20 = vld [vmem:[#allocation20_spill] sm:$0xff] }
 0x260   : > { %v2360_v2 = vsel %vm2104_vm6, %v15975_v55, %v2328_v19  ;;  %14254 = vpow2.f32 %v2223_v15  ;;  %v2282_v23 = vmul.f32 0.6931472, %v14239_v16  ;;  %v2280_v37 = vmul.f32 0.6931472, %v14235_v48  ;;  %v19241_v15 = vld [vmem:[#allocation22_spill] sm:$0xff] }
 0x261   : > { %v14241_v58 = vpop.eup %14240  ;;  %v2225_v8 = vmul.f32 1.442695, %v2164_v28  ;;  %v2364_v57 = vsel %vm2108_vm8, %v15988_v31, %v2332_v14  ;;  %14256 = vlog2.f32 %v2252_v24  ;;  %v16093_v4 = vpack.c.bf16 %v2363_v41, %v2359_v21  ;;  %v12965_v31 = vld [vmem:[#allocation7 + $0x4c8] ss:$16 sps:$4 sm:$0xff]  }
 0x262   : > { %v16091_v33 = vpack.c.bf16 %v2364_v57, %v2360_v2  ;;  %v2288_v30 = vmul.f32 0.6931472, %v14241_v58  ;;  %v2336_v50 = vmul.f32 0.01, %v2282_v23  ;;  %v2335_v26 = vmul.f32 0.01, %v2280_v37 }
 0x263   : > { %v14243_v3 = vpop.eup %14242  ;;  %14258 = vpow2.f32 %v2225_v8  ;;  %v16117_v47 = vrot.slane %v15957_v51, %v19241_v15  ;;  %v12977_v14 = vld [vmem:[#allocation7 + $0x488] ss:$16 sps:$4 sm:$0xff]   ;;  %v12985_v8 = vld [vmem:[#allocation7 + $0x46c] ss:$16 sps:$4 sm:$0xff]   ;;  %vm2128_vm3 = vcmp.gt.f32.partialorder %v16063_v36, 20.0  ;;  %vm2132_vm4 = vcmp.gt.f32.partialorder %v16078_v1, 20.0 }
 0x264   : > { %3231 = vmatprep.mubr.bf16.mxu0 %v16091_v33  ;;  %v2290_v55 = vmul.f32 0.6931472, %v14243_v3  ;;  %v2339_v5 = vmul.f32 0.01, %v2288_v30  ;;  %v2368_v12 = vsel %vm2112_vm9, %v16003_v62, %v2336_v50  ;;  %v2367_v61 = vsel %vm2111_vm12, %v15995_v53, %v2335_v26  ;;  %v13049_v15 = vld [vmem:[#allocation7 + $0x508] ss:$16 sps:$4 sm:$0xff]  }
 0x265   : > { %3232 = vmatmul.mubr.bf16.vlgmr.msra.gmra.mxu0 %v16093_v4  ;;  %v16110_v62 = vrot.slane %v15957_v51, %v19240_v20  ;;  %vm2131_vm5 = vcmp.gt.f32.partialorder %v16071_v56, 20.0 }
 0x266   : > { %3346 = vmatpush1.bf16.msra.mxu0 %v12959_v11  ;;  %v2340_v6 = vmul.f32 0.01, %v2290_v55  ;;  %v2371_v63 = vsel %vm2115_vm10, %v16005_v27, %v2339_v5  ;;  %v12979_v27 = vld [vmem:[#allocation7 + $0x48c] ss:$16 sps:$4 sm:$0xff]   ;;  %v12983_v5 = vld [vmem:[#allocation7 + $0x468] ss:$16 sps:$4 sm:$0xff]  }
 0x267   : > { %3347 = vmatprep.subr.bf16.mxu0 %v12967_v60 }
 0x268   : > { %v14245_v35 = vpop.eup %14244  ;;  %v2372_v38 = vsel %vm2116_vm11, %v16015_v54, %v2340_v6  ;;  %v16112_v54 = vpack.c.bf16 %v2371_v63, %v2367_v61  ;;  %v12991_v63 = vld [vmem:[#allocation7 + $0x44c] ss:$16 sps:$4 sm:$0xff]  }
 0x269   : > { %v14247_v39 = vpop.eup %14246  ;;  %v16104_v19 = vpack.c.bf16 %v2372_v38, %v2368_v12  ;;  %v2296_v16 = vmul.f32 0.6931472, %v14245_v35 }
 0x26a   : > { %v14249_v45 = vpop.eup %14248  ;;  %3348 = vmatpush1.bf16.msra.mxu0 %v12965_v31  ;;  %v2255_v48 = vadd.f32 1.0, %v14247_v39 }
 0x26b   : > { %v14251_v7 = vpop.eup %14250  ;;  %3241 = vmatprep.mubr.bf16.mxu0 %v16104_v19  ;;  %3349 = vmatprep.subr.bf16.mxu0 %v12973_v42  ;;  %v2298_v53 = vmul.f32 0.6931472, %v14249_v45  ;;  %v2343_v26 = vmul.f32 0.01, %v2296_v16 }
 0x26c   : > { %v2256_v49 = vadd.f32 1.0, %v14251_v7  ;;  %v14253_v32 = vpop.eup %14252 }
 0x26d   : > { %3242 = vmatmul.mubr.bf16.gmra.mxu0 %v16112_v54  ;;  %v14255_v21 = vpop.eup %14254  ;;  %v2304_v41 = vmul.f32 0.6931472, %v14253_v32  ;;  %v2344_v50 = vmul.f32 0.01, %v2298_v53 }
 0x26e   : > { %14260 = vlog2.f32 %v2256_v49  ;;  %v1959_v28 = vpop.f32.mrf.mxu0  ;;  %3350 = vmatpush1.bf16.msra.mxu0 %v12971_v22  ;;  %v14257_v24 = vpop.eup %14256  ;;  %v2259_v51 = vadd.f32 1.0, %v14255_v21 }
 0x26f   : > { %v1960_v2 = vadd.f32 %v1959_v28, %v16110_v62  ;;  %v2032_v58 = vpop.f32.mrf.mxu1  ;;  %3351 = vmatprep.subr.bf16.mxu0 %v12979_v27  ;;  %14262 = vlog2.f32 %v2255_v48  ;;  %v2306_v11 = vmul.f32 0.6931472, %v14257_v24  ;;  %v2347_v37 = vmul.f32 0.01, %v2304_v41 }
 0x270   : > { %v14259_v57 = vpop.eup %14258  ;;  %v1961_v23 = vpop.f32.mrf.mxu0  ;;  %v2376_v48 = vsel %vm2120_vm0, %v16031_v25, %v2344_v50  ;;  %v12997_v25 = vld [vmem:[#allocation7 + $0x42c] ss:$16 sps:$4 sm:$0xff]  }
 0x271   : > { %v2260_v30 = vadd.f32 1.0, %v14259_v57  ;;  %v16121_v3 = vadd.f32 %v2032_v58, %v1960_v2  ;;  %v1962_v60 = vadd.f32 %v1961_v23, %v16117_v47  ;;  %v2034_v55 = vpop.f32.mrf.mxu1  ;;  %v2348_v6 = vmul.f32 0.01, %v2306_v11  ;;  %v12995_v23 = vld [vmem:[#allocation7 + $0x428] ss:$16 sps:$4 sm:$0xff]  }
 0x272   : > { %v1963_v31 = vpop.f32.mrf.mxu0  ;;  %3352 = vmatpush1.bf16.msra.mxu0 %v12977_v14  ;;  %v2379_v45 = vsel %vm2123_vm14, %v16038_v10, %v2347_v37  ;;  %v12989_v10 = vld [vmem:[#allocation7 + $0x448] ss:$16 sps:$4 sm:$0xff]  }
 0x273   : > { %14264 = vlog2.f32 %v2260_v30  ;;  %v16127_v42 = vmul.f32 100.0, %v16121_v3  ;;  %v16129_v35 = vadd.f32 %v2034_v55, %v1962_v60  ;;  %v1964_v12 = vadd.f32 %v1963_v31, %v16110_v62  ;;  %v2036_v38 = vpop.f32.mrf.mxu1  ;;  %3353 = vmatprep.subr.bf16.mxu0 %v12985_v8  ;;  %v13003_v55 = vld [vmem:[#allocation7 + $0x40c] ss:$16 sps:$4 sm:$0xff]  }
 0x274   : > { %14266 = vlog2.f32 %v2259_v51  ;;  %v1965_v39 = vpop.f32.mrf.mxu0  ;;  %v2380_v34 = vsel %vm2124_vm15, %v16040_v52, %v2348_v6  ;;  %v2375_v52 = vsel %vm2119_vm13, %v16025_v43, %v2343_v26 }
 0x275   : > { %v2137_v22 = vmin.f32 %v16127_v42, 20.0  ;;  %v16139_v61 = vmul.f32 100.0, %v16129_v35  ;;  %v16141_v7 = vadd.f32 %v2036_v38, %v1964_v12  ;;  %v2038_v27 = vpop.f32.mrf.mxu1  ;;  %v1966_v9 = vadd.f32 %v1965_v39, %v16117_v47 }
 0x276   : > { %v16145_v49 = vpack.c.bf16 %v2380_v34, %v2376_v48  ;;  %v1969_v32 = vpop.f32.mrf.mxu0  ;;  %3354 = vmatpush1.bf16.msra.mxu0 %v12983_v5  ;;  %v16154_v14 = vpack.c.bf16 %v2379_v45, %v2375_v52  ;;  %v13001_v34 = vld [vmem:[#allocation7 + $0x408] ss:$16 sps:$4 sm:$0xff]   ;;  %vm2105_vm6 = vcmp.gt.f32.partialorder %v16127_v42, 20.0 }
 0x277   : > { %v2171_v46 = vmul.f32 1.442695, %v2137_v22  ;;  %v2138_v53 = vmin.f32 %v16139_v61, 20.0  ;;  %v16152_v21 = vmul.f32 100.0, %v16141_v7  ;;  %v2042_v28 = vpop.f32.mrf.mxu1  ;;  %3355 = vmatprep.subr.bf16.mxu0 %v12991_v63  ;;  %v16156_v16 = vadd.f32 %v2038_v27, %v1966_v9 }
 0x278   : > { %3251 = vmatprep.mubr.bf16.mxu0 %v16145_v49  ;;  %v1970_v13 = vadd.f32 %v1969_v32, %v16110_v62  ;;  %v1971_v43 = vpop.f32.mrf.mxu0  ;;  %vm2106_vm7 = vcmp.gt.f32.partialorder %v16139_v61, 20.0 }
 0x279   : > { %14268 = vpow2.f32 %v2171_v46  ;;  %v2173_v41 = vmul.f32 1.442695, %v2138_v53  ;;  %v2141_v24 = vmin.f32 %v16152_v21, 20.0  ;;  %3252 = vmatmul.mubr.bf16.gmra.mxu0 %v16154_v14  ;;  %v2044_v2 = vpop.f32.mrf.mxu1  ;;  %v16163_v58 = vmul.f32 100.0, %v16156_v16  ;;  %v13009_v53 = vld [vmem:[#allocation7 + $0x5ec] ss:$16 sps:$4 sm:$0xff]  }
 0x27a   : > { %v16165_v8 = vadd.f32 %v2042_v28, %v1970_v13  ;;  %v1972_v57 = vadd.f32 %v1971_v43, %v16117_v47  ;;  %v1973_v51 = vpop.f32.mrf.mxu0  ;;  %3356 = vmatpush1.bf16.msra.mxu0 %v12989_v10  ;;  %vm2109_vm8 = vcmp.gt.f32.partialorder %v16152_v21, 20.0 }
 0x27b   : > { %v14261_v11 = vpop.eup %14260  ;;  %14270 = vpow2.f32 %v2173_v41  ;;  %v2179_v37 = vmul.f32 1.442695, %v2141_v24  ;;  %v1974_v30 = vadd.f32 %v1973_v51, %v16110_v62  ;;  %v2046_v60 = vpop.f32.mrf.mxu1  ;;  %3357 = vmatprep.subr.bf16.mxu0 %v12997_v25  ;;  %v2142_v50 = vmin.f32 %v16163_v58, 20.0  ;;  %v13007_v24 = vld [vmem:[#allocation7 + $0x5e8] ss:$16 sps:$4 sm:$0xff]  }
 0x27c   : > { %v16171_v5 = vmul.f32 100.0, %v16165_v8  ;;  %v16173_v31 = vadd.f32 %v2044_v2, %v1972_v57  ;;  %v1975_v6 = vpop.f32.mrf.mxu0  ;;  %v14263_v26 = vpop.eup %14262  ;;  %v2314_v39 = vmul.f32 0.6931472, %v14261_v11  ;;  %vm2110_vm9 = vcmp.gt.f32.partialorder %v16163_v58, 20.0 }
 0x27d   : > { %14272 = vpow2.f32 %v2179_v37  ;;  %v16175_v12 = vadd.f32 %v2046_v60, %v1974_v30  ;;  %v1976_v38 = vadd.f32 %v1975_v6, %v16117_v47  ;;  %v2048_v63 = vpop.f32.mrf.mxu1  ;;  %v2181_v45 = vmul.f32 1.442695, %v2142_v50 }
 0x27e   : > { %v2145_v22 = vmin.f32 %v16171_v5, 20.0  ;;  %v16181_v27 = vmul.f32 100.0, %v16173_v31  ;;  %v1979_v48 = vpop.f32.mrf.mxu0  ;;  %3358 = vmatpush1.bf16.msra.mxu0 %v12995_v23  ;;  %v2352_v52 = vmul.f32 0.01, %v2314_v39  ;;  %v2312_v43 = vmul.f32 0.6931472, %v14263_v26 }
 0x27f   : > { %v16184_v9 = vmul.f32 100.0, %v16175_v12  ;;  %v16186_v32 = vadd.f32 %v2048_v63, %v1976_v38  ;;  %v1980_v10 = vadd.f32 %v1979_v48, %v16110_v62  ;;  %v2052_v46 = vpop.f32.mrf.mxu1  ;;  %3359 = vmatprep.subr.bf16.mxu0 %v13003_v55  ;;  %14274 = vpow2.f32 %v2181_v45  ;;  %v13015_v55 = vld [vmem:[#allocation7 + $0x5cc] ss:$16 sps:$4 sm:$0xff]  }
 0x280   : > { %v14265_v28 = vpop.eup %14264  ;;  %v2187_v25 = vmul.f32 1.442695, %v2145_v22  ;;  %v2146_v13 = vmin.f32 %v16181_v27, 20.0  ;;  %v1981_v41 = vpop.f32.mrf.mxu0  ;;  %v2384_v26 = vsel %vm2128_vm3, %v16058_v44, %v2352_v52  ;;  %v2351_v45 = vmul.f32 0.01, %v2312_v43 }
 0x281   : > { %v14267_v2 = vpop.eup %14266  ;;  %v2149_v57 = vmin.f32 %v16184_v9, 20.0  ;;  %v16193_v51 = vmul.f32 100.0, %v16186_v32  ;;  %v2322_v23 = vmul.f32 0.6931472, %v14265_v28  ;;  %v2054_v11 = vpop.f32.mrf.mxu1  ;;  %v16196_v30 = vadd.f32 %v2052_v46, %v1980_v10 }
 0x282   : > { %14276 = vpow2.f32 %v2187_v25  ;;  %v2189_v37 = vmul.f32 1.442695, %v2146_v13  ;;  %v1983_v60 = vpop.f32.mrf.mxu0  ;;  %3360 = vmatpush1.bf16.msra.mxu0 %v13001_v34  ;;  %v2320_v39 = vmul.f32 0.6931472, %v14267_v2  ;;  %v1982_v10 = vadd.f32 %v1981_v41, %v16117_v47  ;;  %v13013_v13 = vld [vmem:[#allocation7 + $0x5c8] ss:$16 sps:$4 sm:$0xff]  }
 0x283   : > { %v2195_v50 = vmul.f32 1.442695, %v2149_v57  ;;  %v2150_v6 = vmin.f32 %v16193_v51, 20.0  ;;  %v2356_v36 = vmul.f32 0.01, %v2322_v23  ;;  %v2056_v38 = vpop.f32.mrf.mxu1  ;;  %3361 = vmatprep.subr.bf16.mxu0 %v13009_v53  ;;  %v16201_v63 = vmul.f32 100.0, %v16196_v30 }
 0x284   : > { %14278 = vpow2.f32 %v2189_v37  ;;  %v1985_v22 = vpop.f32.mrf.mxu0  ;;  %v2355_v53 = vmul.f32 0.01, %v2320_v39  ;;  %v16214_v1 = vadd.f32 %v2054_v11, %v1982_v10  ;;  %v13021_v2 = vld [vmem:[#allocation7 + $0x5ac] ss:$16 sps:$4 sm:$0xff]   ;;  %v1984_v37 = vadd.f32 %v1983_v60, %v16110_v62  ;;  %v13019_v60 = vld [vmem:[#allocation7 + $0x5a8] ss:$16 sps:$4 sm:$0xff]  }
 0x285   : > { %14280 = vpow2.f32 %v2195_v50  ;;  %v2197_v48 = vmul.f32 1.442695, %v2150_v6  ;;  %v2388_v34 = vsel %vm2132_vm4, %v16073_v18, %v2356_v36  ;;  %v2058_v46 = vpop.f32.mrf.mxu1  ;;  %v2153_v52 = vmin.f32 %v16201_v63, 20.0 }
 0x286   : > { %v14269_v28 = vpop.eup %14268  ;;  %v16208_v44 = vpack.c.bf16 %v2388_v34, %v2384_v26  ;;  %v1989_v25 = vpop.f32.mrf.mxu0  ;;  %3362 = vmatpush2.bf16.msra.mxu0 %v13007_v24  ;;  %v2383_v18 = vsel %vm2127_vm1, %v16052_v59, %v2351_v45  ;;  %v2387_v24 = vsel %vm2131_vm5, %v16065_v40, %v2355_v53  ;;  %v1986_v50 = vadd.f32 %v1985_v22, %v16117_v47 }
 0x287   : > { %v2233_v43 = vadd.f32 1.0, %v14269_v28  ;;  %14282 = vpow2.f32 %v2197_v48  ;;  %v2062_v41 = vpop.f32.mrf.mxu1  ;;  %3363 = vmatprep.subr.bf16.mxu0 %v13015_v55  ;;  %v2203_v23 = vmul.f32 1.442695, %v2153_v52  ;;  %v16222_v0 = vpack.c.bf16 %v2387_v24, %v2383_v18  ;;  %v13027_v48 = vld [vmem:[#allocation7 + $0x58c] ss:$16 sps:$4 sm:$0xff]  }
 0x288   : > { %v14271_v57 = vpop.eup %14270  ;;  %3261 = vmatprep.mubr.bf16.mxu0 %v16208_v44  ;;  %v1991_v6 = vpop.f32.mrf.mxu0  ;;  %v16225_v11 = vmul.f32 100.0, %v16214_v1  ;;  %v16227_v26 = vadd.f32 %v2056_v38, %v1984_v37  ;;  %v16229_v39 = vadd.f32 %v2058_v46, %v1986_v50  ;;  %v1990_v40 = vadd.f32 %v1989_v25, %v16110_v62  ;;  %v13033_v37 = vld [vmem:[#allocation7 + $0x56c] ss:$16 sps:$4 sm:$0xff]  }
 0x289   : > { %14284 = vlog2.f32 %v2233_v43  ;;  %v2234_v59 = vadd.f32 1.0, %v14271_v57  ;;  %v2064_v55 = vpop.f32.mrf.mxu1  ;;  %3262 = vmatmul.mubr.bf16.gmra.mxu0 %v16222_v0  ;;  %v1992_v46 = vadd.f32 %v1991_v6, %v16117_v47  ;;  %vm2114_vm10 = vcmp.gt.f32.partialorder %v16181_v27, 20.0 }
 0x28a   : > { %v14273_v36 = vpop.eup %14272  ;;  %14286 = vpow2.f32 %v2203_v23  ;;  %v1993_v56 = vpop.f32.mrf.mxu0  ;;  %3364 = vmatpush2.bf16.msra.mxu0 %v13013_v13  ;;  %v2154_v22 = vmin.f32 %v16225_v11, 20.0  ;;  %3377 = vmatprep.mubr.bf16.mxu0 %v16091_v33  ;;  %v16236_v38 = vmul.f32 100.0, %v16227_v26  ;;  %v16239_v34 = vmul.f32 100.0, %v16229_v39 }
 0x28b   : > { %14288 = vlog2.f32 %v2234_v59  ;;  %v2237_v45 = vadd.f32 1.0, %v14273_v36  ;;  %3365 = vmatprep.subr.bf16.mxu0 %v13021_v2  ;;  %v16241_v10 = vadd.f32 %v2062_v41, %v1990_v40  ;;  %v1994_v25 = vadd.f32 %v1993_v56, %v16110_v62  ;;  %v2066_v13 = vpop.f32.mrf.mxu1  ;;  %v13025_v2 = vld [vmem:[#allocation7 + $0x588] ss:$16 sps:$4 sm:$0xff]  }
 0x28c   : > { %v1995_v28 = vpop.f32.mrf.mxu0  ;;  %v14275_v52 = vpop.eup %14274  ;;  %v2205_v53 = vmul.f32 1.442695, %v2154_v22  ;;  %v2157_v33 = vmin.f32 %v16236_v38, 20.0  ;;  %v2158_v41 = vmin.f32 %v16239_v34, 20.0  ;;  %v16251_v24 = vadd.f32 %v2064_v55, %v1992_v46 }
 0x28d   : > { %14290 = vlog2.f32 %v2237_v45  ;;  %v2238_v43 = vadd.f32 1.0, %v14275_v52  ;;  %v1996_v18 = vadd.f32 %v1995_v28, %v16117_v47  ;;  %v16249_v23 = vmul.f32 100.0, %v16241_v10  ;;  %v2068_v56 = vpop.f32.mrf.mxu1  ;;  %v13039_v28 = vld [vmem:[#allocation7 + $0x54c] ss:$16 sps:$4 sm:$0xff]  }
 0x28e   : > { %3366 = vmatpush2.bf16.msra.mxu0 %v13019_v60  ;;  %14292 = vpow2.f32 %v2205_v53  ;;  %v2211_v50 = vmul.f32 1.442695, %v2157_v33  ;;  %v16253_v6 = vadd.f32 %v2066_v13, %v1994_v25  ;;  %v2213_v47 = vmul.f32 1.442695, %v2158_v41 }
 0x28f   : > { %v14277_v57 = vpop.eup %14276  ;;  %3367 = vmatprep.subr.bf16.mxu0 %v13027_v48  ;;  %14294 = vlog2.f32 %v2238_v43  ;;  %v2161_v36 = vmin.f32 %v16249_v23, 20.0  ;;  %v16257_v40 = vmul.f32 100.0, %v16251_v24  ;;  %v16262_v22 = vadd.f32 %v2068_v56, %v1996_v18  ;;  %v13031_v48 = vld [vmem:[#allocation7 + $0x568] ss:$16 sps:$4 sm:$0xff]  }
 0x290   : > { %v2241_v62 = vadd.f32 1.0, %v14277_v57  ;;  %v16260_v55 = vmul.f32 100.0, %v16253_v6  ;;  %v13037_v57 = vld [vmem:[#allocation7 + $0x548] ss:$16 sps:$4 sm:$0xff]   ;;  %vm2117_vm11 = vcmp.gt.f32.partialorder %v16184_v9, 20.0  ;;  %vm2118_vm12 = vcmp.gt.f32.partialorder %v16193_v51, 20.0 }
 0x291   : > { %v14279_v59 = vpop.eup %14278  ;;  %v2219_v53 = vmul.f32 1.442695, %v2161_v36  ;;  %v2162_v25 = vmin.f32 %v16257_v40, 20.0  ;;  %v16267_v33 = vmul.f32 100.0, %v16262_v22  ;;  %vm2113_vm13 = vcmp.gt.f32.partialorder %v16171_v5, 20.0 }
 0x292   : > { %v14281_v60 = vpop.eup %14280  ;;  %14296 = vlog2.f32 %v2241_v62  ;;  %v2242_v45 = vadd.f32 1.0, %v14279_v59  ;;  %3368 = vmatpush2.bf16.msra.mxu0 %v13025_v2  ;;  %v2165_v13 = vmin.f32 %v16260_v55, 20.0  ;;  %v13058_v9 = vld [vmem:[#allocation7 + $0x6a8] ss:$16 sps:$4 sm:$0xff]   ;;  %vm2125_vm14 = vcmp.gt.f32.partialorder %v16236_v38, 20.0 }
 0x293   : > { %v2245_v46 = vadd.f32 1.0, %v14281_v60  ;;  %14298 = vpow2.f32 %v2211_v50  ;;  %3369 = vmatprep.subr.bf16.mxu0 %v13033_v37  ;;  %v2221_v2 = vmul.f32 1.442695, %v2162_v25  ;;  %v2166_v62 = vmin.f32 %v16267_v33, 20.0  ;;  %v13045_v50 = vld [vmem:[#allocation7 + $0x52c] ss:$16 sps:$4 sm:$0xff]  }
 0x294   : > { %v14283_v52 = vpop.eup %14282  ;;  %14300 = vlog2.f32 %v2242_v45  ;;  %v2227_v37 = vmul.f32 1.442695, %v2165_v13  ;;  %v13043_v45 = vld [vmem:[#allocation7 + $0x528] ss:$16 sps:$4 sm:$0xff]   ;;  %vm2122_vm15 = vcmp.gt.f32.partialorder %v16225_v11, 20.0  ;;  %vm2126_vm0 = vcmp.gt.f32.partialorder %v16239_v34, 20.0 }
 0x295   : > { %14302 = vlog2.f32 %v2245_v46  ;;  %v2246_v43 = vadd.f32 1.0, %v14283_v52  ;;  %v2229_v36 = vmul.f32 1.442695, %v2166_v62  ;;  %v13061_v5 = vld [vmem:[#allocation7 + $0x688] ss:$16 sps:$4 sm:$0xff]   ;;  %vm2121_vm1 = vcmp.gt.f32.partialorder %v16201_v63, 20.0 }
 0x296   : > { %v14285_v18 = vpop.eup %14284  ;;  %14304 = vpow2.f32 %v2213_v47  ;;  %3370 = vmatpush2.bf16.msra.mxu0 %v13031_v48  ;;  %v13051_v48 = vld [vmem:[#allocation7 + $0x50c] ss:$16 sps:$4 sm:$0xff]   ;;  %v13070_v63 = vld [vmem:[#allocation7 + $0x628] ss:$16 sps:$4 sm:$0xff]   ;;  %vm2130_vm3 = vcmp.gt.f32.partialorder %v16257_v40, 20.0  ;;  %vm2134_vm4 = vcmp.gt.f32.partialorder %v16267_v33, 20.0 }
 0x297   : > { %v14287_v41 = vpop.eup %14286  ;;  %14306 = vlog2.f32 %v2246_v43  ;;  %3371 = vmatprep.subr.bf16.mxu0 %v13039_v28  ;;  %v2268_v60 = vmul.f32 0.6931472, %v14285_v18  ;;  %v13072_v38 = vld [vmem:[#allocation7 + $0x62c] ss:$16 sps:$4 sm:$0xff]   ;;  %vm2133_vm5 = vcmp.gt.f32.partialorder %v16260_v55, 20.0 }
 0x298   : > { %v14289_v59 = vpop.eup %14288  ;;  %14308 = vpow2.f32 %v2219_v53  ;;  %v2249_v43 = vadd.f32 1.0, %v14287_v41  ;;  %v13078_v40 = vld [vmem:[#allocation7 + $0x7ec] ss:$16 sps:$4 sm:$0xff]   ;;  %v13079_v55 = vld [vmem:[#allocation7 + $0x7c8] ss:$16 sps:$4 sm:$0xff]  }
 0x299   : > { %14310 = vpow2.f32 %v2221_v2  ;;  %v2270_v46 = vmul.f32 0.6931472, %v14289_v59  ;;  %v2329_v20 = vmul.f32 0.01, %v2268_v60 }
 0x29a   : > { %v14291_v56 = vpop.eup %14290  ;;  %3372 = vmatpush2.bf16.msra.mxu0 %v13037_v57  ;;  %14312 = vpow2.f32 %v2227_v37 }
 0x29b   : > { %v2276_v47 = vmul.f32 0.6931472, %v14291_v56  ;;  %3373 = vmatprep.subr.bf16.mxu0 %v13045_v50  ;;  %v14293_v52 = vpop.eup %14292  ;;  %14314 = vpow2.f32 %v2229_v36  ;;  %v2330_v2 = vmul.f32 0.01, %v2270_v46  ;;  %v2361_v36 = vsel %vm2105_vm6, %v16121_v3, %v2329_v20 }
 0x29c   : > { %v14295_v25 = vpop.eup %14294  ;;  %v2250_v28 = vadd.f32 1.0, %v14293_v52  ;;  %v13057_v52 = vld [vmem:[#allocation7 + $0x6cc] ss:$16 sps:$4 sm:$0xff]   ;;  %vm2129_vm6 = vcmp.gt.f32.partialorder %v16249_v23, 20.0 }
 0x29d   : > { %v2333_v13 = vmul.f32 0.01, %v2276_v47  ;;  %v2278_v53 = vmul.f32 0.6931472, %v14295_v25  ;;  %v2362_v42 = vsel %vm2106_vm7, %v16129_v35, %v2330_v2  ;;  %v13087_v23 = vld [vmem:[#allocation7 + $0x78c] ss:$16 sps:$4 sm:$0xff]  }
 0x29e   : > { %3374 = vmatpush2.bf16.msra.mxu0 %v13043_v45  ;;  %14316 = vlog2.f32 %v2250_v28  ;;  %v13052_v45 = vld [vmem:[#allocation7 + $0x6e8] ss:$16 sps:$4 sm:$0xff]  }
 0x29f   : > { %v14297_v62 = vpop.eup %14296  ;;  %3375 = vmatprep.subr.bf16.mxu0 %v13051_v48  ;;  %v2334_v57 = vmul.f32 0.01, %v2278_v53  ;;  %v2365_v41 = vsel %vm2109_vm8, %v16141_v7, %v2333_v13  ;;  %14318 = vlog2.f32 %v2249_v43  ;;  %v13055_v13 = vld [vmem:[#allocation7 + $0x6c8] ss:$16 sps:$4 sm:$0xff]  }
 0x2a0   : > { %v14299_v18 = vpop.eup %14298  ;;  %v2284_v46 = vmul.f32 0.6931472, %v14297_v62  ;;  %v16280_v58 = vpack.c.bf16 %v2365_v41, %v2361_v36  ;;  %v13060_v62 = vld [vmem:[#allocation7 + $0x6ac] ss:$16 sps:$4 sm:$0xff]  }
 0x2a1   : > { %v14301_v37 = vpop.eup %14300  ;;  %v2253_v50 = vadd.f32 1.0, %v14299_v18  ;;  %v2366_v56 = vsel %vm2110_vm9, %v16156_v16, %v2334_v57  ;;  %v13066_v36 = vld [vmem:[#allocation7 + $0x66c] ss:$16 sps:$4 sm:$0xff]  }
 0x2a2   : > { %v14303_v59 = vpop.eup %14302  ;;  %3376 = vmatpush2.bf16.msra.mxu0 %v13049_v15  ;;  %v2286_v61 = vmul.f32 0.6931472, %v14301_v37  ;;  %v16278_v21 = vpack.c.bf16 %v2366_v56, %v2362_v42  ;;  %v2337_v53 = vmul.f32 0.01, %v2284_v46 }
 0x2a3   : > { %v14305_v60 = vpop.eup %14304  ;;  %14320 = vlog2.f32 %v2253_v50  ;;  %v2292_v7 = vmul.f32 0.6931472, %v14303_v59  ;;  %v13063_v50 = vld [vmem:[#allocation7 + $0x68c] ss:$16 sps:$4 sm:$0xff]  }
 0x2a4   : > { %v14307_v47 = vpop.eup %14306  ;;  %v2254_v48 = vadd.f32 1.0, %v14305_v60  ;;  %v2338_v25 = vmul.f32 0.01, %v2286_v61  ;;  %3304 = vmatprep.mubr.bf16.mxu1 %v16278_v21  ;;  %v2369_v51 = vsel %vm2113_vm13, %v16165_v8, %v2337_v53  ;;  %v13064_v60 = vld [vmem:[#allocation7 + $0x668] ss:$16 sps:$4 sm:$0xff]  }
 0x2a5   : > { %v14309_v20 = vpop.eup %14308  ;;  %3378 = vmatmul.mubr.bf16.vlgmr.msra.gmra.mxu0 %v16093_v4  ;;  %v2294_v15 = vmul.f32 0.6931472, %v14307_v47  ;;  %v2341_v3 = vmul.f32 0.01, %v2292_v7  ;;  %3305 = vmatmul.mubr.bf16.vlgmr.msra.gmra.mxu1 %v16280_v58  ;;  %v13075_v53 = vld [vmem:[#allocation7 + $0x60c] ss:$16 sps:$4 sm:$0xff]  }
 0x2a6   : > { %v14311_v35 = vpop.eup %14310  ;;  %14322 = vlog2.f32 %v2254_v48  ;;  %v2257_v16 = vadd.f32 1.0, %v14309_v20  ;;  %3387 = vmatprep.mubr.bf16.mxu0 %v16104_v19  ;;  %3419 = vmatpush1.bf16.msra.mxu1 %v13052_v45  ;;  %v2370_v4 = vsel %vm2114_vm10, %v16173_v31, %v2338_v25  ;;  %v13067_v20 = vld [vmem:[#allocation7 + $0x648] ss:$16 sps:$4 sm:$0xff]  }
 0x2a7   : > { %v2258_v43 = vadd.f32 1.0, %v14311_v35  ;;  %v2342_v28 = vmul.f32 0.01, %v2294_v15  ;;  %v14313_v2 = vpop.eup %14312  ;;  %3420 = vmatprep.subr.bf16.mxu1 %v13057_v52  ;;  %v2373_v27 = vsel %vm2117_vm11, %v16175_v12, %v2341_v3 }
 0x2a8   : > { %14324 = vlog2.f32 %v2257_v16  ;;  %v14315_v18 = vpop.eup %14314  ;;  %v2261_v19 = vadd.f32 1.0, %v14313_v2  ;;  %v16297_v31 = vpack.c.bf16 %v2373_v27, %v2369_v51  ;;  %v13085_v27 = vld [vmem:[#allocation7 + $0x788] ss:$16 sps:$4 sm:$0xff]  }
 0x2a9   : > { %14326 = vlog2.f32 %v2258_v43  ;;  %v2374_v57 = vsel %vm2118_vm12, %v16186_v32, %v2342_v28  ;;  %v2262_v37 = vadd.f32 1.0, %v14315_v18  ;;  %v13088_v51 = vld [vmem:[#allocation7 + $0x768] ss:$16 sps:$4 sm:$0xff]  }
 0x2aa   : > { %v16293_v41 = vpack.c.bf16 %v2374_v57, %v2370_v4  ;;  %14328 = vlog2.f32 %v2261_v19  ;;  %3421 = vmatpush1.bf16.msra.mxu1 %v13055_v13  ;;  %v13073_v19 = vld [vmem:[#allocation7 + $0x608] ss:$16 sps:$4 sm:$0xff]  }
 0x2ab   : > { %14330 = vlog2.f32 %v2262_v37  ;;  %3422 = vmatprep.subr.bf16.mxu1 %v13060_v62  ;;  %v14317_v32 = vpop.eup %14316  ;;  %v13100_v37 = vld [vmem:[#allocation7 + $0x8e0] ss:$16 sps:$4 sm:$0xff]  }
 0x2ac   : > { %3314 = vmatprep.mubr.bf16.mxu1 %v16293_v41  ;;  %v14319_v12 = vpop.eup %14318  ;;  %v2302_v8 = vmul.f32 0.6931472, %v14317_v32  ;;  %v13093_v32 = vld [vmem:[#allocation7 + $0x74c] ss:$16 sps:$4 sm:$0xff]  }
 0x2ad   : > { %3388 = vmatmul.mubr.bf16.gmra.mxu0 %v16112_v54  ;;  %3315 = vmatmul.mubr.bf16.gmra.mxu1 %v16297_v31  ;;  %v2300_v42 = vmul.f32 0.6931472, %v14319_v12  ;;  %v13069_v54 = vld [vmem:[#allocation7 + $0x64c] ss:$16 sps:$4 sm:$0xff]   ;;  %v13108_v12 = vld [vmem:[#allocation7 + $0x8a4] ss:$16 sps:$4 sm:$0xff]  }
 0x2ae   : > { %3397 = vmatprep.mubr.bf16.mxu0 %v16145_v49  ;;  %3423 = vmatpush1.bf16.msra.mxu1 %v13058_v9  ;;  %v2346_v7 = vmul.f32 0.01, %v2302_v8  ;;  %v13102_v9 = vld [vmem:[#allocation7 + $0x8e4] ss:$16 sps:$4 sm:$0xff]   ;;  %v13106_v8 = vld [vmem:[#allocation7 + $0x8a0] ss:$16 sps:$4 sm:$0xff]  }
 0x2af   : > { %3424 = vmatprep.subr.bf16.mxu1 %v13063_v50  ;;  %v2345_v48 = vmul.f32 0.01, %v2300_v42  ;;  %v13105_v50 = vld [vmem:[#allocation7 + $0x8c4] ss:$16 sps:$4 sm:$0xff]   ;;  %4619 = vmatprep.subr.bf16.mxu0 %v13102_v9  ;;  %v13099_v42 = vld [vmem:[#allocation7 + $0x70c] ss:$16 sps:$4 sm:$0xff]  }
 0x2b0   : > { %v14321_v59 = vpop.eup %14320  ;;  %4620 = vmatpush1.bf16.msra.mxu0 %v13100_v37  ;;  %v13202_v9 = vld [vmem:[#allocation7 + $0xbc0] ss:$16 sps:$4 sm:$0xff]  }
 0x2b1   : > { %v2308_v56 = vmul.f32 0.6931472, %v14321_v59  ;;  %v2377_v11 = vsel %vm2121_vm1, %v16196_v30, %v2345_v48  ;;  %4621 = vmatprep.subr.bf16.mxu0 %v13105_v50  ;;  %v13096_v59 = vld [vmem:[#allocation7 + $0x72c] ss:$16 sps:$4 sm:$0xff]   ;;  %v13126_v48 = vld [vmem:[#allocation7 + $0x9e4] ss:$16 sps:$4 sm:$0xff]  }
 0x2b2   : > { %3425 = vmatpush1.bf16.msra.mxu1 %v13061_v5  ;;  %v13091_v5 = vld [vmem:[#allocation7 + $0x748] ss:$16 sps:$4 sm:$0xff]  }
 0x2b3   : > { %v14323_v61 = vpop.eup %14322  ;;  %v2349_v45 = vmul.f32 0.01, %v2308_v56  ;;  %3426 = vmatprep.subr.bf16.mxu1 %v13066_v36  ;;  %v13094_v36 = vld [vmem:[#allocation7 + $0x728] ss:$16 sps:$4 sm:$0xff]  }
 0x2b4   : > { %v2310_v46 = vmul.f32 0.6931472, %v14323_v61  ;;  %v13097_v56 = vld [vmem:[#allocation7 + $0x708] ss:$16 sps:$4 sm:$0xff]   ;;  %v13111_v61 = vld [vmem:[#allocation7 + $0x884] ss:$16 sps:$4 sm:$0xff]  }
 0x2b5   : > { %v14325_v47 = vpop.eup %14324  ;;  %3398 = vmatmul.mubr.bf16.gmra.mxu0 %v16154_v14  ;;  %v2381_v25 = vsel %vm2125_vm14, %v16227_v26, %v2349_v45  ;;  %v2378_v14 = vsel %vm2122_vm15, %v16214_v1, %v2346_v7  ;;  %v13114_v45 = vld [vmem:[#allocation7 + $0x864] ss:$16 sps:$4 sm:$0xff]  }
 0x2b6   : > { %v14327_v49 = vpop.eup %14326  ;;  %v2350_v52 = vmul.f32 0.01, %v2310_v46  ;;  %3407 = vmatprep.mubr.bf16.mxu0 %v16208_v44  ;;  %3427 = vmatpush1.bf16.msra.mxu1 %v13064_v60  ;;  %v2316_v34 = vmul.f32 0.6931472, %v14325_v47  ;;  %v16314_v26 = vpack.c.bf16 %v2381_v25, %v2377_v11  ;;  %v13109_v60 = vld [vmem:[#allocation7 + $0x880] ss:$16 sps:$4 sm:$0xff]  }
 0x2b7   : > { %v2318_v15 = vmul.f32 0.6931472, %v14327_v49  ;;  %v14329_v3 = vpop.eup %14328  ;;  %3428 = vmatprep.subr.bf16.mxu1 %v13069_v54  ;;  %v13112_v46 = vld [vmem:[#allocation7 + $0x860] ss:$16 sps:$4 sm:$0xff]   ;;  %v13117_v7 = vld [vmem:[#allocation7 + $0x844] ss:$16 sps:$4 sm:$0xff]  }
 0x2b8   : > { %v2382_v35 = vsel %vm2126_vm0, %v16229_v39, %v2350_v52  ;;  %v14331_v16 = vpop.eup %14330  ;;  %v2324_v13 = vmul.f32 0.6931472, %v14329_v3  ;;  %v2353_v30 = vmul.f32 0.01, %v2316_v34  ;;  %v13123_v54 = vld [vmem:[#allocation7 + $0x804] ss:$16 sps:$4 sm:$0xff]  }
 0x2b9   : > { %v16311_v44 = vpack.c.bf16 %v2382_v35, %v2378_v14  ;;  %v2326_v43 = vmul.f32 0.6931472, %v14331_v16  ;;  %v2354_v28 = vmul.f32 0.01, %v2318_v15  ;;  %v13121_v47 = vld [vmem:[#allocation7 + $0x800] ss:$16 sps:$4 sm:$0xff]  }
 0x2ba   : > { %3429 = vmatpush1.bf16.msra.mxu1 %v13067_v20  ;;  %v2357_v1 = vmul.f32 0.01, %v2324_v13  ;;  %v2385_v33 = vsel %vm2129_vm6, %v16241_v10, %v2353_v30  ;;  %v13090_v10 = vld [vmem:[#allocation7 + $0x76c] ss:$16 sps:$4 sm:$0xff]   ;;  %v13124_v49 = vld [vmem:[#allocation7 + $0x9e0] ss:$16 sps:$4 sm:$0xff]  }
 0x2bb   : > { %3324 = vmatprep.mubr.bf16.mxu1 %v16311_v44  ;;  %v2358_v39 = vmul.f32 0.01, %v2326_v43  ;;  %3430 = vmatprep.subr.bf16.mxu1 %v13072_v38  ;;  %v2386_v2 = vsel %vm2130_vm3, %v16251_v24, %v2354_v28  ;;  %v13081_v24 = vld [vmem:[#allocation7 + $0x7cc] ss:$16 sps:$4 sm:$0xff]   ;;  %v13129_v52 = vld [vmem:[#allocation7 + $0x9c4] ss:$16 sps:$4 sm:$0xff]  }
 0x2bc   : > { %3325 = vmatmul.mubr.bf16.gmra.mxu1 %v16314_v26  ;;  %v2389_v18 = vsel %vm2133_vm5, %v16253_v6, %v2357_v1  ;;  %v13084_v6 = vld [vmem:[#allocation7 + $0x7ac] ss:$16 sps:$4 sm:$0xff]   ;;  %v13127_v25 = vld [vmem:[#allocation7 + $0x9c0] ss:$16 sps:$4 sm:$0xff]   ;;  %v13132_v20 = vld [vmem:[#allocation7 + $0x9a4] ss:$16 sps:$4 sm:$0xff]  }
 0x2bd   : > { %3408 = vmatmul.mubr.bf16.gmra.mxu0 %v16222_v0  ;;  %v2390_v4 = vsel %vm2134_vm4, %v16262_v22, %v2358_v39  ;;  %v2405_v57 = vpack.c.bf16 %v2389_v18, %v2385_v33  ;;  %v13076_v0 = vld [vmem:[#allocation7 + $0x7e8] ss:$16 sps:$4 sm:$0xff]   ;;  %v13130_v15 = vld [vmem:[#allocation7 + $0x9a0] ss:$16 sps:$4 sm:$0xff]   ;;  %v13135_v3 = vld [vmem:[#allocation7 + $0x984] ss:$16 sps:$4 sm:$0xff]  }
 0x2be   : > { %v2406_v62 = vpack.c.bf16 %v2390_v4, %v2386_v2  ;;  %3431 = vmatpush1.bf16.msra.mxu1 %v13070_v63  ;;  %v13082_v22 = vld [vmem:[#allocation7 + $0x7a8] ss:$16 sps:$4 sm:$0xff]   ;;  %v13133_v14 = vld [vmem:[#allocation7 + $0x980] ss:$16 sps:$4 sm:$0xff]   ;;  %v13138_v35 = vld [vmem:[#allocation7 + $0x964] ss:$16 sps:$4 sm:$0xff]  }
 0x2bf   : > { %3432 = vmatprep.subr.bf16.mxu1 %v13075_v53  ;;  %v13136_v38 = vld [vmem:[#allocation7 + $0x960] ss:$16 sps:$4 sm:$0xff]   ;;  %v13141_v16 = vld [vmem:[#allocation7 + $0x944] ss:$16 sps:$4 sm:$0xff]   ;;  %v13153_v63 = vld [vmem:[#allocation7 + $0x8ec] ss:$16 sps:$4 sm:$0xff]  }
 0x2c0   : > { %3334 = vmatprep.mubr.bf16.mxu1 %v2406_v62  ;;  %v13144_v11 = vld [vmem:[#allocation7 + $0x924] ss:$16 sps:$4 sm:$0xff]   ;;  %v13142_v34 = vld [vmem:[#allocation7 + $0x920] ss:$16 sps:$4 sm:$0xff]  }
 0x2c1   : > { %v13147_v13 = vld [vmem:[#allocation7 + $0x904] ss:$16 sps:$4 sm:$0xff]   ;;  %v13145_v43 = vld [vmem:[#allocation7 + $0x900] ss:$16 sps:$4 sm:$0xff]  }
 0x2c2   : > { %3433 = vmatpush1.bf16.msra.mxu1 %v13073_v19  ;;  %v13150_v28 = vld [vmem:[#allocation7 + $0xae4] ss:$16 sps:$4 sm:$0xff]   ;;  %v13154_v39 = vld [vmem:[#allocation7 + $0xac0] ss:$16 sps:$4 sm:$0xff]  }
 0x2c3   : > { %3434 = vmatprep.subr.bf16.mxu1 %v13078_v40  ;;  %v13156_v1 = vld [vmem:[#allocation7 + $0xac4] ss:$16 sps:$4 sm:$0xff]   ;;  %v13160_v30 = vld [vmem:[#allocation7 + $0xaa0] ss:$16 sps:$4 sm:$0xff]  }
 0x2c4   : > { %3335 = vmatmul.mubr.bf16.gmra.mxu1 %v2405_v57  ;;  %v13162_v53 = vld [vmem:[#allocation7 + $0xaa4] ss:$16 sps:$4 sm:$0xff]   ;;  %v13166_v4 = vld [vmem:[#allocation7 + $0xa80] ss:$16 sps:$4 sm:$0xff]  }
 0x2c5   : > { %3450 = vmatprep.mubr.bf16.mxu1 %v16278_v21  ;;  %v13103_v21 = vld [vmem:[#allocation7 + $0x8c0] ss:$16 sps:$4 sm:$0xff]   ;;  %v13168_v2 = vld [vmem:[#allocation7 + $0xa84] ss:$16 sps:$4 sm:$0xff]  }
 0x2c6   : > { %3435 = vmatpush2.bf16.msra.mxu1 %v13076_v0  ;;  %4622 = vmatpush1.bf16.msra.mxu0 %v13103_v21  ;;  %v13172_v18 = vld [vmem:[#allocation7 + $0xa60] ss:$16 sps:$4 sm:$0xff]   ;;  %v13180_v19 = vld [vmem:[#allocation7 + $0xa44] ss:$16 sps:$4 sm:$0xff]  }
 0x2c7   : > { %3436 = vmatprep.subr.bf16.mxu1 %v13081_v24  ;;  %4623 = vmatprep.subr.bf16.mxu0 %v13108_v12  ;;  %v13178_v40 = vld [vmem:[#allocation7 + $0xa40] ss:$16 sps:$4 sm:$0xff]   ;;  %v13186_v33 = vld [vmem:[#allocation7 + $0xa24] ss:$16 sps:$4 sm:$0xff]  }
 0x2c8   : > { %v13192_v24 = vld [vmem:[#allocation7 + $0xa04] ss:$16 sps:$4 sm:$0xff]  }
 0x2c9   : > { %v13216_v21 = vld [vmem:[#allocation7 + $0xb84] ss:$16 sps:$4 sm:$0xff]  }
 0x2ca   : > { %3437 = vmatpush2.bf16.msra.mxu1 %v13079_v55  ;;  %4624 = vmatpush1.bf16.msra.mxu0 %v13106_v8 }
 0x2cb   : > { %3438 = vmatprep.subr.bf16.mxu1 %v13084_v6  ;;  %4625 = vmatprep.subr.bf16.mxu0 %v13111_v61  ;;  %v13190_v6 = vld [vmem:[#allocation7 + $0xa00] ss:$16 sps:$4 sm:$0xff]  }
 0x2ce   : > { %3439 = vmatpush2.bf16.msra.mxu1 %v13082_v22  ;;  %4626 = vmatpush1.bf16.msra.mxu0 %v13109_v60  ;;  %v13198_v22 = vld [vmem:[#allocation7 + $0xbe4] ss:$16 sps:$4 sm:$0xff]   ;;  %v13226_v60 = vld [vmem:[#allocation7 + $0xb40] ss:$16 sps:$4 sm:$0xff]  }
 0x2cf   : > { %3440 = vmatprep.subr.bf16.mxu1 %v13087_v23  ;;  %4627 = vmatprep.subr.bf16.mxu0 %v13114_v45  ;;  %v13234_v45 = vld [vmem:[#allocation7 + $0xb24] ss:$16 sps:$4 sm:$0xff]  }
 0x2d2   : > { %3441 = vmatpush2.bf16.msra.mxu1 %v13085_v27  ;;  %4628 = vmatpush1.bf16.msra.mxu0 %v13112_v46  ;;  %v13196_v27 = vld [vmem:[#allocation7 + $0xbe0] ss:$16 sps:$4 sm:$0xff]  }
 0x2d3   : > { %3442 = vmatprep.subr.bf16.mxu1 %v13090_v10  ;;  %4629 = vmatprep.subr.bf16.mxu0 %v13117_v7  ;;  %v13204_v10 = vld [vmem:[#allocation7 + $0xbc4] ss:$16 sps:$4 sm:$0xff]   ;;  %v13232_v7 = vld [vmem:[#allocation7 + $0xb20] ss:$16 sps:$4 sm:$0xff]  }
 0x2d6   : > { %3443 = vmatpush2.bf16.msra.mxu1 %v13088_v51  ;;  %v13210_v51 = vld [vmem:[#allocation7 + $0xba4] ss:$16 sps:$4 sm:$0xff]  }
 0x2d7   : > { %3444 = vmatprep.subr.bf16.mxu1 %v13093_v32  ;;  %v13208_v32 = vld [vmem:[#allocation7 + $0xba0] ss:$16 sps:$4 sm:$0xff]  }
 0x2da   : > { %3445 = vmatpush2.bf16.msra.mxu1 %v13091_v5  ;;  %v13214_v5 = vld [vmem:[#allocation7 + $0xb80] ss:$16 sps:$4 sm:$0xff]  }
 0x2db   : > { %3446 = vmatprep.subr.bf16.mxu1 %v13096_v59  ;;  %v13222_v59 = vld [vmem:[#allocation7 + $0xb64] ss:$16 sps:$4 sm:$0xff]  }
 0x2de   : > { %3447 = vmatpush2.bf16.msra.mxu1 %v13094_v36  ;;  %v13220_v36 = vld [vmem:[#allocation7 + $0xb60] ss:$16 sps:$4 sm:$0xff]  }
 0x2df   : > { %3448 = vmatprep.subr.bf16.mxu1 %v13099_v42  ;;  %v16333_v42 = vld [vmem:[#allocation8 + $0x4] sm:$0xf] }
 0x2e0   : > { %v16337_v46 = vrot.slane %v16333_v42, %v19238_v17 }
 0x2e2   : > { %3449 = vmatpush2.bf16.msra.mxu1 %v13097_v56  ;;  %v13228_v56 = vld [vmem:[#allocation7 + $0xb44] ss:$16 sps:$4 sm:$0xff]  }
 0x2e3   : > { %4692 = vmatprep.subr.bf16.mxu1 %v13150_v28 }
 0x2e5   : > { %3451 = vmatmul.mubr.bf16.vlgmr.msra.gmra.mxu1 %v16280_v58  ;;  %v13115_v58 = vld [vmem:[#allocation7 + $0x840] ss:$16 sps:$4 sm:$0xff]  }
 0x2e6   : > { %3460 = vmatprep.mubr.bf16.mxu1 %v16293_v41  ;;  %4630 = vmatpush1.bf16.msra.mxu0 %v13115_v58  ;;  %v13120_v41 = vld [vmem:[#allocation7 + $0x824] ss:$16 sps:$4 sm:$0xff]  }
 0x2e7   : > { %4631 = vmatprep.subr.bf16.mxu0 %v13120_v41  ;;  %v13240_v58 = vld [vmem:[#allocation7 + $0xb04] ss:$16 sps:$4 sm:$0xff]   ;;  %v16341_v41 = vrot.slane %v16333_v42, %v19239_v29 }
 0x2ed   : > { %3461 = vmatmul.mubr.bf16.gmra.mxu1 %v16297_v31  ;;  %v13118_v31 = vld [vmem:[#allocation7 + $0x820] ss:$16 sps:$4 sm:$0xff]  }
 0x2ee   : > { %3470 = vmatprep.mubr.bf16.mxu1 %v16311_v44  ;;  %4632 = vmatpush1.bf16.msra.mxu0 %v13118_v31  ;;  %v13139_v44 = vld [vmem:[#allocation7 + $0x940] ss:$16 sps:$4 sm:$0xff]  }
 0x2ef   : > { %4633 = vmatprep.subr.bf16.mxu0 %v13123_v54 }
 0x2f2   : > { %4634 = vmatpush1.bf16.msra.mxu0 %v13121_v47  ;;  %v13238_v47 = vld [vmem:[#allocation7 + $0xb00] ss:$16 sps:$4 sm:$0xff]  }
 0x2f3   : > { %4635 = vmatprep.subr.bf16.mxu0 %v13126_v48 }
 0x2f5   : > { %3471 = vmatmul.mubr.bf16.gmra.mxu1 %v16314_v26  ;;  %v13148_v26 = vld [vmem:[#allocation7 + $0xae0] ss:$16 sps:$4 sm:$0xff]  }
 0x2f6   : > { %3480 = vmatprep.mubr.bf16.mxu1 %v2406_v62  ;;  %4636 = vmatpush2.bf16.msra.mxu0 %v13124_v49  ;;  %v13174_v62 = vld [vmem:[#allocation7 + $0xa64] ss:$16 sps:$4 sm:$0xff]   ;;  %v13246_v49 = vld [vmem:[#allocation7 + $0xaec] ss:$16 sps:$4 sm:$0xff]  }
 0x2f7   : > { %4637 = vmatprep.subr.bf16.mxu0 %v13129_v52  ;;  %4693 = vmatpush1.bf16.msra.mxu1 %v13148_v26 }
 0x2f8   : > { %4694 = vmatprep.subr.bf16.mxu1 %v13156_v1 }
 0x2fa   : > { %4638 = vmatpush2.bf16.msra.mxu0 %v13127_v25 }
 0x2fb   : > { %4639 = vmatprep.subr.bf16.mxu0 %v13132_v20  ;;  %4695 = vmatpush1.bf16.msra.mxu1 %v13154_v39 }
 0x2fc   : > { %4696 = vmatprep.subr.bf16.mxu1 %v13162_v53 }
 0x2fd   : > { %3481 = vmatmul.mubr.bf16.gmra.mxu1 %v2405_v57  ;;  %v13184_v57 = vld [vmem:[#allocation7 + $0xa20] ss:$16 sps:$4 sm:$0xff]  }
 0x2fe   : > { %4640 = vmatpush2.bf16.msra.mxu0 %v13130_v15 }
 0x2ff   : > { %4641 = vmatprep.subr.bf16.mxu0 %v13135_v3  ;;  %4697 = vmatpush1.bf16.msra.mxu1 %v13160_v30 }
 0x300   : > { %4698 = vmatprep.subr.bf16.mxu1 %v13168_v2 }
 0x302   : > { %4642 = vmatpush2.bf16.msra.mxu0 %v13133_v14 }
 0x303   : > { %4643 = vmatprep.subr.bf16.mxu0 %v13138_v35  ;;  %4699 = vmatpush1.bf16.msra.mxu1 %v13166_v4 }
 0x304   : > { %4700 = vmatprep.subr.bf16.mxu1 %v13174_v62 }
 0x306   : > { %4644 = vmatpush2.bf16.msra.mxu0 %v13136_v38 }
 0x307   : > { %4645 = vmatprep.subr.bf16.mxu0 %v13141_v16  ;;  %4701 = vmatpush1.bf16.msra.mxu1 %v13172_v18 }
 0x308   : > { %4702 = vmatprep.subr.bf16.mxu1 %v13180_v19 }
 0x30a   : > { %4646 = vmatpush2.bf16.msra.mxu0 %v13139_v44 }
 0x30b   : > { %4647 = vmatprep.subr.bf16.mxu0 %v13144_v11  ;;  %4703 = vmatpush1.bf16.msra.mxu1 %v13178_v40 }
 0x30c   : > { %4704 = vmatprep.subr.bf16.mxu1 %v13186_v33 }
 0x30e   : > { %4648 = vmatpush2.bf16.msra.mxu0 %v13142_v34 }
 0x30f   : > { %4649 = vmatprep.subr.bf16.mxu0 %v13147_v13  ;;  %4705 = vmatpush1.bf16.msra.mxu1 %v13184_v57 }
 0x310   : > { %4706 = vmatprep.subr.bf16.mxu1 %v13192_v24 }
 0x312   : > { %4650 = vmatpush2.bf16.msra.mxu0 %v13145_v43 }
 0x313   : > { %4765 = vmatprep.subr.bf16.mxu0 %v13153_v63  ;;  %4707 = vmatpush1.bf16.msra.mxu1 %v13190_v6 }
 0x314   : > { %4708 = vmatprep.subr.bf16.mxu1 %v13198_v22 }
 0x317   : > { %4709 = vmatpush2.bf16.msra.mxu1 %v13196_v27 }
 0x318   : > { %4710 = vmatprep.subr.bf16.mxu1 %v13204_v10 }
 0x31b   : > { %4711 = vmatpush2.bf16.msra.mxu1 %v13202_v9 }
 0x31c   : > { %4712 = vmatprep.subr.bf16.mxu1 %v13210_v51 }
 0x31f   : > { %4713 = vmatpush2.bf16.msra.mxu1 %v13208_v32 }
 0x320   : > { %4714 = vmatprep.subr.bf16.mxu1 %v13216_v21 }
 0x323   : > { %4715 = vmatpush2.bf16.msra.mxu1 %v13214_v5 }
 0x324   : > { %4716 = vmatprep.subr.bf16.mxu1 %v13222_v59 }
 0x325   : > { %v3233_v0 = vpop.f32.mrf.mxu0 }
 0x326   : > { %v3234_v54 = vadd.f32 %v3233_v0, %v16337_v46 }
 0x327   : > { %v3235_v55 = vpop.f32.mrf.mxu0  ;;  %4717 = vmatpush2.bf16.msra.mxu1 %v13220_v36 }
 0x328   : > { %4718 = vmatprep.subr.bf16.mxu1 %v13228_v56  ;;  %v3236_v52 = vadd.f32 %v3235_v55, %v16341_v41 }
 0x329   : > { %v3237_v23 = vpop.f32.mrf.mxu0 }
 0x32a   : > { %v3238_v3 = vadd.f32 %v3237_v23, %v16337_v46 }
 0x32b   : > { %v3239_v37 = vpop.f32.mrf.mxu0  ;;  %4719 = vmatpush2.bf16.msra.mxu1 %v13226_v60 }
 0x32c   : > { %4720 = vmatprep.subr.bf16.mxu1 %v13234_v45  ;;  %v3240_v13 = vadd.f32 %v3239_v37, %v16341_v41 }
 0x32d   : > { %v3243_v50 = vpop.f32.mrf.mxu0 }
 0x32e   : > { %v3244_v1 = vadd.f32 %v3243_v50, %v16337_v46 }
 0x32f   : > { %v3245_v12 = vpop.f32.mrf.mxu0  ;;  %4721 = vmatpush2.bf16.msra.mxu1 %v13232_v7 }
 0x330   : > { %4722 = vmatprep.subr.bf16.mxu1 %v13240_v58  ;;  %v3246_v30 = vadd.f32 %v3245_v12, %v16341_v41 }
 0x331   : > { %v3247_v8 = vpop.f32.mrf.mxu0 }
 0x332   : > { %v3248_v33 = vadd.f32 %v3247_v8, %v16337_v46 }
 0x333   : > { %v3249_v61 = vpop.f32.mrf.mxu0  ;;  %4723 = vmatpush2.bf16.msra.mxu1 %v13238_v47 }
 0x334   : > { %4838 = vmatprep.subr.bf16.mxu1 %v13246_v49  ;;  %v3250_v22 = vadd.f32 %v3249_v61, %v16341_v41 }
 0x339   : > { %v16343_v31 = vpop.f32.mrf.mxu0 }
 0x33a   : > { %v3254_v60 = vadd.f32 %v16343_v31, %v16337_v46 }
 0x33b   : > { %v16347_v25 = vpop.f32.mrf.mxu0 }
 0x33c   : > { %v3256_v47 = vadd.f32 %v16347_v25, %v16341_v41 }
 0x33d   : > { %v16357_v16 = vpop.f32.mrf.mxu0 }
 0x33f   : > { %v3259_v2 = vpop.f32.mrf.mxu0 }
 0x340   : > { %v3260_v25 = vadd.f32 %v3259_v2, %v16341_v41 }
 0x349   : > { %v3263_v23 = vpop.f32.mrf.mxu0 }
 0x34b   : > { %v3265_v5 = vpop.f32.mrf.mxu0 }
 0x34d   : > { %v3267_v45 = vpop.f32.mrf.mxu0 }
 0x365   : > { %v3306_v48 = vpop.f32.mrf.mxu1 }
 0x366   : > { %v16349_v20 = vadd.f32 %v3306_v48, %v3234_v54 }
 0x367   : > { %v3308_v15 = vpop.f32.mrf.mxu1 }
 0x368   : > { %v16353_v14 = vmul.f32 100.0, %v16349_v20  ;;  %v16355_v35 = vadd.f32 %v3308_v15, %v3236_v52 }
 0x369   : > { %v3310_v38 = vpop.f32.mrf.mxu1 }
 0x36a   : > { %v3555_v44 = vmin.f32 %v16353_v14, 20.0  ;;  %v16361_v11 = vmul.f32 100.0, %v16355_v35  ;;  %v16363_v34 = vadd.f32 %v3310_v38, %v3238_v3  ;;  %v3269_v3 = vpop.f32.mrf.mxu0  ;;  %vm3523_vm10 = vcmp.gt.f32.partialorder %v16353_v14, 20.0 }
 0x36b   : > { %v3312_v26 = vpop.f32.mrf.mxu1 }
 0x36c   : > { %v3587_v43 = vmul.f32 1.442695, %v3555_v44  ;;  %v3556_v28 = vmin.f32 %v16361_v11, 20.0  ;;  %v16368_v63 = vmul.f32 100.0, %v16363_v34  ;;  %v16371_v39 = vadd.f32 %v3312_v26, %v3240_v13 }
 0x36d   : > { %v3316_v53 = vpop.f32.mrf.mxu1  ;;  %v3258_v26 = vadd.f32 %v16357_v16, %v16337_v46  ;;  %vm3524_vm8 = vcmp.gt.f32.partialorder %v16361_v11, 20.0  ;;  %v13151_v11 = vld [vmem:[#allocation7 + $0x8e8] ss:$16 sps:$4 sm:$0xff]  }
 0x36e   : > { %14332 = vpow2.f32 %v3587_v43  ;;  %v3589_v4 = vmul.f32 1.442695, %v3556_v28  ;;  %v3559_v62 = vmin.f32 %v16368_v63, 20.0  ;;  %v16376_v18 = vmul.f32 100.0, %v16371_v39  ;;  %v16419_v28 = vpop.f32.mrf.mxu0 }
 0x36f   : > { %v16378_v19 = vadd.f32 %v3316_v53, %v3244_v1  ;;  %v3318_v40 = vpop.f32.mrf.mxu1  ;;  %vm3527_vm7 = vcmp.gt.f32.partialorder %v16368_v63, 20.0 }
 0x370   : > { %14334 = vpow2.f32 %v3589_v4  ;;  %v3595_v57 = vmul.f32 1.442695, %v3559_v62  ;;  %v16381_v0 = vadd.f32 %v3318_v40, %v3246_v30  ;;  %v3560_v24 = vmin.f32 %v16376_v18, 20.0 }
 0x371   : > { %v16385_v55 = vmul.f32 100.0, %v16378_v19  ;;  %v3320_v6 = vpop.f32.mrf.mxu1  ;;  %vm3528_vm9 = vcmp.gt.f32.partialorder %v16376_v18, 20.0 }
 0x372   : > { %14336 = vpow2.f32 %v3595_v57  ;;  %v16389_v27 = vmul.f32 100.0, %v16381_v0  ;;  %v16391_v10 = vadd.f32 %v3320_v6, %v3248_v33  ;;  %v3597_v37 = vmul.f32 1.442695, %v3560_v24 }
 0x373   : > { %v3563_v9 = vmin.f32 %v16385_v55, 20.0  ;;  %v3322_v51 = vpop.f32.mrf.mxu1  ;;  %v3264_v33 = vadd.f32 %v3263_v23, %v16337_v46  ;;  %vm3531_vm14 = vcmp.gt.f32.partialorder %v16385_v55, 20.0 }
 0x374   : > { %v3564_v50 = vmin.f32 %v16389_v27, 20.0  ;;  %v16396_v32 = vmul.f32 100.0, %v16391_v10  ;;  %v16398_v21 = vadd.f32 %v3322_v51, %v3250_v22  ;;  %14338 = vpow2.f32 %v3597_v37 }
 0x375   : > { %v3603_v12 = vmul.f32 1.442695, %v3563_v9  ;;  %v16434_v9 = vpop.f32.mrf.mxu0  ;;  %vm3532_vm11 = vcmp.gt.f32.partialorder %v16389_v27, 20.0 }
 0x376   : > { %v3605_v59 = vmul.f32 1.442695, %v3564_v50  ;;  %v3567_v8 = vmin.f32 %v16396_v32, 20.0  ;;  %v16402_v36 = vmul.f32 100.0, %v16398_v21  ;;  %vm3535_vm12 = vcmp.gt.f32.partialorder %v16396_v32, 20.0 }
 0x377   : > { %14340 = vpow2.f32 %v3603_v12  ;;  %v3266_v12 = vadd.f32 %v3265_v5, %v16341_v41  ;;  %v3270_v5 = vadd.f32 %v3269_v3, %v16341_v41 }
 0x378   : > { %14342 = vpow2.f32 %v3605_v59  ;;  %v3611_v56 = vmul.f32 1.442695, %v3567_v8  ;;  %v3568_v61 = vmin.f32 %v16402_v36, 20.0  ;;  %vm3536_vm13 = vcmp.gt.f32.partialorder %v16402_v36, 20.0 }
 0x37a   : > { %14344 = vpow2.f32 %v3611_v56  ;;  %v3613_v7 = vmul.f32 1.442695, %v3568_v61 }
 0x37b   : > { %v14333_v58 = vpop.eup %14332 }
 0x37c   : > { %v3326_v54 = vpop.f32.mrf.mxu1  ;;  %v3651_v48 = vadd.f32 1.0, %v14333_v58  ;;  %14346 = vpow2.f32 %v3613_v7 }
 0x37d   : > { %v16409_v49 = vadd.f32 %v3326_v54, %v3254_v60  ;;  %v14335_v52 = vpop.eup %14334  ;;  %v3268_v54 = vadd.f32 %v3267_v45, %v16337_v46 }
 0x37e   : > { %v3328_v15 = vpop.f32.mrf.mxu1  ;;  %v3652_v38 = vadd.f32 1.0, %v14335_v52  ;;  %14348 = vlog2.f32 %v3651_v48 }
 0x37f   : > { %v16412_v44 = vmul.f32 100.0, %v16409_v49  ;;  %v16414_v31 = vadd.f32 %v3328_v15, %v3256_v47  ;;  %v14337_v13 = vpop.eup %14336  ;;  %v16451_v15 = vpop.f32.mrf.mxu0 }
 0x380   : > { %v3330_v43 = vpop.f32.mrf.mxu1  ;;  %14350 = vlog2.f32 %v3652_v38  ;;  %v3655_v1 = vadd.f32 1.0, %v14337_v13 }
 0x381   : > { %v3571_v53 = vmin.f32 %v16412_v44, 20.0  ;;  %v16423_v30 = vmul.f32 100.0, %v16414_v31  ;;  %v16425_v4 = vadd.f32 %v3330_v43, %v3258_v26  ;;  %v14339_v40 = vpop.eup %14338  ;;  %vm3539_vm15 = vcmp.gt.f32.partialorder %v16412_v44, 20.0 }
 0x382   : > { %v3332_v62 = vpop.f32.mrf.mxu1  ;;  %14352 = vlog2.f32 %v3655_v1  ;;  %v3656_v2 = vadd.f32 1.0, %v14339_v40  ;;  %v16462_v40 = vpop.f32.mrf.mxu0 }
 0x383   : > { %v3619_v16 = vmul.f32 1.442695, %v3571_v53  ;;  %v16428_v57 = vadd.f32 %v3332_v62, %v3260_v25  ;;  %v3572_v24 = vmin.f32 %v16423_v30, 20.0  ;;  %v16432_v6 = vmul.f32 100.0, %v16425_v4 }
 0x384   : > { %v3336_v22 = vpop.f32.mrf.mxu1  ;;  %v14341_v37 = vpop.eup %14340  ;;  %vm3540_vm0 = vcmp.gt.f32.partialorder %v16423_v30, 20.0  ;;  %v13187_v30 = vld [vmem:[#allocation7 + $0x828] ss:$16 sps:$4 sm:$0xff]  }
 0x385   : > { %14354 = vpow2.f32 %v3619_v16  ;;  %v16437_v51 = vmul.f32 100.0, %v16428_v57  ;;  %v16439_v50 = vadd.f32 %v3336_v22, %v3264_v33  ;;  %v14343_v23 = vpop.eup %14342  ;;  %v3659_v59 = vadd.f32 1.0, %v14341_v37 }
 0x386   : > { %14356 = vlog2.f32 %v3656_v2  ;;  %v3621_v8 = vmul.f32 1.442695, %v3572_v24  ;;  %v3338_v56 = vpop.f32.mrf.mxu1  ;;  %v3660_v61 = vadd.f32 1.0, %v14343_v23  ;;  %v3575_v60 = vmin.f32 %v16432_v6, 20.0 }
 0x387   : > { %v3576_v7 = vmin.f32 %v16437_v51, 20.0  ;;  %v14345_v58 = vpop.eup %14344  ;;  %14358 = vlog2.f32 %v3659_v59  ;;  %v16446_v47 = vmul.f32 100.0, %v16439_v50  ;;  %v16448_v48 = vadd.f32 %v3338_v56, %v3266_v12 }
 0x388   : > { %v3340_v52 = vpop.f32.mrf.mxu1  ;;  %14360 = vlog2.f32 %v3660_v61  ;;  %v3663_v38 = vadd.f32 1.0, %v14345_v58  ;;  %v3627_v13 = vmul.f32 1.442695, %v3575_v60  ;;  %v16472_v61 = vpop.f32.mrf.mxu0  ;;  %vm3543_vm1 = vcmp.gt.f32.partialorder %v16432_v6, 20.0 }
 0x389   : > { %v14347_v26 = vpop.eup %14346  ;;  %14362 = vpow2.f32 %v3621_v8  ;;  %v3629_v43 = vmul.f32 1.442695, %v3576_v7  ;;  %v3579_v25 = vmin.f32 %v16446_v47, 20.0  ;;  %v16455_v46 = vmul.f32 100.0, %v16448_v48 }
 0x38a   : > { %v3342_v45 = vpop.f32.mrf.mxu1  ;;  %14364 = vlog2.f32 %v3663_v38  ;;  %v3664_v1 = vadd.f32 1.0, %v14347_v26  ;;  %v16457_v53 = vadd.f32 %v3340_v52, %v3268_v54  ;;  %vm3544_vm3 = vcmp.gt.f32.partialorder %v16437_v51, 20.0 }
 0x38b   : > { %v16459_v62 = vadd.f32 %v3342_v45, %v3270_v5  ;;  %14366 = vpow2.f32 %v3627_v13  ;;  %v3580_v41 = vmin.f32 %v16455_v46, 20.0  ;;  %v14349_v3 = vpop.eup %14348  ;;  %v3635_v24 = vmul.f32 1.442695, %v3579_v25  ;;  %v16474_v25 = vpop.f32.mrf.mxu0 }
 0x38c   : > { %14368 = vlog2.f32 %v3664_v1  ;;  %v16465_v33 = vmul.f32 100.0, %v16457_v53  ;;  %v3684_v8 = vmul.f32 0.6931472, %v14349_v3  ;;  %vm3548_vm4 = vcmp.gt.f32.partialorder %v16455_v46, 20.0 }
 0x38d   : > { %v16468_v16 = vmul.f32 100.0, %v16459_v62  ;;  %v14351_v2 = vpop.eup %14350  ;;  %14370 = vpow2.f32 %v3629_v43  ;;  %v3637_v22 = vmul.f32 1.442695, %v3580_v41  ;;  %vm3547_vm6 = vcmp.gt.f32.partialorder %v16446_v47, 20.0 }
 0x38e   : > { %v3583_v37 = vmin.f32 %v16465_v33, 20.0  ;;  %v3686_v59 = vmul.f32 0.6931472, %v14351_v2  ;;  %v3747_v43 = vmul.f32 0.01, %v3684_v8 }
 0x38f   : > { %v14353_v23 = vpop.eup %14352  ;;  %14372 = vpow2.f32 %v3637_v22  ;;  %v3584_v12 = vmin.f32 %v16468_v16, 20.0  ;;  %vm3552_vm5 = vcmp.gt.f32.partialorder %v16468_v16, 20.0  ;;  %v13201_v16 = vld [vmem:[#allocation7 + $0x9ec] ss:$16 sps:$4 sm:$0xff]  }
 0x390   : > { %v3692_v56 = vmul.f32 0.6931472, %v14353_v23  ;;  %v3643_v60 = vmul.f32 1.442695, %v3583_v37  ;;  %14374 = vpow2.f32 %v3635_v24  ;;  %v3748_v13 = vmul.f32 0.01, %v3686_v59  ;;  %v16484_v59 = vpop.f32.mrf.mxu0 }
 0x391   : > { %v3645_v58 = vmul.f32 1.442695, %v3584_v12  ;;  %v3779_v63 = vsel %vm3523_vm10, %v16349_v20, %v3747_v43 }
 0x392   : > { %v14355_v7 = vpop.eup %14354  ;;  %v3751_v52 = vmul.f32 0.01, %v3692_v56  ;;  %14376 = vpow2.f32 %v3643_v60  ;;  %v3780_v37 = vsel %vm3524_vm8, %v16355_v35, %v3748_v13 }
 0x393   : > { %v14357_v54 = vpop.eup %14356  ;;  %v3667_v5 = vadd.f32 1.0, %v14355_v7  ;;  %14378 = vpow2.f32 %v3645_v58  ;;  %v13159_v7 = vld [vmem:[#allocation7 + $0x8cc] ss:$16 sps:$4 sm:$0xff]  }
 0x394   : > { %v3694_v38 = vmul.f32 0.6931472, %v14357_v54  ;;  %v14359_v26 = vpop.eup %14358  ;;  %v3783_v3 = vsel %vm3527_vm7, %v16363_v34, %v3751_v52  ;;  %v13157_v52 = vld [vmem:[#allocation7 + $0x8c8] ss:$16 sps:$4 sm:$0xff]   ;;  %vm3551_vm7 = vcmp.gt.f32.partialorder %v16465_v33, 20.0 }
 0x395   : > { %v14361_v45 = vpop.eup %14360  ;;  %14380 = vlog2.f32 %v3667_v5  ;;  %v3700_v34 = vmul.f32 0.6931472, %v14359_v26  ;;  %v16488_v60 = vpack.c.bf16 %v3783_v3, %v3779_v63  ;;  %v13171_v63 = vld [vmem:[#allocation7 + $0x88c] ss:$16 sps:$4 sm:$0xff]  }
 0x396   : > { %v3752_v1 = vmul.f32 0.01, %v3694_v38  ;;  %v14363_v41 = vpop.eup %14362  ;;  %v3702_v2 = vmul.f32 0.6931472, %v14361_v45  ;;  %v3395_v38 = vpop.f32.mrf.mxu0  ;;  %v13165_v45 = vld [vmem:[#allocation7 + $0x8ac] ss:$16 sps:$4 sm:$0xff]  }
 0x397   : > { %v14365_v24 = vpop.eup %14364  ;;  %v3668_v22 = vadd.f32 1.0, %v14363_v41  ;;  %v3755_v26 = vmul.f32 0.01, %v3700_v34 }
 0x398   : > { %v3784_v23 = vsel %vm3528_vm9, %v16371_v39, %v3752_v1  ;;  %v14367_v12 = vpop.eup %14366  ;;  %v3708_v56 = vmul.f32 0.6931472, %v14365_v24  ;;  %v3756_v39 = vmul.f32 0.01, %v3702_v2 }
 0x399   : > { %v16486_v8 = vpack.c.bf16 %v3784_v23, %v3780_v37  ;;  %v14369_v18 = vpop.eup %14368  ;;  %14382 = vlog2.f32 %v3668_v22  ;;  %v3671_v14 = vadd.f32 1.0, %v14367_v12  ;;  %v19242_v22 = vld [vmem:[#allocation20_spill] sm:$0xff]  ;;  %v3399_v37 = vpop.f32.mrf.mxu0  ;;  %v13163_v23 = vld [vmem:[#allocation7 + $0x8a8] ss:$16 sps:$4 sm:$0xff]   ;;  %v19243_v12 = vld [vmem:[#allocation22_spill] sm:$0xff] }
 0x39a   : > { %v14371_v58 = vpop.eup %14370  ;;  %v3710_v35 = vmul.f32 0.6931472, %v14369_v18  ;;  %v3759_v54 = vmul.f32 0.01, %v3708_v56  ;;  %v3788_v41 = vsel %vm3532_vm11, %v16381_v0, %v3756_v39  ;;  %v16503_v36 = vrot.slane %v16333_v42, %v19242_v22  ;;  %v13177_v39 = vld [vmem:[#allocation7 + $0x86c] ss:$16 sps:$4 sm:$0xff]  }
 0x39b   : > { %4651 = vmatprep.mubr.bf16.mxu0 %v16486_v8  ;;  %14384 = vlog2.f32 %v3671_v14  ;;  %v3672_v20 = vadd.f32 1.0, %v14371_v58  ;;  %v3787_v0 = vsel %vm3531_vm14, %v16378_v19, %v3755_v26  ;;  %v3401_v18 = vpop.f32.mrf.mxu0 }
 0x39c   : > { %4652 = vmatmul.mubr.bf16.vlgmr.msra.gmra.mxu0 %v16488_v60  ;;  %v14373_v5 = vpop.eup %14372  ;;  %v3760_v13 = vmul.f32 0.01, %v3710_v35  ;;  %v3791_v2 = vsel %vm3535_vm12, %v16391_v10, %v3759_v54  ;;  %v3380_v19 = vadd.f32 %v16419_v28, %v16503_v36  ;;  %v3390_v28 = vadd.f32 %v16472_v61, %v16503_v36 }
 0x39d   : > { %4766 = vmatpush1.bf16.msra.mxu0 %v13151_v11  ;;  %14386 = vlog2.f32 %v3672_v20  ;;  %v3676_v43 = vadd.f32 1.0, %v14373_v5  ;;  %v14375_v1 = vpop.eup %14374  ;;  %v16511_v55 = vpack.c.bf16 %v3791_v2, %v3787_v0  ;;  %v13181_v0 = vld [vmem:[#allocation7 + $0x848] ss:$16 sps:$4 sm:$0xff]  }
 0x39e   : > { %4767 = vmatprep.subr.bf16.mxu0 %v13159_v7  ;;  %v3792_v3 = vsel %vm3536_vm13, %v16398_v21, %v3760_v13  ;;  %v16508_v21 = vrot.slane %v16333_v42, %v19243_v12  ;;  %v3675_v34 = vadd.f32 1.0, %v14375_v1  ;;  %v13169_v42 = vld [vmem:[#allocation7 + $0x888] ss:$16 sps:$4 sm:$0xff]   ;;  %v3384_v7 = vadd.f32 %v16451_v15, %v16503_v36 }
 0x39f   : > { %v14377_v27 = vpop.eup %14376  ;;  %14388 = vlog2.f32 %v3676_v43  ;;  %v16499_v24 = vpack.c.bf16 %v3792_v3, %v3788_v41  ;;  %v16536_v43 = vadd.f32 %v3399_v37, %v16503_v36 }
 0x3a0   : > { %v14379_v32 = vpop.eup %14378  ;;  %v3679_v56 = vadd.f32 1.0, %v14377_v27  ;;  %v3382_v14 = vadd.f32 %v16434_v9, %v16508_v21  ;;  %v3386_v58 = vadd.f32 %v16462_v40, %v16508_v21  ;;  %v16530_v9 = vadd.f32 %v16484_v59, %v16503_v36  ;;  %v13175_v59 = vld [vmem:[#allocation7 + $0x868] ss:$16 sps:$4 sm:$0xff]  }
 0x3a1   : > { %4768 = vmatpush1.bf16.msra.mxu0 %v13157_v52  ;;  %v3680_v10 = vadd.f32 1.0, %v14379_v32  ;;  %4661 = vmatprep.mubr.bf16.mxu0 %v16499_v24  ;;  %v3392_v52 = vadd.f32 %v16474_v25, %v16508_v21  ;;  %v16533_v15 = vadd.f32 %v3395_v38, %v16508_v21  ;;  %v16539_v61 = vadd.f32 %v3401_v18, %v16508_v21  ;;  %v3403_v25 = vpop.f32.mrf.mxu0  ;;  %v13183_v38 = vld [vmem:[#allocation7 + $0x84c] ss:$16 sps:$4 sm:$0xff]  }
 0x3a2   : > { %4769 = vmatprep.subr.bf16.mxu0 %v13165_v45  ;;  %v14381_v11 = vpop.eup %14380 }
 0x3a3   : > { %14390 = vlog2.f32 %v3680_v10  ;;  %v3716_v54 = vmul.f32 0.6931472, %v14381_v11  ;;  %v16556_v10 = vadd.f32 %v3403_v25, %v16503_v36 }
 0x3a4   : > { %4662 = vmatmul.mubr.bf16.gmra.mxu0 %v16511_v55  ;;  %14392 = vlog2.f32 %v3675_v34 }
 0x3a5   : > { %4770 = vmatpush1.bf16.msra.mxu0 %v13163_v23  ;;  %v3452_v35 = vpop.f32.mrf.mxu1  ;;  %14394 = vlog2.f32 %v3679_v56  ;;  %v3763_v2 = vmul.f32 0.01, %v3716_v54 }
 0x3a6   : > { %4771 = vmatprep.subr.bf16.mxu0 %v13171_v63  ;;  %v14383_v20 = vpop.eup %14382  ;;  %v16526_v5 = vadd.f32 %v3452_v35, %v3380_v19 }
 0x3a7   : > { %v3454_v40 = vpop.f32.mrf.mxu1  ;;  %v3718_v13 = vmul.f32 0.6931472, %v14383_v20 }
 0x3a8   : > { %v14385_v26 = vpop.eup %14384  ;;  %v16542_v45 = vmul.f32 100.0, %v16526_v5  ;;  %v16544_v1 = vadd.f32 %v3454_v40, %v3382_v14  ;;  %v13189_v40 = vld [vmem:[#allocation7 + $0x82c] ss:$16 sps:$4 sm:$0xff]  }
 0x3a9   : > { %4772 = vmatpush1.bf16.msra.mxu0 %v13169_v42  ;;  %v3456_v41 = vpop.f32.mrf.mxu1  ;;  %v3724_v3 = vmul.f32 0.6931472, %v14385_v26  ;;  %v3764_v11 = vmul.f32 0.01, %v3718_v13 }
 0x3aa   : > { %4773 = vmatprep.subr.bf16.mxu0 %v13177_v39  ;;  %v14387_v27 = vpop.eup %14386  ;;  %v3557_v32 = vmin.f32 %v16542_v45, 20.0  ;;  %v16551_v37 = vmul.f32 100.0, %v16544_v1  ;;  %v16553_v23 = vadd.f32 %v3456_v41, %v3384_v7  ;;  %v3795_v39 = vsel %vm3539_vm15, %v16409_v49, %v3763_v2 }
 0x3ab   : > { %v3726_v63 = vmul.f32 0.6931472, %v14387_v27  ;;  %v3458_v34 = vpop.f32.mrf.mxu1  ;;  %v3767_v56 = vmul.f32 0.01, %v3724_v3  ;;  %vm3525_vm8 = vcmp.gt.f32.partialorder %v16542_v45, 20.0 }
 0x3ac   : > { %v14389_v19 = vpop.eup %14388  ;;  %v3591_v18 = vmul.f32 1.442695, %v3557_v32  ;;  %v3558_v42 = vmin.f32 %v16551_v37, 20.0  ;;  %v16561_v14 = vmul.f32 100.0, %v16553_v23  ;;  %v16563_v35 = vadd.f32 %v3458_v34, %v3386_v58  ;;  %v13195_v32 = vld [vmem:[#allocation7 + $0x80c] ss:$16 sps:$4 sm:$0xff]  }
 0x3ad   : > { %4774 = vmatpush1.bf16.msra.mxu0 %v13175_v59  ;;  %v3768_v7 = vmul.f32 0.01, %v3726_v63  ;;  %v3799_v54 = vsel %vm3543_vm1, %v16425_v4, %v3767_v56  ;;  %v3462_v20 = vpop.f32.mrf.mxu1  ;;  %v3734_v25 = vmul.f32 0.6931472, %v14389_v19  ;;  %v3796_v58 = vsel %vm3540_vm0, %v16414_v31, %v3764_v11  ;;  %v16587_v31 = vpop.f32.mrf.mxu0 }
 0x3ae   : > { %4775 = vmatprep.subr.bf16.mxu0 %v13183_v38  ;;  %14396 = vpow2.f32 %v3591_v18  ;;  %v3593_v13 = vmul.f32 1.442695, %v3558_v42  ;;  %v3561_v26 = vmin.f32 %v16561_v14, 20.0  ;;  %v16579_v44 = vmul.f32 100.0, %v16563_v35 }
 0x3af   : > { %v3800_v49 = vsel %vm3544_vm3, %v16428_v57, %v3768_v7  ;;  %v16581_v4 = vadd.f32 %v3462_v20, %v3390_v28  ;;  %v3464_v6 = vpop.f32.mrf.mxu1  ;;  %v16590_v57 = vpack.c.bf16 %v3799_v54, %v3795_v39  ;;  %v3772_v63 = vmul.f32 0.01, %v3734_v25  ;;  %v13193_v54 = vld [vmem:[#allocation7 + $0x808] ss:$16 sps:$4 sm:$0xff]   ;;  %v3409_v46 = vpop.f32.mrf.mxu0 }
 0x3b0   : > { %v14391_v59 = vpop.eup %14390  ;;  %14398 = vpow2.f32 %v3593_v13  ;;  %v3599_v38 = vmul.f32 1.442695, %v3561_v26  ;;  %v16583_v41 = vpack.c.bf16 %v3800_v49, %v3796_v58  ;;  %v16585_v3 = vadd.f32 %v3464_v6, %v3392_v52 }
 0x3b1   : > { %4776 = vmatpush1.bf16.msra.mxu0 %v13181_v0  ;;  %v3562_v51 = vmin.f32 %v16579_v44, 20.0  ;;  %v16593_v2 = vmul.f32 100.0, %v16581_v4  ;;  %v3466_v28 = vpop.f32.mrf.mxu1  ;;  %v3742_v27 = vmul.f32 0.6931472, %v14391_v59  ;;  %v14393_v11 = vpop.eup %14392  ;;  %vm3529_vm9 = vcmp.gt.f32.partialorder %v16561_v14, 20.0 }
 0x3b2   : > { %4777 = vmatprep.subr.bf16.mxu0 %v13189_v40  ;;  %14400 = vpow2.f32 %v3599_v38  ;;  %4671 = vmatprep.mubr.bf16.mxu0 %v16583_v41  ;;  %v16597_v52 = vmul.f32 100.0, %v16585_v3  ;;  %v16600_v0 = vadd.f32 %v3466_v28, %v16530_v9  ;;  %v14395_v42 = vpop.eup %14394  ;;  %v3804_v9 = vsel %vm3548_vm4, %v16448_v48, %v3772_v63  ;;  %v13207_v28 = vld [vmem:[#allocation7 + $0x9cc] ss:$16 sps:$4 sm:$0xff]  }
 0x3b3   : > { %v3601_v34 = vmul.f32 1.442695, %v3562_v51  ;;  %4672 = vmatmul.mubr.bf16.gmra.mxu0 %v16590_v57  ;;  %v3565_v56 = vmin.f32 %v16593_v2, 20.0  ;;  %v3776_v19 = vmul.f32 0.01, %v3742_v27  ;;  %v3468_v18 = vpop.f32.mrf.mxu1  ;;  %v3411_v27 = vpop.f32.mrf.mxu0  ;;  %vm3526_vm10 = vcmp.gt.f32.partialorder %v16551_v37, 20.0 }
 0x3b4   : > { %v3566_v7 = vmin.f32 %v16597_v52, 20.0  ;;  %v16608_v39 = vmul.f32 100.0, %v16600_v0  ;;  %v16613_v13 = vadd.f32 %v3468_v18, %v16533_v15  ;;  %v3732_v6 = vmul.f32 0.6931472, %v14393_v11  ;;  %v13199_v51 = vld [vmem:[#allocation7 + $0x9e8] ss:$16 sps:$4 sm:$0xff]  }
 0x3b5   : > { %4778 = vmatpush1.bf16.msra.mxu0 %v13187_v30  ;;  %14402 = vpow2.f32 %v3601_v34  ;;  %v3607_v20 = vmul.f32 1.442695, %v3565_v56  ;;  %v3808_v40 = vsel %vm3552_vm5, %v16459_v62, %v3776_v19  ;;  %v3472_v26 = vpop.f32.mrf.mxu1  ;;  %v3740_v59 = vmul.f32 0.6931472, %v14395_v42 }
 0x3b6   : > { %4779 = vmatprep.subr.bf16.mxu0 %v13195_v32  ;;  %v3609_v25 = vmul.f32 1.442695, %v3566_v7  ;;  %v3569_v58 = vmin.f32 %v16608_v39, 20.0  ;;  %v16617_v49 = vpack.c.bf16 %v3808_v40, %v3804_v9  ;;  %v16620_v48 = vmul.f32 100.0, %v16613_v13 }
 0x3b7   : > { %14404 = vpow2.f32 %v3607_v20  ;;  %v3474_v62 = vpop.f32.mrf.mxu1  ;;  %v16624_v38 = vadd.f32 %v3472_v26, %v16536_v43  ;;  %v3771_v63 = vmul.f32 0.01, %v3732_v6  ;;  %v3775_v11 = vmul.f32 0.01, %v3740_v59 }
 0x3b8   : > { %14406 = vpow2.f32 %v3609_v25  ;;  %v3615_v15 = vmul.f32 1.442695, %v3569_v58  ;;  %4681 = vmatprep.mubr.bf16.mxu0 %v16617_v49  ;;  %v16627_v30 = vadd.f32 %v3474_v62, %v16539_v61  ;;  %v3570_v32 = vmin.f32 %v16620_v48, 20.0  ;;  %v3413_v25 = vpop.f32.mrf.mxu0 }
 0x3b9   : > { %4780 = vmatpush1.bf16.msra.mxu0 %v13193_v54  ;;  %v3476_v34 = vpop.f32.mrf.mxu1  ;;  %v16632_v56 = vmul.f32 100.0, %v16624_v38  ;;  %v3803_v33 = vsel %vm3547_vm6, %v16439_v50, %v3771_v63  ;;  %v3807_v42 = vsel %vm3551_vm7, %v16457_v53, %v3775_v11  ;;  %v3406_v9 = vadd.f32 %v16587_v31, %v16508_v21  ;;  %v13213_v31 = vld [vmem:[#allocation7 + $0x9ac] ss:$16 sps:$4 sm:$0xff]  }
 0x3ba   : > { %4781 = vmatprep.subr.bf16.mxu0 %v13201_v16  ;;  %14408 = vpow2.f32 %v3615_v15  ;;  %v16635_v43 = vmul.f32 100.0, %v16627_v30  ;;  %v16638_v61 = vadd.f32 %v3476_v34, %v16556_v10  ;;  %v3617_v18 = vmul.f32 1.442695, %v3570_v32  ;;  %v13205_v10 = vld [vmem:[#allocation7 + $0x9c8] ss:$16 sps:$4 sm:$0xff]  }
 0x3bb   : > { %v14397_v19 = vpop.eup %14396  ;;  %v3478_v7 = vpop.f32.mrf.mxu1  ;;  %v16646_v20 = vpack.c.bf16 %v3807_v42, %v3803_v33  ;;  %v3573_v40 = vmin.f32 %v16632_v56, 20.0  ;;  %v3410_v16 = vadd.f32 %v3409_v46, %v16503_v36  ;;  %v3412_v58 = vadd.f32 %v3411_v27, %v16508_v21  ;;  %v13211_v34 = vld [vmem:[#allocation7 + $0x9a8] ss:$16 sps:$4 sm:$0xff]   ;;  %v13219_v42 = vld [vmem:[#allocation7 + $0x98c] ss:$16 sps:$4 sm:$0xff]  }
 0x3bc   : > { %v3653_v54 = vadd.f32 1.0, %v14397_v19  ;;  %14410 = vpow2.f32 %v3617_v18  ;;  %v3574_v50 = vmin.f32 %v16635_v43, 20.0  ;;  %v16652_v47 = vmul.f32 100.0, %v16638_v61  ;;  %v3415_v19 = vpop.f32.mrf.mxu0 }
 0x3bd   : > { %4782 = vmatpush2.bf16.msra.mxu0 %v13199_v51  ;;  %v14399_v26 = vpop.eup %14398  ;;  %v3482_v53 = vpop.f32.mrf.mxu1  ;;  %v3623_v59 = vmul.f32 1.442695, %v3573_v40  ;;  %v16656_v62 = vadd.f32 %v3478_v7, %v3406_v9  ;;  %v3414_v40 = vadd.f32 %v3413_v25, %v16503_v36  ;;  %v13225_v36 = vld [vmem:[#allocation7 + $0x96c] ss:$16 sps:$4 sm:$0xff]   ;;  %vm3530_vm11 = vcmp.gt.f32.partialorder %v16579_v44, 20.0 }
 0x3be   : > { %4783 = vmatprep.subr.bf16.mxu0 %v13207_v28  ;;  %v3654_v6 = vadd.f32 1.0, %v14399_v26  ;;  %4682 = vmatmul.mubr.bf16.gmra.mxu0 %v16646_v20  ;;  %14412 = vlog2.f32 %v3653_v54  ;;  %v3625_v46 = vmul.f32 1.442695, %v3574_v50  ;;  %v3577_v51 = vmin.f32 %v16652_v47, 20.0 }
 0x3bf   : > { %v14401_v15 = vpop.eup %14400  ;;  %4797 = vmatprep.mubr.bf16.mxu0 %v16486_v8  ;;  %v16660_v32 = vadd.f32 %v3482_v53, %v3410_v16  ;;  %v3484_v63 = vpop.f32.mrf.mxu1  ;;  %v16663_v27 = vmul.f32 100.0, %v16656_v62  ;;  %v3416_v53 = vadd.f32 %v3415_v19, %v16508_v21  ;;  %vm3537_vm12 = vcmp.gt.f32.partialorder %v16608_v39, 20.0 }
 0x3c0   : > { %14414 = vlog2.f32 %v3654_v6  ;;  %v3657_v28 = vadd.f32 1.0, %v14401_v15  ;;  %v16665_v11 = vadd.f32 %v3484_v63, %v3412_v58  ;;  %v3631_v18 = vmul.f32 1.442695, %v3577_v51  ;;  %v13217_v6 = vld [vmem:[#allocation7 + $0x988] ss:$16 sps:$4 sm:$0xff]  }
 0x3c1   : > { %4784 = vmatpush2.bf16.msra.mxu0 %v13205_v10  ;;  %14416 = vpow2.f32 %v3623_v59  ;;  %v16668_v8 = vmul.f32 100.0, %v16660_v32  ;;  %v3486_v33 = vpop.f32.mrf.mxu1  ;;  %v3578_v9 = vmin.f32 %v16663_v27, 20.0  ;;  %vm3534_vm13 = vcmp.gt.f32.partialorder %v16597_v52, 20.0 }
 0x3c2   : > { %4785 = vmatprep.subr.bf16.mxu0 %v13213_v31  ;;  %v14403_v7 = vpop.eup %14402  ;;  %14418 = vlog2.f32 %v3657_v28  ;;  %v16672_v54 = vmul.f32 100.0, %v16665_v11  ;;  %v16678_v63 = vadd.f32 %v3486_v33, %v3414_v40  ;;  %v13223_v33 = vld [vmem:[#allocation7 + $0x968] ss:$16 sps:$4 sm:$0xff]   ;;  %vm3538_vm14 = vcmp.gt.f32.partialorder %v16620_v48, 20.0 }
 0x3c3   : > { %v3658_v10 = vadd.f32 1.0, %v14403_v7  ;;  %14420 = vpow2.f32 %v3625_v46  ;;  %v3581_v26 = vmin.f32 %v16668_v8, 20.0  ;;  %v3488_v16 = vpop.f32.mrf.mxu1  ;;  %v3633_v31 = vmul.f32 1.442695, %v3578_v9  ;;  %v13231_v7 = vld [vmem:[#allocation7 + $0x94c] ss:$16 sps:$4 sm:$0xff]  }
 0x3c4   : > { %v14405_v50 = vpop.eup %14404  ;;  %14422 = vpow2.f32 %v3631_v18  ;;  %v3582_v58 = vmin.f32 %v16672_v54, 20.0  ;;  %v16680_v46 = vadd.f32 %v3488_v16, %v3416_v53  ;;  %v16683_v19 = vmul.f32 100.0, %v16678_v63  ;;  %v13229_v53 = vld [vmem:[#allocation7 + $0x948] ss:$16 sps:$4 sm:$0xff]  }
 0x3c5   : > { %4786 = vmatpush2.bf16.msra.mxu0 %v13211_v34  ;;  %v14407_v59 = vpop.eup %14406  ;;  %14424 = vlog2.f32 %v3658_v10  ;;  %v3661_v15 = vadd.f32 1.0, %v14405_v50  ;;  %v3639_v51 = vmul.f32 1.442695, %v3581_v26  ;;  %vm3533_vm15 = vcmp.gt.f32.partialorder %v16593_v2, 20.0 }
 0x3c6   : > { %4787 = vmatprep.subr.bf16.mxu0 %v13219_v42  ;;  %v3662_v25 = vadd.f32 1.0, %v14407_v59  ;;  %14426 = vpow2.f32 %v3633_v31  ;;  %v3641_v21 = vmul.f32 1.442695, %v3582_v58  ;;  %v16686_v18 = vmul.f32 100.0, %v16680_v46  ;;  %v13237_v58 = vld [vmem:[#allocation7 + $0x92c] ss:$16 sps:$4 sm:$0xff]  }
 0x3c7   : > { %v14409_v28 = vpop.eup %14408  ;;  %14428 = vlog2.f32 %v3661_v15  ;;  %v3585_v42 = vmin.f32 %v16683_v19, 20.0  ;;  %vm3545_vm0 = vcmp.gt.f32.partialorder %v16652_v47, 20.0  ;;  %vm3542_vm1 = vcmp.gt.f32.partialorder %v16635_v43, 20.0 }
 0x3c8   : > { %14430 = vlog2.f32 %v3662_v25  ;;  %v3665_v34 = vadd.f32 1.0, %v14409_v28  ;;  %v3586_v40 = vmin.f32 %v16686_v18, 20.0  ;;  %vm3546_vm3 = vcmp.gt.f32.partialorder %v16663_v27, 20.0  ;;  %v13261_v27 = vld [vmem:[#allocation7 + $0xa4c] ss:$16 sps:$4 sm:$0xff]  }
 0x3c9   : > { %4788 = vmatpush2.bf16.msra.mxu0 %v13217_v6  ;;  %14432 = vpow2.f32 %v3639_v51  ;;  %v14411_v9 = vpop.eup %14410  ;;  %v3647_v26 = vmul.f32 1.442695, %v3585_v42  ;;  %vm3541_vm4 = vcmp.gt.f32.partialorder %v16632_v56, 20.0  ;;  %vm3553_vm5 = vcmp.gt.f32.partialorder %v16683_v19, 20.0 }
 0x3ca   : > { %4789 = vmatprep.subr.bf16.mxu0 %v13225_v36  ;;  %14434 = vlog2.f32 %v3665_v34  ;;  %v3666_v10 = vadd.f32 1.0, %v14411_v9  ;;  %v3649_v50 = vmul.f32 1.442695, %v3586_v40  ;;  %vm3550_vm6 = vcmp.gt.f32.partialorder %v16672_v54, 20.0  ;;  %v13267_v54 = vld [vmem:[#allocation7 + $0xa0c] ss:$16 sps:$4 sm:$0xff]  }
 0x3cb   : > { %14436 = vpow2.f32 %v3641_v21  ;;  %v14413_v16 = vpop.eup %14412  ;;  %v13235_v21 = vld [vmem:[#allocation7 + $0x928] ss:$16 sps:$4 sm:$0xff]   ;;  %vm3554_vm7 = vcmp.gt.f32.partialorder %v16686_v18, 20.0  ;;  %v13276_v18 = vld [vmem:[#allocation7 + $0xbac] ss:$16 sps:$4 sm:$0xff]  }
 0x3cc   : > { %14438 = vlog2.f32 %v3666_v10  ;;  %v3688_v25 = vmul.f32 0.6931472, %v14413_v16  ;;  %v13241_v16 = vld [vmem:[#allocation7 + $0x908] ss:$16 sps:$4 sm:$0xff]  }
 0x3cd   : > { %4790 = vmatpush2.bf16.msra.mxu0 %v13223_v33  ;;  %v14415_v31 = vpop.eup %14414  ;;  %14440 = vpow2.f32 %v3647_v26  ;;  %v13243_v33 = vld [vmem:[#allocation7 + $0x90c] ss:$16 sps:$4 sm:$0xff]  }
 0x3ce   : > { %4791 = vmatprep.subr.bf16.mxu0 %v13231_v7  ;;  %v14417_v6 = vpop.eup %14416  ;;  %14442 = vpow2.f32 %v3649_v50  ;;  %v3690_v51 = vmul.f32 0.6931472, %v14415_v31  ;;  %v3749_v50 = vmul.f32 0.01, %v3688_v25 }
 0x3cf   : > { %v14419_v59 = vpop.eup %14418  ;;  %v3669_v15 = vadd.f32 1.0, %v14417_v6 }
 0x3d0   : > { %v14421_v36 = vpop.eup %14420  ;;  %v3696_v28 = vmul.f32 0.6931472, %v14419_v59  ;;  %v3750_v12 = vmul.f32 0.01, %v3690_v51  ;;  %v3781_v14 = vsel %vm3525_vm8, %v16526_v5, %v3749_v50  ;;  %vm3549_vm8 = vcmp.gt.f32.partialorder %v16668_v8, 20.0 }
 0x3d1   : > { %4792 = vmatpush2.bf16.msra.mxu0 %v13229_v53  ;;  %v14423_v34 = vpop.eup %14422  ;;  %14444 = vlog2.f32 %v3669_v15  ;;  %v3670_v42 = vadd.f32 1.0, %v14421_v36  ;;  %v13270_v8 = vld [vmem:[#allocation7 + $0xbec] ss:$16 sps:$4 sm:$0xff]  }
 0x3d2   : > { %4793 = vmatprep.subr.bf16.mxu0 %v13237_v58  ;;  %v14425_v9 = vpop.eup %14424  ;;  %v3753_v40 = vmul.f32 0.01, %v3696_v28  ;;  %v3673_v7 = vadd.f32 1.0, %v14423_v34  ;;  %v3782_v25 = vsel %vm3526_vm10, %v16544_v1, %v3750_v12 }
 0x3d3   : > { %v14427_v10 = vpop.eup %14426  ;;  %14446 = vlog2.f32 %v3670_v42  ;;  %v3698_v26 = vmul.f32 0.6931472, %v14425_v9  ;;  %v13244_v42 = vld [vmem:[#allocation7 + $0xae8] ss:$16 sps:$4 sm:$0xff]   ;;  %v13249_v9 = vld [vmem:[#allocation7 + $0xacc] ss:$16 sps:$4 sm:$0xff]  }
 0x3d4   : > { %v14429_v6 = vpop.eup %14428  ;;  %14448 = vlog2.f32 %v3673_v7  ;;  %v3674_v31 = vadd.f32 1.0, %v14427_v10  ;;  %v3785_v15 = vsel %vm3529_vm9, %v16553_v23, %v3753_v40 }
 0x3d5   : > { %4794 = vmatpush2.bf16.msra.mxu0 %v13235_v21  ;;  %v14431_v53 = vpop.eup %14430  ;;  %v3754_v58 = vmul.f32 0.01, %v3698_v26  ;;  %v3704_v37 = vmul.f32 0.6931472, %v14429_v6  ;;  %v16700_v23 = vpack.c.bf16 %v3785_v15, %v3781_v14  ;;  %v13247_v26 = vld [vmem:[#allocation7 + $0xac8] ss:$16 sps:$4 sm:$0xff]  }
 0x3d6   : > { %4795 = vmatprep.subr.bf16.mxu0 %v13243_v33  ;;  %v14433_v59 = vpop.eup %14432  ;;  %14450 = vlog2.f32 %v3674_v31  ;;  %v3706_v21 = vmul.f32 0.6931472, %v14431_v53  ;;  %v13250_v15 = vld [vmem:[#allocation7 + $0xaa8] ss:$16 sps:$4 sm:$0xff]  }
 0x3d7   : > { %v14435_v51 = vpop.eup %14434  ;;  %v3677_v36 = vadd.f32 1.0, %v14433_v59  ;;  %v3786_v28 = vsel %vm3530_vm11, %v16563_v35, %v3754_v58  ;;  %v3757_v6 = vmul.f32 0.01, %v3704_v37 }
 0x3d8   : > { %v14437_v45 = vpop.eup %14436  ;;  %v16698_v34 = vpack.c.bf16 %v3786_v28, %v3782_v25  ;;  %v3712_v33 = vmul.f32 0.6931472, %v14435_v51  ;;  %v3758_v35 = vmul.f32 0.01, %v3706_v21 }
 0x3d9   : > { %4796 = vmatpush2.bf16.msra.mxu0 %v13241_v16  ;;  %v3678_v44 = vadd.f32 1.0, %v14437_v45  ;;  %v14439_v40 = vpop.eup %14438  ;;  %14452 = vlog2.f32 %v3677_v36  ;;  %v13252_v16 = vld [vmem:[#allocation7 + $0xaac] ss:$16 sps:$4 sm:$0xff]   ;;  %v3789_v51 = vsel %vm3533_vm15, %v16581_v4, %v3757_v6 }
 0x3da   : > { %4724 = vmatprep.mubr.bf16.mxu1 %v16698_v34  ;;  %v3761_v12 = vmul.f32 0.01, %v3712_v33  ;;  %v14441_v1 = vpop.eup %14440  ;;  %v3714_v5 = vmul.f32 0.6931472, %v14439_v40  ;;  %v13255_v36 = vld [vmem:[#allocation7 + $0xa8c] ss:$16 sps:$4 sm:$0xff]  }
 0x3db   : > { %14454 = vlog2.f32 %v3678_v44  ;;  %4725 = vmatmul.mubr.bf16.vlgmr.msra.gmra.mxu1 %v16700_v23  ;;  %v14443_v7 = vpop.eup %14442  ;;  %v3681_v10 = vadd.f32 1.0, %v14441_v1  ;;  %v13258_v45 = vld [vmem:[#allocation7 + $0xa6c] ss:$16 sps:$4 sm:$0xff]   ;;  %v13256_v40 = vld [vmem:[#allocation7 + $0xa68] ss:$16 sps:$4 sm:$0xff]  }
 0x3dc   : > { %4798 = vmatmul.mubr.bf16.vlgmr.msra.gmra.mxu0 %v16488_v60  ;;  %4839 = vmatpush1.bf16.msra.mxu1 %v13244_v42  ;;  %v3682_v50 = vadd.f32 1.0, %v14443_v7  ;;  %v3762_v31 = vmul.f32 0.01, %v3714_v5  ;;  %v3793_v60 = vsel %vm3537_vm12, %v16600_v0, %v3761_v12 }
 0x3dd   : > { %4807 = vmatprep.mubr.bf16.mxu0 %v16499_v24  ;;  %4840 = vmatprep.subr.bf16.mxu1 %v13249_v9  ;;  %14456 = vlog2.f32 %v3681_v10  ;;  %v3790_v24 = vsel %vm3534_vm13, %v16585_v3, %v3758_v35  ;;  %v16716_v48 = vpack.c.bf16 %v3793_v60, %v3789_v51  ;;  %v13264_v35 = vld [vmem:[#allocation7 + $0xa2c] ss:$16 sps:$4 sm:$0xff]   ;;  %v13292_v60 = vld [vmem:[#allocation7 + $0xce0] ss:$16 sps:$4 sm:$0xff]   ;;  %v13300_v51 = vld [vmem:[#allocation7 + $0xca4] ss:$16 sps:$4 sm:$0xff]  }
 0x3de   : > { %v14445_v53 = vpop.eup %14444  ;;  %14458 = vlog2.f32 %v3682_v50  ;;  %v3794_v58 = vsel %vm3538_vm14, %v16613_v13, %v3762_v31  ;;  %v13253_v13 = vld [vmem:[#allocation7 + $0xa88] ss:$16 sps:$4 sm:$0xff]  }
 0x3df   : > { %v16713_v59 = vpack.c.bf16 %v3794_v58, %v3790_v24  ;;  %v3720_v25 = vmul.f32 0.6931472, %v14445_v53  ;;  %v13262_v31 = vld [vmem:[#allocation7 + $0xa28] ss:$16 sps:$4 sm:$0xff]   ;;  %v13279_v53 = vld [vmem:[#allocation7 + $0xb8c] ss:$16 sps:$4 sm:$0xff]  }
 0x3e0   : > { %v14447_v39 = vpop.eup %14446  ;;  %4841 = vmatpush1.bf16.msra.mxu1 %v13247_v26  ;;  %v13294_v24 = vld [vmem:[#allocation7 + $0xce4] ss:$16 sps:$4 sm:$0xff]   ;;  %v13277_v58 = vld [vmem:[#allocation7 + $0xb88] ss:$16 sps:$4 sm:$0xff]  }
 0x3e1   : > { %v14449_v52 = vpop.eup %14448  ;;  %4842 = vmatprep.subr.bf16.mxu1 %v13252_v16  ;;  %v3722_v0 = vmul.f32 0.6931472, %v14447_v39  ;;  %4734 = vmatprep.mubr.bf16.mxu1 %v16713_v59  ;;  %v3765_v14 = vmul.f32 0.01, %v3720_v25  ;;  %v13282_v39 = vld [vmem:[#allocation7 + $0xb6c] ss:$16 sps:$4 sm:$0xff]  }
 0x3e2   : > { %v3728_v2 = vmul.f32 0.6931472, %v14449_v52  ;;  %6039 = vmatprep.subr.bf16.mxu0 %v13294_v24  ;;  %v13280_v52 = vld [vmem:[#allocation7 + $0xb68] ss:$16 sps:$4 sm:$0xff]   ;;  %v13396_v24 = vld [vmem:[#allocation7 + $0xfc4] ss:$16 sps:$4 sm:$0xff]  }
 0x3e3   : > { %v14451_v3 = vpop.eup %14450  ;;  %4735 = vmatmul.mubr.bf16.gmra.mxu1 %v16716_v48  ;;  %v3766_v28 = vmul.f32 0.01, %v3722_v0  ;;  %v3797_v47 = vsel %vm3541_vm4, %v16624_v38, %v3765_v14  ;;  %6040 = vmatpush1.bf16.msra.mxu0 %v13292_v60  ;;  %v13298_v0 = vld [vmem:[#allocation7 + $0xca0] ss:$16 sps:$4 sm:$0xff]   ;;  %v13283_v25 = vld [vmem:[#allocation7 + $0xb48] ss:$16 sps:$4 sm:$0xff]  }
 0x3e4   : > { %4808 = vmatmul.mubr.bf16.gmra.mxu0 %v16511_v55  ;;  %4843 = vmatpush1.bf16.msra.mxu1 %v13250_v15  ;;  %v3730_v4 = vmul.f32 0.6931472, %v14451_v3  ;;  %v3769_v21 = vmul.f32 0.01, %v3728_v2  ;;  %v13295_v15 = vld [vmem:[#allocation7 + $0xcc0] ss:$16 sps:$4 sm:$0xff]  }
 0x3e5   : > { %4817 = vmatprep.mubr.bf16.mxu0 %v16583_v41  ;;  %4844 = vmatprep.subr.bf16.mxu1 %v13255_v36  ;;  %v3798_v41 = vsel %vm3542_vm1, %v16627_v30, %v3766_v28  ;;  %v13285_v36 = vld [vmem:[#allocation7 + $0xb4c] ss:$16 sps:$4 sm:$0xff]   ;;  %v13286_v3 = vld [vmem:[#allocation7 + $0xb28] ss:$16 sps:$4 sm:$0xff]   ;;  %v13303_v28 = vld [vmem:[#allocation7 + $0xc84] ss:$16 sps:$4 sm:$0xff]  }
 0x3e6   : > { %v3770_v42 = vmul.f32 0.01, %v3730_v4  ;;  %v14453_v37 = vpop.eup %14452  ;;  %v3801_v55 = vsel %vm3545_vm0, %v16638_v61, %v3769_v21  ;;  %v13288_v2 = vld [vmem:[#allocation7 + $0xb2c] ss:$16 sps:$4 sm:$0xff]   ;;  %v13289_v4 = vld [vmem:[#allocation7 + $0xb08] ss:$16 sps:$4 sm:$0xff]  }
 0x3e7   : > { %v16732_v43 = vpack.c.bf16 %v3801_v55, %v3797_v47  ;;  %v3736_v1 = vmul.f32 0.6931472, %v14453_v37  ;;  %v13301_v21 = vld [vmem:[#allocation7 + $0xc80] ss:$16 sps:$4 sm:$0xff]   ;;  %v13315_v37 = vld [vmem:[#allocation7 + $0xc04] ss:$16 sps:$4 sm:$0xff]  }
 0x3e8   : > { %v14455_v33 = vpop.eup %14454  ;;  %4845 = vmatpush1.bf16.msra.mxu1 %v13253_v13  ;;  %v3802_v44 = vsel %vm3546_vm3, %v16656_v62, %v3770_v42  ;;  %v13259_v62 = vld [vmem:[#allocation7 + $0xa48] ss:$16 sps:$4 sm:$0xff]   ;;  %v13291_v13 = vld [vmem:[#allocation7 + $0xb0c] ss:$16 sps:$4 sm:$0xff]   ;;  %v13304_v14 = vld [vmem:[#allocation7 + $0xc60] ss:$16 sps:$4 sm:$0xff]  }
 0x3e9   : > { %v16729_v9 = vpack.c.bf16 %v3802_v44, %v3798_v41  ;;  %4846 = vmatprep.subr.bf16.mxu1 %v13258_v45  ;;  %v3738_v12 = vmul.f32 0.6931472, %v14455_v33  ;;  %v3773_v7 = vmul.f32 0.01, %v3736_v1  ;;  %v13306_v45 = vld [vmem:[#allocation7 + $0xc64] ss:$16 sps:$4 sm:$0xff]  }
 0x3ea   : > { %v14457_v61 = vpop.eup %14456  ;;  %v13309_v42 = vld [vmem:[#allocation7 + $0xc44] ss:$16 sps:$4 sm:$0xff]   ;;  %v13313_v55 = vld [vmem:[#allocation7 + $0xc00] ss:$16 sps:$4 sm:$0xff]  }
 0x3eb   : > { %4744 = vmatprep.mubr.bf16.mxu1 %v16729_v9  ;;  %v14459_v56 = vpop.eup %14458  ;;  %v3744_v30 = vmul.f32 0.6931472, %v14457_v61  ;;  %v3774_v38 = vmul.f32 0.01, %v3738_v12  ;;  %v3805_v19 = vsel %vm3549_vm8, %v16660_v32, %v3773_v7  ;;  %v13271_v32 = vld [vmem:[#allocation7 + $0xbc8] ss:$16 sps:$4 sm:$0xff]  }
 0x3ec   : > { %4818 = vmatmul.mubr.bf16.gmra.mxu0 %v16590_v57  ;;  %4745 = vmatmul.mubr.bf16.gmra.mxu1 %v16732_v43  ;;  %v3746_v5 = vmul.f32 0.6931472, %v14459_v56  ;;  %v13318_v33 = vld [vmem:[#allocation7 + $0xde4] ss:$16 sps:$4 sm:$0xff]   ;;  %v13316_v41 = vld [vmem:[#allocation7 + $0xde0] ss:$16 sps:$4 sm:$0xff]  }
 0x3ed   : > { %4827 = vmatprep.mubr.bf16.mxu0 %v16617_v49  ;;  %4847 = vmatpush1.bf16.msra.mxu1 %v13256_v40  ;;  %v3777_v10 = vmul.f32 0.01, %v3744_v30  ;;  %v3806_v49 = vsel %vm3550_vm6, %v16665_v11, %v3774_v38  ;;  %v13265_v11 = vld [vmem:[#allocation7 + $0xa08] ss:$16 sps:$4 sm:$0xff]   ;;  %v13321_v44 = vld [vmem:[#allocation7 + $0xdc4] ss:$16 sps:$4 sm:$0xff]  }
 0x3ee   : > { %4848 = vmatprep.subr.bf16.mxu1 %v13261_v27  ;;  %v3778_v26 = vmul.f32 0.01, %v3746_v5  ;;  %v13324_v40 = vld [vmem:[#allocation7 + $0xda4] ss:$16 sps:$4 sm:$0xff]   ;;  %v13322_v47 = vld [vmem:[#allocation7 + $0xda0] ss:$16 sps:$4 sm:$0xff]  }
 0x3ef   : > { %v3809_v57 = vsel %vm3553_vm5, %v16678_v63, %v3777_v10  ;;  %v13268_v63 = vld [vmem:[#allocation7 + $0xbe8] ss:$16 sps:$4 sm:$0xff]   ;;  %v13327_v12 = vld [vmem:[#allocation7 + $0xd84] ss:$16 sps:$4 sm:$0xff]   ;;  %v13328_v1 = vld [vmem:[#allocation7 + $0xd60] ss:$16 sps:$4 sm:$0xff]  }
 0x3f0   : > { %v3810_v6 = vsel %vm3554_vm7, %v16680_v46, %v3778_v26  ;;  %v16748_v16 = vpack.c.bf16 %v3809_v57, %v3805_v19  ;;  %v13273_v46 = vld [vmem:[#allocation7 + $0xbcc] ss:$16 sps:$4 sm:$0xff]   ;;  %v13330_v27 = vld [vmem:[#allocation7 + $0xd64] ss:$16 sps:$4 sm:$0xff]   ;;  %v13331_v56 = vld [vmem:[#allocation7 + $0xd40] ss:$16 sps:$4 sm:$0xff]  }
 0x3f1   : > { %4849 = vmatpush1.bf16.msra.mxu1 %v13259_v62  ;;  %v16745_v50 = vpack.c.bf16 %v3810_v6, %v3806_v49  ;;  %v13333_v61 = vld [vmem:[#allocation7 + $0xd44] ss:$16 sps:$4 sm:$0xff]   ;;  %v13334_v62 = vld [vmem:[#allocation7 + $0xd20] ss:$16 sps:$4 sm:$0xff]   ;;  %v13345_v10 = vld [vmem:[#allocation7 + $0xcec] ss:$16 sps:$4 sm:$0xff]  }
 0x3f2   : > { %4850 = vmatprep.subr.bf16.mxu1 %v13264_v35  ;;  %v13336_v30 = vld [vmem:[#allocation7 + $0xd24] ss:$16 sps:$4 sm:$0xff]   ;;  %v13337_v38 = vld [vmem:[#allocation7 + $0xd00] ss:$16 sps:$4 sm:$0xff]  }
 0x3f3   : > { %4754 = vmatprep.mubr.bf16.mxu1 %v16745_v50  ;;  %v13339_v5 = vld [vmem:[#allocation7 + $0xd04] ss:$16 sps:$4 sm:$0xff]   ;;  %v13340_v7 = vld [vmem:[#allocation7 + $0xee0] ss:$16 sps:$4 sm:$0xff]  }
 0x3f4   : > { %4828 = vmatmul.mubr.bf16.gmra.mxu0 %v16646_v20  ;;  %4755 = vmatmul.mubr.bf16.gmra.mxu1 %v16748_v16  ;;  %v13274_v20 = vld [vmem:[#allocation7 + $0xba8] ss:$16 sps:$4 sm:$0xff]   ;;  %v13342_v35 = vld [vmem:[#allocation7 + $0xee4] ss:$16 sps:$4 sm:$0xff]   ;;  %v13346_v57 = vld [vmem:[#allocation7 + $0xec0] ss:$16 sps:$4 sm:$0xff]  }
 0x3f5   : > { %4851 = vmatpush1.bf16.msra.mxu1 %v13262_v31  ;;  %4870 = vmatprep.mubr.bf16.mxu1 %v16698_v34  ;;  %v13297_v34 = vld [vmem:[#allocation7 + $0xcc4] ss:$16 sps:$4 sm:$0xff]   ;;  %v13352_v6 = vld [vmem:[#allocation7 + $0xea0] ss:$16 sps:$4 sm:$0xff]  }
 0x3f6   : > { %4852 = vmatprep.subr.bf16.mxu1 %v13267_v54  ;;  %6041 = vmatprep.subr.bf16.mxu0 %v13297_v34  ;;  %v13348_v26 = vld [vmem:[#allocation7 + $0xec4] ss:$16 sps:$4 sm:$0xff]   ;;  %v13358_v31 = vld [vmem:[#allocation7 + $0xe80] ss:$16 sps:$4 sm:$0xff]  }
 0x3f7   : > { %6042 = vmatpush1.bf16.msra.mxu0 %v13295_v15  ;;  %v13354_v49 = vld [vmem:[#allocation7 + $0xea4] ss:$16 sps:$4 sm:$0xff]   ;;  %v13400_v15 = vld [vmem:[#allocation7 + $0xfa0] ss:$16 sps:$4 sm:$0xff]  }
 0x3f8   : > { %6043 = vmatprep.subr.bf16.mxu0 %v13300_v51  ;;  %v13366_v19 = vld [vmem:[#allocation7 + $0xe64] ss:$16 sps:$4 sm:$0xff]  }
 0x3f9   : > { %4853 = vmatpush1.bf16.msra.mxu1 %v13265_v11  ;;  %v13372_v54 = vld [vmem:[#allocation7 + $0xe44] ss:$16 sps:$4 sm:$0xff]   ;;  %v13370_v11 = vld [vmem:[#allocation7 + $0xe40] ss:$16 sps:$4 sm:$0xff]  }
 0x3fa   : > { %4854 = vmatprep.subr.bf16.mxu1 %v13270_v8  ;;  %v13378_v8 = vld [vmem:[#allocation7 + $0xe24] ss:$16 sps:$4 sm:$0xff]  }
 0x3fb   : > { %6044 = vmatpush1.bf16.msra.mxu0 %v13298_v0 }
 0x3fc   : > { %6045 = vmatprep.subr.bf16.mxu0 %v13303_v28  ;;  %v16761_v28 = vld [vmem:[#allocation8 + $0x8] sm:$0xf] }
 0x3fd   : > { %4855 = vmatpush2.bf16.msra.mxu1 %v13268_v63  ;;  %v13376_v63 = vld [vmem:[#allocation7 + $0xe20] ss:$16 sps:$4 sm:$0xff]  }
 0x3fe   : > { %4856 = vmatprep.subr.bf16.mxu1 %v13273_v46  ;;  %v13384_v46 = vld [vmem:[#allocation7 + $0xe04] ss:$16 sps:$4 sm:$0xff]  }
 0x3ff   : > { %6046 = vmatpush1.bf16.msra.mxu0 %v13301_v21 }
 0x400   : > { %6047 = vmatprep.subr.bf16.mxu0 %v13306_v45  ;;  %v13426_v45 = vld [vmem:[#allocation7 + $0xf24] ss:$16 sps:$4 sm:$0xff]  }
 0x401   : > { %4857 = vmatpush2.bf16.msra.mxu1 %v13271_v32  ;;  %v13382_v32 = vld [vmem:[#allocation7 + $0xe00] ss:$16 sps:$4 sm:$0xff]  }
 0x402   : > { %4858 = vmatprep.subr.bf16.mxu1 %v13276_v18 }
 0x403   : > { %6048 = vmatpush1.bf16.msra.mxu0 %v13304_v14  ;;  %v16765_v14 = vrot.slane %v16761_v28, %v19238_v17 }
 0x404   : > { %6049 = vmatprep.subr.bf16.mxu0 %v13309_v42  ;;  %v13424_v42 = vld [vmem:[#allocation7 + $0xf20] ss:$16 sps:$4 sm:$0xff]  }
 0x405   : > { %4859 = vmatpush2.bf16.msra.mxu1 %v13274_v20  ;;  %v13390_v20 = vld [vmem:[#allocation7 + $0xfe4] ss:$16 sps:$4 sm:$0xff]  }
 0x406   : > { %4860 = vmatprep.subr.bf16.mxu1 %v13279_v53  ;;  %v13388_v53 = vld [vmem:[#allocation7 + $0xfe0] ss:$16 sps:$4 sm:$0xff]  }
 0x409   : > { %4861 = vmatpush2.bf16.msra.mxu1 %v13277_v58  ;;  %v13394_v58 = vld [vmem:[#allocation7 + $0xfc0] ss:$16 sps:$4 sm:$0xff]  }
 0x40a   : > { %4862 = vmatprep.subr.bf16.mxu1 %v13282_v39  ;;  %v13402_v39 = vld [vmem:[#allocation7 + $0xfa4] ss:$16 sps:$4 sm:$0xff]  }
 0x40d   : > { %4863 = vmatpush2.bf16.msra.mxu1 %v13280_v52  ;;  %v13408_v52 = vld [vmem:[#allocation7 + $0xf84] ss:$16 sps:$4 sm:$0xff]  }
 0x40e   : > { %4864 = vmatprep.subr.bf16.mxu1 %v13285_v36  ;;  %v13406_v36 = vld [vmem:[#allocation7 + $0xf80] ss:$16 sps:$4 sm:$0xff]  }
 0x411   : > { %4865 = vmatpush2.bf16.msra.mxu1 %v13283_v25  ;;  %v13414_v25 = vld [vmem:[#allocation7 + $0xf64] ss:$16 sps:$4 sm:$0xff]  }
 0x412   : > { %4866 = vmatprep.subr.bf16.mxu1 %v13288_v2  ;;  %v13412_v2 = vld [vmem:[#allocation7 + $0xf60] ss:$16 sps:$4 sm:$0xff]  }
 0x415   : > { %4867 = vmatpush2.bf16.msra.mxu1 %v13286_v3 }
 0x416   : > { %4868 = vmatprep.subr.bf16.mxu1 %v13291_v13  ;;  %v13420_v13 = vld [vmem:[#allocation7 + $0xf44] ss:$16 sps:$4 sm:$0xff]  }
 0x419   : > { %4869 = vmatpush2.bf16.msra.mxu1 %v13289_v4  ;;  %v13418_v4 = vld [vmem:[#allocation7 + $0xf40] ss:$16 sps:$4 sm:$0xff]  }
 0x41a   : > { %6112 = vmatprep.subr.bf16.mxu1 %v13342_v35 }
 0x41c   : > { %4871 = vmatmul.mubr.bf16.vlgmr.msra.gmra.mxu1 %v16700_v23  ;;  %v13307_v23 = vld [vmem:[#allocation7 + $0xc40] ss:$16 sps:$4 sm:$0xff]  }
 0x41d   : > { %4880 = vmatprep.mubr.bf16.mxu1 %v16713_v59  ;;  %6050 = vmatpush1.bf16.msra.mxu0 %v13307_v23  ;;  %v13312_v59 = vld [vmem:[#allocation7 + $0xc24] ss:$16 sps:$4 sm:$0xff]   ;;  %v16769_v23 = vrot.slane %v16761_v28, %v19239_v29 }
 0x41e   : > { %6051 = vmatprep.subr.bf16.mxu0 %v13312_v59  ;;  %6113 = vmatpush1.bf16.msra.mxu1 %v13340_v7 }
 0x41f   : > { %6114 = vmatprep.subr.bf16.mxu1 %v13348_v26 }
 0x422   : > { %6115 = vmatpush1.bf16.msra.mxu1 %v13346_v57 }
 0x423   : > { %6116 = vmatprep.subr.bf16.mxu1 %v13354_v49 }
 0x424   : > { %4881 = vmatmul.mubr.bf16.gmra.mxu1 %v16716_v48  ;;  %v13310_v48 = vld [vmem:[#allocation7 + $0xc20] ss:$16 sps:$4 sm:$0xff]  }
 0x425   : > { %4890 = vmatprep.mubr.bf16.mxu1 %v16729_v9  ;;  %6052 = vmatpush1.bf16.msra.mxu0 %v13310_v48  ;;  %v13319_v9 = vld [vmem:[#allocation7 + $0xdc0] ss:$16 sps:$4 sm:$0xff]   ;;  %v13432_v48 = vld [vmem:[#allocation7 + $0xf04] ss:$16 sps:$4 sm:$0xff]  }
 0x426   : > { %6053 = vmatprep.subr.bf16.mxu0 %v13315_v37  ;;  %6117 = vmatpush1.bf16.msra.mxu1 %v13352_v6 }
 0x429   : > { %6054 = vmatpush1.bf16.msra.mxu0 %v13313_v55  ;;  %v13430_v55 = vld [vmem:[#allocation7 + $0xf00] ss:$16 sps:$4 sm:$0xff]  }
 0x42a   : > { %6055 = vmatprep.subr.bf16.mxu0 %v13318_v33 }
 0x42c   : > { %4891 = vmatmul.mubr.bf16.gmra.mxu1 %v16732_v43  ;;  %v13325_v43 = vld [vmem:[#allocation7 + $0xd80] ss:$16 sps:$4 sm:$0xff]  }
 0x42d   : > { %4900 = vmatprep.mubr.bf16.mxu1 %v16745_v50  ;;  %6056 = vmatpush2.bf16.msra.mxu0 %v13316_v41  ;;  %v13360_v50 = vld [vmem:[#allocation7 + $0xe84] ss:$16 sps:$4 sm:$0xff]  }
 0x42e   : > { %6057 = vmatprep.subr.bf16.mxu0 %v13321_v44  ;;  %6118 = vmatprep.subr.bf16.mxu1 %v13360_v50 }
 0x42f   : > { %6119 = vmatpush1.bf16.msra.mxu1 %v13358_v31 }
 0x430   : > { %6120 = vmatprep.subr.bf16.mxu1 %v13366_v19 }
 0x431   : > { %6058 = vmatpush2.bf16.msra.mxu0 %v13319_v9 }
 0x432   : > { %6059 = vmatprep.subr.bf16.mxu0 %v13324_v40 }
 0x434   : > { %4901 = vmatmul.mubr.bf16.gmra.mxu1 %v16748_v16  ;;  %v13364_v16 = vld [vmem:[#allocation7 + $0xe60] ss:$16 sps:$4 sm:$0xff]  }
 0x435   : > { %6060 = vmatpush2.bf16.msra.mxu0 %v13322_v47  ;;  %6121 = vmatpush1.bf16.msra.mxu1 %v13364_v16  ;;  %v13438_v47 = vld [vmem:[#allocation7 + $0xeec] ss:$16 sps:$4 sm:$0xff]  }
 0x436   : > { %6061 = vmatprep.subr.bf16.mxu0 %v13327_v12  ;;  %6122 = vmatprep.subr.bf16.mxu1 %v13372_v54 }
 0x439   : > { %6062 = vmatpush2.bf16.msra.mxu0 %v13325_v43  ;;  %6123 = vmatpush1.bf16.msra.mxu1 %v13370_v11 }
 0x43a   : > { %6063 = vmatprep.subr.bf16.mxu0 %v13330_v27  ;;  %6124 = vmatprep.subr.bf16.mxu1 %v13378_v8 }
 0x43d   : > { %6064 = vmatpush2.bf16.msra.mxu0 %v13328_v1  ;;  %6125 = vmatpush1.bf16.msra.mxu1 %v13376_v63 }
 0x43e   : > { %6065 = vmatprep.subr.bf16.mxu0 %v13333_v61  ;;  %6126 = vmatprep.subr.bf16.mxu1 %v13384_v46 }
 0x441   : > { %6066 = vmatpush2.bf16.msra.mxu0 %v13331_v56  ;;  %6127 = vmatpush1.bf16.msra.mxu1 %v13382_v32 }
 0x442   : > { %6067 = vmatprep.subr.bf16.mxu0 %v13336_v30  ;;  %6128 = vmatprep.subr.bf16.mxu1 %v13390_v20 }
 0x445   : > { %6068 = vmatpush2.bf16.msra.mxu0 %v13334_v62  ;;  %6129 = vmatpush2.bf16.msra.mxu1 %v13388_v53 }
 0x446   : > { %6069 = vmatprep.subr.bf16.mxu0 %v13339_v5  ;;  %6130 = vmatprep.subr.bf16.mxu1 %v13396_v24 }
 0x449   : > { %6070 = vmatpush2.bf16.msra.mxu0 %v13337_v38  ;;  %6131 = vmatpush2.bf16.msra.mxu1 %v13394_v58 }
 0x44a   : > { %6185 = vmatprep.subr.bf16.mxu0 %v13345_v10  ;;  %6132 = vmatprep.subr.bf16.mxu1 %v13402_v39 }
 0x44d   : > { %6133 = vmatpush2.bf16.msra.mxu1 %v13400_v15 }
 0x44e   : > { %6134 = vmatprep.subr.bf16.mxu1 %v13408_v52 }
 0x451   : > { %6135 = vmatpush2.bf16.msra.mxu1 %v13406_v36 }
 0x452   : > { %6136 = vmatprep.subr.bf16.mxu1 %v13414_v25 }
 0x455   : > { %6137 = vmatpush2.bf16.msra.mxu1 %v13412_v2 }
 0x456   : > { %6138 = vmatprep.subr.bf16.mxu1 %v13420_v13 }
 0x459   : > { %6139 = vmatpush2.bf16.msra.mxu1 %v13418_v4 }
 0x45a   : > { %6140 = vmatprep.subr.bf16.mxu1 %v13426_v45 }
 0x45c   : > { %v4653_v18 = vpop.f32.mrf.mxu0 }
 0x45d   : > { %6141 = vmatpush2.bf16.msra.mxu1 %v13424_v42  ;;  %v4654_v37 = vadd.f32 %v4653_v18, %v16765_v14 }
 0x45e   : > { %v4655_v60 = vpop.f32.mrf.mxu0  ;;  %6142 = vmatprep.subr.bf16.mxu1 %v13432_v48 }
 0x45f   : > { %v4656_v41 = vadd.f32 %v4655_v60, %v16769_v23 }
 0x460   : > { %v4657_v34 = vpop.f32.mrf.mxu0 }
 0x461   : > { %6143 = vmatpush2.bf16.msra.mxu1 %v13430_v55  ;;  %v4658_v12 = vadd.f32 %v4657_v34, %v16765_v14 }
 0x462   : > { %v4659_v51 = vpop.f32.mrf.mxu0  ;;  %6258 = vmatprep.subr.bf16.mxu1 %v13438_v47 }
 0x463   : > { %v4660_v5 = vadd.f32 %v4659_v51, %v16769_v23 }
 0x464   : > { %v4663_v0 = vpop.f32.mrf.mxu0 }
 0x465   : > { %v4664_v26 = vadd.f32 %v4663_v0, %v16765_v14 }
 0x466   : > { %v4665_v3 = vpop.f32.mrf.mxu0 }
 0x467   : > { %v4666_v6 = vadd.f32 %v4665_v3, %v16769_v23 }
 0x468   : > { %v4667_v21 = vpop.f32.mrf.mxu0 }
 0x469   : > { %v4668_v8 = vadd.f32 %v4667_v21, %v16765_v14 }
 0x46a   : > { %v4669_v59 = vpop.f32.mrf.mxu0 }
 0x46b   : > { %v4670_v53 = vadd.f32 %v4669_v59, %v16769_v23 }
 0x473   : > { %v4673_v44 = vpop.f32.mrf.mxu0 }
 0x474   : > { %v4674_v0 = vadd.f32 %v4673_v44, %v16765_v14 }
 0x475   : > { %v4675_v61 = vpop.f32.mrf.mxu0 }
 0x476   : > { %v4676_v45 = vadd.f32 %v4675_v61, %v16769_v23 }
 0x477   : > { %v4677_v50 = vpop.f32.mrf.mxu0 }
 0x478   : > { %v4678_v55 = vadd.f32 %v4677_v50, %v16765_v14 }
 0x479   : > { %v4679_v60 = vpop.f32.mrf.mxu0 }
 0x47e   : > { %v4683_v2 = vpop.f32.mrf.mxu0 }
 0x47f   : > { %v4684_v50 = vadd.f32 %v4683_v2, %v16765_v14 }
 0x480   : > { %v4685_v44 = vpop.f32.mrf.mxu0 }
 0x49b   : > { %v4726_v33 = vpop.f32.mrf.mxu1 }
 0x49c   : > { %v16773_v9 = vadd.f32 %v4726_v33, %v4654_v37 }
 0x49d   : > { %v4728_v40 = vpop.f32.mrf.mxu1 }
 0x49e   : > { %v16777_v43 = vmul.f32 100.0, %v16773_v9  ;;  %v16779_v27 = vadd.f32 %v4728_v40, %v4656_v41 }
 0x49f   : > { %v4730_v1 = vpop.f32.mrf.mxu1 }
 0x4a0   : > { %v4975_v56 = vmin.f32 %v16777_v43, 20.0  ;;  %v16783_v30 = vmul.f32 100.0, %v16779_v27  ;;  %v16785_v62 = vadd.f32 %v4730_v1, %v4658_v12  ;;  %vm4943_vm9 = vcmp.gt.f32.partialorder %v16777_v43, 20.0 }
 0x4a1   : > { %v4732_v38 = vpop.f32.mrf.mxu1 }
 0x4a2   : > { %v5007_v35 = vmul.f32 1.442695, %v4975_v56  ;;  %v4976_v7 = vmin.f32 %v16783_v30, 20.0  ;;  %v16790_v10 = vmul.f32 100.0, %v16785_v62  ;;  %v16793_v57 = vadd.f32 %v4732_v38, %v4660_v5 }
 0x4a3   : > { %v4736_v49 = vpop.f32.mrf.mxu1  ;;  %v4680_v5 = vadd.f32 %v4679_v60, %v16769_v23  ;;  %vm4944_vm10 = vcmp.gt.f32.partialorder %v16783_v30, 20.0  ;;  %v13343_v30 = vld [vmem:[#allocation7 + $0xce8] ss:$16 sps:$4 sm:$0xff]  }
 0x4a4   : > { %14460 = vpow2.f32 %v5007_v35  ;;  %v5009_v31 = vmul.f32 1.442695, %v4976_v7  ;;  %v4979_v19 = vmin.f32 %v16790_v10, 20.0  ;;  %v16798_v16 = vmul.f32 100.0, %v16793_v57 }
 0x4a5   : > { %v16800_v54 = vadd.f32 %v4736_v49, %v4664_v26  ;;  %v4738_v11 = vpop.f32.mrf.mxu1  ;;  %vm4947_vm11 = vcmp.gt.f32.partialorder %v16790_v10, 20.0 }
 0x4a6   : > { %14462 = vpow2.f32 %v5009_v31  ;;  %v5015_v63 = vmul.f32 1.442695, %v4979_v19  ;;  %v16803_v46 = vadd.f32 %v4738_v11, %v4666_v6  ;;  %v4980_v32 = vmin.f32 %v16798_v16, 20.0  ;;  %v4687_v31 = vpop.f32.mrf.mxu0 }
 0x4a7   : > { %v16807_v18 = vmul.f32 100.0, %v16800_v54  ;;  %v4740_v20 = vpop.f32.mrf.mxu1  ;;  %vm4948_vm12 = vcmp.gt.f32.partialorder %v16798_v16, 20.0 }
 0x4a8   : > { %14464 = vpow2.f32 %v5015_v63  ;;  %v16811_v24 = vmul.f32 100.0, %v16803_v46  ;;  %v16813_v58 = vadd.f32 %v4740_v20, %v4668_v8  ;;  %v5017_v34 = vmul.f32 1.442695, %v4980_v32  ;;  %v4689_v2 = vpop.f32.mrf.mxu0 }
 0x4a9   : > { %v4983_v39 = vmin.f32 %v16807_v18, 20.0  ;;  %v4742_v15 = vpop.f32.mrf.mxu1  ;;  %vm4951_vm0 = vcmp.gt.f32.partialorder %v16807_v18, 20.0  ;;  %v16926_v18 = vrot.slane %v16761_v28, %v19242_v22 }
 0x4aa   : > { %v4984_v51 = vmin.f32 %v16811_v24, 20.0  ;;  %v16818_v52 = vmul.f32 100.0, %v16813_v58  ;;  %v16820_v36 = vadd.f32 %v4742_v15, %v4670_v53  ;;  %14466 = vpow2.f32 %v5017_v34 }
 0x4ab   : > { %v5023_v25 = vmul.f32 1.442695, %v4983_v39  ;;  %v4686_v39 = vadd.f32 %v4685_v44, %v16769_v23  ;;  %vm4952_vm13 = vcmp.gt.f32.partialorder %v16811_v24, 20.0 }
 0x4ac   : > { %v5025_v3 = vmul.f32 1.442695, %v4984_v51  ;;  %v4987_v13 = vmin.f32 %v16818_v52, 20.0  ;;  %v16825_v4 = vmul.f32 100.0, %v16820_v36  ;;  %v4746_v21 = vpop.f32.mrf.mxu1  ;;  %vm4955_vm14 = vcmp.gt.f32.partialorder %v16818_v52, 20.0 }
 0x4ad   : > { %14468 = vpow2.f32 %v5023_v25  ;;  %v16828_v42 = vadd.f32 %v4746_v21, %v4674_v0  ;;  %v4688_v25 = vadd.f32 %v4687_v31, %v16765_v14  ;;  %v4690_v14 = vadd.f32 %v4689_v2, %v16769_v23 }
 0x4ae   : > { %14470 = vpow2.f32 %v5025_v3  ;;  %v5031_v59 = vmul.f32 1.442695, %v4987_v13  ;;  %v4988_v48 = vmin.f32 %v16825_v4, 20.0  ;;  %v4748_v37 = vpop.f32.mrf.mxu1  ;;  %vm4956_vm15 = vcmp.gt.f32.partialorder %v16825_v4, 20.0 }
 0x4af   : > { %v16833_v33 = vmul.f32 100.0, %v16828_v42  ;;  %v16835_v41 = vadd.f32 %v4748_v37, %v4676_v45 }
 0x4b0   : > { %14472 = vpow2.f32 %v5031_v59  ;;  %v5033_v40 = vmul.f32 1.442695, %v4988_v48  ;;  %v4750_v47 = vpop.f32.mrf.mxu1 }
 0x4b1   : > { %v14461_v12 = vpop.eup %14460  ;;  %v4991_v1 = vmin.f32 %v16833_v33, 20.0  ;;  %v16839_v61 = vmul.f32 100.0, %v16835_v41  ;;  %v16841_v56 = vadd.f32 %v4750_v47, %v4678_v55  ;;  %vm4959_vm5 = vcmp.gt.f32.partialorder %v16833_v33, 20.0 }
 0x4b2   : > { %v5071_v38 = vadd.f32 1.0, %v14461_v12  ;;  %14474 = vpow2.f32 %v5033_v40  ;;  %v4752_v35 = vpop.f32.mrf.mxu1 }
 0x4b3   : > { %v14463_v7 = vpop.eup %14462  ;;  %v5039_v26 = vmul.f32 1.442695, %v4991_v1  ;;  %v4992_v49 = vmin.f32 %v16839_v61, 20.0  ;;  %v16846_v6 = vmul.f32 100.0, %v16841_v56  ;;  %v16849_v11 = vadd.f32 %v4752_v35, %v4680_v5 }
 0x4b4   : > { %14476 = vlog2.f32 %v5071_v38  ;;  %v5072_v19 = vadd.f32 1.0, %v14463_v7  ;;  %v4756_v20 = vpop.f32.mrf.mxu1  ;;  %vm4960_vm3 = vcmp.gt.f32.partialorder %v16839_v61, 20.0 }
 0x4b5   : > { %v14465_v8 = vpop.eup %14464  ;;  %14478 = vpow2.f32 %v5039_v26  ;;  %v5041_v63 = vmul.f32 1.442695, %v4992_v49  ;;  %v4995_v32 = vmin.f32 %v16846_v6, 20.0  ;;  %v16853_v60 = vmul.f32 100.0, %v16849_v11  ;;  %v16875_v26 = vpop.f32.mrf.mxu0 }
 0x4b6   : > { %14480 = vlog2.f32 %v5072_v19  ;;  %v5075_v53 = vadd.f32 1.0, %v14465_v8  ;;  %v16855_v34 = vadd.f32 %v4756_v20, %v4684_v50  ;;  %v4758_v51 = vpop.f32.mrf.mxu1  ;;  %vm4963_vm1 = vcmp.gt.f32.partialorder %v16846_v6, 20.0 }
 0x4b7   : > { %14482 = vpow2.f32 %v5041_v63  ;;  %v5047_v15 = vmul.f32 1.442695, %v4995_v32  ;;  %v14467_v0 = vpop.eup %14466  ;;  %v4996_v3 = vmin.f32 %v16853_v60, 20.0  ;;  %v16863_v45 = vadd.f32 %v4758_v51, %v4686_v39  ;;  %v16884_v39 = vpop.f32.mrf.mxu0 }
 0x4b8   : > { %14484 = vlog2.f32 %v5075_v53  ;;  %v16861_v13 = vmul.f32 100.0, %v16855_v34  ;;  %v5076_v21 = vadd.f32 1.0, %v14467_v0  ;;  %v4760_v59 = vpop.f32.mrf.mxu1  ;;  %vm4964_vm4 = vcmp.gt.f32.partialorder %v16853_v60, 20.0 }
 0x4b9   : > { %14486 = vpow2.f32 %v5047_v15  ;;  %v5049_v37 = vmul.f32 1.442695, %v4996_v3  ;;  %v16866_v44 = vadd.f32 %v4760_v59, %v4688_v25  ;;  %v16870_v12 = vmul.f32 100.0, %v16863_v45 }
 0x4ba   : > { %v14469_v48 = vpop.eup %14468  ;;  %v4999_v55 = vmin.f32 %v16861_v13, 20.0  ;;  %14488 = vlog2.f32 %v5076_v21  ;;  %v4762_v1 = vpop.f32.mrf.mxu1  ;;  %vm4967_vm6 = vcmp.gt.f32.partialorder %v16861_v13, 20.0 }
 0x4bb   : > { %v14471_v40 = vpop.eup %14470  ;;  %v5079_v47 = vadd.f32 1.0, %v14469_v48  ;;  %14490 = vpow2.f32 %v5049_v37  ;;  %v16873_v35 = vmul.f32 100.0, %v16866_v44  ;;  %v5000_v49 = vmin.f32 %v16870_v12, 20.0  ;;  %v16887_v48 = vpop.f32.mrf.mxu0 }
 0x4bc   : > { %v5080_v5 = vadd.f32 1.0, %v14471_v40  ;;  %v5055_v38 = vmul.f32 1.442695, %v4999_v55  ;;  %v16878_v50 = vadd.f32 %v4762_v1, %v4690_v14  ;;  %vm4968_vm7 = vcmp.gt.f32.partialorder %v16870_v12, 20.0 }
 0x4bd   : > { %v14473_v7 = vpop.eup %14472  ;;  %14492 = vlog2.f32 %v5079_v47  ;;  %v5003_v31 = vmin.f32 %v16873_v35, 20.0  ;;  %v5057_v8 = vmul.f32 1.442695, %v5000_v49  ;;  %v16889_v49 = vpop.f32.mrf.mxu0  ;;  %vm4971_vm8 = vcmp.gt.f32.partialorder %v16873_v35, 20.0 }
 0x4be   : > { %14494 = vlog2.f32 %v5080_v5  ;;  %v5083_v23 = vadd.f32 1.0, %v14473_v7  ;;  %v16882_v63 = vmul.f32 100.0, %v16878_v50 }
 0x4bf   : > { %v14475_v19 = vpop.eup %14474  ;;  %14496 = vpow2.f32 %v5055_v38  ;;  %v5063_v20 = vmul.f32 1.442695, %v5003_v31 }
 0x4c0   : > { %14498 = vlog2.f32 %v5083_v23  ;;  %v5084_v32 = vadd.f32 1.0, %v14475_v19  ;;  %v5004_v15 = vmin.f32 %v16882_v63, 20.0 }
 0x4c1   : > { %v14477_v53 = vpop.eup %14476  ;;  %14500 = vpow2.f32 %v5057_v8 }
 0x4c2   : > { %v14479_v51 = vpop.eup %14478  ;;  %14502 = vlog2.f32 %v5084_v32  ;;  %v5065_v2 = vmul.f32 1.442695, %v5004_v15  ;;  %v5104_v59 = vmul.f32 0.6931472, %v14477_v53 }
 0x4c3   : > { %v14481_v0 = vpop.eup %14480  ;;  %v5087_v25 = vadd.f32 1.0, %v14479_v51  ;;  %14504 = vpow2.f32 %v5063_v20 }
 0x4c4   : > { %v14483_v3 = vpop.eup %14482  ;;  %v5106_v55 = vmul.f32 0.6931472, %v14481_v0  ;;  %v5167_v7 = vmul.f32 0.01, %v5104_v59 }
 0x4c5   : > { %v14485_v21 = vpop.eup %14484  ;;  %14506 = vlog2.f32 %v5087_v25  ;;  %v5088_v37 = vadd.f32 1.0, %v14483_v3 }
 0x4c6   : > { %v14487_v40 = vpop.eup %14486  ;;  %v5112_v14 = vmul.f32 0.6931472, %v14485_v21  ;;  %14508 = vpow2.f32 %v5065_v2  ;;  %v5168_v31 = vmul.f32 0.01, %v5106_v55  ;;  %v5199_v25 = vsel %vm4943_vm9, %v16773_v9, %v5167_v7  ;;  %v16897_v2 = vpop.f32.mrf.mxu0 }
 0x4c7   : > { %14510 = vlog2.f32 %v5088_v37  ;;  %v5091_v47 = vadd.f32 1.0, %v14487_v40  ;;  %v14489_v1 = vpop.eup %14488  ;;  %vm4972_vm9 = vcmp.gt.f32.partialorder %v16882_v63, 20.0 }
 0x4c8   : > { %v5171_v5 = vmul.f32 0.01, %v5112_v14  ;;  %v14491_v38 = vpop.eup %14490  ;;  %v5114_v23 = vmul.f32 0.6931472, %v14489_v1  ;;  %v5200_v3 = vsel %vm4944_vm10, %v16779_v27, %v5168_v31  ;;  %v13351_v14 = vld [vmem:[#allocation7 + $0xccc] ss:$16 sps:$4 sm:$0xff]  }
 0x4c9   : > { %14512 = vlog2.f32 %v5091_v47  ;;  %v5092_v8 = vadd.f32 1.0, %v14491_v38 }
 0x4ca   : > { %v14493_v19 = vpop.eup %14492  ;;  %v5172_v20 = vmul.f32 0.01, %v5114_v23  ;;  %v5203_v15 = vsel %vm4947_vm11, %v16785_v62, %v5171_v5  ;;  %v16906_v5 = vpop.f32.mrf.mxu0  ;;  %v13349_v23 = vld [vmem:[#allocation7 + $0xcc8] ss:$16 sps:$4 sm:$0xff]  }
 0x4cb   : > { %v14495_v32 = vpop.eup %14494  ;;  %14514 = vlog2.f32 %v5092_v8  ;;  %v5120_v10 = vmul.f32 0.6931472, %v14493_v19  ;;  %v16903_v16 = vpack.c.bf16 %v5203_v15, %v5199_v25  ;;  %v13357_v8 = vld [vmem:[#allocation7 + $0xcac] ss:$16 sps:$4 sm:$0xff]   ;;  %v13355_v25 = vld [vmem:[#allocation7 + $0xca8] ss:$16 sps:$4 sm:$0xff]  }
 0x4cc   : > { %v14497_v53 = vpop.eup %14496  ;;  %v5122_v51 = vmul.f32 0.6931472, %v14495_v32  ;;  %v5204_v43 = vsel %vm4948_vm12, %v16793_v57, %v5172_v20 }
 0x4cd   : > { %v14499_v0 = vpop.eup %14498  ;;  %v5095_v37 = vadd.f32 1.0, %v14497_v53  ;;  %v16901_v55 = vpack.c.bf16 %v5204_v43, %v5200_v3  ;;  %v5175_v7 = vmul.f32 0.01, %v5120_v10 }
 0x4ce   : > { %v14501_v21 = vpop.eup %14500  ;;  %v5128_v59 = vmul.f32 0.6931472, %v14499_v0  ;;  %v5176_v27 = vmul.f32 0.01, %v5122_v51  ;;  %v16916_v0 = vpop.f32.mrf.mxu0 }
 0x4cf   : > { %v14503_v62 = vpop.eup %14502  ;;  %v5096_v40 = vadd.f32 1.0, %v14501_v21  ;;  %6071 = vmatprep.mubr.bf16.mxu0 %v16901_v55  ;;  %v5207_v4 = vsel %vm4951_vm0, %v16800_v54, %v5175_v7  ;;  %v19244_v21 = vld [vmem:[#allocation22_spill] sm:$0xff] }
 0x4d0   : > { %v14505_v47 = vpop.eup %14504  ;;  %v5179_v9 = vmul.f32 0.01, %v5128_v59  ;;  %v5130_v1 = vmul.f32 0.6931472, %v14503_v62  ;;  %6072 = vmatmul.mubr.bf16.vlgmr.msra.gmra.mxu0 %v16903_v16  ;;  %v5208_v15 = vsel %vm4952_vm13, %v16803_v46, %v5176_v27  ;;  %v13363_v46 = vld [vmem:[#allocation7 + $0xc8c] ss:$16 sps:$4 sm:$0xff]   ;;  %v16930_v54 = vrot.slane %v16761_v28, %v19244_v21  ;;  %v4815_v10 = vpop.f32.mrf.mxu0 }
 0x4d1   : > { %14516 = vlog2.f32 %v5096_v40  ;;  %v5099_v57 = vadd.f32 1.0, %v14505_v47  ;;  %6186 = vmatpush1.bf16.msra.mxu0 %v13343_v30  ;;  %v13369_v47 = vld [vmem:[#allocation7 + $0xc6c] ss:$16 sps:$4 sm:$0xff]  }
 0x4d2   : > { %v14507_v38 = vpop.eup %14506  ;;  %14518 = vlog2.f32 %v5095_v37  ;;  %v5180_v31 = vmul.f32 0.01, %v5130_v1  ;;  %6187 = vmatprep.subr.bf16.mxu0 %v13351_v14  ;;  %v5211_v20 = vsel %vm4955_vm14, %v16813_v58, %v5179_v9  ;;  %v13361_v37 = vld [vmem:[#allocation7 + $0xc88] ss:$16 sps:$4 sm:$0xff]   ;;  %v4800_v9 = vadd.f32 %v16875_v26, %v16926_v18  ;;  %v4819_v27 = vpop.f32.mrf.mxu0 }
 0x4d3   : > { %v14509_v19 = vpop.eup %14508  ;;  %14520 = vlog2.f32 %v5099_v57  ;;  %v16921_v43 = vpack.c.bf16 %v5211_v20, %v5207_v4  ;;  %v5136_v58 = vmul.f32 0.6931472, %v14507_v38  ;;  %v4802_v28 = vadd.f32 %v16884_v39, %v16930_v54 }
 0x4d4   : > { %v14511_v32 = vpop.eup %14510  ;;  %v5100_v53 = vadd.f32 1.0, %v14509_v19  ;;  %v5212_v51 = vsel %vm4956_vm15, %v16820_v36, %v5180_v31  ;;  %v4810_v20 = vadd.f32 %v16897_v2, %v16926_v18  ;;  %v4812_v2 = vadd.f32 %v16906_v5, %v16930_v54 }
 0x4d5   : > { %v16918_v24 = vpack.c.bf16 %v5212_v51, %v5208_v15  ;;  %6188 = vmatpush1.bf16.msra.mxu0 %v13349_v23  ;;  %v5138_v3 = vmul.f32 0.6931472, %v14511_v32  ;;  %v5183_v14 = vmul.f32 0.01, %v5136_v58  ;;  %v4816_v58 = vadd.f32 %v4815_v10, %v16930_v54 }
 0x4d6   : > { %v14513_v52 = vpop.eup %14512  ;;  %14522 = vlog2.f32 %v5100_v53  ;;  %6189 = vmatprep.subr.bf16.mxu0 %v13357_v8  ;;  %v4804_v8 = vadd.f32 %v16887_v48, %v16926_v18  ;;  %v16962_v53 = vpop.f32.mrf.mxu0 }
 0x4d7   : > { %v5144_v30 = vmul.f32 0.6931472, %v14513_v52  ;;  %6081 = vmatprep.mubr.bf16.mxu0 %v16918_v24  ;;  %v5184_v40 = vmul.f32 0.01, %v5138_v3  ;;  %v5215_v39 = vsel %vm4959_vm5, %v16828_v42, %v5183_v14  ;;  %v4806_v42 = vadd.f32 %v16889_v49, %v16930_v54 }
 0x4d8   : > { %v14515_v36 = vpop.eup %14514  ;;  %6082 = vmatmul.mubr.bf16.gmra.mxu0 %v16921_v43  ;;  %v4814_v3 = vadd.f32 %v16916_v0, %v16926_v18  ;;  %v16984_v5 = vpop.f32.mrf.mxu0 }
 0x4d9   : > { %v5187_v59 = vmul.f32 0.01, %v5144_v30  ;;  %6190 = vmatpush1.bf16.msra.mxu0 %v13355_v25  ;;  %v5146_v62 = vmul.f32 0.6931472, %v14515_v36  ;;  %v5216_v6 = vsel %vm4960_vm3, %v16835_v41, %v5184_v40  ;;  %v16978_v30 = vadd.f32 %v4819_v27, %v16926_v18  ;;  %v13373_v36 = vld [vmem:[#allocation7 + $0xc48] ss:$16 sps:$4 sm:$0xff]  }
 0x4da   : > { %6191 = vmatprep.subr.bf16.mxu0 %v13363_v46 }
 0x4db   : > { %v5188_v1 = vmul.f32 0.01, %v5146_v62  ;;  %v5219_v57 = vsel %vm4963_vm1, %v16841_v56, %v5187_v59  ;;  %v13367_v56 = vld [vmem:[#allocation7 + $0xc68] ss:$16 sps:$4 sm:$0xff]   ;;  %v13381_v59 = vld [vmem:[#allocation7 + $0xc2c] ss:$16 sps:$4 sm:$0xff]  }
 0x4dc   : > { %v4872_v38 = vpop.f32.mrf.mxu1  ;;  %v16951_v33 = vpack.c.bf16 %v5219_v57, %v5215_v39 }
 0x4dd   : > { %v16942_v23 = vadd.f32 %v4872_v38, %v4800_v9  ;;  %6192 = vmatpush1.bf16.msra.mxu0 %v13361_v37  ;;  %v5220_v26 = vsel %vm4964_vm4, %v16849_v11, %v5188_v1  ;;  %v13375_v11 = vld [vmem:[#allocation7 + $0xc4c] ss:$16 sps:$4 sm:$0xff]  }
 0x4de   : > { %v14517_v7 = vpop.eup %14516  ;;  %v4874_v19 = vpop.f32.mrf.mxu1  ;;  %v16947_v61 = vpack.c.bf16 %v5220_v26, %v5216_v6  ;;  %6193 = vmatprep.subr.bf16.mxu0 %v13369_v47  ;;  %v13379_v26 = vld [vmem:[#allocation7 + $0xc28] ss:$16 sps:$4 sm:$0xff]  }
 0x4df   : > { %v14519_v31 = vpop.eup %14518  ;;  %v16954_v32 = vmul.f32 100.0, %v16942_v23  ;;  %v16956_v41 = vadd.f32 %v4874_v19, %v4802_v28  ;;  %v5154_v48 = vmul.f32 0.6931472, %v14517_v7  ;;  %v13387_v19 = vld [vmem:[#allocation7 + $0xc0c] ss:$16 sps:$4 sm:$0xff]  }
 0x4e0   : > { %v14521_v60 = vpop.eup %14520  ;;  %v4876_v15 = vpop.f32.mrf.mxu1  ;;  %6091 = vmatprep.mubr.bf16.mxu0 %v16947_v61  ;;  %v5152_v37 = vmul.f32 0.6931472, %v14519_v31 }
 0x4e1   : > { %v5160_v51 = vmul.f32 0.6931472, %v14521_v60  ;;  %v4977_v52 = vmin.f32 %v16954_v32, 20.0  ;;  %v16967_v4 = vmul.f32 100.0, %v16956_v41  ;;  %v16969_v25 = vadd.f32 %v4876_v15, %v4804_v8  ;;  %6092 = vmatmul.mubr.bf16.gmra.mxu0 %v16951_v33 }
 0x4e2   : > { %v4878_v46 = vpop.f32.mrf.mxu1  ;;  %6194 = vmatpush1.bf16.msra.mxu0 %v13367_v56  ;;  %v5192_v28 = vmul.f32 0.01, %v5154_v48  ;;  %v5191_v31 = vmul.f32 0.01, %v5152_v37  ;;  %v4825_v56 = vpop.f32.mrf.mxu0  ;;  %vm4945_vm10 = vcmp.gt.f32.partialorder %v16954_v32, 20.0 }
 0x4e3   : > { %v14523_v49 = vpop.eup %14522  ;;  %v5011_v62 = vmul.f32 1.442695, %v4977_v52  ;;  %v4978_v40 = vmin.f32 %v16967_v4, 20.0  ;;  %v16982_v14 = vmul.f32 100.0, %v16969_v25  ;;  %6195 = vmatprep.subr.bf16.mxu0 %v13375_v11  ;;  %v16988_v0 = vadd.f32 %v4878_v46, %v4806_v42  ;;  %v13385_v46 = vld [vmem:[#allocation7 + $0xc08] ss:$16 sps:$4 sm:$0xff]  }
 0x4e4   : > { %v4882_v10 = vpop.f32.mrf.mxu1  ;;  %v5162_v47 = vmul.f32 0.6931472, %v14523_v49  ;;  %v5195_v9 = vmul.f32 0.01, %v5160_v51  ;;  %v5224_v52 = vsel %vm4968_vm7, %v16863_v45, %v5192_v28  ;;  %v13391_v28 = vld [vmem:[#allocation7 + $0xde8] ss:$16 sps:$4 sm:$0xff]  }
 0x4e5   : > { %14524 = vpow2.f32 %v5011_v62  ;;  %v5013_v1 = vmul.f32 1.442695, %v4978_v40  ;;  %v4981_v27 = vmin.f32 %v16982_v14, 20.0  ;;  %v16992_v57 = vmul.f32 100.0, %v16988_v0  ;;  %v13393_v62 = vld [vmem:[#allocation7 + $0xdec] ss:$16 sps:$4 sm:$0xff]  }
 0x4e6   : > { %v16994_v38 = vadd.f32 %v4882_v10, %v4810_v20  ;;  %v4884_v7 = vpop.f32.mrf.mxu1  ;;  %6196 = vmatpush1.bf16.msra.mxu0 %v13373_v36  ;;  %v5196_v6 = vmul.f32 0.01, %v5162_v47  ;;  %v5227_v20 = vsel %vm4971_vm8, %v16866_v44, %v5195_v9  ;;  %v5223_v44 = vsel %vm4967_vm6, %v16855_v34, %v5191_v31  ;;  %v4829_v36 = vpop.f32.mrf.mxu0  ;;  %v13439_v32 = vld [vmem:[#allocation7 + $0xec8] ss:$16 sps:$4 sm:$0xff]  }
 0x4e7   : > { %14526 = vpow2.f32 %v5013_v1  ;;  %v16997_v39 = vadd.f32 %v4884_v7, %v4812_v2  ;;  %6197 = vmatprep.subr.bf16.mxu0 %v13381_v59  ;;  %v5019_v60 = vmul.f32 1.442695, %v4981_v27  ;;  %v4982_v8 = vmin.f32 %v16992_v57, 20.0 }
 0x4e8   : > { %v17002_v11 = vmul.f32 100.0, %v16994_v38  ;;  %v4886_v42 = vpop.f32.mrf.mxu1  ;;  %v5228_v48 = vsel %vm4972_vm9, %v16878_v50, %v5196_v6  ;;  %v17024_v59 = vpack.c.bf16 %v5227_v20, %v5223_v44  ;;  %v4822_v34 = vadd.f32 %v16962_v53, %v16930_v54  ;;  %v4831_v27 = vpop.f32.mrf.mxu0 }
 0x4e9   : > { %v17006_v15 = vmul.f32 100.0, %v16997_v39  ;;  %v17008_v35 = vadd.f32 %v4886_v42, %v4814_v3  ;;  %14528 = vpow2.f32 %v5019_v60  ;;  %v5021_v51 = vmul.f32 1.442695, %v4982_v8 }
 0x4ea   : > { %v4985_v63 = vmin.f32 %v17002_v11, 20.0  ;;  %v4888_v49 = vpop.f32.mrf.mxu1  ;;  %6198 = vmatpush1.bf16.msra.mxu0 %v13379_v26  ;;  %v17022_v50 = vpack.c.bf16 %v5228_v48, %v5224_v52  ;;  %v13399_v26 = vld [vmem:[#allocation7 + $0xdcc] ss:$16 sps:$4 sm:$0xff]   ;;  %v4826_v60 = vadd.f32 %v4825_v56, %v16930_v54  ;;  %v13397_v52 = vld [vmem:[#allocation7 + $0xdc8] ss:$16 sps:$4 sm:$0xff]   ;;  %v4832_v44 = vadd.f32 %v4831_v27, %v16930_v54 }
 0x4eb   : > { %v4986_v2 = vmin.f32 %v17006_v15, 20.0  ;;  %v17020_v3 = vmul.f32 100.0, %v17008_v35  ;;  %6199 = vmatprep.subr.bf16.mxu0 %v13387_v19  ;;  %14530 = vpow2.f32 %v5021_v51  ;;  %v17026_v12 = vadd.f32 %v4888_v49, %v4816_v58  ;;  %v13403_v27 = vld [vmem:[#allocation7 + $0xda8] ss:$16 sps:$4 sm:$0xff]  }
 0x4ec   : > { %v5027_v45 = vmul.f32 1.442695, %v4985_v63  ;;  %v4892_v37 = vpop.f32.mrf.mxu1  ;;  %6101 = vmatprep.mubr.bf16.mxu0 %v17022_v50  ;;  %vm4949_vm11 = vcmp.gt.f32.partialorder %v16982_v14, 20.0  ;;  %vm4946_vm12 = vcmp.gt.f32.partialorder %v16967_v4, 20.0  ;;  %vm4950_vm13 = vcmp.gt.f32.partialorder %v16992_v57, 20.0 }
 0x4ed   : > { %v5029_v13 = vmul.f32 1.442695, %v4986_v2  ;;  %v4989_v40 = vmin.f32 %v17020_v3, 20.0  ;;  %v17033_v10 = vadd.f32 %v4892_v37, %v16978_v30  ;;  %v17036_v47 = vmul.f32 100.0, %v17026_v12  ;;  %6102 = vmatmul.mubr.bf16.gmra.mxu0 %v17024_v59  ;;  %v4833_v2 = vpop.f32.mrf.mxu0  ;;  %v13405_v37 = vld [vmem:[#allocation7 + $0xdac] ss:$16 sps:$4 sm:$0xff]  }
 0x4ee   : > { %14532 = vpow2.f32 %v5027_v45  ;;  %v4894_v58 = vpop.f32.mrf.mxu1  ;;  %6217 = vmatprep.mubr.bf16.mxu0 %v16901_v55  ;;  %6200 = vmatpush1.bf16.msra.mxu0 %v13385_v46  ;;  %v4824_v30 = vadd.f32 %v16984_v5, %v16926_v18  ;;  %v4830_v5 = vadd.f32 %v4829_v36, %v16926_v18  ;;  %vm4957_vm14 = vcmp.gt.f32.partialorder %v17020_v3, 20.0 }
 0x4ef   : > { %14534 = vpow2.f32 %v5029_v13  ;;  %v5035_v9 = vmul.f32 1.442695, %v4989_v40  ;;  %v17041_v53 = vmul.f32 100.0, %v17033_v10  ;;  %v17043_v1 = vadd.f32 %v4894_v58, %v4822_v34  ;;  %6201 = vmatprep.subr.bf16.mxu0 %v13393_v62 }
 0x4f0   : > { %v4990_v7 = vmin.f32 %v17036_v47, 20.0  ;;  %v4896_v6 = vpop.f32.mrf.mxu1  ;;  %vm4954_vm15 = vcmp.gt.f32.partialorder %v17006_v15, 20.0  ;;  %vm4958_vm0 = vcmp.gt.f32.partialorder %v17036_v47, 20.0  ;;  %vm4953_vm1 = vcmp.gt.f32.partialorder %v17002_v11, 20.0 }
 0x4f1   : > { %14536 = vpow2.f32 %v5035_v9  ;;  %v4993_v31 = vmin.f32 %v17041_v53, 20.0  ;;  %v17050_v55 = vmul.f32 100.0, %v17043_v1  ;;  %v17053_v42 = vadd.f32 %v4896_v6, %v4824_v30  ;;  %v4835_v6 = vpop.f32.mrf.mxu0 }
 0x4f2   : > { %v14525_v19 = vpop.eup %14524  ;;  %v5037_v8 = vmul.f32 1.442695, %v4990_v7  ;;  %v4898_v20 = vpop.f32.mrf.mxu1  ;;  %6202 = vmatpush2.bf16.msra.mxu0 %v13391_v28  ;;  %v4834_v7 = vadd.f32 %v4833_v2, %v16926_v18  ;;  %vm4961_vm6 = vcmp.gt.f32.partialorder %v17041_v53, 20.0 }
 0x4f3   : > { %v5073_v48 = vadd.f32 1.0, %v14525_v19  ;;  %v5043_v51 = vmul.f32 1.442695, %v4993_v31  ;;  %v4994_v63 = vmin.f32 %v17050_v55, 20.0  ;;  %v17059_v46 = vmul.f32 100.0, %v17053_v42  ;;  %6203 = vmatprep.subr.bf16.mxu0 %v13399_v26 }
 0x4f4   : > { %v14527_v49 = vpop.eup %14526  ;;  %14538 = vpow2.f32 %v5037_v8  ;;  %v17061_v56 = vadd.f32 %v4898_v20, %v4826_v60  ;;  %v4902_v45 = vpop.f32.mrf.mxu1  ;;  %v13411_v60 = vld [vmem:[#allocation7 + $0xd8c] ss:$16 sps:$4 sm:$0xff]   ;;  %vm4962_vm4 = vcmp.gt.f32.partialorder %v17050_v55, 20.0 }
 0x4f5   : > { %14540 = vlog2.f32 %v5073_v48  ;;  %v5074_v36 = vadd.f32 1.0, %v14527_v49  ;;  %v5045_v62 = vmul.f32 1.442695, %v4994_v63  ;;  %v17063_v34 = vadd.f32 %v4902_v45, %v4830_v5  ;;  %v13409_v45 = vld [vmem:[#allocation7 + $0xd88] ss:$16 sps:$4 sm:$0xff]  }
 0x4f6   : > { %14542 = vpow2.f32 %v5043_v51  ;;  %v4997_v13 = vmin.f32 %v17059_v46, 20.0  ;;  %v17067_v40 = vmul.f32 100.0, %v17061_v56  ;;  %v4904_v58 = vpop.f32.mrf.mxu1  ;;  %v14529_v9 = vpop.eup %14528  ;;  %6204 = vmatpush2.bf16.msra.mxu0 %v13397_v52  ;;  %v4836_v49 = vadd.f32 %v4835_v6, %v16930_v54 }
 0x4f7   : > { %14544 = vlog2.f32 %v5074_v36  ;;  %v17070_v28 = vmul.f32 100.0, %v17063_v34  ;;  %v17072_v30 = vadd.f32 %v4904_v58, %v4832_v44  ;;  %v5077_v26 = vadd.f32 1.0, %v14529_v9  ;;  %6205 = vmatprep.subr.bf16.mxu0 %v13405_v37  ;;  %v13417_v58 = vld [vmem:[#allocation7 + $0xd6c] ss:$16 sps:$4 sm:$0xff]  }
 0x4f8   : > { %14546 = vpow2.f32 %v5045_v62  ;;  %v5051_v31 = vmul.f32 1.442695, %v4997_v13  ;;  %v4906_v19 = vpop.f32.mrf.mxu1  ;;  %v14531_v8 = vpop.eup %14530  ;;  %v4998_v20 = vmin.f32 %v17067_v40, 20.0  ;;  %vm4965_vm3 = vcmp.gt.f32.partialorder %v17059_v46, 20.0 }
 0x4f9   : > { %v5001_v5 = vmin.f32 %v17070_v28, 20.0  ;;  %v17078_v48 = vmul.f32 100.0, %v17072_v30  ;;  %14548 = vlog2.f32 %v5077_v26  ;;  %v5078_v51 = vadd.f32 1.0, %v14531_v8 }
 0x4fa   : > { %v17080_v63 = vadd.f32 %v4906_v19, %v4834_v7  ;;  %v4908_v18 = vpop.f32.mrf.mxu1  ;;  %14550 = vpow2.f32 %v5051_v31  ;;  %v5053_v44 = vmul.f32 1.442695, %v4998_v20  ;;  %6206 = vmatpush2.bf16.msra.mxu0 %v13403_v27  ;;  %v13415_v19 = vld [vmem:[#allocation7 + $0xd68] ss:$16 sps:$4 sm:$0xff]   ;;  %vm4966_vm5 = vcmp.gt.f32.partialorder %v17067_v40, 20.0 }
 0x4fb   : > { %v14533_v52 = vpop.eup %14532  ;;  %v5059_v2 = vmul.f32 1.442695, %v5001_v5  ;;  %14552 = vlog2.f32 %v5078_v51  ;;  %v5002_v62 = vmin.f32 %v17078_v48, 20.0  ;;  %6207 = vmatprep.subr.bf16.mxu0 %v13411_v60  ;;  %v17087_v7 = vadd.f32 %v4908_v18, %v4836_v49  ;;  %v13423_v60 = vld [vmem:[#allocation7 + $0xd4c] ss:$16 sps:$4 sm:$0xff]  }
 0x4fc   : > { %v14535_v37 = vpop.eup %14534  ;;  %v5081_v36 = vadd.f32 1.0, %v14533_v52  ;;  %v17085_v13 = vmul.f32 100.0, %v17080_v63  ;;  %14554 = vpow2.f32 %v5053_v44  ;;  %v13421_v44 = vld [vmem:[#allocation7 + $0xd48] ss:$16 sps:$4 sm:$0xff]   ;;  %vm4970_vm8 = vcmp.gt.f32.partialorder %v17078_v48, 20.0 }
 0x4fd   : > { %v5082_v9 = vadd.f32 1.0, %v14535_v37  ;;  %v5061_v6 = vmul.f32 1.442695, %v5002_v62  ;;  %v17091_v31 = vmul.f32 100.0, %v17087_v7  ;;  %v6339_v62 = vld [vmem:[#allocation10 + $0x40] sm:$0xff] }
 0x4fe   : > { %v14537_v54 = vpop.eup %14536  ;;  %14556 = vlog2.f32 %v5081_v36  ;;  %v5005_v27 = vmin.f32 %v17085_v13, 20.0  ;;  %6208 = vmatpush2.bf16.msra.mxu0 %v13409_v45  ;;  %vm4973_vm7 = vcmp.gt.f32.partialorder %v17085_v13, 20.0  ;;  %v13456_v13 = vld [vmem:[#allocation7 + $0xe28] ss:$16 sps:$4 sm:$0xff]   ;;  %v13464_v48 = vld [vmem:[#allocation7 + $0xe0c] ss:$16 sps:$4 sm:$0xff]  }
 0x4ff   : > { %14558 = vlog2.f32 %v5082_v9  ;;  %v5085_v26 = vadd.f32 1.0, %v14537_v54  ;;  %6209 = vmatprep.subr.bf16.mxu0 %v13417_v58  ;;  %v5006_v5 = vmin.f32 %v17091_v31, 20.0  ;;  %vm4974_vm9 = vcmp.gt.f32.partialorder %v17091_v31, 20.0  ;;  %v19247_v31 = vld [vmem:[#allocation15_spill] sm:$0xff] }
 0x500   : > { %14560 = vpow2.f32 %v5059_v2  ;;  %v5067_v8 = vmul.f32 1.442695, %v5005_v27  ;;  %v13429_v2 = vld [vmem:[#allocation7 + $0xd2c] ss:$16 sps:$4 sm:$0xff]  }
 0x501   : > { %v14539_v20 = vpop.eup %14538  ;;  %14562 = vlog2.f32 %v5085_v26  ;;  %v5069_v49 = vmul.f32 1.442695, %v5006_v5 }
 0x502   : > { %v14541_v51 = vpop.eup %14540  ;;  %v5086_v18 = vadd.f32 1.0, %v14539_v20  ;;  %14564 = vpow2.f32 %v5061_v6  ;;  %6210 = vmatpush2.bf16.msra.mxu0 %v13415_v19  ;;  %v13427_v6 = vld [vmem:[#allocation7 + $0xd28] ss:$16 sps:$4 sm:$0xff]   ;;  %v13435_v19 = vld [vmem:[#allocation7 + $0xd0c] ss:$16 sps:$4 sm:$0xff]   ;;  %v12125_v20 = vcombine.high %v6339_v62, %v6339_v62 }
 0x503   : > { %v14543_v52 = vpop.eup %14542  ;;  %14566 = vpow2.f32 %v5067_v8  ;;  %6211 = vmatprep.subr.bf16.mxu0 %v13423_v60  ;;  %v5108_v27 = vmul.f32 0.6931472, %v14541_v51  ;;  %v13433_v51 = vld [vmem:[#allocation7 + $0xd08] ss:$16 sps:$4 sm:$0xff]  }
 0x504   : > { %v14545_v37 = vpop.eup %14544  ;;  %14568 = vlog2.f32 %v5086_v18  ;;  %v5089_v45 = vadd.f32 1.0, %v14543_v52 }
 0x505   : > { %v14547_v36 = vpop.eup %14546  ;;  %14570 = vpow2.f32 %v5069_v49  ;;  %v5110_v9 = vmul.f32 0.6931472, %v14545_v37 }
 0x506   : > { %v5090_v58 = vadd.f32 1.0, %v14547_v36  ;;  %v14549_v54 = vpop.eup %14548  ;;  %14572 = vlog2.f32 %v5089_v45  ;;  %6212 = vmatpush2.bf16.msra.mxu0 %v13421_v44  ;;  %v5169_v36 = vmul.f32 0.01, %v5108_v27  ;;  %v12124_v44 = vcombine.low %v6339_v62, %v6339_v62 }
 0x507   : > { %v14551_v26 = vpop.eup %14550  ;;  %v5116_v8 = vmul.f32 0.6931472, %v14549_v54  ;;  %6213 = vmatprep.subr.bf16.mxu0 %v13429_v2  ;;  %v5170_v49 = vmul.f32 0.01, %v5110_v9 }
 0x508   : > { %14574 = vlog2.f32 %v5090_v58  ;;  %v14553_v5 = vpop.eup %14552  ;;  %v5093_v18 = vadd.f32 1.0, %v14551_v26  ;;  %v19245_v58 = vld [vmem:[#allocation14_spill] sm:$0xff] }
 0x509   : > { %v14555_v60 = vpop.eup %14554  ;;  %v5173_v52 = vmul.f32 0.01, %v5116_v8  ;;  %v5118_v21 = vmul.f32 0.6931472, %v14553_v5  ;;  %v6395_v54 = vand.u32 %v12125_v20, %v19245_v58  ;;  %v5202_v62 = vsel %vm4946_vm12, %v16956_v41, %v5170_v49  ;;  %v13441_v41 = vld [vmem:[#allocation7 + $0xecc] ss:$16 sps:$4 sm:$0xff]  }
 0x50a   : > { %14576 = vlog2.f32 %v5093_v18  ;;  %v5094_v37 = vadd.f32 1.0, %v14555_v60  ;;  %6214 = vmatpush2.bf16.msra.mxu0 %v13427_v6 }
 0x50b   : > { %v14557_v22 = vpop.eup %14556  ;;  %6215 = vmatprep.subr.bf16.mxu0 %v13435_v19  ;;  %v5174_v2 = vmul.f32 0.01, %v5118_v21  ;;  %v5205_v9 = vsel %vm4949_vm11, %v16969_v25, %v5173_v52  ;;  %v5201_v21 = vsel %vm4945_vm10, %v16942_v23, %v5169_v36  ;;  %v13436_v25 = vld [vmem:[#allocation7 + $0xee8] ss:$16 sps:$4 sm:$0xff]   ;;  %vm4969_vm10 = vcmp.gt.f32.partialorder %v17070_v28, 20.0 }
 0x50c   : > { %v14559_v45 = vpop.eup %14558  ;;  %14578 = vlog2.f32 %v5094_v37  ;;  %v5124_v19 = vmul.f32 0.6931472, %v14557_v22  ;;  %v17107_v18 = vpack.c.bf16 %v5205_v9, %v5201_v21  ;;  %v13461_v22 = vld [vmem:[#allocation10 + $0x24] ss:$16 sps:$4 sm:$0xff]   ;;  %v13459_v9 = vld [vmem:[#allocation10 + $0x20] ss:$16 sps:$4 sm:$0xff]  }
 0x50d   : > { %v14561_v26 = vpop.eup %14560  ;;  %v5206_v8 = vsel %vm4950_vm13, %v16988_v0, %v5174_v2  ;;  %v5126_v5 = vmul.f32 0.6931472, %v14559_v45  ;;  %v6392_v0 = vand.u32 %v12124_v44, %v19245_v58  ;;  %v13444_v44 = vld [vmem:[#allocation7 + $0xeac] ss:$16 sps:$4 sm:$0xff]   ;;  %v19246_v28 = vmov 0  }
 0x50e   : > { %v14563_v27 = vpop.eup %14562  ;;  %v5097_v6 = vadd.f32 1.0, %v14561_v26  ;;  %6216 = vmatpush2.bf16.msra.mxu0 %v13433_v51  ;;  %v17105_v4 = vpack.c.bf16 %v5206_v8, %v5202_v62  ;;  %v5177_v45 = vmul.f32 0.01, %v5124_v19  ;;  %v13447_v21 = vld [vmem:[#allocation7 + $0xe8c] ss:$16 sps:$4 sm:$0xff]  }
 0x50f   : > { %v14565_v14 = vpop.eup %14564  ;;  %v5132_v20 = vmul.f32 0.6931472, %v14563_v27  ;;  %6413 = vmatprep.subr.bf16.mxu0 %v6395_v54  ;;  %v5178_v51 = vmul.f32 0.01, %v5126_v5  ;;  %v13442_v5 = vld [vmem:[#allocation7 + $0xea8] ss:$16 sps:$4 sm:$0xff]  }
 0x510   : > { %v14567_v57 = vpop.eup %14566  ;;  %14580 = vlog2.f32 %v5097_v6  ;;  %v5098_v60 = vadd.f32 1.0, %v14565_v14  ;;  %6144 = vmatprep.mubr.bf16.mxu1 %v17105_v4  ;;  %v13467_v6 = vld [vmem:[#allocation10 + $0x4] ss:$16 sps:$4 sm:$0xff]   ;;  %v5209_v62 = vsel %vm4953_vm1, %v16994_v38, %v5177_v45  ;;  %v13465_v19 = vld [vmem:[#allocation10] ss:$16 sps:$4 sm:$0xff]  }
 0x511   : > { %v14569_v52 = vpop.eup %14568  ;;  %v5181_v49 = vmul.f32 0.01, %v5132_v20  ;;  %v5101_v37 = vadd.f32 1.0, %v14567_v57  ;;  %6145 = vmatmul.mubr.bf16.vlgmr.msra.gmra.mxu1 %v17107_v18  ;;  %6218 = vmatmul.mubr.bf16.vlgmr.msra.gmra.mxu0 %v16903_v16  ;;  %v13445_v38 = vld [vmem:[#allocation7 + $0xe88] ss:$16 sps:$4 sm:$0xff]  }
 0x512   : > { %v14571_v23 = vpop.eup %14570  ;;  %14582 = vlog2.f32 %v5098_v60  ;;  %v5134_v36 = vmul.f32 0.6931472, %v14569_v52  ;;  %6259 = vmatpush1.bf16.msra.mxu1 %v13436_v25  ;;  %6227 = vmatprep.mubr.bf16.mxu0 %v16918_v24  ;;  %v5210_v24 = vsel %vm4954_vm15, %v16997_v39, %v5178_v51  ;;  %v13450_v60 = vld [vmem:[#allocation7 + $0xe6c] ss:$16 sps:$4 sm:$0xff]   ;;  %v13451_v45 = vld [vmem:[#allocation7 + $0xe48] ss:$16 sps:$4 sm:$0xff]  }
 0x513   : > { %14584 = vlog2.f32 %v5101_v37  ;;  %v5102_v2 = vadd.f32 1.0, %v14571_v23  ;;  %v14573_v54 = vpop.eup %14572  ;;  %6260 = vmatprep.subr.bf16.mxu1 %v13441_v41  ;;  %6414 = vmatpush1.bf16.msra.mxu0 %v6392_v0  ;;  %v5213_v16 = vsel %vm4957_vm14, %v17008_v35, %v5181_v49 }
 0x514   : > { %v5182_v26 = vmul.f32 0.01, %v5134_v36  ;;  %6415 = vmatprep.subr.bf16.mxu0 %v13461_v22  ;;  %v17124_v35 = vpack.c.bf16 %v5213_v16, %v5209_v62  ;;  %v5140_v47 = vmul.f32 0.6931472, %v14573_v54  ;;  %v13453_v36 = vld [vmem:[#allocation7 + $0xe4c] ss:$16 sps:$4 sm:$0xff]  }
 0x515   : > { %v14575_v27 = vpop.eup %14574  ;;  %14586 = vlog2.f32 %v5102_v2  ;;  %v13476_v16 = vld [vmem:[#allocation7 + $0xfac] ss:$16 sps:$4 sm:$0xff]  }
 0x516   : > { %v5214_v3 = vsel %vm4958_vm0, %v17026_v12, %v5182_v26  ;;  %6261 = vmatpush1.bf16.msra.mxu1 %v13439_v32  ;;  %v5142_v15 = vmul.f32 0.6931472, %v14575_v27  ;;  %v5185_v57 = vmul.f32 0.01, %v5140_v47  ;;  %v13448_v32 = vld [vmem:[#allocation7 + $0xe68] ss:$16 sps:$4 sm:$0xff]  }
 0x517   : > { %v17122_v8 = vpack.c.bf16 %v5214_v3, %v5210_v24  ;;  %v14577_v14 = vpop.eup %14576  ;;  %6262 = vmatprep.subr.bf16.mxu1 %v13444_v44  ;;  %6416 = vmatpush1.bf16.msra.mxu0 %v13459_v9  ;;  %v13458_v44 = vld [vmem:[#allocation7 + $0xe2c] ss:$16 sps:$4 sm:$0xff]   ;;  %v13477_v3 = vld [vmem:[#allocation7 + $0xf88] ss:$16 sps:$4 sm:$0xff]  }
 0x518   : > { %v5148_v11 = vmul.f32 0.6931472, %v14577_v14  ;;  %6417 = vmatprep.subr.bf16.mxu0 %v13467_v6  ;;  %v5186_v25 = vmul.f32 0.01, %v5142_v15  ;;  %v5217_v22 = vsel %vm4961_vm6, %v17033_v10, %v5185_v57  ;;  %v13474_v6 = vld [vmem:[#allocation7 + $0xfa8] ss:$16 sps:$4 sm:$0xff]  }
 0x519   : > { %6154 = vmatprep.mubr.bf16.mxu1 %v17122_v8  ;;  %v14579_v39 = vpop.eup %14578  ;;  %6228 = vmatmul.mubr.bf16.gmra.mxu0 %v16921_v43  ;;  %v19248_v24 = vld [vmem:[#allocation16_spill] sm:$0xff]  ;;  %v19249_v14 = vld [vmem:[#allocation17_spill] sm:$0xff] }
 0x51a   : > { %6155 = vmatmul.mubr.bf16.gmra.mxu1 %v17124_v35  ;;  %v5189_v12 = vmul.f32 0.01, %v5148_v11  ;;  %6237 = vmatprep.mubr.bf16.mxu0 %v16947_v61  ;;  %v5150_v20 = vmul.f32 0.6931472, %v14579_v39  ;;  %v5218_v61 = vsel %vm4962_vm4, %v17043_v1, %v5186_v25  ;;  %v13482_v62 = vld [vmem:[#allocation7 + $0xf6c] ss:$16 sps:$4 sm:$0xff]  }
 0x51b   : > { %6263 = vmatpush1.bf16.msra.mxu1 %v13442_v5  ;;  %6418 = vmatpush1.bf16.msra.mxu0 %v13465_v19  ;;  %v13480_v5 = vld [vmem:[#allocation7 + $0xf68] ss:$16 sps:$4 sm:$0xff]   ;;  %v13485_v15 = vld [vmem:[#allocation7 + $0xf4c] ss:$16 sps:$4 sm:$0xff]  }
 0x51c   : > { %6264 = vmatprep.subr.bf16.mxu1 %v13447_v21  ;;  %v5190_v0 = vmul.f32 0.01, %v5150_v20  ;;  %v5221_v52 = vsel %vm4965_vm3, %v17053_v42, %v5189_v12  ;;  %v13483_v47 = vld [vmem:[#allocation7 + $0xf48] ss:$16 sps:$4 sm:$0xff]   ;;  %v13488_v21 = vld [vmem:[#allocation7 + $0xf2c] ss:$16 sps:$4 sm:$0xff]  }
 0x51d   : > { %v14581_v41 = vpop.eup %14580  ;;  %v17140_v42 = vpack.c.bf16 %v5221_v52, %v5217_v22  ;;  %v6340_v19 = vld [vmem:[#allocation10 + $0x48] sm:$0xff]  ;;  %v13491_v39 = vld [vmem:[#allocation7 + $0xf0c] ss:$16 sps:$4 sm:$0xff]   ;;  %v13509_v22 = vld [vmem:[#allocation7 + $0x1080] ss:$16 sps:$4 sm:$0xff]  }
 0x51e   : > { %v5222_v49 = vsel %vm4966_vm5, %v17061_v56, %v5190_v0  ;;  %v5156_v23 = vmul.f32 0.6931472, %v14581_v41  ;;  %v13486_v11 = vld [vmem:[#allocation7 + $0xf28] ss:$16 sps:$4 sm:$0xff]   ;;  %v19250_v12 = vld [vmem:[#allocation18_spill] sm:$0xff]  ;;  %v12126_v25 = vcombine.low %v6340_v19, %v6340_v19 }
 0x51f   : > { %v14583_v43 = vpop.eup %14582  ;;  %6265 = vmatpush1.bf16.msra.mxu1 %v13445_v38  ;;  %v17138_v46 = vpack.c.bf16 %v5222_v49, %v5218_v61  ;;  %v12127_v38 = vcombine.high %v6340_v19, %v6340_v19  ;;  %v13489_v20 = vld [vmem:[#allocation7 + $0xf08] ss:$16 sps:$4 sm:$0xff]   ;;  %v13494_v0 = vld [vmem:[#allocation10 + $0x28] ss:$16 sps:$4 sm:$0xff]  }
 0x520   : > { %v14585_v37 = vpop.eup %14584  ;;  %6266 = vmatprep.subr.bf16.mxu1 %v13450_v60  ;;  %v5158_v55 = vmul.f32 0.6931472, %v14583_v43  ;;  %v5193_v56 = vmul.f32 0.01, %v5156_v23  ;;  %v6398_v60 = vand.u32 %v12126_v25, %v19245_v58  ;;  %v13496_v41 = vld [vmem:[#allocation10 + $0x2c] ss:$16 sps:$4 sm:$0xff]  }
 0x521   : > { %v5164_v40 = vmul.f32 0.6931472, %v14585_v37  ;;  %6164 = vmatprep.mubr.bf16.mxu1 %v17138_v46  ;;  %6238 = vmatmul.mubr.bf16.gmra.mxu0 %v16951_v33  ;;  %v6401_v57 = vand.u32 %v12127_v38, %v19245_v58  ;;  %v13499_v52 = vld [vmem:[#allocation10 + $0xc] ss:$16 sps:$4 sm:$0xff]   ;;  %v13497_v43 = vld [vmem:[#allocation10 + $0x8] ss:$16 sps:$4 sm:$0xff]  }
 0x522   : > { %v14587_v51 = vpop.eup %14586  ;;  %6165 = vmatmul.mubr.bf16.gmra.mxu1 %v17140_v42  ;;  %6247 = vmatprep.mubr.bf16.mxu0 %v17022_v50  ;;  %v5194_v1 = vmul.f32 0.01, %v5158_v55  ;;  %v5225_v26 = vsel %vm4969_vm10, %v17063_v34, %v5193_v56  ;;  %v13462_v34 = vld [vmem:[#allocation7 + $0xe08] ss:$16 sps:$4 sm:$0xff]   ;;  %v13500_v58 = vld [vmem:[#allocation7 + $0x10e0] ss:$16 sps:$4 sm:$0xff]  }
 0x523   : > { %v5197_v53 = vmul.f32 0.01, %v5164_v40  ;;  %v5166_v10 = vmul.f32 0.6931472, %v14587_v51  ;;  %6267 = vmatpush1.bf16.msra.mxu1 %v13448_v32  ;;  %v13505_v61 = vld [vmem:[#allocation7 + $0x10c4] ss:$16 sps:$4 sm:$0xff]  }
 0x524   : > { %6268 = vmatprep.subr.bf16.mxu1 %v13453_v36  ;;  %v5226_v33 = vsel %vm4970_vm8, %v17072_v30, %v5194_v1  ;;  %v13470_v30 = vld [vmem:[#allocation7 + $0xfec] ss:$16 sps:$4 sm:$0xff]   ;;  %v13508_v49 = vld [vmem:[#allocation7 + $0x10a4] ss:$16 sps:$4 sm:$0xff]   ;;  %v13515_v55 = vld [vmem:[#allocation7 + $0x1040] ss:$16 sps:$4 sm:$0xff]  }
 0x525   : > { %v5198_v2 = vmul.f32 0.01, %v5166_v10  ;;  %v5229_v54 = vsel %vm4973_vm7, %v17080_v63, %v5197_v53  ;;  %v13468_v63 = vld [vmem:[#allocation7 + $0xfe8] ss:$16 sps:$4 sm:$0xff]   ;;  %v13511_v37 = vld [vmem:[#allocation7 + $0x1084] ss:$16 sps:$4 sm:$0xff]  }
 0x526   : > { %v17156_v27 = vpack.c.bf16 %v5229_v54, %v5225_v26  ;;  %v13514_v23 = vld [vmem:[#allocation7 + $0x1064] ss:$16 sps:$4 sm:$0xff]   ;;  %v13518_v40 = vld [vmem:[#allocation7 + $0x1020] ss:$16 sps:$4 sm:$0xff]  }
 0x527   : > { %v5230_v50 = vsel %vm4974_vm9, %v17087_v7, %v5198_v2  ;;  %6269 = vmatpush1.bf16.msra.mxu1 %v13451_v45  ;;  %v13473_v7 = vld [vmem:[#allocation7 + $0xfcc] ss:$16 sps:$4 sm:$0xff]   ;;  %v13517_v32 = vld [vmem:[#allocation7 + $0x1044] ss:$16 sps:$4 sm:$0xff]   ;;  %v13521_v51 = vld [vmem:[#allocation7 + $0x1000] ss:$16 sps:$4 sm:$0xff]  }
 0x528   : > { %v17154_v9 = vpack.c.bf16 %v5230_v50, %v5226_v33  ;;  %6270 = vmatprep.subr.bf16.mxu1 %v13458_v44  ;;  %v13523_v36 = vld [vmem:[#allocation7 + $0x1004] ss:$16 sps:$4 sm:$0xff]   ;;  %v13524_v10 = vld [vmem:[#allocation7 + $0x11e0] ss:$16 sps:$4 sm:$0xff]  }
 0x529   : > { %6248 = vmatmul.mubr.bf16.gmra.mxu0 %v17024_v59  ;;  %v13471_v59 = vld [vmem:[#allocation7 + $0xfc8] ss:$16 sps:$4 sm:$0xff]   ;;  %v13526_v53 = vld [vmem:[#allocation7 + $0x11e4] ss:$16 sps:$4 sm:$0xff]   ;;  %v13527_v45 = vld [vmem:[#allocation7 + $0x11c0] ss:$16 sps:$4 sm:$0xff]  }
 0x52a   : > { %6174 = vmatprep.mubr.bf16.mxu1 %v17154_v9  ;;  %6435 = vmatprep.mubr.bf16.mxu0 %v19246_v28  ;;  %v13529_v56 = vld [vmem:[#allocation7 + $0x11c4] ss:$16 sps:$4 sm:$0xff]   ;;  %v13530_v54 = vld [vmem:[#allocation7 + $0x11a0] ss:$16 sps:$4 sm:$0xff]  }
 0x52b   : > { %6175 = vmatmul.mubr.bf16.gmra.mxu1 %v17156_v27  ;;  %v13532_v44 = vld [vmem:[#allocation7 + $0x11a4] ss:$16 sps:$4 sm:$0xff]   ;;  %v13533_v26 = vld [vmem:[#allocation7 + $0x1180] ss:$16 sps:$4 sm:$0xff]  }
 0x52c   : > { %6271 = vmatpush1.bf16.msra.mxu1 %v13456_v13  ;;  %6290 = vmatprep.mubr.bf16.mxu1 %v17105_v4  ;;  %v13479_v4 = vld [vmem:[#allocation7 + $0xf8c] ss:$16 sps:$4 sm:$0xff]   ;;  %v13535_v50 = vld [vmem:[#allocation7 + $0x1184] ss:$16 sps:$4 sm:$0xff]  }
 0x52d   : > { %6272 = vmatprep.subr.bf16.mxu1 %v13464_v48  ;;  %v13538_v13 = vld [vmem:[#allocation7 + $0x1164] ss:$16 sps:$4 sm:$0xff]  }
 0x530   : > { %6273 = vmatpush1.bf16.msra.mxu1 %v13462_v34  ;;  %v13539_v34 = vld [vmem:[#allocation7 + $0x1140] ss:$16 sps:$4 sm:$0xff]  }
 0x531   : > { %6274 = vmatprep.subr.bf16.mxu1 %v13470_v30  ;;  %12128 = vmatmul.mubr.msk.bf16.vlgmr.msra.gmra.mxu0 %vm477_vm2, %v19247_v31 }
 0x532   : > { %6445 = vmatprep.mubr.bf16.mxu0 %v19246_v28 }
 0x534   : > { %6275 = vmatpush2.bf16.msra.mxu1 %v13468_v63  ;;  %v13544_v63 = vld [vmem:[#allocation7 + $0x1124] ss:$16 sps:$4 sm:$0xff]  }
 0x535   : > { %6276 = vmatprep.subr.bf16.mxu1 %v13473_v7  ;;  %v13542_v7 = vld [vmem:[#allocation7 + $0x1120] ss:$16 sps:$4 sm:$0xff]  }
 0x538   : > { %6277 = vmatpush2.bf16.msra.mxu1 %v13471_v59  ;;  %v13547_v59 = vld [vmem:[#allocation7 + $0x1104] ss:$16 sps:$4 sm:$0xff]  }
 0x539   : > { %6278 = vmatprep.subr.bf16.mxu1 %v13476_v16  ;;  %12129 = vmatmul.mubr.msk.bf16.gmra.mxu0 %vm477_vm2, %v19248_v24  ;;  %v13545_v16 = vld [vmem:[#allocation7 + $0x1100] ss:$16 sps:$4 sm:$0xff]  }
 0x53a   : > { %6455 = vmatprep.mubr.bf16.mxu0 %v19246_v28 }
 0x53c   : > { %6279 = vmatpush2.bf16.msra.mxu1 %v13474_v6 }
 0x53d   : > { %6280 = vmatprep.subr.bf16.mxu1 %v13479_v4  ;;  %v13550_v4 = vld [vmem:[#allocation7 + $0x12e4] ss:$16 sps:$4 sm:$0xff]  }
 0x540   : > { %6281 = vmatpush2.bf16.msra.mxu1 %v13477_v3  ;;  %v13553_v3 = vld [vmem:[#allocation7 + $0x10ec] ss:$16 sps:$4 sm:$0xff]  }
 0x541   : > { %6282 = vmatprep.subr.bf16.mxu1 %v13482_v62  ;;  %12130 = vmatmul.mubr.msk.bf16.gmra.mxu0 %vm477_vm2, %v19249_v14 }
 0x542   : > { %6465 = vmatprep.mubr.bf16.mxu0 %v19246_v28 }
 0x544   : > { %6283 = vmatpush2.bf16.msra.mxu1 %v13480_v5  ;;  %v13556_v5 = vld [vmem:[#allocation7 + $0x12c4] ss:$16 sps:$4 sm:$0xff]  }
 0x545   : > { %6284 = vmatprep.subr.bf16.mxu1 %v13485_v15  ;;  %v13554_v15 = vld [vmem:[#allocation7 + $0x12c0] ss:$16 sps:$4 sm:$0xff]  }
 0x548   : > { %6285 = vmatpush2.bf16.msra.mxu1 %v13483_v47  ;;  %v13562_v47 = vld [vmem:[#allocation7 + $0x12a4] ss:$16 sps:$4 sm:$0xff]  }
 0x549   : > { %6286 = vmatprep.subr.bf16.mxu1 %v13488_v21  ;;  %12131 = vmatmul.mubr.msk.bf16.gmra.mxu0 %vm477_vm2, %v19250_v12  ;;  %v13560_v21 = vld [vmem:[#allocation7 + $0x12a0] ss:$16 sps:$4 sm:$0xff]  }
 0x54c   : > { %6287 = vmatpush2.bf16.msra.mxu1 %v13486_v11  ;;  %v13568_v11 = vld [vmem:[#allocation7 + $0x1284] ss:$16 sps:$4 sm:$0xff]  }
 0x54d   : > { %6288 = vmatprep.subr.bf16.mxu1 %v13491_v39  ;;  %v13566_v39 = vld [vmem:[#allocation7 + $0x1280] ss:$16 sps:$4 sm:$0xff]  }
 0x550   : > { %6289 = vmatpush2.bf16.msra.mxu1 %v13489_v20  ;;  %v13572_v20 = vld [vmem:[#allocation7 + $0x1260] ss:$16 sps:$4 sm:$0xff]  }
 0x551   : > { %6486 = vmatprep.subr.bf16.mxu1 %v6401_v57  ;;  %v13580_v57 = vld [vmem:[#allocation7 + $0x1244] ss:$16 sps:$4 sm:$0xff]  }
 0x553   : > { %6291 = vmatmul.mubr.bf16.vlgmr.msra.gmra.mxu1 %v17107_v18  ;;  %v13502_v18 = vld [vmem:[#allocation7 + $0x10e4] ss:$16 sps:$4 sm:$0xff]  }
 0x554   : > { %6300 = vmatprep.mubr.bf16.mxu1 %v17122_v8  ;;  %6487 = vmatpush1.bf16.msra.mxu1 %v6398_v60  ;;  %v13503_v8 = vld [vmem:[#allocation7 + $0x10c0] ss:$16 sps:$4 sm:$0xff]  }
 0x555   : > { %6488 = vmatprep.subr.bf16.mxu1 %v13496_v41  ;;  %7709 = vmatprep.subr.bf16.mxu0 %v13502_v18  ;;  %v13578_v60 = vld [vmem:[#allocation7 + $0x1240] ss:$16 sps:$4 sm:$0xff]  }
 0x556   : > { %7710 = vmatpush1.bf16.msra.mxu0 %v13500_v58  ;;  %v13592_v58 = vld [vmem:[#allocation7 + $0x1204] ss:$16 sps:$4 sm:$0xff]   ;;  %v13590_v18 = vld [vmem:[#allocation7 + $0x1200] ss:$16 sps:$4 sm:$0xff]  }
 0x557   : > { %7711 = vmatprep.subr.bf16.mxu0 %v13505_v61  ;;  %v13598_v61 = vld [vmem:[#allocation7 + $0x13e4] ss:$16 sps:$4 sm:$0xff]  }
 0x558   : > { %6489 = vmatpush1.bf16.msra.mxu1 %v13494_v0  ;;  %v13586_v0 = vld [vmem:[#allocation7 + $0x1224] ss:$16 sps:$4 sm:$0xff]  }
 0x559   : > { %6490 = vmatprep.subr.bf16.mxu1 %v13499_v52  ;;  %v13584_v52 = vld [vmem:[#allocation7 + $0x1220] ss:$16 sps:$4 sm:$0xff]  }
 0x55a   : > { %7712 = vmatpush1.bf16.msra.mxu0 %v13503_v8 }
 0x55b   : > { %6301 = vmatmul.mubr.bf16.gmra.mxu1 %v17124_v35  ;;  %v13506_v35 = vld [vmem:[#allocation7 + $0x10a0] ss:$16 sps:$4 sm:$0xff]   ;;  %7713 = vmatprep.subr.bf16.mxu0 %v13508_v49 }
 0x55c   : > { %6310 = vmatprep.mubr.bf16.mxu1 %v17138_v46  ;;  %6491 = vmatpush1.bf16.msra.mxu1 %v13497_v43  ;;  %v13512_v46 = vld [vmem:[#allocation7 + $0x1060] ss:$16 sps:$4 sm:$0xff]  }
 0x55d   : > { %7782 = vmatprep.subr.bf16.mxu1 %v13550_v4  ;;  %v17249_v4 = vld [vmem:[#allocation8 + $0xc] sm:$0xf] }
 0x55e   : > { %7714 = vmatpush1.bf16.msra.mxu0 %v13506_v35  ;;  %v13596_v35 = vld [vmem:[#allocation7 + $0x13e0] ss:$16 sps:$4 sm:$0xff]  }
 0x55f   : > { %7715 = vmatprep.subr.bf16.mxu0 %v13511_v37 }
 0x562   : > { %7716 = vmatpush1.bf16.msra.mxu0 %v13509_v22 }
 0x563   : > { %6311 = vmatmul.mubr.bf16.gmra.mxu1 %v17140_v42  ;;  %7717 = vmatprep.subr.bf16.mxu0 %v13514_v23  ;;  %v13520_v42 = vld [vmem:[#allocation7 + $0x1024] ss:$16 sps:$4 sm:$0xff]  }
 0x564   : > { %6320 = vmatprep.mubr.bf16.mxu1 %v17154_v9 }
 0x566   : > { %7718 = vmatpush1.bf16.msra.mxu0 %v13512_v46  ;;  %v13604_v46 = vld [vmem:[#allocation7 + $0x13c4] ss:$16 sps:$4 sm:$0xff]  }
 0x567   : > { %7719 = vmatprep.subr.bf16.mxu0 %v13517_v32  ;;  %v13602_v32 = vld [vmem:[#allocation7 + $0x13c0] ss:$16 sps:$4 sm:$0xff]  }
 0x56a   : > { %7720 = vmatpush1.bf16.msra.mxu0 %v13515_v55 }
 0x56b   : > { %6321 = vmatmul.mubr.bf16.gmra.mxu1 %v17156_v27  ;;  %7721 = vmatprep.subr.bf16.mxu0 %v13520_v42  ;;  %v13536_v27 = vld [vmem:[#allocation7 + $0x1160] ss:$16 sps:$4 sm:$0xff]  }
 0x56c   : > { %6508 = vmatprep.mubr.bf16.mxu1 %v19246_v28 }
 0x56e   : > { %7722 = vmatpush1.bf16.msra.mxu0 %v13518_v40 }
 0x56f   : > { %7723 = vmatprep.subr.bf16.mxu0 %v13523_v36  ;;  %v13610_v36 = vld [vmem:[#allocation7 + $0x13a4] ss:$16 sps:$4 sm:$0xff]  }
 0x572   : > { %7724 = vmatpush1.bf16.msra.mxu0 %v13521_v51  ;;  %v13608_v51 = vld [vmem:[#allocation7 + $0x13a0] ss:$16 sps:$4 sm:$0xff]  }
 0x573   : > { %12132 = vmatmul.mubr.msk.bf16.vlgmr.msra.gmra.mxu1 %vm477_vm2, %v19247_v31  ;;  %7725 = vmatprep.subr.bf16.mxu0 %v13526_v53 }
 0x574   : > { %6518 = vmatprep.mubr.bf16.mxu1 %v19246_v28 }
 0x576   : > { %7726 = vmatpush2.bf16.msra.mxu0 %v13524_v10 }
 0x577   : > { %7727 = vmatprep.subr.bf16.mxu0 %v13529_v56 }
 0x57a   : > { %7728 = vmatpush2.bf16.msra.mxu0 %v13527_v45  ;;  %v13616_v45 = vld [vmem:[#allocation7 + $0x1384] ss:$16 sps:$4 sm:$0xff]  }
 0x57b   : > { %12133 = vmatmul.mubr.msk.bf16.gmra.mxu1 %vm477_vm2, %v19248_v24  ;;  %7729 = vmatprep.subr.bf16.mxu0 %v13532_v44  ;;  %v13548_v24 = vld [vmem:[#allocation7 + $0x12e0] ss:$16 sps:$4 sm:$0xff]  }
 0x57c   : > { %6528 = vmatprep.mubr.bf16.mxu1 %v19246_v28  ;;  %7783 = vmatpush1.bf16.msra.mxu1 %v13548_v24  ;;  %v13614_v44 = vld [vmem:[#allocation7 + $0x1380] ss:$16 sps:$4 sm:$0xff]  }
 0x57d   : > { %7784 = vmatprep.subr.bf16.mxu1 %v13556_v5  ;;  %v13634_v5 = vld [vmem:[#allocation7 + $0x1324] ss:$16 sps:$4 sm:$0xff]  }
 0x57e   : > { %7730 = vmatpush2.bf16.msra.mxu0 %v13530_v54 }
 0x57f   : > { %7731 = vmatprep.subr.bf16.mxu0 %v13535_v50 }
 0x580   : > { %7785 = vmatpush1.bf16.msra.mxu1 %v13554_v15  ;;  %v13632_v15 = vld [vmem:[#allocation7 + $0x1320] ss:$16 sps:$4 sm:$0xff]  }
 0x581   : > { %7786 = vmatprep.subr.bf16.mxu1 %v13562_v47 }
 0x582   : > { %7732 = vmatpush2.bf16.msra.mxu0 %v13533_v26 }
 0x583   : > { %12134 = vmatmul.mubr.msk.bf16.gmra.mxu1 %vm477_vm2, %v19249_v14  ;;  %7733 = vmatprep.subr.bf16.mxu0 %v13538_v13  ;;  %v13622_v13 = vld [vmem:[#allocation7 + $0x1364] ss:$16 sps:$4 sm:$0xff]  }
 0x584   : > { %6538 = vmatprep.mubr.bf16.mxu1 %v19246_v28  ;;  %v13541_v28 = vld [vmem:[#allocation7 + $0x1144] ss:$16 sps:$4 sm:$0xff]   ;;  %7787 = vmatpush1.bf16.msra.mxu1 %v13560_v21  ;;  %v17257_v21 = vrot.slane %v17249_v4, %v19238_v17 }
 0x585   : > { %7788 = vmatprep.subr.bf16.mxu1 %v13568_v11 }
 0x586   : > { %7734 = vmatpush2.bf16.msra.mxu0 %v13536_v27  ;;  %v13620_v27 = vld [vmem:[#allocation7 + $0x1360] ss:$16 sps:$4 sm:$0xff]  }
 0x587   : > { %7735 = vmatprep.subr.bf16.mxu0 %v13541_v28 }
 0x588   : > { %7789 = vmatpush1.bf16.msra.mxu1 %v13566_v39 }
 0x58a   : > { %7736 = vmatpush2.bf16.msra.mxu0 %v13539_v34 }
 0x58b   : > { %12135 = vmatmul.mubr.msk.bf16.gmra.mxu1 %vm477_vm2, %v19250_v12  ;;  %7737 = vmatprep.subr.bf16.mxu0 %v13544_v63  ;;  %v13574_v12 = vld [vmem:[#allocation7 + $0x1264] ss:$16 sps:$4 sm:$0xff]  }
 0x58c   : > { %7790 = vmatprep.subr.bf16.mxu1 %v13574_v12  ;;  %v13640_v12 = vld [vmem:[#allocation7 + $0x1304] ss:$16 sps:$4 sm:$0xff]  }
 0x58d   : > { %7791 = vmatpush1.bf16.msra.mxu1 %v13572_v20  ;;  %v17263_v20 = vrot.slane %v17249_v4, %v19239_v29 }
 0x58e   : > { %7738 = vmatpush2.bf16.msra.mxu0 %v13542_v7  ;;  %7792 = vmatprep.subr.bf16.mxu1 %v13580_v57  ;;  %v13628_v7 = vld [vmem:[#allocation7 + $0x1344] ss:$16 sps:$4 sm:$0xff]   ;;  %v13638_v57 = vld [vmem:[#allocation7 + $0x1300] ss:$16 sps:$4 sm:$0xff]  }
 0x58f   : > { %7739 = vmatprep.subr.bf16.mxu0 %v13547_v59  ;;  %v13626_v59 = vld [vmem:[#allocation7 + $0x1340] ss:$16 sps:$4 sm:$0xff]  }
 0x590   : > { %v17195_v1 = vpop.f32.mrf.mxu0 }
 0x591   : > { %7793 = vmatpush1.bf16.msra.mxu1 %v13578_v60 }
 0x592   : > { %v17197_v2 = vpop.f32.mrf.mxu0  ;;  %7740 = vmatpush2.bf16.msra.mxu0 %v13545_v16  ;;  %7794 = vmatprep.subr.bf16.mxu1 %v13586_v0  ;;  %v6074_v0 = vadd.f32 %v17195_v1, %v17257_v21 }
 0x593   : > { %7855 = vmatprep.subr.bf16.mxu0 %v13553_v3 }
 0x594   : > { %v17199_v33 = vpop.f32.mrf.mxu0 }
 0x595   : > { %7795 = vmatpush1.bf16.msra.mxu1 %v13584_v52 }
 0x596   : > { %v17201_v9 = vpop.f32.mrf.mxu0  ;;  %7796 = vmatprep.subr.bf16.mxu1 %v13592_v58 }
 0x598   : > { %v17203_v48 = vpop.f32.mrf.mxu0 }
 0x599   : > { %7797 = vmatpush1.bf16.msra.mxu1 %v13590_v18  ;;  %v13646_v18 = vld [vmem:[#allocation7 + $0x12ec] ss:$16 sps:$4 sm:$0xff]  }
 0x59a   : > { %v17205_v30 = vpop.f32.mrf.mxu0  ;;  %7798 = vmatprep.subr.bf16.mxu1 %v13598_v61  ;;  %v6076_v61 = vadd.f32 %v17197_v2, %v17263_v20  ;;  %v6080_v2 = vadd.f32 %v17201_v9, %v17263_v20 }
 0x59c   : > { %v17207_v31 = vpop.f32.mrf.mxu0 }
 0x59d   : > { %7799 = vmatpush2.bf16.msra.mxu1 %v13596_v35 }
 0x59e   : > { %v17209_v6 = vpop.f32.mrf.mxu0  ;;  %7800 = vmatprep.subr.bf16.mxu1 %v13604_v46 }
 0x5a1   : > { %v17211_v62 = vpop.f32.mrf.mxu0  ;;  %7801 = vmatpush2.bf16.msra.mxu1 %v13602_v32  ;;  %v6078_v32 = vadd.f32 %v17199_v33, %v17257_v21 }
 0x5a2   : > { %7802 = vmatprep.subr.bf16.mxu1 %v13610_v36 }
 0x5a3   : > { %v17213_v14 = vpop.f32.mrf.mxu0 }
 0x5a5   : > { %v17215_v19 = vpop.f32.mrf.mxu0  ;;  %7803 = vmatpush2.bf16.msra.mxu1 %v13608_v51 }
 0x5a6   : > { %7804 = vmatprep.subr.bf16.mxu1 %v13616_v45 }
 0x5a7   : > { %v17217_v38 = vpop.f32.mrf.mxu0 }
 0x5a9   : > { %7805 = vmatpush2.bf16.msra.mxu1 %v13614_v44 }
 0x5aa   : > { %7806 = vmatprep.subr.bf16.mxu1 %v13622_v13 }
 0x5ad   : > { %v17219_v25 = vpop.f32.mrf.mxu0  ;;  %7807 = vmatpush2.bf16.msra.mxu1 %v13620_v27 }
 0x5ae   : > { %7808 = vmatprep.subr.bf16.mxu1 %v13628_v7 }
 0x5af   : > { %v17221_v41 = vpop.f32.mrf.mxu0 }
 0x5b1   : > { %v17223_v43 = vpop.f32.mrf.mxu0  ;;  %7809 = vmatpush2.bf16.msra.mxu1 %v13626_v59 }
 0x5b2   : > { %7810 = vmatprep.subr.bf16.mxu1 %v13634_v5 }
 0x5b3   : > { %v17225_v8 = vpop.f32.mrf.mxu0 }
 0x5b5   : > { %7811 = vmatpush2.bf16.msra.mxu1 %v13632_v15 }
 0x5b6   : > { %7812 = vmatprep.subr.bf16.mxu1 %v13640_v12  ;;  %v6086_v12 = vadd.f32 %v17205_v30, %v17263_v20  ;;  %v6090_v30 = vadd.f32 %v17209_v6, %v17263_v20 }
 0x5b9   : > { %7813 = vmatpush2.bf16.msra.mxu1 %v13638_v57 }
 0x5ba   : > { %7928 = vmatprep.subr.bf16.mxu1 %v13646_v18  ;;  %v6088_v18 = vadd.f32 %v17207_v31, %v17257_v21 }
 0x5d1   : > { %v6146_v49 = vpop.f32.mrf.mxu1  ;;  %v17227_v37 = vpop.f32.mrf.mxu0 }
 0x5d2   : > { %v6147_v35 = vadd.f32 %v6146_v49, %v6074_v0 }
 0x5d3   : > { %v6148_v22 = vpop.f32.mrf.mxu1  ;;  %v17229_v23 = vpop.f32.mrf.mxu0 }
 0x5d4   : > { %v6149_v36 = vadd.f32 %v6148_v22, %v6076_v61  ;;  %v6084_v22 = vadd.f32 %v17203_v48, %v17257_v21 }
 0x5d5   : > { %v17231_v55 = vpop.f32.mrf.mxu0  ;;  %v6150_v42 = vpop.f32.mrf.mxu1 }
 0x5d6   : > { %v6151_v1 = vadd.f32 %v6150_v42, %v6078_v32 }
 0x5d7   : > { %v17233_v40 = vpop.f32.mrf.mxu0  ;;  %v6152_v10 = vpop.f32.mrf.mxu1 }
 0x5d8   : > { %v6153_v42 = vadd.f32 %v6152_v10, %v6080_v2 }
 0x5d9   : > { %v17235_v53 = vpop.f32.mrf.mxu0 }
 0x5da   : > { %v6156_v50 = vpop.f32.mrf.mxu1 }
 0x5db   : > { %v17237_v56 = vpop.f32.mrf.mxu0  ;;  %v6157_v61 = vadd.f32 %v6156_v50, %v6084_v22 }
 0x5dc   : > { %v6158_v34 = vpop.f32.mrf.mxu1 }
 0x5dd   : > { %v17239_v54 = vpop.f32.mrf.mxu0  ;;  %v6159_v48 = vadd.f32 %v6158_v34, %v6086_v12 }
 0x5de   : > { %v6160_v24 = vpop.f32.mrf.mxu1 }
 0x5df   : > { %v17241_v26 = vpop.f32.mrf.mxu0  ;;  %v6161_v31 = vadd.f32 %v6160_v24, %v6088_v18  ;;  %v6094_v24 = vadd.f32 %v17211_v62, %v17257_v21  ;;  %v6098_v62 = vadd.f32 %v17215_v19, %v17257_v21 }
 0x5e0   : > { %v6162_v11 = vpop.f32.mrf.mxu1 }
 0x5e1   : > { %v17243_v28 = vpop.f32.mrf.mxu0 }
 0x5e2   : > { %v6166_v52 = vpop.f32.mrf.mxu1 }
 0x5e3   : > { %v17245_v63 = vpop.f32.mrf.mxu0 }
 0x5e4   : > { %v6168_v45 = vpop.f32.mrf.mxu1 }
 0x5e5   : > { %v17247_v16 = vpop.f32.mrf.mxu0 }
 0x5e6   : > { %19251 = vst [vmem:[#allocation29_spill] sm:$0xff] %v17247_v16  ;;  %v6170_v5 = vpop.f32.mrf.mxu1 }
 0x5e7   : > { %v17251_v3 = vpop.f32.mrf.mxu0 }
 0x5e8   : > { %19252 = vst [vmem:[#allocation23_spill] sm:$0xff] %v17251_v3 }
 0x5e9   : > { %v17253_v47 = vpop.f32.mrf.mxu0 }
 0x5ea   : > { %19253 = vst [vmem:[#allocation25_spill] sm:$0xff] %v17253_v47 }
 0x5eb   : > { %v17259_v39 = vpop.f32.mrf.mxu0 }
 0x5ec   : > { %19254 = vst [vmem:[#allocation26_spill] sm:$0xff] %v17259_v39 }
 0x5ed   : > { %v17265_v60 = vpop.f32.mrf.mxu0 }
 0x5ee   : > { %19255 = vst [vmem:[#allocation24_spill] sm:$0xff] %v17265_v60 }
 0x5ef   : > { %v17269_v58 = vpop.f32.mrf.mxu0 }
 0x5f0   : > { %19256 = vst [vmem:[#allocation30_spill] sm:$0xff] %v17269_v58 }
 0x5f1   : > { %v6437_v46 = vpop.f32.mrf.mxu0 }
 0x5f2   : > { %v17275_v51 = vadd.f32 %v6437_v46, %v6147_v35 }
 0x5f3   : > { %v6439_v44 = vpop.f32.mrf.mxu0 }
 0x5f4   : > { %v17278_v13 = vmul.f32 100.0, %v17275_v51  ;;  %v17280_v27 = vadd.f32 %v6439_v44, %v6149_v36  ;;  %v6172_v36 = vpop.f32.mrf.mxu1 }
 0x5f5   : > { %v6441_v49 = vpop.f32.mrf.mxu0 }
 0x5f6   : > { %v6645_v7 = vmin.f32 %v17278_v13, 20.0  ;;  %v17286_v59 = vmul.f32 100.0, %v17280_v27  ;;  %v17288_v33 = vadd.f32 %v6441_v49, %v6151_v1  ;;  %v6176_v12 = vpop.f32.mrf.mxu1  ;;  %vm6613_vm2 = vcmp.gt.f32.partialorder %v17278_v13, 20.0 }
 0x5f7   : > { %v6443_v15 = vpop.f32.mrf.mxu0 }
 0x5f8   : > { %v6677_v57 = vmul.f32 1.442695, %v6645_v7  ;;  %v6646_v9 = vmin.f32 %v17286_v59, 20.0  ;;  %v17296_v0 = vmul.f32 100.0, %v17288_v33  ;;  %v17300_v35 = vadd.f32 %v6443_v15, %v6153_v42 }
 0x5f9   : > { %v6447_v46 = vpop.f32.mrf.mxu0  ;;  %v6163_v42 = vadd.f32 %v6162_v11, %v6090_v30  ;;  %vm6614_vm12 = vcmp.gt.f32.partialorder %v17286_v59, 20.0  ;;  %v13551_v59 = vld [vmem:[#allocation7 + $0x10e8] ss:$16 sps:$4 sm:$0xff]  }
 0x5fa   : > { %14588 = vpow2.f32 %v6677_v57  ;;  %v6679_v10 = vmul.f32 1.442695, %v6646_v9  ;;  %v6649_v32 = vmin.f32 %v17296_v0, 20.0  ;;  %v17306_v44 = vmul.f32 100.0, %v17300_v35 }
 0x5fb   : > { %v17308_v1 = vadd.f32 %v6447_v46, %v6157_v61  ;;  %v6449_v2 = vpop.f32.mrf.mxu0  ;;  %vm6617_vm11 = vcmp.gt.f32.partialorder %v17296_v0, 20.0 }
 0x5fc   : > { %14590 = vpow2.f32 %v6679_v10  ;;  %v6685_v50 = vmul.f32 1.442695, %v6649_v32  ;;  %v17310_v49 = vadd.f32 %v6449_v2, %v6159_v48  ;;  %v6650_v34 = vmin.f32 %v17306_v44, 20.0 }
 0x5fd   : > { %v17314_v7 = vmul.f32 100.0, %v17308_v1  ;;  %v6451_v22 = vpop.f32.mrf.mxu0  ;;  %v6096_v48 = vadd.f32 %v17213_v14, %v17263_v20  ;;  %v6167_v10 = vadd.f32 %v6166_v52, %v6094_v24  ;;  %v6171_v24 = vadd.f32 %v6170_v5, %v6098_v62 }
 0x5fe   : > { %14592 = vpow2.f32 %v6685_v50  ;;  %v17317_v6 = vmul.f32 100.0, %v17310_v49  ;;  %v17319_v15 = vadd.f32 %v6451_v22, %v6161_v31  ;;  %v6687_v57 = vmul.f32 1.442695, %v6650_v34 }
 0x5ff   : > { %v6653_v9 = vmin.f32 %v17314_v7, 20.0  ;;  %v6453_v18 = vpop.f32.mrf.mxu0  ;;  %v6100_v34 = vadd.f32 %v17217_v38, %v17263_v20  ;;  %v6169_v22 = vadd.f32 %v6168_v45, %v6096_v48  ;;  %v6106_v5 = vadd.f32 %v17221_v41, %v17263_v20 }
 0x600   : > { %v6654_v61 = vmin.f32 %v17317_v6, 20.0  ;;  %v17326_v46 = vmul.f32 100.0, %v17319_v15  ;;  %v17328_v11 = vadd.f32 %v6453_v18, %v6163_v42  ;;  %14594 = vpow2.f32 %v6687_v57  ;;  %v6178_v42 = vpop.f32.mrf.mxu1 }
 0x601   : > { %v6693_v32 = vmul.f32 1.442695, %v6653_v9  ;;  %v6457_v30 = vpop.f32.mrf.mxu0  ;;  %v6104_v9 = vadd.f32 %v17219_v25, %v17257_v21  ;;  %v6173_v45 = vadd.f32 %v6172_v36, %v6100_v34  ;;  %v6179_v41 = vadd.f32 %v6178_v42, %v6106_v5 }
 0x602   : > { %v6695_v2 = vmul.f32 1.442695, %v6654_v61  ;;  %v6657_v31 = vmin.f32 %v17326_v46, 20.0  ;;  %v17336_v50 = vmul.f32 100.0, %v17328_v11  ;;  %v17340_v14 = vadd.f32 %v6457_v30, %v6167_v10  ;;  %v6180_v62 = vpop.f32.mrf.mxu1 }
 0x603   : > { %14596 = vpow2.f32 %v6693_v32  ;;  %v6459_v52 = vpop.f32.mrf.mxu0  ;;  %v6108_v30 = vadd.f32 %v17223_v43, %v17257_v21  ;;  %vm6618_vm13 = vcmp.gt.f32.partialorder %v17306_v44, 20.0  ;;  %vm6621_vm14 = vcmp.gt.f32.partialorder %v17314_v7, 20.0 }
 0x604   : > { %14598 = vpow2.f32 %v6695_v2  ;;  %v6701_v57 = vmul.f32 1.442695, %v6657_v31  ;;  %v6658_v19 = vmin.f32 %v17336_v50, 20.0  ;;  %v17346_v18 = vmul.f32 100.0, %v17340_v14 }
 0x605   : > { %v17348_v61 = vadd.f32 %v6459_v52, %v6169_v22  ;;  %v6461_v38 = vpop.f32.mrf.mxu0  ;;  %vm6622_vm15 = vcmp.gt.f32.partialorder %v17317_v6, 20.0  ;;  %vm6625_vm0 = vcmp.gt.f32.partialorder %v17326_v46, 20.0  ;;  %vm6626_vm1 = vcmp.gt.f32.partialorder %v17336_v50, 20.0 }
 0x606   : > { %14600 = vpow2.f32 %v6701_v57  ;;  %v6703_v48 = vmul.f32 1.442695, %v6658_v19  ;;  %v17350_v10 = vadd.f32 %v6461_v38, %v6171_v24  ;;  %v6661_v25 = vmin.f32 %v17346_v18, 20.0 }
 0x607   : > { %v14589_v32 = vpop.eup %14588  ;;  %v17358_v2 = vmul.f32 100.0, %v17348_v61  ;;  %v6463_v31 = vpop.f32.mrf.mxu0  ;;  %v6177_v24 = vadd.f32 %v6176_v12, %v6104_v9  ;;  %v6181_v19 = vadd.f32 %v6180_v62, %v6108_v30  ;;  %v6110_v30 = vadd.f32 %v17225_v8, %v17263_v20 }
 0x608   : > { %v6741_v22 = vadd.f32 1.0, %v14589_v32  ;;  %14602 = vpow2.f32 %v6703_v48  ;;  %v17361_v36 = vmul.f32 100.0, %v17350_v10  ;;  %v17363_v34 = vadd.f32 %v6463_v31, %v6173_v45  ;;  %v6182_v12 = vpop.f32.mrf.mxu1 }
 0x609   : > { %v14591_v52 = vpop.eup %14590  ;;  %v6709_v57 = vmul.f32 1.442695, %v6661_v25  ;;  %v6662_v43 = vmin.f32 %v17358_v2, 20.0  ;;  %v6467_v21 = vpop.f32.mrf.mxu0  ;;  %vm6629_vm3 = vcmp.gt.f32.partialorder %v17346_v18, 20.0  ;;  %vm6630_vm5 = vcmp.gt.f32.partialorder %v17358_v2, 20.0 }
 0x60a   : > { %14604 = vlog2.f32 %v6741_v22  ;;  %v6742_v38 = vadd.f32 1.0, %v14591_v52  ;;  %v6665_v29 = vmin.f32 %v17361_v36, 20.0  ;;  %v17368_v32 = vmul.f32 100.0, %v17363_v34 }
 0x60b   : > { %v14593_v17 = vpop.eup %14592  ;;  %14606 = vpow2.f32 %v6709_v57  ;;  %v6711_v48 = vmul.f32 1.442695, %v6662_v43  ;;  %v17370_v45 = vadd.f32 %v6467_v21, %v6177_v24  ;;  %v6469_v31 = vpop.f32.mrf.mxu0  ;;  %vm6633_vm4 = vcmp.gt.f32.partialorder %v17361_v36, 20.0 }
 0x60c   : > { %14608 = vlog2.f32 %v6742_v38  ;;  %v6745_v42 = vadd.f32 1.0, %v14593_v17  ;;  %v6717_v9 = vmul.f32 1.442695, %v6665_v29  ;;  %v17372_v5 = vadd.f32 %v6469_v31, %v6179_v41 }
 0x60d   : > { %14610 = vpow2.f32 %v6711_v48  ;;  %v6666_v62 = vmin.f32 %v17368_v32, 20.0  ;;  %v17378_v25 = vmul.f32 100.0, %v17370_v45  ;;  %v6471_v22 = vpop.f32.mrf.mxu0  ;;  %v14595_v52 = vpop.eup %14594  ;;  %v6183_v17 = vadd.f32 %v6182_v12, %v6110_v30 }
 0x60e   : > { %19257 = vst [vmem:[#allocation36_spill] sm:$0xff] %v17372_v5  ;;  %14612 = vlog2.f32 %v6745_v42  ;;  %v17381_v24 = vmul.f32 100.0, %v17372_v5  ;;  %v17383_v57 = vadd.f32 %v6471_v22, %v6181_v19  ;;  %v6746_v29 = vadd.f32 1.0, %v14595_v52 }
 0x60f   : > { %14614 = vpow2.f32 %v6717_v9  ;;  %v6719_v41 = vmul.f32 1.442695, %v6666_v62  ;;  %v6473_v43 = vpop.f32.mrf.mxu0  ;;  %v6669_v20 = vmin.f32 %v17378_v25, 20.0  ;;  %vm6634_vm6 = vcmp.gt.f32.partialorder %v17368_v32, 20.0 }
 0x610   : > { %v14597_v8 = vpop.eup %14596  ;;  %v6670_v21 = vmin.f32 %v17381_v24, 20.0  ;;  %v17388_v38 = vmul.f32 100.0, %v17383_v57  ;;  %14616 = vlog2.f32 %v6746_v29  ;;  %v17390_v42 = vadd.f32 %v6473_v43, %v6183_v17 }
 0x611   : > { %v14599_v48 = vpop.eup %14598  ;;  %v6749_v31 = vadd.f32 1.0, %v14597_v8  ;;  %14618 = vpow2.f32 %v6719_v41  ;;  %v6725_v12 = vmul.f32 1.442695, %v6669_v20  ;;  %vm6637_vm7 = vcmp.gt.f32.partialorder %v17378_v25, 20.0 }
 0x612   : > { %19258 = vst [vmem:[#allocation32_spill] sm:$0xff] %v17390_v42  ;;  %v6750_v19 = vadd.f32 1.0, %v14599_v48  ;;  %v6727_v62 = vmul.f32 1.442695, %v6670_v21  ;;  %v6673_v22 = vmin.f32 %v17388_v38, 20.0  ;;  %v17396_v52 = vmul.f32 100.0, %v17390_v42 }
 0x613   : > { %v17392_v30 = vpop.f32.mrf.mxu1  ;;  %v14601_v9 = vpop.eup %14600  ;;  %14620 = vlog2.f32 %v6749_v31  ;;  %vm6641_vm8 = vcmp.gt.f32.partialorder %v17388_v38, 20.0  ;;  %vm6638_vm9 = vcmp.gt.f32.partialorder %v17381_v24, 20.0  ;;  %v19266_v24 = vld [vmem:[#allocation29_spill] sm:$0xff] }
 0x614   : > { %14622 = vlog2.f32 %v6750_v19  ;;  %v6753_v58 = vadd.f32 1.0, %v14601_v9  ;;  %v6733_v17 = vmul.f32 1.442695, %v6673_v22  ;;  %v6674_v41 = vmin.f32 %v17396_v52, 20.0 }
 0x615   : > { %v17398_v60 = vpop.f32.mrf.mxu1  ;;  %v14603_v29 = vpop.eup %14602  ;;  %14624 = vpow2.f32 %v6725_v12  ;;  %vm6642_vm10 = vcmp.gt.f32.partialorder %v17396_v52, 20.0 }
 0x616   : > { %14626 = vlog2.f32 %v6753_v58  ;;  %v6754_v43 = vadd.f32 1.0, %v14603_v29  ;;  %v6735_v21 = vmul.f32 1.442695, %v6674_v41 }
 0x617   : > { %v17401_v8 = vpop.f32.mrf.mxu1  ;;  %v14605_v20 = vpop.eup %14604  ;;  %14628 = vpow2.f32 %v6727_v62 }
 0x618   : > { %v14607_v48 = vpop.eup %14606  ;;  %v6774_v31 = vmul.f32 0.6931472, %v14605_v20  ;;  %14630 = vlog2.f32 %v6754_v43 }
 0x619   : > { %v17403_v39 = vpop.f32.mrf.mxu1  ;;  %v14609_v19 = vpop.eup %14608  ;;  %v6757_v9 = vadd.f32 1.0, %v14607_v48  ;;  %14632 = vpow2.f32 %v6733_v17 }
 0x61a   : > { %v14611_v47 = vpop.eup %14610  ;;  %14634 = vpow2.f32 %v6735_v21  ;;  %v6776_v29 = vmul.f32 0.6931472, %v14609_v19  ;;  %v6837_v16 = vmul.f32 0.01, %v6774_v31 }
 0x61b   : > { %v17405_v12 = vpop.f32.mrf.mxu1  ;;  %v14613_v22 = vpop.eup %14612  ;;  %14636 = vlog2.f32 %v6757_v9  ;;  %v6758_v58 = vadd.f32 1.0, %v14611_v47 }
 0x61c   : > { %v14615_v3 = vpop.eup %14614  ;;  %v6782_v62 = vmul.f32 0.6931472, %v14613_v22  ;;  %v6838_v47 = vmul.f32 0.01, %v6776_v29  ;;  %v6869_v31 = vsel %vm6613_vm2, %v17275_v51, %v6837_v16 }
 0x61d   : > { %v17407_v41 = vpop.f32.mrf.mxu1  ;;  %14638 = vlog2.f32 %v6758_v58  ;;  %v6761_v43 = vadd.f32 1.0, %v14615_v3  ;;  %v14617_v20 = vpop.eup %14616 }
 0x61e   : > { %v6841_v48 = vmul.f32 0.01, %v6782_v62  ;;  %v14619_v21 = vpop.eup %14618  ;;  %v6784_v9 = vmul.f32 0.6931472, %v14617_v20 }
 0x61f   : > { %v17410_v17 = vpop.f32.mrf.mxu1  ;;  %14640 = vlog2.f32 %v6761_v43  ;;  %v6762_v5 = vadd.f32 1.0, %v14619_v21 }
 0x620   : > { %19259 = vst [vmem:[#allocation37_spill] sm:$0xff] %v17410_v17  ;;  %v14621_v19 = vpop.eup %14620  ;;  %v6873_v22 = vsel %vm6617_vm11, %v17288_v33, %v6841_v48  ;;  %v6842_v62 = vmul.f32 0.01, %v6784_v9  ;;  %v6870_v33 = vsel %vm6614_vm12, %v17280_v27, %v6838_v47 }
 0x621   : > { %v17415_v58 = vpop.f32.mrf.mxu1  ;;  %v14623_v3 = vpop.eup %14622  ;;  %v17417_v42 = vpack.c.bf16 %v6873_v22, %v6869_v31  ;;  %v6790_v13 = vmul.f32 0.6931472, %v14621_v19  ;;  %14642 = vlog2.f32 %v6762_v5  ;;  %v13559_v5 = vld [vmem:[#allocation7 + $0x10cc] ss:$16 sps:$4 sm:$0xff]  }
 0x622   : > { %v14625_v17 = vpop.eup %14624  ;;  %v6792_v29 = vmul.f32 0.6931472, %v14623_v3  ;;  %v6874_v43 = vsel %vm6618_vm13, %v17300_v35, %v6842_v62 }
 0x623   : > { %19260 = vst [vmem:[#allocation33_spill] sm:$0xff] %v17417_v42  ;;  %v17421_v0 = vpop.f32.mrf.mxu1  ;;  %v14627_v16 = vpop.eup %14626  ;;  %v6765_v51 = vadd.f32 1.0, %v14625_v17  ;;  %v6845_v48 = vmul.f32 0.01, %v6790_v13  ;;  %v17427_v9 = vpack.c.bf16 %v6874_v43, %v6870_v33  ;;  %v19261_v17 = vld [vmem:[#allocation20_spill] sm:$0xff] }
 0x624   : > { %v14629_v20 = vpop.eup %14628  ;;  %v6798_v21 = vmul.f32 0.6931472, %v14627_v16  ;;  %v17432_v27 = vrot.slane %v17249_v4, %v19261_v17  ;;  %v6846_v13 = vmul.f32 0.01, %v6792_v29  ;;  %v13557_v29 = vld [vmem:[#allocation7 + $0x10c8] ss:$16 sps:$4 sm:$0xff]  }
 0x625   : > { %v17425_v19 = vpop.f32.mrf.mxu1  ;;  %v14631_v31 = vpop.eup %14630  ;;  %14644 = vlog2.f32 %v6765_v51  ;;  %v6766_v44 = vadd.f32 1.0, %v14629_v20  ;;  %7741 = vmatprep.mubr.bf16.mxu0 %v17427_v9  ;;  %v6877_v33 = vsel %vm6621_vm14, %v17308_v1, %v6845_v48 }
 0x626   : > { %v14633_v22 = vpop.eup %14632  ;;  %v6849_v35 = vmul.f32 0.01, %v6798_v21  ;;  %v6800_v3 = vmul.f32 0.6931472, %v14631_v31  ;;  %7742 = vmatmul.mubr.bf16.vlgmr.msra.gmra.mxu0 %v17417_v42  ;;  %v19262_v42 = vld [vmem:[#allocation22_spill] sm:$0xff]  ;;  %v6220_v6 = vadd.f32 %v17227_v37, %v17432_v27 }
 0x627   : > { %v17434_v47 = vpop.f32.mrf.mxu1  ;;  %v14635_v62 = vpop.eup %14634  ;;  %14646 = vlog2.f32 %v6766_v44  ;;  %v6769_v16 = vadd.f32 1.0, %v14633_v22  ;;  %7856 = vmatpush1.bf16.msra.mxu0 %v13551_v59  ;;  %v13565_v44 = vld [vmem:[#allocation7 + $0x10ac] ss:$16 sps:$4 sm:$0xff]   ;;  %v17451_v1 = vrot.slane %v17249_v4, %v19262_v42  ;;  %v13569_v37 = vld [vmem:[#allocation7 + $0x1088] ss:$16 sps:$4 sm:$0xff]  }
 0x628   : > { %v14637_v51 = vpop.eup %14636  ;;  %v6881_v43 = vsel %vm6625_vm0, %v17319_v15, %v6849_v35  ;;  %v6770_v20 = vadd.f32 1.0, %v14635_v62  ;;  %v6850_v31 = vmul.f32 0.01, %v6800_v3  ;;  %7857 = vmatprep.subr.bf16.mxu0 %v13559_v5  ;;  %v6878_v15 = vsel %vm6622_vm15, %v17310_v49, %v6846_v13  ;;  %v13563_v5 = vld [vmem:[#allocation7 + $0x10a8] ss:$16 sps:$4 sm:$0xff]  }
 0x629   : > { %v17444_v21 = vpop.f32.mrf.mxu1  ;;  %v17446_v17 = vpack.c.bf16 %v6881_v43, %v6877_v33  ;;  %v6806_v46 = vmul.f32 0.6931472, %v14637_v51  ;;  %14648 = vlog2.f32 %v6769_v16  ;;  %v13571_v16 = vld [vmem:[#allocation7 + $0x108c] ss:$16 sps:$4 sm:$0xff]   ;;  %v6222_v49 = vadd.f32 %v17229_v23, %v17451_v1 }
 0x62a   : > { %v14639_v22 = vpop.eup %14638  ;;  %14650 = vlog2.f32 %v6770_v20  ;;  %v6882_v48 = vsel %vm6626_vm1, %v17328_v11, %v6850_v31  ;;  %v6224_v11 = vadd.f32 %v17231_v55, %v17432_v27  ;;  %v6226_v33 = vadd.f32 %v17233_v40, %v17451_v1 }
 0x62b   : > { %v17453_v7 = vpop.f32.mrf.mxu1  ;;  %v17459_v59 = vpack.c.bf16 %v6882_v48, %v6878_v15  ;;  %7858 = vmatpush1.bf16.msra.mxu0 %v13557_v29  ;;  %v6808_v3 = vmul.f32 0.6931472, %v14639_v22  ;;  %v6853_v62 = vmul.f32 0.01, %v6806_v46  ;;  %v6230_v43 = vadd.f32 %v17235_v53, %v17432_v27 }
 0x62c   : > { %v14641_v50 = vpop.eup %14640  ;;  %7859 = vmatprep.subr.bf16.mxu0 %v13565_v44  ;;  %v6232_v20 = vadd.f32 %v17237_v56, %v17451_v1  ;;  %v17485_v40 = vadd.f32 %v17239_v54, %v17432_v27  ;;  %v6293_v46 = vadd.f32 %v17392_v30, %v6220_v6  ;;  %v13577_v44 = vld [vmem:[#allocation7 + $0x106c] ss:$16 sps:$4 sm:$0xff]   ;;  %v17492_v36 = vadd.f32 %v17241_v26, %v17451_v1 }
 0x62d   : > { %v17461_v35 = vpop.f32.mrf.mxu1  ;;  %v6814_v4 = vmul.f32 0.6931472, %v14641_v50  ;;  %7751 = vmatprep.mubr.bf16.mxu0 %v17459_v59  ;;  %v6854_v31 = vmul.f32 0.01, %v6808_v3  ;;  %v6885_v53 = vsel %vm6629_vm3, %v17340_v14, %v6853_v62  ;;  %v17503_v50 = vadd.f32 %v17243_v28, %v17432_v27  ;;  %v13575_v28 = vld [vmem:[#allocation7 + $0x1068] ss:$16 sps:$4 sm:$0xff]  }
 0x62e   : > { %v14643_v51 = vpop.eup %14642  ;;  %7752 = vmatmul.mubr.bf16.gmra.mxu0 %v17446_v17  ;;  %v17507_v26 = vadd.f32 %v17245_v63, %v17451_v1  ;;  %v6297_v63 = vadd.f32 %v17401_v8, %v6224_v11  ;;  %v13583_v6 = vld [vmem:[#allocation7 + $0x104c] ss:$16 sps:$4 sm:$0xff]   ;;  %v13581_v11 = vld [vmem:[#allocation7 + $0x1048] ss:$16 sps:$4 sm:$0xff]  }
 0x62f   : > { %v17470_v13 = vpop.f32.mrf.mxu1  ;;  %v6857_v29 = vmul.f32 0.01, %v6814_v4  ;;  %7860 = vmatpush1.bf16.msra.mxu0 %v13563_v5  ;;  %v6816_v55 = vmul.f32 0.6931472, %v14643_v51  ;;  %v6886_v5 = vsel %vm6630_vm5, %v17348_v61, %v6854_v31  ;;  %v6305_v31 = vadd.f32 %v17407_v41, %v6232_v20  ;;  %v13589_v41 = vld [vmem:[#allocation7 + $0x102c] ss:$16 sps:$4 sm:$0xff]  }
 0x630   : > { %7861 = vmatprep.subr.bf16.mxu0 %v13571_v16 }
 0x631   : > { %v17481_v23 = vpop.f32.mrf.mxu1  ;;  %v6889_v56 = vsel %vm6633_vm4, %v17350_v10, %v6857_v29  ;;  %v6858_v54 = vmul.f32 0.01, %v6816_v55  ;;  %v6295_v10 = vadd.f32 %v17398_v60, %v6222_v49  ;;  %v6299_v29 = vadd.f32 %v17403_v39, %v6226_v33 }
 0x632   : > { %v14645_v18 = vpop.eup %14644  ;;  %v17495_v22 = vpack.c.bf16 %v6889_v56, %v6885_v53 }
 0x633   : > { %v6510_v15 = vpop.f32.mrf.mxu1  ;;  %v6822_v14 = vmul.f32 0.6931472, %v14645_v18  ;;  %7862 = vmatpush1.bf16.msra.mxu0 %v13569_v37  ;;  %v6890_v32 = vsel %vm6634_vm6, %v17363_v34, %v6858_v54  ;;  %v6303_v37 = vadd.f32 %v17405_v12, %v6230_v43 }
 0x634   : > { %v17499_v48 = vadd.f32 %v6510_v15, %v6293_v46  ;;  %v14647_v30 = vpop.eup %14646  ;;  %v17516_v4 = vpack.c.bf16 %v6890_v32, %v6886_v5  ;;  %7863 = vmatprep.subr.bf16.mxu0 %v13577_v44 }
 0x635   : > { %v6512_v2 = vpop.f32.mrf.mxu1  ;;  %v6861_v3 = vmul.f32 0.01, %v6822_v14  ;;  %v6824_v34 = vmul.f32 0.6931472, %v14647_v30 }
 0x636   : > { %v17512_v60 = vmul.f32 100.0, %v17499_v48  ;;  %v17514_v62 = vadd.f32 %v6512_v2, %v6295_v10  ;;  %v14649_v16 = vpop.eup %14648  ;;  %7761 = vmatprep.mubr.bf16.mxu0 %v17516_v4 }
 0x637   : > { %v6514_v61 = vpop.f32.mrf.mxu1  ;;  %v14651_v49 = vpop.eup %14650  ;;  %v6830_v51 = vmul.f32 0.6931472, %v14649_v16  ;;  %7762 = vmatmul.mubr.bf16.gmra.mxu0 %v17495_v22  ;;  %v6893_v39 = vsel %vm6637_vm7, %v17370_v45, %v6861_v3  ;;  %v6862_v15 = vmul.f32 0.01, %v6824_v34  ;;  %v13587_v3 = vld [vmem:[#allocation7 + $0x1028] ss:$16 sps:$4 sm:$0xff]  }
 0x638   : > { %v6647_v55 = vmin.f32 %v17512_v60, 20.0  ;;  %v17527_v53 = vmul.f32 100.0, %v17514_v62  ;;  %v17529_v56 = vadd.f32 %v6514_v61, %v6297_v63  ;;  %v6832_v46 = vmul.f32 0.6931472, %v14651_v49  ;;  %7864 = vmatpush1.bf16.msra.mxu0 %v13575_v28  ;;  %v19263_v28 = vld [vmem:[#allocation37_spill] sm:$0xff] }
 0x639   : > { %v6516_v8 = vpop.f32.mrf.mxu1  ;;  %v6865_v12 = vmul.f32 0.01, %v6830_v51  ;;  %7865 = vmatprep.subr.bf16.mxu0 %v13583_v6  ;;  %v6307_v16 = vadd.f32 %v19263_v28, %v17485_v40  ;;  %v19264_v6 = vld [vmem:[#allocation32_spill] sm:$0xff]  ;;  %v6309_v40 = vadd.f32 %v17415_v58, %v17492_v36  ;;  %vm6615_vm2 = vcmp.gt.f32.partialorder %v17512_v60, 20.0 }
 0x63a   : > { %v6681_v33 = vmul.f32 1.442695, %v6647_v55  ;;  %v17535_v43 = vadd.f32 %v6516_v8, %v6299_v29  ;;  %v6648_v20 = vmin.f32 %v17527_v53, 20.0  ;;  %v17539_v44 = vmul.f32 100.0, %v17529_v56  ;;  %v13595_v49 = vld [vmem:[#allocation7 + $0x100c] ss:$16 sps:$4 sm:$0xff]  }
 0x63b   : > { %v6520_v18 = vpop.f32.mrf.mxu1  ;;  %v6866_v54 = vmul.f32 0.01, %v6832_v46  ;;  %v6897_v25 = vsel %vm6641_vm8, %v17383_v57, %v6865_v12  ;;  %v6313_v46 = vadd.f32 %v17421_v0, %v17503_v50  ;;  %v6315_v0 = vadd.f32 %v17425_v19, %v17507_v26  ;;  %v13599_v26 = vld [vmem:[#allocation7 + $0x11e8] ss:$16 sps:$4 sm:$0xff]  }
 0x63c   : > { %14652 = vpow2.f32 %v6681_v33  ;;  %v17545_v45 = vmul.f32 100.0, %v17535_v43  ;;  %v17547_v14 = vadd.f32 %v6520_v18, %v6303_v37  ;;  %v17550_v10 = vpack.c.bf16 %v6897_v25, %v6893_v39  ;;  %7866 = vmatpush1.bf16.msra.mxu0 %v13581_v11  ;;  %v19265_v37 = vld [vmem:[#allocation36_spill] sm:$0xff]  ;;  %v13593_v33 = vld [vmem:[#allocation7 + $0x1008] ss:$16 sps:$4 sm:$0xff]  }
 0x63d   : > { %v6683_v30 = vmul.f32 1.442695, %v6648_v20  ;;  %v6651_v2 = vmin.f32 %v17539_v44, 20.0  ;;  %v6522_v5 = vpop.f32.mrf.mxu1  ;;  %v6898_v34 = vsel %vm6642_vm10, %v19264_v6, %v6866_v54  ;;  %7867 = vmatprep.subr.bf16.mxu0 %v13589_v41  ;;  %v6894_v55 = vsel %vm6638_vm9, %v19265_v37, %v6862_v15  ;;  %v13601_v18 = vld [vmem:[#allocation7 + $0x11ec] ss:$16 sps:$4 sm:$0xff]  }
 0x63e   : > { %v6652_v32 = vmin.f32 %v17545_v45, 20.0  ;;  %v17556_v57 = vmul.f32 100.0, %v17547_v14  ;;  %v17558_v38 = vadd.f32 %v6522_v5, %v6305_v31  ;;  %v17574_v8 = vpack.c.bf16 %v6898_v34, %v6894_v55 }
 0x63f   : > { %14654 = vpow2.f32 %v6683_v30  ;;  %v6689_v63 = vmul.f32 1.442695, %v6651_v2  ;;  %v6524_v61 = vpop.f32.mrf.mxu1  ;;  %v6244_v41 = vadd.f32 %v19266_v24, %v17432_v27  ;;  %v13605_v24 = vld [vmem:[#allocation7 + $0x11c8] ss:$16 sps:$4 sm:$0xff]   ;;  %vm6616_vm11 = vcmp.gt.f32.partialorder %v17527_v53, 20.0 }
 0x640   : > { %v6691_v52 = vmul.f32 1.442695, %v6652_v32  ;;  %v6655_v51 = vmin.f32 %v17556_v57, 20.0  ;;  %v17565_v29 = vmul.f32 100.0, %v17558_v38  ;;  %v17572_v31 = vadd.f32 %v6524_v61, %v6307_v16  ;;  %7868 = vmatpush1.bf16.msra.mxu0 %v13587_v3  ;;  %7771 = vmatprep.mubr.bf16.mxu0 %v17574_v8  ;;  %v19267_v32 = vld [vmem:[#allocation23_spill] sm:$0xff]  ;;  %v19268_v61 = vld [vmem:[#allocation25_spill] sm:$0xff] }
 0x641   : > { %14656 = vpow2.f32 %v6689_v63  ;;  %v6526_v11 = vpop.f32.mrf.mxu1  ;;  %7869 = vmatprep.subr.bf16.mxu0 %v13595_v49  ;;  %7772 = vmatmul.mubr.bf16.gmra.mxu0 %v17550_v10  ;;  %v6317_v2 = vadd.f32 %v17434_v47, %v6244_v41  ;;  %v6246_v3 = vadd.f32 %v19267_v32, %v17451_v1  ;;  %v6250_v47 = vadd.f32 %v19268_v61, %v17432_v27  ;;  %v19270_v41 = vld [vmem:[#allocation24_spill] sm:$0xff]  ;;  %v13611_v61 = vld [vmem:[#allocation7 + $0x11a8] ss:$16 sps:$4 sm:$0xff]  }
 0x642   : > { %14658 = vpow2.f32 %v6691_v52  ;;  %v6697_v39 = vmul.f32 1.442695, %v6655_v51  ;;  %v6656_v12 = vmin.f32 %v17565_v29, 20.0  ;;  %v17582_v58 = vmul.f32 100.0, %v17572_v31  ;;  %7887 = vmatprep.mubr.bf16.mxu0 %v17427_v9  ;;  %v13607_v9 = vld [vmem:[#allocation7 + $0x11cc] ss:$16 sps:$4 sm:$0xff]  }
 0x643   : > { %v17585_v36 = vadd.f32 %v6526_v11, %v6309_v40  ;;  %v6530_v20 = vpop.f32.mrf.mxu1  ;;  %v19269_v51 = vld [vmem:[#allocation26_spill] sm:$0xff]  ;;  %v6319_v55 = vadd.f32 %v17444_v21, %v6246_v3  ;;  %vm6619_vm12 = vcmp.gt.f32.partialorder %v17539_v44, 20.0  ;;  %vm6620_vm13 = vcmp.gt.f32.partialorder %v17545_v45, 20.0 }
 0x644   : > { %14660 = vpow2.f32 %v6697_v39  ;;  %v6699_v50 = vmul.f32 1.442695, %v6656_v12  ;;  %v17590_v15 = vadd.f32 %v6530_v20, %v6313_v46  ;;  %v6659_v54 = vmin.f32 %v17582_v58, 20.0  ;;  %7870 = vmatpush1.bf16.msra.mxu0 %v13593_v33 }
 0x645   : > { %v17594_v25 = vmul.f32 100.0, %v17585_v36  ;;  %v6532_v30 = vpop.f32.mrf.mxu1  ;;  %7871 = vmatprep.subr.bf16.mxu0 %v13601_v18  ;;  %v6252_v37 = vadd.f32 %v19269_v51, %v17451_v1  ;;  %v6323_v46 = vadd.f32 %v17453_v7, %v6250_v47  ;;  %v6254_v20 = vadd.f32 %v19270_v41, %v17432_v27 }
 0x646   : > { %14662 = vpow2.f32 %v6699_v50  ;;  %v17599_v5 = vmul.f32 100.0, %v17590_v15  ;;  %v17601_v19 = vadd.f32 %v6532_v30, %v6315_v0  ;;  %v6705_v28 = vmul.f32 1.442695, %v6659_v54  ;;  %v13613_v50 = vld [vmem:[#allocation7 + $0x11ac] ss:$16 sps:$4 sm:$0xff]  }
 0x647   : > { %v6660_v16 = vmin.f32 %v17594_v25, 20.0  ;;  %v6534_v63 = vpop.f32.mrf.mxu1  ;;  %v6325_v7 = vadd.f32 %v17461_v35, %v6252_v37  ;;  %v13619_v37 = vld [vmem:[#allocation7 + $0x118c] ss:$16 sps:$4 sm:$0xff]   ;;  %vm6623_vm14 = vcmp.gt.f32.partialorder %v17556_v57, 20.0  ;;  %vm6627_vm15 = vcmp.gt.f32.partialorder %v17582_v58, 20.0 }
 0x648   : > { %v6663_v6 = vmin.f32 %v17599_v5, 20.0  ;;  %v17610_v34 = vmul.f32 100.0, %v17601_v19  ;;  %v17612_v49 = vadd.f32 %v6534_v63, %v6317_v2  ;;  %14664 = vpow2.f32 %v6705_v28  ;;  %7872 = vmatpush2.bf16.msra.mxu0 %v13599_v26  ;;  %v19271_v26 = vld [vmem:[#allocation30_spill] sm:$0xff] }
 0x649   : > { %v14653_v52 = vpop.eup %14652  ;;  %v6707_v40 = vmul.f32 1.442695, %v6660_v16  ;;  %v6536_v11 = vpop.f32.mrf.mxu1  ;;  %7873 = vmatprep.subr.bf16.mxu0 %v13607_v9  ;;  %v6256_v32 = vadd.f32 %v19271_v26, %v17451_v1  ;;  %v6327_v1 = vadd.f32 %v17470_v13, %v6254_v20  ;;  %vm6624_vm0 = vcmp.gt.f32.partialorder %v17565_v29, 20.0 }
 0x64a   : > { %v6743_v39 = vadd.f32 1.0, %v14653_v52  ;;  %v6713_v12 = vmul.f32 1.442695, %v6663_v6  ;;  %v6664_v33 = vmin.f32 %v17610_v34, 20.0  ;;  %v17622_v18 = vmul.f32 100.0, %v17612_v49 }
 0x64b   : > { %14666 = vpow2.f32 %v6707_v40  ;;  %v17624_v0 = vadd.f32 %v6536_v11, %v6319_v55  ;;  %v6540_v21 = vpop.f32.mrf.mxu1  ;;  %v6329_v55 = vadd.f32 %v17481_v23, %v6256_v32  ;;  %v13617_v23 = vld [vmem:[#allocation7 + $0x1188] ss:$16 sps:$4 sm:$0xff]   ;;  %vm6628_vm1 = vcmp.gt.f32.partialorder %v17594_v25, 20.0 }
 0x64c   : > { %v14655_v54 = vpop.eup %14654  ;;  %14668 = vlog2.f32 %v6743_v39  ;;  %v6715_v30 = vmul.f32 1.442695, %v6664_v33  ;;  %v17627_v2 = vadd.f32 %v6540_v21, %v6323_v46  ;;  %v6667_v3 = vmin.f32 %v17622_v18, 20.0  ;;  %7874 = vmatpush2.bf16.msra.mxu0 %v13605_v24 }
 0x64d   : > { %v6744_v27 = vadd.f32 1.0, %v14655_v54  ;;  %14670 = vpow2.f32 %v6713_v12  ;;  %v6542_v28 = vpop.f32.mrf.mxu1  ;;  %v17633_v63 = vmul.f32 100.0, %v17624_v0  ;;  %7875 = vmatprep.subr.bf16.mxu0 %v13613_v50  ;;  %vm6631_vm3 = vcmp.gt.f32.partialorder %v17599_v5, 20.0 }
 0x64e   : > { %v14657_v16 = vpop.eup %14656  ;;  %14672 = vpow2.f32 %v6715_v30  ;;  %v17636_v9 = vmul.f32 100.0, %v17627_v2  ;;  %v17638_v35 = vadd.f32 %v6542_v28, %v6325_v7  ;;  %v6721_v52 = vmul.f32 1.442695, %v6667_v3  ;;  %v13625_v7 = vld [vmem:[#allocation7 + $0x116c] ss:$16 sps:$4 sm:$0xff]  }
 0x64f   : > { %v14659_v47 = vpop.eup %14658  ;;  %14674 = vlog2.f32 %v6744_v27  ;;  %v6747_v6 = vadd.f32 1.0, %v14657_v16  ;;  %v6544_v51 = vpop.f32.mrf.mxu1  ;;  %v6668_v11 = vmin.f32 %v17633_v63, 20.0  ;;  %v13623_v16 = vld [vmem:[#allocation7 + $0x1168] ss:$16 sps:$4 sm:$0xff]   ;;  %vm6635_vm4 = vcmp.gt.f32.partialorder %v17622_v18, 20.0 }
 0x650   : > { %v6748_v40 = vadd.f32 1.0, %v14659_v47  ;;  %v6671_v39 = vmin.f32 %v17636_v9, 20.0  ;;  %v17645_v12 = vmul.f32 100.0, %v17638_v35  ;;  %v17647_v33 = vadd.f32 %v6544_v51, %v6327_v1  ;;  %7876 = vmatpush2.bf16.msra.mxu0 %v13611_v61  ;;  %v13631_v1 = vld [vmem:[#allocation7 + $0x114c] ss:$16 sps:$4 sm:$0xff]  }
 0x651   : > { %v14661_v46 = vpop.eup %14660  ;;  %14676 = vlog2.f32 %v6747_v6  ;;  %v6546_v13 = vpop.f32.mrf.mxu1  ;;  %v6723_v41 = vmul.f32 1.442695, %v6668_v11  ;;  %7877 = vmatprep.subr.bf16.mxu0 %v13619_v37  ;;  %vm6632_vm5 = vcmp.gt.f32.partialorder %v17610_v34, 20.0  ;;  %vm6636_vm6 = vcmp.gt.f32.partialorder %v17633_v63, 20.0  ;;  %v13659_v34 = vld [vmem:[#allocation7 + $0x1248] ss:$16 sps:$4 sm:$0xff]  }
 0x652   : > { %14678 = vlog2.f32 %v6748_v40  ;;  %v6751_v24 = vadd.f32 1.0, %v14661_v46  ;;  %v17649_v20 = vadd.f32 %v6546_v13, %v6329_v55  ;;  %v6729_v50 = vmul.f32 1.442695, %v6671_v39  ;;  %v13629_v46 = vld [vmem:[#allocation7 + $0x1148] ss:$16 sps:$4 sm:$0xff]  }
 0x653   : > { %v14663_v21 = vpop.eup %14662  ;;  %14680 = vpow2.f32 %v6721_v52  ;;  %v6672_v54 = vmin.f32 %v17645_v12, 20.0  ;;  %v17653_v26 = vmul.f32 100.0, %v17647_v33  ;;  %vm6639_vm7 = vcmp.gt.f32.partialorder %v17636_v9, 20.0 }
 0x654   : > { %14682 = vlog2.f32 %v6751_v24  ;;  %v6752_v30 = vadd.f32 1.0, %v14663_v21  ;;  %v17656_v32 = vmul.f32 100.0, %v17649_v20  ;;  %7878 = vmatpush2.bf16.msra.mxu0 %v13617_v23  ;;  %v13637_v24 = vld [vmem:[#allocation7 + $0x112c] ss:$16 sps:$4 sm:$0xff]   ;;  %vm6640_vm9 = vcmp.gt.f32.partialorder %v17645_v12, 20.0 }
 0x655   : > { %14684 = vpow2.f32 %v6723_v41  ;;  %v6731_v27 = vmul.f32 1.442695, %v6672_v54  ;;  %v14665_v3 = vpop.eup %14664  ;;  %v6675_v28 = vmin.f32 %v17653_v26, 20.0  ;;  %7879 = vmatprep.subr.bf16.mxu0 %v13625_v7  ;;  %v13635_v7 = vld [vmem:[#allocation7 + $0x1128] ss:$16 sps:$4 sm:$0xff]   ;;  %vm6643_vm8 = vcmp.gt.f32.partialorder %v17653_v26, 20.0 }
 0x656   : > { %14686 = vlog2.f32 %v6752_v30  ;;  %v6755_v61 = vadd.f32 1.0, %v14665_v3  ;;  %v6676_v47 = vmin.f32 %v17656_v32, 20.0  ;;  %v13643_v3 = vld [vmem:[#allocation7 + $0x110c] ss:$16 sps:$4 sm:$0xff]   ;;  %vm6644_vm10 = vcmp.gt.f32.partialorder %v17656_v32, 20.0 }
 0x657   : > { %14688 = vpow2.f32 %v6729_v50  ;;  %v6737_v52 = vmul.f32 1.442695, %v6675_v28  ;;  %v13665_v12 = vld [vmem:[#allocation7 + $0x1208] ss:$16 sps:$4 sm:$0xff]  }
 0x658   : > { %v14667_v6 = vpop.eup %14666  ;;  %14690 = vpow2.f32 %v6731_v27  ;;  %v6739_v55 = vmul.f32 1.442695, %v6676_v47  ;;  %7880 = vmatpush2.bf16.msra.mxu0 %v13623_v16  ;;  %v13671_v32 = vld [vmem:[#allocation7 + $0x13c8] ss:$16 sps:$4 sm:$0xff]  }
 0x659   : > { %v14669_v51 = vpop.eup %14668  ;;  %14692 = vlog2.f32 %v6755_v61  ;;  %v6756_v37 = vadd.f32 1.0, %v14667_v6  ;;  %7881 = vmatprep.subr.bf16.mxu0 %v13631_v1 }
 0x65a   : > { %v14671_v40 = vpop.eup %14670  ;;  %v6778_v11 = vmul.f32 0.6931472, %v14669_v51  ;;  %14694 = vpow2.f32 %v6737_v52 }
 0x65b   : > { %v14673_v39 = vpop.eup %14672  ;;  %14696 = vlog2.f32 %v6756_v37  ;;  %v6759_v13 = vadd.f32 1.0, %v14671_v40  ;;  %v13641_v37 = vld [vmem:[#allocation7 + $0x1108] ss:$16 sps:$4 sm:$0xff]  }
 0x65c   : > { %v14675_v41 = vpop.eup %14674  ;;  %v6760_v23 = vadd.f32 1.0, %v14673_v39  ;;  %14698 = vpow2.f32 %v6739_v55  ;;  %v6839_v54 = vmul.f32 0.01, %v6778_v11  ;;  %7882 = vmatpush2.bf16.msra.mxu0 %v13629_v46 }
 0x65d   : > { %14700 = vlog2.f32 %v6759_v13  ;;  %v6780_v21 = vmul.f32 0.6931472, %v14675_v41  ;;  %7883 = vmatprep.subr.bf16.mxu0 %v13637_v24 }
 0x65e   : > { %v14677_v50 = vpop.eup %14676  ;;  %14702 = vlog2.f32 %v6760_v23  ;;  %v6871_v51 = vsel %vm6615_vm2, %v17499_v48, %v6839_v54  ;;  %v13644_v23 = vld [vmem:[#allocation7 + $0x12e8] ss:$16 sps:$4 sm:$0xff]   ;;  %v13649_v54 = vld [vmem:[#allocation7 + $0x12cc] ss:$16 sps:$4 sm:$0xff]  }
 0x65f   : > { %v14679_v30 = vpop.eup %14678  ;;  %v6786_v27 = vmul.f32 0.6931472, %v14677_v50  ;;  %v6840_v61 = vmul.f32 0.01, %v6780_v21 }
 0x660   : > { %v14681_v28 = vpop.eup %14680  ;;  %v6788_v16 = vmul.f32 0.6931472, %v14679_v30  ;;  %7884 = vmatpush2.bf16.msra.mxu0 %v13635_v7 }
 0x661   : > { %v14683_v47 = vpop.eup %14682  ;;  %v6843_v1 = vmul.f32 0.01, %v6786_v27  ;;  %v6763_v6 = vadd.f32 1.0, %v14681_v28  ;;  %7885 = vmatprep.subr.bf16.mxu0 %v13643_v3  ;;  %v6872_v48 = vsel %vm6616_vm11, %v17514_v62, %v6840_v61 }
 0x662   : > { %v14685_v52 = vpop.eup %14684  ;;  %v6844_v55 = vmul.f32 0.01, %v6788_v16  ;;  %v6794_v46 = vmul.f32 0.6931472, %v14683_v47  ;;  %v19272_v16 = vld [vmem:[#allocation33_spill] sm:$0xff] }
 0x663   : > { %v14687_v40 = vpop.eup %14686  ;;  %v6875_v11 = vsel %vm6619_vm12, %v17529_v56, %v6843_v1  ;;  %14704 = vlog2.f32 %v6763_v6  ;;  %v6764_v60 = vadd.f32 1.0, %v14685_v52  ;;  %v13652_v52 = vld [vmem:[#allocation7 + $0x12ac] ss:$16 sps:$4 sm:$0xff]  }
 0x664   : > { %v14689_v39 = vpop.eup %14688  ;;  %v17666_v13 = vpack.c.bf16 %v6875_v11, %v6871_v51  ;;  %v6876_v44 = vsel %vm6620_vm13, %v17535_v43, %v6844_v55  ;;  %v6796_v56 = vmul.f32 0.6931472, %v14687_v40  ;;  %7886 = vmatpush2.bf16.msra.mxu0 %v13641_v37  ;;  %v6847_v30 = vmul.f32 0.01, %v6794_v46  ;;  %v13647_v43 = vld [vmem:[#allocation7 + $0x12c8] ss:$16 sps:$4 sm:$0xff]  }
 0x665   : > { %v14691_v45 = vpop.eup %14690  ;;  %14706 = vlog2.f32 %v6764_v60  ;;  %v6767_v24 = vadd.f32 1.0, %v14689_v39  ;;  %v17672_v41 = vpack.c.bf16 %v6876_v44, %v6872_v48 }
 0x666   : > { %v14693_v21 = vpop.eup %14692  ;;  %v6768_v50 = vadd.f32 1.0, %v14691_v45  ;;  %v6848_v47 = vmul.f32 0.01, %v6796_v56  ;;  %v6879_v51 = vsel %vm6623_vm14, %v17547_v14, %v6847_v30  ;;  %v13650_v14 = vld [vmem:[#allocation7 + $0x12a8] ss:$16 sps:$4 sm:$0xff]  }
 0x667   : > { %v14695_v7 = vpop.eup %14694  ;;  %v6802_v27 = vmul.f32 0.6931472, %v14693_v21  ;;  %14708 = vlog2.f32 %v6767_v24  ;;  %7814 = vmatprep.mubr.bf16.mxu1 %v17672_v41  ;;  %7888 = vmatmul.mubr.bf16.vlgmr.msra.gmra.mxu0 %v19272_v16 }
 0x668   : > { %v14697_v62 = vpop.eup %14696  ;;  %14710 = vlog2.f32 %v6768_v50  ;;  %v6771_v53 = vadd.f32 1.0, %v14695_v7  ;;  %7815 = vmatmul.mubr.bf16.vlgmr.msra.gmra.mxu1 %v17666_v13  ;;  %7897 = vmatprep.mubr.bf16.mxu0 %v17459_v59  ;;  %v6880_v58 = vsel %vm6624_vm0, %v17558_v38, %v6848_v47  ;;  %v13653_v38 = vld [vmem:[#allocation7 + $0x1288] ss:$16 sps:$4 sm:$0xff]  }
 0x669   : > { %v14699_v3 = vpop.eup %14698  ;;  %v6851_v28 = vmul.f32 0.01, %v6802_v27  ;;  %7929 = vmatpush1.bf16.msra.mxu1 %v13644_v23  ;;  %v6804_v61 = vmul.f32 0.6931472, %v14697_v62  ;;  %v13656_v7 = vld [vmem:[#allocation7 + $0x1268] ss:$16 sps:$4 sm:$0xff]  }
 0x66a   : > { %v14701_v1 = vpop.eup %14700  ;;  %14712 = vlog2.f32 %v6771_v53  ;;  %v6772_v6 = vadd.f32 1.0, %v14699_v3  ;;  %7930 = vmatprep.subr.bf16.mxu1 %v13649_v54  ;;  %v13661_v53 = vld [vmem:[#allocation7 + $0x124c] ss:$16 sps:$4 sm:$0xff]   ;;  %v13662_v47 = vld [vmem:[#allocation7 + $0x1228] ss:$16 sps:$4 sm:$0xff]  }
 0x66b   : > { %v6883_v37 = vsel %vm6627_vm15, %v17572_v31, %v6851_v28  ;;  %v6852_v55 = vmul.f32 0.01, %v6804_v61  ;;  %v14703_v40 = vpop.eup %14702  ;;  %v6810_v57 = vmul.f32 0.6931472, %v14701_v1  ;;  %v13655_v31 = vld [vmem:[#allocation7 + $0x128c] ss:$16 sps:$4 sm:$0xff]  }
 0x66c   : > { %v17683_v11 = vpack.c.bf16 %v6883_v37, %v6879_v51  ;;  %14714 = vlog2.f32 %v6772_v6  ;;  %v6812_v60 = vmul.f32 0.6931472, %v14703_v40  ;;  %v13676_v1 = vld [vmem:[#allocation7 + $0x13ac] ss:$16 sps:$4 sm:$0xff]   ;;  %v13692_v6 = vld [vmem:[#allocation7 + $0x14e0] ss:$16 sps:$4 sm:$0xff]  }
 0x66d   : > { %7931 = vmatpush1.bf16.msra.mxu1 %v13647_v43  ;;  %v6884_v59 = vsel %vm6628_vm1, %v17585_v36, %v6852_v55  ;;  %v6855_v29 = vmul.f32 0.01, %v6810_v57  ;;  %v13658_v36 = vld [vmem:[#allocation7 + $0x126c] ss:$16 sps:$4 sm:$0xff]   ;;  %v13697_v51 = vld [vmem:[#allocation7 + $0x14c4] ss:$16 sps:$4 sm:$0xff]  }
 0x66e   : > { %v17688_v46 = vpack.c.bf16 %v6884_v59, %v6880_v58  ;;  %7932 = vmatprep.subr.bf16.mxu1 %v13652_v52  ;;  %v6856_v24 = vmul.f32 0.01, %v6812_v60  ;;  %v13694_v52 = vld [vmem:[#allocation7 + $0x14e4] ss:$16 sps:$4 sm:$0xff]   ;;  %v13695_v37 = vld [vmem:[#allocation7 + $0x14c0] ss:$16 sps:$4 sm:$0xff]  }
 0x66f   : > { %7898 = vmatmul.mubr.bf16.gmra.mxu0 %v17446_v17  ;;  %v6887_v21 = vsel %vm6631_vm3, %v17590_v15, %v6855_v29  ;;  %9129 = vmatprep.subr.bf16.mxu0 %v13694_v52  ;;  %v13679_v55 = vld [vmem:[#allocation7 + $0x138c] ss:$16 sps:$4 sm:$0xff]   ;;  %v13677_v40 = vld [vmem:[#allocation7 + $0x1388] ss:$16 sps:$4 sm:$0xff]   ;;  %v13698_v57 = vld [vmem:[#allocation7 + $0x14a0] ss:$16 sps:$4 sm:$0xff]  }
 0x670   : > { %v14705_v39 = vpop.eup %14704  ;;  %7824 = vmatprep.mubr.bf16.mxu1 %v17688_v46  ;;  %7907 = vmatprep.mubr.bf16.mxu0 %v17516_v4  ;;  %v6888_v5 = vsel %vm6632_vm5, %v17601_v19, %v6856_v24  ;;  %v13664_v19 = vld [vmem:[#allocation7 + $0x122c] ss:$16 sps:$4 sm:$0xff]   ;;  %v13680_v59 = vld [vmem:[#allocation7 + $0x1368] ss:$16 sps:$4 sm:$0xff]   ;;  %v13715_v24 = vld [vmem:[#allocation7 + $0x1404] ss:$16 sps:$4 sm:$0xff]  }
 0x671   : > { %v6818_v48 = vmul.f32 0.6931472, %v14705_v39  ;;  %7825 = vmatmul.mubr.bf16.gmra.mxu1 %v17683_v11  ;;  %9130 = vmatpush1.bf16.msra.mxu0 %v13692_v6  ;;  %v13682_v58 = vld [vmem:[#allocation7 + $0x136c] ss:$16 sps:$4 sm:$0xff]   ;;  %v13686_v39 = vld [vmem:[#allocation7 + $0x1328] ss:$16 sps:$4 sm:$0xff]  }
 0x672   : > { %v14707_v25 = vpop.eup %14706  ;;  %7933 = vmatpush1.bf16.msra.mxu1 %v13650_v14  ;;  %9131 = vmatprep.subr.bf16.mxu0 %v13697_v51  ;;  %v13685_v14 = vld [vmem:[#allocation7 + $0x134c] ss:$16 sps:$4 sm:$0xff]   ;;  %v13794_v6 = vld [vmem:[#allocation7 + $0x17c0] ss:$16 sps:$4 sm:$0xff]   ;;  %v13802_v51 = vld [vmem:[#allocation7 + $0x17a4] ss:$16 sps:$4 sm:$0xff]  }
 0x673   : > { %v6859_v44 = vmul.f32 0.01, %v6818_v48  ;;  %7934 = vmatprep.subr.bf16.mxu1 %v13655_v31  ;;  %v6820_v45 = vmul.f32 0.6931472, %v14707_v25  ;;  %v13683_v31 = vld [vmem:[#allocation7 + $0x1348] ss:$16 sps:$4 sm:$0xff]  }
 0x674   : > { %v14709_v23 = vpop.eup %14708  ;;  %v13688_v60 = vld [vmem:[#allocation7 + $0x132c] ss:$16 sps:$4 sm:$0xff]   ;;  %v13689_v48 = vld [vmem:[#allocation7 + $0x1308] ss:$16 sps:$4 sm:$0xff]   ;;  %v13703_v25 = vld [vmem:[#allocation7 + $0x1484] ss:$16 sps:$4 sm:$0xff]  }
 0x675   : > { %v14711_v56 = vpop.eup %14710  ;;  %v6891_v17 = vsel %vm6635_vm4, %v17612_v49, %v6859_v44  ;;  %v6826_v50 = vmul.f32 0.6931472, %v14709_v23  ;;  %v6860_v54 = vmul.f32 0.01, %v6820_v45  ;;  %9132 = vmatpush1.bf16.msra.mxu0 %v13695_v37  ;;  %v13691_v29 = vld [vmem:[#allocation7 + $0x130c] ss:$16 sps:$4 sm:$0xff]  }
 0x676   : > { %v17699_v4 = vpack.c.bf16 %v6891_v17, %v6887_v21  ;;  %7935 = vmatpush1.bf16.msra.mxu1 %v13653_v38  ;;  %v6828_v30 = vmul.f32 0.6931472, %v14711_v56  ;;  %v13701_v38 = vld [vmem:[#allocation7 + $0x1480] ss:$16 sps:$4 sm:$0xff]   ;;  %v13709_v45 = vld [vmem:[#allocation7 + $0x1444] ss:$16 sps:$4 sm:$0xff]  }
 0x677   : > { %v14713_v27 = vpop.eup %14712  ;;  %v6892_v18 = vsel %vm6636_vm6, %v17624_v0, %v6860_v54  ;;  %7936 = vmatprep.subr.bf16.mxu1 %v13658_v36  ;;  %v6863_v15 = vmul.f32 0.01, %v6826_v50  ;;  %7908 = vmatmul.mubr.bf16.gmra.mxu0 %v17495_v22  ;;  %v13706_v36 = vld [vmem:[#allocation7 + $0x1464] ss:$16 sps:$4 sm:$0xff]   ;;  %v13704_v44 = vld [vmem:[#allocation7 + $0x1460] ss:$16 sps:$4 sm:$0xff]  }
 0x678   : > { %v6834_v62 = vmul.f32 0.6931472, %v14713_v27  ;;  %v17704_v49 = vpack.c.bf16 %v6892_v18, %v6888_v5  ;;  %v6864_v28 = vmul.f32 0.01, %v6828_v30  ;;  %7917 = vmatprep.mubr.bf16.mxu0 %v17574_v8  ;;  %v13713_v23 = vld [vmem:[#allocation7 + $0x1400] ss:$16 sps:$4 sm:$0xff]  }
 0x679   : > { %v14715_v43 = vpop.eup %14714  ;;  %v6895_v0 = vsel %vm6639_vm7, %v17627_v2, %v6863_v15  ;;  %v13667_v2 = vld [vmem:[#allocation7 + $0x120c] ss:$16 sps:$4 sm:$0xff]   ;;  %v13718_v56 = vld [vmem:[#allocation7 + $0x15e4] ss:$16 sps:$4 sm:$0xff]   ;;  %v13716_v21 = vld [vmem:[#allocation7 + $0x15e0] ss:$16 sps:$4 sm:$0xff]  }
 0x67a   : > { %v6867_v3 = vmul.f32 0.01, %v6834_v62  ;;  %7834 = vmatprep.mubr.bf16.mxu1 %v17704_v49  ;;  %7937 = vmatpush1.bf16.msra.mxu1 %v13656_v7  ;;  %v6836_v63 = vmul.f32 0.6931472, %v14715_v43  ;;  %v6896_v9 = vsel %vm6640_vm9, %v17638_v35, %v6864_v28  ;;  %v13668_v35 = vld [vmem:[#allocation7 + $0x13e8] ss:$16 sps:$4 sm:$0xff]  }
 0x67b   : > { %7835 = vmatmul.mubr.bf16.gmra.mxu1 %v17699_v4  ;;  %7938 = vmatprep.subr.bf16.mxu1 %v13661_v53  ;;  %v13721_v17 = vld [vmem:[#allocation7 + $0x15c4] ss:$16 sps:$4 sm:$0xff]   ;;  %v13719_v50 = vld [vmem:[#allocation7 + $0x15c0] ss:$16 sps:$4 sm:$0xff]  }
 0x67c   : > { %v6899_v22 = vsel %vm6643_vm8, %v17647_v33, %v6867_v3  ;;  %v6868_v16 = vmul.f32 0.01, %v6836_v63  ;;  %v13670_v33 = vld [vmem:[#allocation7 + $0x13ec] ss:$16 sps:$4 sm:$0xff]   ;;  %v13724_v54 = vld [vmem:[#allocation7 + $0x15a4] ss:$16 sps:$4 sm:$0xff]  }
 0x67d   : > { %v17715_v61 = vpack.c.bf16 %v6899_v22, %v6895_v0  ;;  %v13727_v7 = vld [vmem:[#allocation7 + $0x1584] ss:$16 sps:$4 sm:$0xff]   ;;  %v13725_v30 = vld [vmem:[#allocation7 + $0x1580] ss:$16 sps:$4 sm:$0xff]   ;;  %v13745_v63 = vld [vmem:[#allocation7 + $0x14ec] ss:$16 sps:$4 sm:$0xff]  }
 0x67e   : > { %7939 = vmatpush1.bf16.msra.mxu1 %v13659_v34  ;;  %v6900_v26 = vsel %vm6644_vm10, %v17649_v20, %v6868_v16  ;;  %v13673_v20 = vld [vmem:[#allocation7 + $0x13cc] ss:$16 sps:$4 sm:$0xff]   ;;  %v13730_v27 = vld [vmem:[#allocation7 + $0x1564] ss:$16 sps:$4 sm:$0xff]   ;;  %v13728_v5 = vld [vmem:[#allocation7 + $0x1560] ss:$16 sps:$4 sm:$0xff]  }
 0x67f   : > { %v17720_v8 = vpack.c.bf16 %v6900_v26, %v6896_v9  ;;  %7940 = vmatprep.subr.bf16.mxu1 %v13664_v19  ;;  %7918 = vmatmul.mubr.bf16.gmra.mxu0 %v17550_v10  ;;  %v13674_v10 = vld [vmem:[#allocation7 + $0x13a8] ss:$16 sps:$4 sm:$0xff]   ;;  %v13733_v18 = vld [vmem:[#allocation7 + $0x1544] ss:$16 sps:$4 sm:$0xff]   ;;  %v13731_v15 = vld [vmem:[#allocation7 + $0x1540] ss:$16 sps:$4 sm:$0xff]  }
 0x680   : > { %v13736_v62 = vld [vmem:[#allocation7 + $0x1524] ss:$16 sps:$4 sm:$0xff]   ;;  %v13737_v43 = vld [vmem:[#allocation7 + $0x1500] ss:$16 sps:$4 sm:$0xff]  }
 0x681   : > { %7844 = vmatprep.mubr.bf16.mxu1 %v17720_v8  ;;  %v13739_v53 = vld [vmem:[#allocation7 + $0x1504] ss:$16 sps:$4 sm:$0xff]   ;;  %v13740_v3 = vld [vmem:[#allocation7 + $0x16e0] ss:$16 sps:$4 sm:$0xff]  }
 0x682   : > { %7941 = vmatpush1.bf16.msra.mxu1 %v13662_v47  ;;  %v13742_v34 = vld [vmem:[#allocation7 + $0x16e4] ss:$16 sps:$4 sm:$0xff]   ;;  %v13746_v19 = vld [vmem:[#allocation7 + $0x16c0] ss:$16 sps:$4 sm:$0xff]  }
 0x683   : > { %7845 = vmatmul.mubr.bf16.gmra.mxu1 %v17715_v61  ;;  %7942 = vmatprep.subr.bf16.mxu1 %v13667_v2  ;;  %v13748_v28 = vld [vmem:[#allocation7 + $0x16c4] ss:$16 sps:$4 sm:$0xff]   ;;  %v13752_v22 = vld [vmem:[#allocation7 + $0x16a0] ss:$16 sps:$4 sm:$0xff]  }
 0x684   : > { %7960 = vmatprep.mubr.bf16.mxu1 %v17672_v41  ;;  %v13700_v41 = vld [vmem:[#allocation7 + $0x14a4] ss:$16 sps:$4 sm:$0xff]   ;;  %v13764_v26 = vld [vmem:[#allocation7 + $0x1660] ss:$16 sps:$4 sm:$0xff]  }
 0x685   : > { %9133 = vmatprep.subr.bf16.mxu0 %v13700_v41  ;;  %v13754_v0 = vld [vmem:[#allocation7 + $0x16a4] ss:$16 sps:$4 sm:$0xff]   ;;  %v13806_v41 = vld [vmem:[#allocation7 + $0x1780] ss:$16 sps:$4 sm:$0xff]  }
 0x686   : > { %7943 = vmatpush1.bf16.msra.mxu1 %v13665_v12  ;;  %9134 = vmatpush1.bf16.msra.mxu0 %v13698_v57  ;;  %v13760_v16 = vld [vmem:[#allocation7 + $0x1684] ss:$16 sps:$4 sm:$0xff]   ;;  %v13776_v12 = vld [vmem:[#allocation7 + $0x1620] ss:$16 sps:$4 sm:$0xff]  }
 0x687   : > { %7944 = vmatprep.subr.bf16.mxu1 %v13670_v33  ;;  %9135 = vmatprep.subr.bf16.mxu0 %v13703_v25  ;;  %v13766_v9 = vld [vmem:[#allocation7 + $0x1664] ss:$16 sps:$4 sm:$0xff]   ;;  %v17733_v25 = vld [vmem:[#allocation8 + $0x10] sm:$0xf] }
 0x688   : > { %v13772_v47 = vld [vmem:[#allocation7 + $0x1644] ss:$16 sps:$4 sm:$0xff]  }
 0x689   : > { %v13778_v2 = vld [vmem:[#allocation7 + $0x1624] ss:$16 sps:$4 sm:$0xff]  }
 0x68a   : > { %7945 = vmatpush2.bf16.msra.mxu1 %v13668_v35  ;;  %9136 = vmatpush1.bf16.msra.mxu0 %v13701_v38  ;;  %v13784_v33 = vld [vmem:[#allocation7 + $0x1604] ss:$16 sps:$4 sm:$0xff]   ;;  %v13782_v35 = vld [vmem:[#allocation7 + $0x1600] ss:$16 sps:$4 sm:$0xff]  }
 0x68b   : > { %7946 = vmatprep.subr.bf16.mxu1 %v13673_v20  ;;  %9137 = vmatprep.subr.bf16.mxu0 %v13706_v36  ;;  %v13790_v20 = vld [vmem:[#allocation7 + $0x17e4] ss:$16 sps:$4 sm:$0xff]   ;;  %v13830_v36 = vld [vmem:[#allocation7 + $0x1700] ss:$16 sps:$4 sm:$0xff]  }
 0x68c   : > { %v13814_v57 = vld [vmem:[#allocation7 + $0x1764] ss:$16 sps:$4 sm:$0xff]  }
 0x68d   : > { %v13832_v38 = vld [vmem:[#allocation7 + $0x1704] ss:$16 sps:$4 sm:$0xff]  }
 0x68e   : > { %7947 = vmatpush2.bf16.msra.mxu1 %v13671_v32  ;;  %9138 = vmatpush1.bf16.msra.mxu0 %v13704_v44  ;;  %v13788_v32 = vld [vmem:[#allocation7 + $0x17e0] ss:$16 sps:$4 sm:$0xff]  }
 0x68f   : > { %7948 = vmatprep.subr.bf16.mxu1 %v13676_v1  ;;  %9139 = vmatprep.subr.bf16.mxu0 %v13709_v45  ;;  %v13796_v1 = vld [vmem:[#allocation7 + $0x17c4] ss:$16 sps:$4 sm:$0xff]  }
 0x690   : > { %v19273_v45 = vld [vmem:[#allocation19_spill] sm:$0xff] }
 0x692   : > { %7949 = vmatpush2.bf16.msra.mxu1 %v13674_v10  ;;  %v13800_v10 = vld [vmem:[#allocation7 + $0x17a0] ss:$16 sps:$4 sm:$0xff]  }
 0x693   : > { %7950 = vmatprep.subr.bf16.mxu1 %v13679_v55  ;;  %v13808_v55 = vld [vmem:[#allocation7 + $0x1784] ss:$16 sps:$4 sm:$0xff]  }
 0x696   : > { %7951 = vmatpush2.bf16.msra.mxu1 %v13677_v40 }
 0x697   : > { %7952 = vmatprep.subr.bf16.mxu1 %v13682_v58  ;;  %v13812_v58 = vld [vmem:[#allocation7 + $0x1760] ss:$16 sps:$4 sm:$0xff]  }
 0x69a   : > { %7953 = vmatpush2.bf16.msra.mxu1 %v13680_v59 }
 0x69b   : > { %7954 = vmatprep.subr.bf16.mxu1 %v13685_v14  ;;  %v13820_v14 = vld [vmem:[#allocation7 + $0x1744] ss:$16 sps:$4 sm:$0xff]  }
 0x69e   : > { %7955 = vmatpush2.bf16.msra.mxu1 %v13683_v31  ;;  %v13818_v31 = vld [vmem:[#allocation7 + $0x1740] ss:$16 sps:$4 sm:$0xff]  }
 0x69f   : > { %7956 = vmatprep.subr.bf16.mxu1 %v13688_v60 }
 0x6a2   : > { %7957 = vmatpush2.bf16.msra.mxu1 %v13686_v39  ;;  %v13826_v39 = vld [vmem:[#allocation7 + $0x1724] ss:$16 sps:$4 sm:$0xff]  }
 0x6a3   : > { %7958 = vmatprep.subr.bf16.mxu1 %v13691_v29  ;;  %v13824_v29 = vld [vmem:[#allocation7 + $0x1720] ss:$16 sps:$4 sm:$0xff]  }
 0x6a6   : > { %7959 = vmatpush2.bf16.msra.mxu1 %v13689_v48 }
 0x6a7   : > { %9202 = vmatprep.subr.bf16.mxu1 %v13742_v34 }
 0x6a9   : > { %7961 = vmatmul.mubr.bf16.vlgmr.msra.gmra.mxu1 %v17666_v13  ;;  %v13707_v13 = vld [vmem:[#allocation7 + $0x1440] ss:$16 sps:$4 sm:$0xff]  }
 0x6aa   : > { %7970 = vmatprep.mubr.bf16.mxu1 %v17688_v46  ;;  %9140 = vmatpush1.bf16.msra.mxu0 %v13707_v13  ;;  %v13712_v46 = vld [vmem:[#allocation7 + $0x1424] ss:$16 sps:$4 sm:$0xff]   ;;  %v17737_v13 = vrot.slane %v17733_v25, %v19273_v45 }
 0x6ab   : > { %9141 = vmatprep.subr.bf16.mxu0 %v13712_v46  ;;  %9203 = vmatpush1.bf16.msra.mxu1 %v13740_v3  ;;  %v13838_v46 = vld [vmem:[#allocation7 + $0x16ec] ss:$16 sps:$4 sm:$0xff]  }
 0x6ac   : > { %9204 = vmatprep.subr.bf16.mxu1 %v13748_v28 }
 0x6af   : > { %9205 = vmatpush1.bf16.msra.mxu1 %v13746_v19 }
 0x6b0   : > { %9206 = vmatprep.subr.bf16.mxu1 %v13754_v0 }
 0x6b1   : > { %7971 = vmatmul.mubr.bf16.gmra.mxu1 %v17683_v11  ;;  %v13710_v11 = vld [vmem:[#allocation7 + $0x1420] ss:$16 sps:$4 sm:$0xff]  }
 0x6b2   : > { %7980 = vmatprep.mubr.bf16.mxu1 %v17704_v49  ;;  %9142 = vmatpush1.bf16.msra.mxu0 %v13710_v11  ;;  %v13734_v49 = vld [vmem:[#allocation7 + $0x1520] ss:$16 sps:$4 sm:$0xff]   ;;  %v19274_v11 = vld [vmem:[#allocation21_spill] sm:$0xff] }
 0x6b3   : > { %9143 = vmatprep.subr.bf16.mxu0 %v13715_v24  ;;  %9207 = vmatpush1.bf16.msra.mxu1 %v13752_v22  ;;  %v17741_v24 = vrot.slane %v17733_v25, %v19274_v11 }
 0x6b4   : > { %9208 = vmatprep.subr.bf16.mxu1 %v13760_v16 }
 0x6b6   : > { %9144 = vmatpush1.bf16.msra.mxu0 %v13713_v23 }
 0x6b7   : > { %9145 = vmatprep.subr.bf16.mxu0 %v13718_v56 }
 0x6b9   : > { %7981 = vmatmul.mubr.bf16.gmra.mxu1 %v17699_v4  ;;  %v13722_v4 = vld [vmem:[#allocation7 + $0x15a0] ss:$16 sps:$4 sm:$0xff]  }
 0x6ba   : > { %7990 = vmatprep.mubr.bf16.mxu1 %v17720_v8  ;;  %9146 = vmatpush2.bf16.msra.mxu0 %v13716_v21  ;;  %v13770_v8 = vld [vmem:[#allocation7 + $0x1640] ss:$16 sps:$4 sm:$0xff]  }
 0x6bb   : > { %9147 = vmatprep.subr.bf16.mxu0 %v13721_v17 }
 0x6be   : > { %9148 = vmatpush2.bf16.msra.mxu0 %v13719_v50 }
 0x6bf   : > { %9149 = vmatprep.subr.bf16.mxu0 %v13724_v54 }
 0x6c1   : > { %7991 = vmatmul.mubr.bf16.gmra.mxu1 %v17715_v61  ;;  %v13758_v61 = vld [vmem:[#allocation7 + $0x1680] ss:$16 sps:$4 sm:$0xff]  }
 0x6c2   : > { %9150 = vmatpush2.bf16.msra.mxu0 %v13722_v4  ;;  %9209 = vmatpush1.bf16.msra.mxu1 %v13758_v61 }
 0x6c3   : > { %9151 = vmatprep.subr.bf16.mxu0 %v13727_v7  ;;  %9210 = vmatprep.subr.bf16.mxu1 %v13766_v9 }
 0x6c6   : > { %9152 = vmatpush2.bf16.msra.mxu0 %v13725_v30  ;;  %9211 = vmatpush1.bf16.msra.mxu1 %v13764_v26 }
 0x6c7   : > { %9153 = vmatprep.subr.bf16.mxu0 %v13730_v27  ;;  %9212 = vmatprep.subr.bf16.mxu1 %v13772_v47 }
 0x6ca   : > { %9154 = vmatpush2.bf16.msra.mxu0 %v13728_v5  ;;  %9213 = vmatpush1.bf16.msra.mxu1 %v13770_v8 }
 0x6cb   : > { %9155 = vmatprep.subr.bf16.mxu0 %v13733_v18  ;;  %9214 = vmatprep.subr.bf16.mxu1 %v13778_v2 }
 0x6ce   : > { %9156 = vmatpush2.bf16.msra.mxu0 %v13731_v15  ;;  %9215 = vmatpush1.bf16.msra.mxu1 %v13776_v12 }
 0x6cf   : > { %9157 = vmatprep.subr.bf16.mxu0 %v13736_v62  ;;  %9216 = vmatprep.subr.bf16.mxu1 %v13784_v33 }
 0x6d2   : > { %9158 = vmatpush2.bf16.msra.mxu0 %v13734_v49  ;;  %9217 = vmatpush1.bf16.msra.mxu1 %v13782_v35 }
 0x6d3   : > { %9159 = vmatprep.subr.bf16.mxu0 %v13739_v53  ;;  %9218 = vmatprep.subr.bf16.mxu1 %v13790_v20 }
 0x6d6   : > { %9160 = vmatpush2.bf16.msra.mxu0 %v13737_v43  ;;  %9219 = vmatpush2.bf16.msra.mxu1 %v13788_v32 }
 0x6d7   : > { %9275 = vmatprep.subr.bf16.mxu0 %v13745_v63  ;;  %9220 = vmatprep.subr.bf16.mxu1 %v13796_v1 }
 0x6da   : > { %9221 = vmatpush2.bf16.msra.mxu1 %v13794_v6 }
 0x6db   : > { %9222 = vmatprep.subr.bf16.mxu1 %v13802_v51 }
 0x6de   : > { %9223 = vmatpush2.bf16.msra.mxu1 %v13800_v10 }
 0x6df   : > { %9224 = vmatprep.subr.bf16.mxu1 %v13808_v55 }
 0x6e2   : > { %9225 = vmatpush2.bf16.msra.mxu1 %v13806_v41 }
 0x6e3   : > { %9226 = vmatprep.subr.bf16.mxu1 %v13814_v57 }
 0x6e6   : > { %v7743_v52 = vpop.f32.mrf.mxu0  ;;  %9227 = vmatpush2.bf16.msra.mxu1 %v13812_v58 }
 0x6e7   : > { %9228 = vmatprep.subr.bf16.mxu1 %v13820_v14  ;;  %v7744_v56 = vadd.f32 %v7743_v52, %v17737_v13 }
 0x6e8   : > { %v7745_v37 = vpop.f32.mrf.mxu0 }
 0x6e9   : > { %v7746_v17 = vadd.f32 %v7745_v37, %v17741_v24 }
 0x6ea   : > { %v7747_v40 = vpop.f32.mrf.mxu0  ;;  %9229 = vmatpush2.bf16.msra.mxu1 %v13818_v31 }
 0x6eb   : > { %9230 = vmatprep.subr.bf16.mxu1 %v13826_v39  ;;  %v7748_v7 = vadd.f32 %v7747_v40, %v17737_v13 }
 0x6ec   : > { %v7749_v59 = vpop.f32.mrf.mxu0 }
 0x6ed   : > { %v7750_v49 = vadd.f32 %v7749_v59, %v17741_v24 }
 0x6ee   : > { %v7753_v60 = vpop.f32.mrf.mxu0  ;;  %9231 = vmatpush2.bf16.msra.mxu1 %v13824_v29 }
 0x6ef   : > { %9232 = vmatprep.subr.bf16.mxu1 %v13832_v38  ;;  %v7754_v28 = vadd.f32 %v7753_v60, %v17737_v13 }
 0x6f0   : > { %v7755_v48 = vpop.f32.mrf.mxu0 }
 0x6f1   : > { %v7756_v61 = vadd.f32 %v7755_v48, %v17741_v24 }
 0x6f2   : > { %v7757_v44 = vpop.f32.mrf.mxu0  ;;  %9233 = vmatpush2.bf16.msra.mxu1 %v13830_v36 }
 0x6f3   : > { %9348 = vmatprep.subr.bf16.mxu1 %v13838_v46  ;;  %v7758_v20 = vadd.f32 %v7757_v44, %v17737_v13 }
 0x6f4   : > { %v7759_v23 = vpop.f32.mrf.mxu0 }
 0x6f5   : > { %v7760_v10 = vadd.f32 %v7759_v23, %v17741_v24 }
 0x6f7   : > { %v7763_v54 = vpop.f32.mrf.mxu0 }
 0x6f8   : > { %v7764_v59 = vadd.f32 %v7763_v54, %v17737_v13 }
 0x6f9   : > { %v7765_v53 = vpop.f32.mrf.mxu0 }
 0x6fa   : > { %v7766_v48 = vadd.f32 %v7765_v53, %v17741_v24 }
 0x6fb   : > { %v7767_v9 = vpop.f32.mrf.mxu0 }
 0x6fd   : > { %v7769_v1 = vpop.f32.mrf.mxu0 }
 0x701   : > { %v7773_v14 = vpop.f32.mrf.mxu0 }
 0x728   : > { %v7816_v21 = vpop.f32.mrf.mxu1 }
 0x729   : > { %v17745_v50 = vadd.f32 %v7816_v21, %v7744_v56  ;;  %v7768_v56 = vadd.f32 %v7767_v9, %v17737_v13  ;;  %v7775_v21 = vpop.f32.mrf.mxu0 }
 0x72a   : > { %v7818_v4 = vpop.f32.mrf.mxu1 }
 0x72b   : > { %v17749_v30 = vmul.f32 100.0, %v17745_v50  ;;  %v17751_v27 = vadd.f32 %v7818_v4, %v7746_v17 }
 0x72c   : > { %v7820_v5 = vpop.f32.mrf.mxu1 }
 0x72d   : > { %v8065_v18 = vmin.f32 %v17749_v30, 20.0  ;;  %v17755_v15 = vmul.f32 100.0, %v17751_v27  ;;  %v17757_v62 = vadd.f32 %v7820_v5, %v7748_v7  ;;  %vm8033_vm13 = vcmp.gt.f32.partialorder %v17749_v30, 20.0 }
 0x72e   : > { %v7822_v43 = vpop.f32.mrf.mxu1 }
 0x72f   : > { %v8097_v34 = vmul.f32 1.442695, %v8065_v18  ;;  %v8066_v3 = vmin.f32 %v17755_v15, 20.0  ;;  %v17762_v63 = vmul.f32 100.0, %v17757_v62  ;;  %v17765_v19 = vadd.f32 %v7822_v43, %v7750_v49 }
 0x730   : > { %vm8034_vm2 = vcmp.gt.f32.partialorder %v17755_v15, 20.0 }
 0x731   : > { %14716 = vpow2.f32 %v8097_v34  ;;  %v8099_v0 = vmul.f32 1.442695, %v8066_v3  ;;  %v8069_v22 = vmin.f32 %v17762_v63, 20.0  ;;  %v7826_v16 = vpop.f32.mrf.mxu1  ;;  %v17770_v26 = vmul.f32 100.0, %v17765_v19 }
 0x732   : > { %v17772_v47 = vadd.f32 %v7826_v16, %v7754_v28  ;;  %v7770_v34 = vadd.f32 %v7769_v1, %v17741_v24  ;;  %v7777_v16 = vpop.f32.mrf.mxu0  ;;  %vm8037_vm11 = vcmp.gt.f32.partialorder %v17762_v63, 20.0 }
 0x733   : > { %14718 = vpow2.f32 %v8099_v0  ;;  %v8105_v8 = vmul.f32 1.442695, %v8069_v22  ;;  %v7828_v2 = vpop.f32.mrf.mxu1  ;;  %v8070_v12 = vmin.f32 %v17770_v26, 20.0  ;;  %v7774_v22 = vadd.f32 %v7773_v14, %v17737_v13 }
 0x734   : > { %v17776_v33 = vmul.f32 100.0, %v17772_v47  ;;  %v17778_v35 = vadd.f32 %v7828_v2, %v7756_v61  ;;  %vm8038_vm12 = vcmp.gt.f32.partialorder %v17770_v26, 20.0 }
 0x735   : > { %14720 = vpow2.f32 %v8105_v8  ;;  %v7830_v32 = vpop.f32.mrf.mxu1  ;;  %v8107_v6 = vmul.f32 1.442695, %v8070_v12 }
 0x736   : > { %v8073_v52 = vmin.f32 %v17776_v33, 20.0  ;;  %v17783_v51 = vmul.f32 100.0, %v17778_v35  ;;  %v17786_v37 = vadd.f32 %v7830_v32, %v7758_v20  ;;  %v7776_v32 = vadd.f32 %v7775_v21, %v17741_v24 }
 0x737   : > { %v7832_v55 = vpop.f32.mrf.mxu1  ;;  %14722 = vpow2.f32 %v8107_v6  ;;  %vm8041_vm1 = vcmp.gt.f32.partialorder %v17776_v33, 20.0  ;;  %v13761_v33 = vld [vmem:[#allocation7 + $0x1488] ss:$16 sps:$4 sm:$0xff]  }
 0x738   : > { %v8113_v41 = vmul.f32 1.442695, %v8073_v52  ;;  %v8074_v40 = vmin.f32 %v17783_v51, 20.0  ;;  %v17790_v57 = vmul.f32 100.0, %v17786_v37  ;;  %v17792_v58 = vadd.f32 %v7832_v55, %v7760_v10 }
 0x739   : > { %vm8042_vm14 = vcmp.gt.f32.partialorder %v17783_v51, 20.0 }
 0x73a   : > { %14724 = vpow2.f32 %v8113_v41  ;;  %v8115_v31 = vmul.f32 1.442695, %v8074_v40  ;;  %v8077_v60 = vmin.f32 %v17790_v57, 20.0  ;;  %v17797_v39 = vmul.f32 100.0, %v17792_v58  ;;  %v7779_v40 = vpop.f32.mrf.mxu0 }
 0x73b   : > { %v7836_v29 = vpop.f32.mrf.mxu1  ;;  %vm8045_vm15 = vcmp.gt.f32.partialorder %v17790_v57, 20.0 }
 0x73c   : > { %14726 = vpow2.f32 %v8115_v31  ;;  %v17800_v38 = vadd.f32 %v7836_v29, %v7764_v59  ;;  %v8121_v36 = vmul.f32 1.442695, %v8077_v60  ;;  %v8078_v44 = vmin.f32 %v17797_v39, 20.0 }
 0x73d   : > { %v7838_v46 = vpop.f32.mrf.mxu1  ;;  %v7778_v29 = vadd.f32 %v7777_v16, %v17737_v13  ;;  %v7780_v13 = vadd.f32 %v7779_v40, %v17741_v24  ;;  %vm8046_vm0 = vcmp.gt.f32.partialorder %v17797_v39, 20.0 }
 0x73e   : > { %v14717_v23 = vpop.eup %14716  ;;  %v17805_v17 = vmul.f32 100.0, %v17800_v38  ;;  %v17807_v54 = vadd.f32 %v7838_v46, %v7766_v48  ;;  %14728 = vpow2.f32 %v8121_v36  ;;  %v8123_v7 = vmul.f32 1.442695, %v8078_v44  ;;  %v17837_v46 = vpop.f32.mrf.mxu0 }
 0x73f   : > { %v8161_v4 = vadd.f32 1.0, %v14717_v23  ;;  %v7840_v5 = vpop.f32.mrf.mxu1 }
 0x740   : > { %v14719_v18 = vpop.eup %14718  ;;  %v8081_v49 = vmin.f32 %v17805_v17, 20.0  ;;  %v17811_v53 = vmul.f32 100.0, %v17807_v54  ;;  %v17813_v43 = vadd.f32 %v7840_v5, %v7768_v56  ;;  %vm8049_vm5 = vcmp.gt.f32.partialorder %v17805_v17, 20.0 }
 0x741   : > { %14730 = vlog2.f32 %v8161_v4  ;;  %v8162_v3 = vadd.f32 1.0, %v14719_v18  ;;  %v7842_v28 = vpop.f32.mrf.mxu1 }
 0x742   : > { %v14721_v0 = vpop.eup %14720  ;;  %14732 = vpow2.f32 %v8123_v7  ;;  %v8129_v61 = vmul.f32 1.442695, %v8081_v49  ;;  %v8082_v9 = vmin.f32 %v17811_v53, 20.0  ;;  %v17819_v2 = vmul.f32 100.0, %v17813_v43 }
 0x743   : > { %14734 = vlog2.f32 %v8162_v3  ;;  %v8165_v8 = vadd.f32 1.0, %v14721_v0  ;;  %v17821_v12 = vadd.f32 %v7842_v28, %v7770_v34  ;;  %v7846_v20 = vpop.f32.mrf.mxu1  ;;  %vm8050_vm6 = vcmp.gt.f32.partialorder %v17811_v53, 20.0 }
 0x744   : > { %14736 = vpow2.f32 %v8129_v61  ;;  %v8131_v1 = vmul.f32 1.442695, %v8082_v9  ;;  %v17824_v6 = vadd.f32 %v7846_v20, %v7774_v22  ;;  %v14723_v52 = vpop.eup %14722  ;;  %v8085_v10 = vmin.f32 %v17819_v2, 20.0  ;;  %v17850_v22 = vpop.f32.mrf.mxu0 }
 0x745   : > { %14738 = vlog2.f32 %v8165_v8  ;;  %v17828_v55 = vmul.f32 100.0, %v17821_v12  ;;  %v7848_v41 = vpop.f32.mrf.mxu1  ;;  %v8166_v59 = vadd.f32 1.0, %v14723_v52  ;;  %vm8053_vm3 = vcmp.gt.f32.partialorder %v17819_v2, 20.0 }
 0x746   : > { %14740 = vpow2.f32 %v8131_v1  ;;  %v17831_v14 = vmul.f32 100.0, %v17824_v6  ;;  %v17833_v31 = vadd.f32 %v7848_v41, %v7776_v32  ;;  %v8137_v48 = vmul.f32 1.442695, %v8085_v10  ;;  %v17858_v52 = vpop.f32.mrf.mxu0 }
 0x747   : > { %v14725_v60 = vpop.eup %14724  ;;  %v8086_v36 = vmin.f32 %v17828_v55, 20.0  ;;  %v7850_v44 = vpop.f32.mrf.mxu1  ;;  %14742 = vlog2.f32 %v8166_v59  ;;  %vm8054_vm4 = vcmp.gt.f32.partialorder %v17828_v55, 20.0 }
 0x748   : > { %v8169_v23 = vadd.f32 1.0, %v14725_v60  ;;  %v8089_v56 = vmin.f32 %v17831_v14, 20.0  ;;  %14744 = vpow2.f32 %v8137_v48  ;;  %v17841_v7 = vmul.f32 100.0, %v17833_v31 }
 0x749   : > { %v14727_v21 = vpop.eup %14726  ;;  %v8139_v4 = vmul.f32 1.442695, %v8086_v36  ;;  %v17843_v5 = vadd.f32 %v7850_v44, %v7778_v29  ;;  %v7852_v18 = vpop.f32.mrf.mxu1  ;;  %vm8057_vm7 = vcmp.gt.f32.partialorder %v17831_v14, 20.0 }
 0x74a   : > { %v8170_v49 = vadd.f32 1.0, %v14727_v21  ;;  %v8145_v34 = vmul.f32 1.442695, %v8089_v56  ;;  %v8090_v3 = vmin.f32 %v17841_v7, 20.0  ;;  %v17852_v16 = vadd.f32 %v7852_v18, %v7780_v13  ;;  %v17861_v21 = vpop.f32.mrf.mxu0 }
 0x74b   : > { %14746 = vpow2.f32 %v8139_v4  ;;  %v17848_v28 = vmul.f32 100.0, %v17843_v5  ;;  %v14729_v0 = vpop.eup %14728  ;;  %vm8058_vm8 = vcmp.gt.f32.partialorder %v17841_v7, 20.0 }
 0x74c   : > { %14748 = vlog2.f32 %v8170_v49  ;;  %v8173_v61 = vadd.f32 1.0, %v14729_v0  ;;  %v8147_v9 = vmul.f32 1.442695, %v8090_v3  ;;  %v17856_v20 = vmul.f32 100.0, %v17852_v16 }
 0x74d   : > { %14750 = vlog2.f32 %v8169_v23  ;;  %v8093_v24 = vmin.f32 %v17848_v28, 20.0  ;;  %vm8061_vm9 = vcmp.gt.f32.partialorder %v17848_v28, 20.0 }
 0x74e   : > { %v14731_v8 = vpop.eup %14730  ;;  %14752 = vpow2.f32 %v8145_v34  ;;  %v8094_v59 = vmin.f32 %v17856_v20, 20.0  ;;  %vm8062_vm10 = vcmp.gt.f32.partialorder %v17856_v20, 20.0  ;;  %v13791_v20 = vld [vmem:[#allocation7 + $0x15e8] ss:$16 sps:$4 sm:$0xff]  }
 0x74f   : > { %v14733_v32 = vpop.eup %14732  ;;  %14754 = vlog2.f32 %v8173_v61  ;;  %v8153_v41 = vmul.f32 1.442695, %v8093_v24  ;;  %v8194_v29 = vmul.f32 0.6931472, %v14731_v8  ;;  %v17865_v8 = vpop.f32.mrf.mxu0 }
 0x750   : > { %v14735_v1 = vpop.eup %14734  ;;  %v8174_v10 = vadd.f32 1.0, %v14733_v32  ;;  %14756 = vpow2.f32 %v8147_v9  ;;  %v8155_v56 = vmul.f32 1.442695, %v8094_v59 }
 0x751   : > { %v14737_v40 = vpop.eup %14736  ;;  %v8196_v48 = vmul.f32 0.6931472, %v14735_v1  ;;  %v8257_v0 = vmul.f32 0.01, %v8194_v29  ;;  %v13743_v29 = vld [vmem:[#allocation7 + $0x14e8] ss:$16 sps:$4 sm:$0xff]   ;;  %v17877_v26 = vpop.f32.mrf.mxu0 }
 0x752   : > { %v14739_v60 = vpop.eup %14738  ;;  %14758 = vlog2.f32 %v8174_v10  ;;  %v8177_v23 = vadd.f32 1.0, %v14737_v40 }
 0x753   : > { %v14741_v36 = vpop.eup %14740  ;;  %v8202_v44 = vmul.f32 0.6931472, %v14739_v60  ;;  %14760 = vpow2.f32 %v8153_v41  ;;  %v8258_v3 = vmul.f32 0.01, %v8196_v48  ;;  %v8289_v63 = vsel %vm8033_vm13, %v17745_v50, %v8257_v0  ;;  %v13757_v0 = vld [vmem:[#allocation7 + $0x14ac] ss:$16 sps:$4 sm:$0xff]  }
 0x754   : > { %v8178_v4 = vadd.f32 1.0, %v14741_v36  ;;  %v14743_v18 = vpop.eup %14742  ;;  %14762 = vpow2.f32 %v8155_v56  ;;  %v13751_v36 = vld [vmem:[#allocation7 + $0x14cc] ss:$16 sps:$4 sm:$0xff]  }
 0x755   : > { %v8261_v13 = vmul.f32 0.01, %v8202_v44  ;;  %v14745_v49 = vpop.eup %14744  ;;  %v8204_v34 = vmul.f32 0.6931472, %v14743_v18  ;;  %v8290_v40 = vsel %vm8034_vm2, %v17751_v27, %v8258_v3  ;;  %v13749_v18 = vld [vmem:[#allocation7 + $0x14c8] ss:$16 sps:$4 sm:$0xff]  }
 0x756   : > { %14764 = vlog2.f32 %v8178_v4  ;;  %v8181_v61 = vadd.f32 1.0, %v14745_v49  ;;  %v7903_v49 = vpop.f32.mrf.mxu0 }
 0x757   : > { %14766 = vlog2.f32 %v8177_v23  ;;  %v8262_v24 = vmul.f32 0.01, %v8204_v34  ;;  %v8293_v1 = vsel %vm8037_vm11, %v17757_v62, %v8261_v13 }
 0x758   : > { %v14747_v9 = vpop.eup %14746  ;;  %14768 = vlog2.f32 %v8181_v61  ;;  %v17875_v62 = vpack.c.bf16 %v8293_v1, %v8289_v63  ;;  %v19275_v61 = vld [vmem:[#allocation20_spill] sm:$0xff]  ;;  %v7905_v51 = vpop.f32.mrf.mxu0 }
 0x759   : > { %v14749_v32 = vpop.eup %14748  ;;  %v8182_v10 = vadd.f32 1.0, %v14747_v9  ;;  %v8294_v59 = vsel %vm8038_vm12, %v17765_v19, %v8262_v24  ;;  %v17883_v9 = vrot.slane %v17733_v25, %v19275_v61 }
 0x75a   : > { %v14751_v41 = vpop.eup %14750  ;;  %v17873_v60 = vpack.c.bf16 %v8294_v59, %v8290_v40  ;;  %v8212_v44 = vmul.f32 0.6931472, %v14749_v32 }
 0x75b   : > { %v14753_v15 = vpop.eup %14752  ;;  %14770 = vlog2.f32 %v8182_v10  ;;  %v8210_v30 = vmul.f32 0.6931472, %v14751_v41 }
 0x75c   : > { %v14755_v48 = vpop.eup %14754  ;;  %9161 = vmatprep.mubr.bf16.mxu0 %v17873_v60  ;;  %v8185_v27 = vadd.f32 1.0, %v14753_v15  ;;  %v8266_v3 = vmul.f32 0.01, %v8212_v44  ;;  %v13755_v15 = vld [vmem:[#allocation7 + $0x14a8] ss:$16 sps:$4 sm:$0xff]  }
 0x75d   : > { %v14757_v23 = vpop.eup %14756  ;;  %v8218_v56 = vmul.f32 0.6931472, %v14755_v48  ;;  %9162 = vmatmul.mubr.bf16.vlgmr.msra.gmra.mxu0 %v17875_v62  ;;  %v8265_v24 = vmul.f32 0.01, %v8210_v30 }
 0x75e   : > { %v8186_v19 = vadd.f32 1.0, %v14757_v23  ;;  %9276 = vmatpush1.bf16.msra.mxu0 %v13743_v29  ;;  %v17891_v29 = vrot.slane %v17733_v25, %v19262_v42  ;;  %v8298_v57 = vsel %vm8042_vm14, %v17778_v35, %v8266_v3 }
 0x75f   : > { %v14759_v50 = vpop.eup %14758  ;;  %v8269_v4 = vmul.f32 0.01, %v8218_v56  ;;  %9277 = vmatprep.subr.bf16.mxu0 %v13751_v36  ;;  %v8297_v39 = vsel %vm8041_vm1, %v17772_v47, %v8265_v24  ;;  %v17920_v24 = vadd.f32 %v7903_v49, %v17883_v9  ;;  %v13775_v49 = vld [vmem:[#allocation7 + $0x144c] ss:$16 sps:$4 sm:$0xff]  }
 0x760   : > { %v14761_v13 = vpop.eup %14760  ;;  %v8220_v34 = vmul.f32 0.6931472, %v14759_v50  ;;  %14772 = vlog2.f32 %v8186_v19  ;;  %v7892_v47 = vadd.f32 %v17850_v22, %v17891_v29  ;;  %v13769_v19 = vld [vmem:[#allocation7 + $0x146c] ss:$16 sps:$4 sm:$0xff]   ;;  %v7894_v50 = vadd.f32 %v17858_v52, %v17883_v9 }
 0x761   : > { %v8189_v32 = vadd.f32 1.0, %v14761_v13  ;;  %v14763_v1 = vpop.eup %14762  ;;  %14774 = vlog2.f32 %v8185_v27  ;;  %v8301_v40 = vsel %vm8045_vm15, %v17786_v37, %v8269_v4  ;;  %v13763_v37 = vld [vmem:[#allocation7 + $0x148c] ss:$16 sps:$4 sm:$0xff]   ;;  %v7909_v27 = vpop.f32.mrf.mxu0  ;;  %v7896_v4 = vadd.f32 %v17861_v21, %v17891_v29 }
 0x762   : > { %v8270_v10 = vmul.f32 0.01, %v8220_v34  ;;  %v8190_v59 = vadd.f32 1.0, %v14763_v1  ;;  %9278 = vmatpush1.bf16.msra.mxu0 %v13749_v18  ;;  %v17899_v23 = vpack.c.bf16 %v8301_v40, %v8297_v39  ;;  %v17915_v22 = vadd.f32 %v17877_v26, %v17891_v29  ;;  %v13773_v39 = vld [vmem:[#allocation7 + $0x1448] ss:$16 sps:$4 sm:$0xff]  }
 0x763   : > { %v14765_v41 = vpop.eup %14764  ;;  %14776 = vlog2.f32 %v8189_v32  ;;  %9279 = vmatprep.subr.bf16.mxu0 %v13757_v0  ;;  %v17923_v52 = vadd.f32 %v7905_v51, %v17891_v29  ;;  %v17945_v53 = vadd.f32 %v7909_v27, %v17883_v9 }
 0x764   : > { %v14767_v63 = vpop.eup %14766  ;;  %v8302_v48 = vsel %vm8046_vm0, %v17792_v58, %v8270_v10  ;;  %14778 = vlog2.f32 %v8190_v59  ;;  %v8228_v30 = vmul.f32 0.6931472, %v14765_v41  ;;  %v7890_v58 = vadd.f32 %v17837_v46, %v17883_v9  ;;  %v13767_v10 = vld [vmem:[#allocation7 + $0x1468] ss:$16 sps:$4 sm:$0xff]   ;;  %v7911_v41 = vpop.f32.mrf.mxu0 }
 0x765   : > { %v17897_v36 = vpack.c.bf16 %v8302_v48, %v8298_v57  ;;  %v14769_v44 = vpop.eup %14768  ;;  %v8226_v25 = vmul.f32 0.6931472, %v14767_v63  ;;  %v7900_v46 = vadd.f32 %v17865_v8, %v17883_v9 }
 0x766   : > { %v8234_v56 = vmul.f32 0.6931472, %v14769_v44  ;;  %9280 = vmatpush1.bf16.msra.mxu0 %v13755_v15  ;;  %v8274_v0 = vmul.f32 0.01, %v8228_v30 }
 0x767   : > { %9171 = vmatprep.mubr.bf16.mxu0 %v17897_v36  ;;  %9281 = vmatprep.subr.bf16.mxu0 %v13763_v37  ;;  %v8273_v21 = vmul.f32 0.01, %v8226_v25  ;;  %v17954_v25 = vpop.f32.mrf.mxu0 }
 0x768   : > { %v14771_v35 = vpop.eup %14770  ;;  %9172 = vmatmul.mubr.bf16.gmra.mxu0 %v17899_v23  ;;  %v8277_v18 = vmul.f32 0.01, %v8234_v56  ;;  %v8306_v57 = vsel %vm8050_vm6, %v17807_v54, %v8274_v0 }
 0x769   : > { %v7962_v13 = vpop.f32.mrf.mxu1  ;;  %v8236_v34 = vmul.f32 0.6931472, %v14771_v35  ;;  %v8305_v17 = vsel %vm8049_vm5, %v17800_v38, %v8273_v21 }
 0x76a   : > { %v17917_v3 = vadd.f32 %v7962_v13, %v7890_v58  ;;  %9282 = vmatpush1.bf16.msra.mxu0 %v13761_v33  ;;  %v8309_v40 = vsel %vm8053_vm3, %v17813_v43, %v8277_v18  ;;  %v17948_v43 = vadd.f32 %v7911_v41, %v17891_v29  ;;  %v13781_v33 = vld [vmem:[#allocation7 + $0x142c] ss:$16 sps:$4 sm:$0xff]  }
 0x76b   : > { %v7964_v32 = vpop.f32.mrf.mxu1  ;;  %v8278_v1 = vmul.f32 0.01, %v8236_v34  ;;  %9283 = vmatprep.subr.bf16.mxu0 %v13769_v19  ;;  %v17952_v30 = vpack.c.bf16 %v8309_v40, %v8305_v17  ;;  %v13787_v40 = vld [vmem:[#allocation7 + $0x140c] ss:$16 sps:$4 sm:$0xff]  }
 0x76c   : > { %v17928_v8 = vmul.f32 100.0, %v17917_v3  ;;  %v17930_v26 = vadd.f32 %v7964_v32, %v7892_v47  ;;  %v13779_v32 = vld [vmem:[#allocation7 + $0x1428] ss:$16 sps:$4 sm:$0xff]  }
 0x76d   : > { %v7966_v59 = vpop.f32.mrf.mxu1  ;;  %v8310_v15 = vsel %vm8054_vm4, %v17821_v12, %v8278_v1  ;;  %v14773_v63 = vpop.eup %14772 }
 0x76e   : > { %v8067_v2 = vmin.f32 %v17928_v8, 20.0  ;;  %v17938_v55 = vmul.f32 100.0, %v17930_v26  ;;  %v17940_v51 = vadd.f32 %v7966_v59, %v7894_v50  ;;  %v14775_v48 = vpop.eup %14774  ;;  %v17950_v12 = vpack.c.bf16 %v8310_v15, %v8306_v57  ;;  %9284 = vmatpush1.bf16.msra.mxu0 %v13767_v10  ;;  %v17972_v1 = vpop.f32.mrf.mxu0 }
 0x76f   : > { %v7968_v37 = vpop.f32.mrf.mxu1  ;;  %9285 = vmatprep.subr.bf16.mxu0 %v13775_v49  ;;  %v8244_v27 = vmul.f32 0.6931472, %v14773_v63  ;;  %v8242_v50 = vmul.f32 0.6931472, %v14775_v48  ;;  %vm8035_vm2 = vcmp.gt.f32.partialorder %v17928_v8, 20.0 }
 0x770   : > { %v14777_v44 = vpop.eup %14776  ;;  %v8101_v54 = vmul.f32 1.442695, %v8067_v2  ;;  %v8068_v56 = vmin.f32 %v17938_v55, 20.0  ;;  %v17958_v38 = vmul.f32 100.0, %v17940_v51  ;;  %9181 = vmatprep.mubr.bf16.mxu0 %v17950_v12  ;;  %v17962_v58 = vadd.f32 %v7968_v37, %v7896_v4 }
 0x771   : > { %v8250_v35 = vmul.f32 0.6931472, %v14777_v44  ;;  %v7972_v47 = vpop.f32.mrf.mxu1  ;;  %v14779_v19 = vpop.eup %14778  ;;  %9182 = vmatmul.mubr.bf16.gmra.mxu0 %v17952_v30  ;;  %v8282_v63 = vmul.f32 0.01, %v8244_v27  ;;  %v8281_v2 = vmul.f32 0.01, %v8242_v50 }
 0x772   : > { %14780 = vpow2.f32 %v8101_v54  ;;  %v8103_v18 = vmul.f32 1.442695, %v8068_v56  ;;  %v8071_v13 = vmin.f32 %v17958_v38, 20.0  ;;  %v17968_v34 = vmul.f32 100.0, %v17962_v58  ;;  %9286 = vmatpush1.bf16.msra.mxu0 %v13773_v39  ;;  %v7919_v54 = vpop.f32.mrf.mxu0 }
 0x773   : > { %v17970_v0 = vadd.f32 %v7972_v47, %v7900_v46  ;;  %v7974_v21 = vpop.f32.mrf.mxu1  ;;  %v8252_v4 = vmul.f32 0.6931472, %v14779_v19  ;;  %v8285_v10 = vmul.f32 0.01, %v8250_v35  ;;  %9287 = vmatprep.subr.bf16.mxu0 %v13781_v33  ;;  %v13793_v47 = vld [vmem:[#allocation7 + $0x15ec] ss:$16 sps:$4 sm:$0xff]   ;;  %v8314_v19 = vsel %vm8058_vm8, %v17833_v31, %v8282_v63 }
 0x774   : > { %14782 = vpow2.f32 %v8103_v18  ;;  %v8109_v41 = vmul.f32 1.442695, %v8071_v13  ;;  %v17975_v49 = vadd.f32 %v7974_v21, %v17915_v22  ;;  %v8072_v59 = vmin.f32 %v17968_v34, 20.0  ;;  %v13785_v22 = vld [vmem:[#allocation7 + $0x1408] ss:$16 sps:$4 sm:$0xff]   ;;  %v7921_v14 = vpop.f32.mrf.mxu0 }
 0x775   : > { %v17980_v46 = vmul.f32 100.0, %v17970_v0  ;;  %v7976_v15 = vpop.f32.mrf.mxu1  ;;  %v8286_v39 = vmul.f32 0.01, %v8252_v4  ;;  %v8317_v56 = vsel %vm8061_vm9, %v17843_v5, %v8285_v10  ;;  %v8313_v50 = vsel %vm8057_vm7, %v17824_v6, %v8281_v2  ;;  %v13799_v10 = vld [vmem:[#allocation7 + $0x15cc] ss:$16 sps:$4 sm:$0xff]  }
 0x776   : > { %14784 = vpow2.f32 %v8109_v41  ;;  %v17983_v57 = vmul.f32 100.0, %v17975_v49  ;;  %v17986_v48 = vadd.f32 %v7976_v15, %v17920_v24  ;;  %v8111_v17 = vmul.f32 1.442695, %v8072_v59  ;;  %9288 = vmatpush1.bf16.msra.mxu0 %v13779_v32 }
 0x777   : > { %v8075_v37 = vmin.f32 %v17980_v46, 20.0  ;;  %v7978_v44 = vpop.f32.mrf.mxu1  ;;  %9289 = vmatprep.subr.bf16.mxu0 %v13787_v40  ;;  %v8318_v5 = vsel %vm8062_vm10, %v17852_v16, %v8286_v39  ;;  %v18012_v21 = vpack.c.bf16 %v8317_v56, %v8313_v50  ;;  %v7914_v6 = vadd.f32 %v17954_v25, %v17883_v9  ;;  %v13805_v56 = vld [vmem:[#allocation7 + $0x15ac] ss:$16 sps:$4 sm:$0xff]  }
 0x778   : > { %v8076_v33 = vmin.f32 %v17983_v57, 20.0  ;;  %v17995_v35 = vmul.f32 100.0, %v17986_v48  ;;  %v17998_v24 = vadd.f32 %v7978_v44, %v17923_v52  ;;  %14786 = vpow2.f32 %v8111_v17  ;;  %v13797_v17 = vld [vmem:[#allocation7 + $0x15c8] ss:$16 sps:$4 sm:$0xff]  }
 0x779   : > { %v8117_v27 = vmul.f32 1.442695, %v8075_v37  ;;  %v7982_v28 = vpop.f32.mrf.mxu1  ;;  %v18010_v13 = vpack.c.bf16 %v8318_v5, %v8314_v19  ;;  %v7916_v15 = vadd.f32 %v17972_v1, %v17891_v29  ;;  %v7923_v37 = vpop.f32.mrf.mxu0  ;;  %v7922_v5 = vadd.f32 %v7921_v14, %v17891_v29 }
 0x77a   : > { %v8119_v18 = vmul.f32 1.442695, %v8076_v33  ;;  %v8079_v52 = vmin.f32 %v17995_v35, 20.0  ;;  %v18015_v7 = vmul.f32 100.0, %v17998_v24  ;;  %v18018_v31 = vadd.f32 %v7982_v28, %v17945_v53  ;;  %9290 = vmatpush1.bf16.msra.mxu0 %v13785_v22 }
 0x77b   : > { %14788 = vpow2.f32 %v8117_v27  ;;  %v7984_v16 = vpop.f32.mrf.mxu1  ;;  %9191 = vmatprep.mubr.bf16.mxu0 %v18010_v13  ;;  %9291 = vmatprep.subr.bf16.mxu0 %v13793_v47  ;;  %v7920_v47 = vadd.f32 %v7919_v54, %v17883_v9  ;;  %vm8039_vm11 = vcmp.gt.f32.partialorder %v17958_v38, 20.0  ;;  %vm8036_vm12 = vcmp.gt.f32.partialorder %v17938_v55, 20.0  ;;  %v13836_v55 = vld [vmem:[#allocation7 + $0x16e8] ss:$16 sps:$4 sm:$0xff]  }
 0x77c   : > { %14790 = vpow2.f32 %v8119_v18  ;;  %v8125_v4 = vmul.f32 1.442695, %v8079_v52  ;;  %v18024_v32 = vadd.f32 %v7984_v16, %v17948_v43  ;;  %v8080_v41 = vmin.f32 %v18015_v7, 20.0  ;;  %9192 = vmatmul.mubr.bf16.gmra.mxu0 %v18012_v21 }
 0x77d   : > { %v18029_v53 = vmul.f32 100.0, %v18018_v31  ;;  %v7986_v40 = vpop.f32.mrf.mxu1  ;;  %9307 = vmatprep.mubr.bf16.mxu0 %v17873_v60  ;;  %vm8040_vm13 = vcmp.gt.f32.partialorder %v17968_v34, 20.0  ;;  %v13841_v34 = vld [vmem:[#allocation7 + $0x16cc] ss:$16 sps:$4 sm:$0xff]   ;;  %vm8047_vm14 = vcmp.gt.f32.partialorder %v17995_v35, 20.0  ;;  %vm8044_vm15 = vcmp.gt.f32.partialorder %v17983_v57, 20.0 }
 0x77e   : > { %14792 = vpow2.f32 %v8125_v4  ;;  %v18033_v25 = vmul.f32 100.0, %v18024_v32  ;;  %v18035_v59 = vadd.f32 %v7986_v40, %v7914_v6  ;;  %v8127_v63 = vmul.f32 1.442695, %v8080_v41  ;;  %9292 = vmatpush2.bf16.msra.mxu0 %v13791_v20  ;;  %v13803_v6 = vld [vmem:[#allocation7 + $0x15a8] ss:$16 sps:$4 sm:$0xff]  }
 0x77f   : > { %v14781_v43 = vpop.eup %14780  ;;  %v8083_v2 = vmin.f32 %v18029_v53, 20.0  ;;  %v7988_v22 = vpop.f32.mrf.mxu1  ;;  %9293 = vmatprep.subr.bf16.mxu0 %v13799_v10  ;;  %v7924_v4 = vadd.f32 %v7923_v37, %v17883_v9  ;;  %v13811_v40 = vld [vmem:[#allocation7 + $0x158c] ss:$16 sps:$4 sm:$0xff]   ;;  %vm8048_vm0 = vcmp.gt.f32.partialorder %v18015_v7, 20.0  ;;  %vm8043_vm1 = vcmp.gt.f32.partialorder %v17980_v46, 20.0 }
 0x780   : > { %v8163_v39 = vadd.f32 1.0, %v14781_v43  ;;  %v8084_v44 = vmin.f32 %v18033_v25, 20.0  ;;  %v18042_v60 = vmul.f32 100.0, %v18035_v59  ;;  %14794 = vpow2.f32 %v8127_v63  ;;  %v7925_v10 = vpop.f32.mrf.mxu0  ;;  %v13847_v7 = vld [vmem:[#allocation7 + $0x168c] ss:$16 sps:$4 sm:$0xff]  }
 0x781   : > { %v14783_v33 = vpop.eup %14782  ;;  %v8133_v1 = vmul.f32 1.442695, %v8083_v2  ;;  %v18045_v27 = vadd.f32 %v7988_v22, %v7916_v15  ;;  %v7992_v19 = vpop.f32.mrf.mxu1  ;;  %v7926_v37 = vadd.f32 %v7925_v10, %v17891_v29  ;;  %vm8052_vm4 = vcmp.gt.f32.partialorder %v18033_v25, 20.0 }
 0x782   : > { %14796 = vlog2.f32 %v8163_v39  ;;  %v8164_v28 = vadd.f32 1.0, %v14783_v33  ;;  %v8135_v50 = vmul.f32 1.442695, %v8084_v44  ;;  %v8087_v52 = vmin.f32 %v18042_v60, 20.0  ;;  %9294 = vmatpush2.bf16.msra.mxu0 %v13797_v17  ;;  %v13809_v33 = vld [vmem:[#allocation7 + $0x1588] ss:$16 sps:$4 sm:$0xff]  }
 0x783   : > { %v14785_v18 = vpop.eup %14784  ;;  %14798 = vpow2.f32 %v8133_v1  ;;  %v18050_v16 = vmul.f32 100.0, %v18045_v27  ;;  %v18052_v20 = vadd.f32 %v7992_v19, %v7920_v47  ;;  %v7994_v54 = vpop.f32.mrf.mxu1  ;;  %9295 = vmatprep.subr.bf16.mxu0 %v13805_v56  ;;  %vm8055_vm3 = vcmp.gt.f32.partialorder %v18042_v60, 20.0 }
 0x784   : > { %14800 = vlog2.f32 %v8164_v28  ;;  %v8167_v14 = vadd.f32 1.0, %v14785_v18  ;;  %v18055_v41 = vadd.f32 %v7994_v54, %v7922_v5  ;;  %v8141_v43 = vmul.f32 1.442695, %v8087_v52  ;;  %v13817_v5 = vld [vmem:[#allocation7 + $0x156c] ss:$16 sps:$4 sm:$0xff]  }
 0x785   : > { %14802 = vpow2.f32 %v8135_v50  ;;  %v8088_v15 = vmin.f32 %v18050_v16, 20.0  ;;  %v7996_v63 = vpop.f32.mrf.mxu1  ;;  %v14787_v2 = vpop.eup %14786  ;;  %v18059_v22 = vmul.f32 100.0, %v18052_v20  ;;  %vm8056_vm5 = vcmp.gt.f32.partialorder %v18050_v16, 20.0 }
 0x786   : > { %14804 = vlog2.f32 %v8167_v14  ;;  %v18062_v17 = vmul.f32 100.0, %v18055_v41  ;;  %v18064_v9 = vadd.f32 %v7996_v63, %v7924_v4  ;;  %v8168_v39 = vadd.f32 1.0, %v14787_v2  ;;  %9296 = vmatpush2.bf16.msra.mxu0 %v13803_v6 }
 0x787   : > { %14806 = vpow2.f32 %v8141_v43  ;;  %v8143_v44 = vmul.f32 1.442695, %v8088_v15  ;;  %v7998_v56 = vpop.f32.mrf.mxu1  ;;  %v8091_v1 = vmin.f32 %v18059_v22, 20.0  ;;  %9297 = vmatprep.subr.bf16.mxu0 %v13811_v40  ;;  %v13815_v40 = vld [vmem:[#allocation7 + $0x1568] ss:$16 sps:$4 sm:$0xff]   ;;  %vm8051_vm6 = vcmp.gt.f32.partialorder %v18029_v53, 20.0 }
 0x788   : > { %v14789_v47 = vpop.eup %14788  ;;  %v8092_v19 = vmin.f32 %v18062_v17, 20.0  ;;  %14808 = vlog2.f32 %v8168_v39  ;;  %v18070_v18 = vmul.f32 100.0, %v18064_v9  ;;  %v18072_v29 = vadd.f32 %v7998_v56, %v7926_v37  ;;  %v13823_v15 = vld [vmem:[#allocation7 + $0x154c] ss:$16 sps:$4 sm:$0xff]  }
 0x789   : > { %v14791_v28 = vpop.eup %14790  ;;  %v8171_v50 = vadd.f32 1.0, %v14789_v47  ;;  %14810 = vpow2.f32 %v8143_v44  ;;  %v8149_v54 = vmul.f32 1.442695, %v8091_v1  ;;  %v13821_v47 = vld [vmem:[#allocation7 + $0x1548] ss:$16 sps:$4 sm:$0xff]   ;;  %vm8060_vm8 = vcmp.gt.f32.partialorder %v18062_v17, 20.0 }
 0x78a   : > { %v8172_v52 = vadd.f32 1.0, %v14791_v28  ;;  %v8151_v4 = vmul.f32 1.442695, %v8092_v19  ;;  %v8095_v10 = vmin.f32 %v18070_v18, 20.0  ;;  %v18076_v14 = vmul.f32 100.0, %v18072_v29  ;;  %9298 = vmatpush2.bf16.msra.mxu0 %v13809_v33 }
 0x78b   : > { %v14793_v6 = vpop.eup %14792  ;;  %14812 = vlog2.f32 %v8171_v50  ;;  %9299 = vmatprep.subr.bf16.mxu0 %v13817_v5  ;;  %v13829_v33 = vld [vmem:[#allocation7 + $0x152c] ss:$16 sps:$4 sm:$0xff]   ;;  %vm8063_vm7 = vcmp.gt.f32.partialorder %v18070_v18, 20.0  ;;  %vm8059_vm10 = vcmp.gt.f32.partialorder %v18059_v22, 20.0  ;;  %v13854_v18 = vld [vmem:[#allocation7 + $0x1628] ss:$16 sps:$4 sm:$0xff]  }
 0x78c   : > { %14814 = vlog2.f32 %v8172_v52  ;;  %v8175_v43 = vadd.f32 1.0, %v14793_v6  ;;  %v8157_v63 = vmul.f32 1.442695, %v8095_v10  ;;  %v8096_v2 = vmin.f32 %v18076_v14, 20.0  ;;  %v13853_v53 = vld [vmem:[#allocation7 + $0x164c] ss:$16 sps:$4 sm:$0xff]  }
 0x78d   : > { %14816 = vpow2.f32 %v8149_v54  ;;  %v14795_v37 = vpop.eup %14794  ;;  %v13827_v54 = vld [vmem:[#allocation7 + $0x1528] ss:$16 sps:$4 sm:$0xff]   ;;  %vm8064_vm9 = vcmp.gt.f32.partialorder %v18076_v14, 20.0  ;;  %v13859_v17 = vld [vmem:[#allocation7 + $0x160c] ss:$16 sps:$4 sm:$0xff]  }
 0x78e   : > { %14818 = vlog2.f32 %v8175_v43  ;;  %v8176_v44 = vadd.f32 1.0, %v14795_v37  ;;  %v8159_v56 = vmul.f32 1.442695, %v8096_v2  ;;  %9300 = vmatpush2.bf16.msra.mxu0 %v13815_v40  ;;  %v13835_v40 = vld [vmem:[#allocation7 + $0x150c] ss:$16 sps:$4 sm:$0xff]  }
 0x78f   : > { %v14797_v39 = vpop.eup %14796  ;;  %14820 = vpow2.f32 %v8151_v4  ;;  %9301 = vmatprep.subr.bf16.mxu0 %v13823_v15  ;;  %v13860_v22 = vld [vmem:[#allocation7 + $0x17e8] ss:$16 sps:$4 sm:$0xff]   ;;  %v13868_v14 = vld [vmem:[#allocation7 + $0x17ac] ss:$16 sps:$4 sm:$0xff]  }
 0x790   : > { %v14799_v1 = vpop.eup %14798  ;;  %14822 = vpow2.f32 %v8157_v63  ;;  %v8198_v43 = vmul.f32 0.6931472, %v14797_v39 }
 0x791   : > { %v14801_v19 = vpop.eup %14800  ;;  %14824 = vlog2.f32 %v8176_v44  ;;  %v8179_v5 = vadd.f32 1.0, %v14799_v1  ;;  %v13833_v44 = vld [vmem:[#allocation7 + $0x1508] ss:$16 sps:$4 sm:$0xff]  }
 0x792   : > { %v14803_v28 = vpop.eup %14802  ;;  %14826 = vpow2.f32 %v8159_v56  ;;  %9302 = vmatpush2.bf16.msra.mxu0 %v13821_v47  ;;  %v8200_v6 = vmul.f32 0.6931472, %v14801_v19  ;;  %v8259_v47 = vmul.f32 0.01, %v8198_v43 }
 0x793   : > { %v14805_v50 = vpop.eup %14804  ;;  %v8180_v52 = vadd.f32 1.0, %v14803_v28  ;;  %14828 = vlog2.f32 %v8179_v5  ;;  %9303 = vmatprep.subr.bf16.mxu0 %v13829_v33 }
 0x794   : > { %v14807_v10 = vpop.eup %14806  ;;  %v8206_v4 = vmul.f32 0.6931472, %v14805_v50  ;;  %v8260_v1 = vmul.f32 0.01, %v8200_v6  ;;  %v8291_v38 = vsel %vm8035_vm2, %v17917_v3, %v8259_v47 }
 0x795   : > { %14830 = vlog2.f32 %v8180_v52  ;;  %v8183_v63 = vadd.f32 1.0, %v14807_v10  ;;  %v14809_v15 = vpop.eup %14808 }
 0x796   : > { %v8263_v2 = vmul.f32 0.01, %v8206_v4  ;;  %v14811_v37 = vpop.eup %14810  ;;  %9304 = vmatpush2.bf16.msra.mxu0 %v13827_v54  ;;  %v8208_v56 = vmul.f32 0.6931472, %v14809_v15  ;;  %v8292_v54 = vsel %vm8036_vm12, %v17930_v26, %v8260_v1  ;;  %v13839_v1 = vld [vmem:[#allocation7 + $0x16c8] ss:$16 sps:$4 sm:$0xff]  }
 0x797   : > { %14832 = vlog2.f32 %v8183_v63  ;;  %v8184_v42 = vadd.f32 1.0, %v14811_v37  ;;  %9305 = vmatprep.subr.bf16.mxu0 %v13835_v40 }
 0x798   : > { %v14813_v28 = vpop.eup %14812  ;;  %v8264_v39 = vmul.f32 0.01, %v8208_v56  ;;  %v8295_v5 = vsel %vm8039_vm11, %v17940_v51, %v8263_v2 }
 0x799   : > { %v14815_v19 = vpop.eup %14814  ;;  %14834 = vlog2.f32 %v8184_v42  ;;  %v8214_v43 = vmul.f32 0.6931472, %v14813_v28  ;;  %v18089_v63 = vpack.c.bf16 %v8295_v5, %v8291_v38  ;;  %v13850_v38 = vld [vmem:[#allocation7 + $0x166c] ss:$16 sps:$4 sm:$0xff]  }
 0x79a   : > { %v14817_v33 = vpop.eup %14816  ;;  %9306 = vmatpush2.bf16.msra.mxu0 %v13833_v44  ;;  %v8296_v6 = vsel %vm8040_vm13, %v17962_v58, %v8264_v39  ;;  %v8216_v10 = vmul.f32 0.6931472, %v14815_v19  ;;  %v13844_v19 = vld [vmem:[#allocation7 + $0x16ac] ss:$16 sps:$4 sm:$0xff]  }
 0x79b   : > { %v14819_v50 = vpop.eup %14818  ;;  %v8187_v52 = vadd.f32 1.0, %v14817_v33  ;;  %v18087_v40 = vpack.c.bf16 %v8296_v6, %v8292_v54  ;;  %v8267_v44 = vmul.f32 0.01, %v8214_v43 }
 0x79c   : > { %v14821_v8 = vpop.eup %14820  ;;  %v8222_v4 = vmul.f32 0.6931472, %v14819_v50  ;;  %v8268_v37 = vmul.f32 0.01, %v8216_v10 }
 0x79d   : > { %v14823_v51 = vpop.eup %14822  ;;  %14836 = vlog2.f32 %v8187_v52  ;;  %v8188_v42 = vadd.f32 1.0, %v14821_v8  ;;  %9234 = vmatprep.mubr.bf16.mxu1 %v18087_v40  ;;  %9308 = vmatmul.mubr.bf16.vlgmr.msra.gmra.mxu0 %v17875_v62  ;;  %v8299_v35 = vsel %vm8043_vm1, %v17970_v0, %v8267_v44  ;;  %v13842_v52 = vld [vmem:[#allocation7 + $0x16a8] ss:$16 sps:$4 sm:$0xff]   ;;  %v13856_v44 = vld [vmem:[#allocation7 + $0x162c] ss:$16 sps:$4 sm:$0xff]  }
 0x79e   : > { %v14825_v15 = vpop.eup %14824  ;;  %v8271_v2 = vmul.f32 0.01, %v8222_v4  ;;  %v8191_v26 = vadd.f32 1.0, %v14823_v51  ;;  %9235 = vmatmul.mubr.bf16.vlgmr.msra.gmra.mxu1 %v18089_v63  ;;  %9317 = vmatprep.mubr.bf16.mxu0 %v17897_v36  ;;  %v8300_v36 = vsel %vm8044_vm15, %v17975_v49, %v8268_v37  ;;  %v13845_v0 = vld [vmem:[#allocation7 + $0x1688] ss:$16 sps:$4 sm:$0xff]  }
 0x79f   : > { %v14827_v58 = vpop.eup %14826  ;;  %14838 = vlog2.f32 %v8188_v42  ;;  %v8224_v3 = vmul.f32 0.6931472, %v14825_v15  ;;  %9349 = vmatpush1.bf16.msra.mxu1 %v13836_v55 }
 0x7a0   : > { %14840 = vlog2.f32 %v8191_v26  ;;  %v8192_v56 = vadd.f32 1.0, %v14827_v58  ;;  %v14829_v28 = vpop.eup %14828  ;;  %9350 = vmatprep.subr.bf16.mxu1 %v13841_v34  ;;  %v8303_v39 = vsel %vm8047_vm14, %v17986_v48, %v8271_v2  ;;  %v13848_v2 = vld [vmem:[#allocation7 + $0x1668] ss:$16 sps:$4 sm:$0xff]  }
 0x7a1   : > { %v8272_v47 = vmul.f32 0.01, %v8224_v3  ;;  %v18105_v57 = vpack.c.bf16 %v8303_v39, %v8299_v35  ;;  %v8230_v48 = vmul.f32 0.6931472, %v14829_v28  ;;  %v13851_v3 = vld [vmem:[#allocation7 + $0x1648] ss:$16 sps:$4 sm:$0xff]  }
 0x7a2   : > { %v14831_v62 = vpop.eup %14830  ;;  %14842 = vlog2.f32 %v8192_v56  ;;  %v13889_v39 = vld [vmem:[#allocation7 + $0x18c4] ss:$16 sps:$4 sm:$0xff]   ;;  %v13874_v35 = vld [vmem:[#allocation7 + $0x176c] ss:$16 sps:$4 sm:$0xff]  }
 0x7a3   : > { %v8304_v33 = vsel %vm8048_vm0, %v17998_v24, %v8272_v47  ;;  %9351 = vmatpush1.bf16.msra.mxu1 %v13839_v1  ;;  %v8232_v54 = vmul.f32 0.6931472, %v14831_v62  ;;  %v8275_v8 = vmul.f32 0.01, %v8230_v48  ;;  %v13866_v62 = vld [vmem:[#allocation7 + $0x17a8] ss:$16 sps:$4 sm:$0xff]  }
 0x7a4   : > { %v14833_v5 = vpop.eup %14832  ;;  %v18103_v50 = vpack.c.bf16 %v8304_v33, %v8300_v36  ;;  %9352 = vmatprep.subr.bf16.mxu1 %v13844_v19  ;;  %v13886_v19 = vld [vmem:[#allocation7 + $0x18e4] ss:$16 sps:$4 sm:$0xff]   ;;  %v13871_v36 = vld [vmem:[#allocation7 + $0x178c] ss:$16 sps:$4 sm:$0xff]  }
 0x7a5   : > { %v8238_v6 = vmul.f32 0.6931472, %v14833_v5  ;;  %9318 = vmatmul.mubr.bf16.gmra.mxu0 %v17899_v23  ;;  %v8276_v10 = vmul.f32 0.01, %v8232_v54  ;;  %v8307_v34 = vsel %vm8051_vm6, %v18018_v31, %v8275_v8  ;;  %10549 = vmatprep.subr.bf16.mxu0 %v13886_v19  ;;  %v13892_v33 = vld [vmem:[#allocation7 + $0x18a4] ss:$16 sps:$4 sm:$0xff]  }
 0x7a6   : > { %9244 = vmatprep.mubr.bf16.mxu1 %v18103_v50  ;;  %v14835_v49 = vpop.eup %14834  ;;  %9327 = vmatprep.mubr.bf16.mxu0 %v17950_v12  ;;  %v13869_v5 = vld [vmem:[#allocation7 + $0x1788] ss:$16 sps:$4 sm:$0xff]   ;;  %v13877_v48 = vld [vmem:[#allocation7 + $0x174c] ss:$16 sps:$4 sm:$0xff]   ;;  %v13898_v8 = vld [vmem:[#allocation7 + $0x1864] ss:$16 sps:$4 sm:$0xff]  }
 0x7a7   : > { %v8279_v46 = vmul.f32 0.01, %v8238_v6  ;;  %9245 = vmatmul.mubr.bf16.gmra.mxu1 %v18105_v57  ;;  %v8240_v24 = vmul.f32 0.6931472, %v14835_v49  ;;  %v8308_v12 = vsel %vm8052_vm4, %v18024_v32, %v8276_v10  ;;  %v13872_v54 = vld [vmem:[#allocation7 + $0x1768] ss:$16 sps:$4 sm:$0xff]  }
 0x7a8   : > { %9353 = vmatpush1.bf16.msra.mxu1 %v13842_v52  ;;  %v13890_v52 = vld [vmem:[#allocation7 + $0x18a0] ss:$16 sps:$4 sm:$0xff]   ;;  %v13875_v6 = vld [vmem:[#allocation7 + $0x1748] ss:$16 sps:$4 sm:$0xff]   ;;  %v13988_v19 = vld [vmem:[#allocation7 + $0x1bc4] ss:$16 sps:$4 sm:$0xff]  }
 0x7a9   : > { %9354 = vmatprep.subr.bf16.mxu1 %v13847_v7  ;;  %v8280_v4 = vmul.f32 0.01, %v8240_v24  ;;  %v8311_v23 = vsel %vm8055_vm3, %v18035_v59, %v8279_v46  ;;  %v13880_v7 = vld [vmem:[#allocation7 + $0x172c] ss:$16 sps:$4 sm:$0xff]   ;;  %v13878_v49 = vld [vmem:[#allocation7 + $0x1728] ss:$16 sps:$4 sm:$0xff]  }
 0x7aa   : > { %v14837_v43 = vpop.eup %14836  ;;  %v18121_v59 = vpack.c.bf16 %v8311_v23, %v8307_v34  ;;  %v13883_v46 = vld [vmem:[#allocation7 + $0x170c] ss:$16 sps:$4 sm:$0xff]   ;;  %v13895_v24 = vld [vmem:[#allocation7 + $0x1884] ss:$16 sps:$4 sm:$0xff]   ;;  %v13893_v10 = vld [vmem:[#allocation7 + $0x1880] ss:$16 sps:$4 sm:$0xff]  }
 0x7ab   : > { %v8312_v51 = vsel %vm8056_vm5, %v18045_v27, %v8280_v4  ;;  %v8246_v15 = vmul.f32 0.6931472, %v14837_v43  ;;  %v13901_v43 = vld [vmem:[#allocation7 + $0x1844] ss:$16 sps:$4 sm:$0xff]   ;;  %v13899_v4 = vld [vmem:[#allocation7 + $0x1840] ss:$16 sps:$4 sm:$0xff]  }
 0x7ac   : > { %v14839_v55 = vpop.eup %14838  ;;  %9355 = vmatpush1.bf16.msra.mxu1 %v13845_v0  ;;  %v18119_v60 = vpack.c.bf16 %v8312_v51, %v8308_v12  ;;  %v13881_v0 = vld [vmem:[#allocation7 + $0x1708] ss:$16 sps:$4 sm:$0xff]   ;;  %v13905_v23 = vld [vmem:[#allocation7 + $0x1800] ss:$16 sps:$4 sm:$0xff]   ;;  %v13913_v51 = vld [vmem:[#allocation7 + $0x19c4] ss:$16 sps:$4 sm:$0xff]  }
 0x7ad   : > { %v14841_v42 = vpop.eup %14840  ;;  %9356 = vmatprep.subr.bf16.mxu1 %v13850_v38  ;;  %v8248_v25 = vmul.f32 0.6931472, %v14839_v55  ;;  %9328 = vmatmul.mubr.bf16.gmra.mxu0 %v17952_v30  ;;  %v8283_v58 = vmul.f32 0.01, %v8246_v15  ;;  %v13896_v38 = vld [vmem:[#allocation7 + $0x1860] ss:$16 sps:$4 sm:$0xff]  }
 0x7ae   : > { %v8254_v16 = vmul.f32 0.6931472, %v14841_v42  ;;  %9254 = vmatprep.mubr.bf16.mxu1 %v18119_v60  ;;  %9337 = vmatprep.mubr.bf16.mxu0 %v18010_v13  ;;  %v13910_v55 = vld [vmem:[#allocation7 + $0x19e4] ss:$16 sps:$4 sm:$0xff]   ;;  %v13908_v12 = vld [vmem:[#allocation7 + $0x19e0] ss:$16 sps:$4 sm:$0xff]  }
 0x7af   : > { %v14843_v26 = vpop.eup %14842  ;;  %9255 = vmatmul.mubr.bf16.gmra.mxu1 %v18121_v59  ;;  %v8284_v27 = vmul.f32 0.01, %v8248_v25  ;;  %v8315_v1 = vsel %vm8059_vm10, %v18052_v20, %v8283_v58  ;;  %v13862_v20 = vld [vmem:[#allocation7 + $0x17ec] ss:$16 sps:$4 sm:$0xff]   ;;  %v13911_v42 = vld [vmem:[#allocation7 + $0x19c0] ss:$16 sps:$4 sm:$0xff]  }
 0x7b0   : > { %v8287_v32 = vmul.f32 0.01, %v8254_v16  ;;  %v8256_v31 = vmul.f32 0.6931472, %v14843_v26  ;;  %9357 = vmatpush1.bf16.msra.mxu1 %v13848_v2  ;;  %v13916_v34 = vld [vmem:[#allocation7 + $0x19a4] ss:$16 sps:$4 sm:$0xff]  }
 0x7b1   : > { %9358 = vmatprep.subr.bf16.mxu1 %v13853_v53  ;;  %v8316_v13 = vsel %vm8060_vm8, %v18055_v41, %v8284_v27  ;;  %v13857_v41 = vld [vmem:[#allocation7 + $0x1608] ss:$16 sps:$4 sm:$0xff]   ;;  %v13914_v15 = vld [vmem:[#allocation7 + $0x19a0] ss:$16 sps:$4 sm:$0xff]   ;;  %v13922_v25 = vld [vmem:[#allocation7 + $0x1964] ss:$16 sps:$4 sm:$0xff]  }
 0x7b2   : > { %v8288_v37 = vmul.f32 0.01, %v8256_v31  ;;  %v8319_v30 = vsel %vm8063_vm7, %v18064_v9, %v8287_v32  ;;  %v13865_v9 = vld [vmem:[#allocation7 + $0x17cc] ss:$16 sps:$4 sm:$0xff]   ;;  %v13917_v2 = vld [vmem:[#allocation7 + $0x1980] ss:$16 sps:$4 sm:$0xff]  }
 0x7b3   : > { %v18137_v47 = vpack.c.bf16 %v8319_v30, %v8315_v1  ;;  %v13925_v16 = vld [vmem:[#allocation7 + $0x1944] ss:$16 sps:$4 sm:$0xff]   ;;  %v13923_v53 = vld [vmem:[#allocation7 + $0x1940] ss:$16 sps:$4 sm:$0xff]  }
 0x7b4   : > { %v8320_v56 = vsel %vm8064_vm9, %v18072_v29, %v8288_v37  ;;  %9359 = vmatpush1.bf16.msra.mxu1 %v13851_v3  ;;  %v13863_v29 = vld [vmem:[#allocation7 + $0x17c8] ss:$16 sps:$4 sm:$0xff]   ;;  %v13928_v26 = vld [vmem:[#allocation7 + $0x1924] ss:$16 sps:$4 sm:$0xff]   ;;  %v13926_v32 = vld [vmem:[#allocation7 + $0x1920] ss:$16 sps:$4 sm:$0xff]  }
 0x7b5   : > { %v18135_v28 = vpack.c.bf16 %v8320_v56, %v8316_v13  ;;  %9360 = vmatprep.subr.bf16.mxu1 %v13856_v44  ;;  %9338 = vmatmul.mubr.bf16.gmra.mxu0 %v18012_v21  ;;  %v13884_v21 = vld [vmem:[#allocation7 + $0x18e0] ss:$16 sps:$4 sm:$0xff]   ;;  %v13931_v31 = vld [vmem:[#allocation7 + $0x1904] ss:$16 sps:$4 sm:$0xff]   ;;  %v13937_v37 = vld [vmem:[#allocation7 + $0x18ec] ss:$16 sps:$4 sm:$0xff]  }
 0x7b6   : > { %10550 = vmatpush1.bf16.msra.mxu0 %v13884_v21  ;;  %v13929_v27 = vld [vmem:[#allocation7 + $0x1900] ss:$16 sps:$4 sm:$0xff]   ;;  %v13934_v58 = vld [vmem:[#allocation7 + $0x1ae4] ss:$16 sps:$4 sm:$0xff]  }
 0x7b7   : > { %9264 = vmatprep.mubr.bf16.mxu1 %v18135_v28  ;;  %10551 = vmatprep.subr.bf16.mxu0 %v13889_v39  ;;  %v13932_v3 = vld [vmem:[#allocation7 + $0x1ae0] ss:$16 sps:$4 sm:$0xff]   ;;  %v13940_v44 = vld [vmem:[#allocation7 + $0x1ac4] ss:$16 sps:$4 sm:$0xff]  }
 0x7b8   : > { %9265 = vmatmul.mubr.bf16.gmra.mxu1 %v18137_v47  ;;  %v13938_v30 = vld [vmem:[#allocation7 + $0x1ac0] ss:$16 sps:$4 sm:$0xff]   ;;  %v13946_v13 = vld [vmem:[#allocation7 + $0x1aa4] ss:$16 sps:$4 sm:$0xff]  }
 0x7b9   : > { %9361 = vmatpush1.bf16.msra.mxu1 %v13854_v18  ;;  %9380 = vmatprep.mubr.bf16.mxu1 %v18087_v40  ;;  %v13887_v40 = vld [vmem:[#allocation7 + $0x18c0] ss:$16 sps:$4 sm:$0xff]   ;;  %v13952_v1 = vld [vmem:[#allocation7 + $0x1a84] ss:$16 sps:$4 sm:$0xff]  }
 0x7ba   : > { %9362 = vmatprep.subr.bf16.mxu1 %v13859_v17  ;;  %10552 = vmatpush1.bf16.msra.mxu0 %v13887_v40  ;;  %v13944_v56 = vld [vmem:[#allocation7 + $0x1aa0] ss:$16 sps:$4 sm:$0xff]   ;;  %v13958_v18 = vld [vmem:[#allocation7 + $0x1a64] ss:$16 sps:$4 sm:$0xff]  }
 0x7bb   : > { %10553 = vmatprep.subr.bf16.mxu0 %v13892_v33  ;;  %v13964_v17 = vld [vmem:[#allocation7 + $0x1a44] ss:$16 sps:$4 sm:$0xff]   ;;  %v13980_v21 = vld [vmem:[#allocation7 + $0x1be0] ss:$16 sps:$4 sm:$0xff]  }
 0x7bc   : > { %v13992_v40 = vld [vmem:[#allocation7 + $0x1ba0] ss:$16 sps:$4 sm:$0xff]  }
 0x7bd   : > { %9363 = vmatpush1.bf16.msra.mxu1 %v13857_v41  ;;  %v13962_v41 = vld [vmem:[#allocation7 + $0x1a40] ss:$16 sps:$4 sm:$0xff]  }
 0x7be   : > { %9364 = vmatprep.subr.bf16.mxu1 %v13862_v20  ;;  %10554 = vmatpush1.bf16.msra.mxu0 %v13890_v52  ;;  %v13970_v20 = vld [vmem:[#allocation7 + $0x1a24] ss:$16 sps:$4 sm:$0xff]  }
 0x7bf   : > { %10555 = vmatprep.subr.bf16.mxu0 %v13895_v24  ;;  %v14016_v24 = vld [vmem:[#allocation7 + $0x1b20] ss:$16 sps:$4 sm:$0xff]  }
 0x7c1   : > { %9365 = vmatpush2.bf16.msra.mxu1 %v13860_v22  ;;  %v13968_v22 = vld [vmem:[#allocation7 + $0x1a20] ss:$16 sps:$4 sm:$0xff]  }
 0x7c2   : > { %9366 = vmatprep.subr.bf16.mxu1 %v13865_v9  ;;  %10556 = vmatpush1.bf16.msra.mxu0 %v13893_v10  ;;  %v13976_v9 = vld [vmem:[#allocation7 + $0x1a04] ss:$16 sps:$4 sm:$0xff]  }
 0x7c3   : > { %10557 = vmatprep.subr.bf16.mxu0 %v13898_v8  ;;  %v14024_v8 = vld [vmem:[#allocation7 + $0x1b04] ss:$16 sps:$4 sm:$0xff]  }
 0x7c5   : > { %9367 = vmatpush2.bf16.msra.mxu1 %v13863_v29  ;;  %v13974_v29 = vld [vmem:[#allocation7 + $0x1a00] ss:$16 sps:$4 sm:$0xff]  }
 0x7c6   : > { %9368 = vmatprep.subr.bf16.mxu1 %v13868_v14  ;;  %10558 = vmatpush1.bf16.msra.mxu0 %v13896_v38  ;;  %v13982_v14 = vld [vmem:[#allocation7 + $0x1be4] ss:$16 sps:$4 sm:$0xff]   ;;  %v14022_v38 = vld [vmem:[#allocation7 + $0x1b00] ss:$16 sps:$4 sm:$0xff]  }
 0x7c7   : > { %10559 = vmatprep.subr.bf16.mxu0 %v13901_v43  ;;  %v18150_v43 = vld [vmem:[#allocation8 + $0x14] sm:$0xf] }
 0x7c9   : > { %9369 = vmatpush2.bf16.msra.mxu1 %v13866_v62  ;;  %v13986_v62 = vld [vmem:[#allocation7 + $0x1bc0] ss:$16 sps:$4 sm:$0xff]  }
 0x7ca   : > { %9370 = vmatprep.subr.bf16.mxu1 %v13871_v36  ;;  %10560 = vmatpush1.bf16.msra.mxu0 %v13899_v4  ;;  %v13994_v36 = vld [vmem:[#allocation7 + $0x1ba4] ss:$16 sps:$4 sm:$0xff]  }
 0x7cd   : > { %9371 = vmatpush2.bf16.msra.mxu1 %v13869_v5  ;;  %v14000_v5 = vld [vmem:[#allocation7 + $0x1b84] ss:$16 sps:$4 sm:$0xff]  }
 0x7ce   : > { %9372 = vmatprep.subr.bf16.mxu1 %v13874_v35  ;;  %v13998_v35 = vld [vmem:[#allocation7 + $0x1b80] ss:$16 sps:$4 sm:$0xff]  }
 0x7d1   : > { %9373 = vmatpush2.bf16.msra.mxu1 %v13872_v54  ;;  %v14006_v54 = vld [vmem:[#allocation7 + $0x1b64] ss:$16 sps:$4 sm:$0xff]  }
 0x7d2   : > { %9374 = vmatprep.subr.bf16.mxu1 %v13877_v48  ;;  %v14004_v48 = vld [vmem:[#allocation7 + $0x1b60] ss:$16 sps:$4 sm:$0xff]  }
 0x7d5   : > { %9375 = vmatpush2.bf16.msra.mxu1 %v13875_v6 }
 0x7d6   : > { %9376 = vmatprep.subr.bf16.mxu1 %v13880_v7  ;;  %v14012_v7 = vld [vmem:[#allocation7 + $0x1b44] ss:$16 sps:$4 sm:$0xff]  }
 0x7d9   : > { %9377 = vmatpush2.bf16.msra.mxu1 %v13878_v49  ;;  %v14010_v49 = vld [vmem:[#allocation7 + $0x1b40] ss:$16 sps:$4 sm:$0xff]  }
 0x7da   : > { %9378 = vmatprep.subr.bf16.mxu1 %v13883_v46 }
 0x7dd   : > { %9379 = vmatpush2.bf16.msra.mxu1 %v13881_v0  ;;  %v14018_v0 = vld [vmem:[#allocation7 + $0x1b24] ss:$16 sps:$4 sm:$0xff]  }
 0x7de   : > { %10622 = vmatprep.subr.bf16.mxu1 %v13934_v58 }
 0x7e0   : > { %9381 = vmatmul.mubr.bf16.vlgmr.msra.gmra.mxu1 %v18089_v63  ;;  %v13904_v63 = vld [vmem:[#allocation7 + $0x1824] ss:$16 sps:$4 sm:$0xff]  }
 0x7e1   : > { %9390 = vmatprep.mubr.bf16.mxu1 %v18103_v50  ;;  %v13902_v50 = vld [vmem:[#allocation7 + $0x1820] ss:$16 sps:$4 sm:$0xff]   ;;  %10561 = vmatprep.subr.bf16.mxu0 %v13904_v63  ;;  %v14030_v63 = vld [vmem:[#allocation7 + $0x1aec] ss:$16 sps:$4 sm:$0xff]  }
 0x7e2   : > { %10562 = vmatpush1.bf16.msra.mxu0 %v13902_v50  ;;  %10623 = vmatpush1.bf16.msra.mxu1 %v13932_v3  ;;  %v18154_v50 = vrot.slane %v18150_v43, %v19273_v45 }
 0x7e3   : > { %10624 = vmatprep.subr.bf16.mxu1 %v13940_v44 }
 0x7e6   : > { %10625 = vmatpush1.bf16.msra.mxu1 %v13938_v30 }
 0x7e7   : > { %10626 = vmatprep.subr.bf16.mxu1 %v13946_v13 }
 0x7e8   : > { %9391 = vmatmul.mubr.bf16.gmra.mxu1 %v18105_v57  ;;  %v13907_v57 = vld [vmem:[#allocation7 + $0x1804] ss:$16 sps:$4 sm:$0xff]  }
 0x7e9   : > { %9400 = vmatprep.mubr.bf16.mxu1 %v18119_v60  ;;  %10563 = vmatprep.subr.bf16.mxu0 %v13907_v57  ;;  %v13919_v60 = vld [vmem:[#allocation7 + $0x1984] ss:$16 sps:$4 sm:$0xff]   ;;  %v18158_v57 = vrot.slane %v18150_v43, %v19274_v11 }
 0x7ea   : > { %10564 = vmatpush1.bf16.msra.mxu0 %v13905_v23  ;;  %10627 = vmatpush1.bf16.msra.mxu1 %v13944_v56 }
 0x7eb   : > { %10565 = vmatprep.subr.bf16.mxu0 %v13910_v55  ;;  %10628 = vmatprep.subr.bf16.mxu1 %v13952_v1 }
 0x7ee   : > { %10566 = vmatpush2.bf16.msra.mxu0 %v13908_v12 }
 0x7ef   : > { %10567 = vmatprep.subr.bf16.mxu0 %v13913_v51 }
 0x7f0   : > { %9401 = vmatmul.mubr.bf16.gmra.mxu1 %v18121_v59  ;;  %v13920_v59 = vld [vmem:[#allocation7 + $0x1960] ss:$16 sps:$4 sm:$0xff]  }
 0x7f1   : > { %9410 = vmatprep.mubr.bf16.mxu1 %v18135_v28  ;;  %v13950_v28 = vld [vmem:[#allocation7 + $0x1a80] ss:$16 sps:$4 sm:$0xff]  }
 0x7f2   : > { %10568 = vmatpush2.bf16.msra.mxu0 %v13911_v42  ;;  %10629 = vmatpush1.bf16.msra.mxu1 %v13950_v28 }
 0x7f3   : > { %10569 = vmatprep.subr.bf16.mxu0 %v13916_v34  ;;  %10630 = vmatprep.subr.bf16.mxu1 %v13958_v18 }
 0x7f6   : > { %10570 = vmatpush2.bf16.msra.mxu0 %v13914_v15 }
 0x7f7   : > { %10571 = vmatprep.subr.bf16.mxu0 %v13919_v60 }
 0x7f8   : > { %9411 = vmatmul.mubr.bf16.gmra.mxu1 %v18137_v47  ;;  %v13956_v47 = vld [vmem:[#allocation7 + $0x1a60] ss:$16 sps:$4 sm:$0xff]  }
 0x7f9   : > { %10631 = vmatpush1.bf16.msra.mxu1 %v13956_v47 }
 0x7fa   : > { %10572 = vmatpush2.bf16.msra.mxu0 %v13917_v2  ;;  %10632 = vmatprep.subr.bf16.mxu1 %v13964_v17 }
 0x7fb   : > { %10573 = vmatprep.subr.bf16.mxu0 %v13922_v25 }
 0x7fd   : > { %10633 = vmatpush1.bf16.msra.mxu1 %v13962_v41 }
 0x7fe   : > { %10574 = vmatpush2.bf16.msra.mxu0 %v13920_v59  ;;  %10634 = vmatprep.subr.bf16.mxu1 %v13970_v20 }
 0x7ff   : > { %10575 = vmatprep.subr.bf16.mxu0 %v13925_v16 }
 0x801   : > { %10635 = vmatpush1.bf16.msra.mxu1 %v13968_v22 }
 0x802   : > { %10576 = vmatpush2.bf16.msra.mxu0 %v13923_v53  ;;  %10636 = vmatprep.subr.bf16.mxu1 %v13976_v9 }
 0x803   : > { %10577 = vmatprep.subr.bf16.mxu0 %v13928_v26 }
 0x805   : > { %10637 = vmatpush1.bf16.msra.mxu1 %v13974_v29 }
 0x806   : > { %10578 = vmatpush2.bf16.msra.mxu0 %v13926_v32  ;;  %10638 = vmatprep.subr.bf16.mxu1 %v13982_v14 }
 0x807   : > { %10579 = vmatprep.subr.bf16.mxu0 %v13931_v31 }
 0x809   : > { %10639 = vmatpush2.bf16.msra.mxu1 %v13980_v21 }
 0x80a   : > { %10580 = vmatpush2.bf16.msra.mxu0 %v13929_v27  ;;  %10640 = vmatprep.subr.bf16.mxu1 %v13988_v19 }
 0x80b   : > { %10695 = vmatprep.subr.bf16.mxu0 %v13937_v37 }
 0x80d   : > { %10641 = vmatpush2.bf16.msra.mxu1 %v13986_v62 }
 0x80e   : > { %10642 = vmatprep.subr.bf16.mxu1 %v13994_v36 }
 0x811   : > { %10643 = vmatpush2.bf16.msra.mxu1 %v13992_v40 }
 0x812   : > { %10644 = vmatprep.subr.bf16.mxu1 %v14000_v5 }
 0x815   : > { %10645 = vmatpush2.bf16.msra.mxu1 %v13998_v35 }
 0x816   : > { %10646 = vmatprep.subr.bf16.mxu1 %v14006_v54 }
 0x819   : > { %10647 = vmatpush2.bf16.msra.mxu1 %v14004_v48 }
 0x81a   : > { %10648 = vmatprep.subr.bf16.mxu1 %v14012_v7 }
 0x81d   : > { %v9163_v39 = vpop.f32.mrf.mxu0  ;;  %10649 = vmatpush2.bf16.msra.mxu1 %v14010_v49 }
 0x81e   : > { %10650 = vmatprep.subr.bf16.mxu1 %v14018_v0  ;;  %v9164_v55 = vadd.f32 %v9163_v39, %v18154_v50 }
 0x81f   : > { %v9165_v33 = vpop.f32.mrf.mxu0 }
 0x820   : > { %v9166_v51 = vadd.f32 %v9165_v33, %v18158_v57 }
 0x821   : > { %v9167_v52 = vpop.f32.mrf.mxu0  ;;  %10651 = vmatpush2.bf16.msra.mxu1 %v14016_v24 }
 0x822   : > { %10652 = vmatprep.subr.bf16.mxu1 %v14024_v8  ;;  %v9168_v60 = vadd.f32 %v9167_v52, %v18154_v50 }
 0x823   : > { %v9169_v6 = vpop.f32.mrf.mxu0 }
 0x824   : > { %v9170_v31 = vadd.f32 %v9169_v6, %v18158_v57 }
 0x825   : > { %10653 = vmatpush2.bf16.msra.mxu1 %v14022_v38 }
 0x826   : > { %10768 = vmatprep.subr.bf16.mxu1 %v14030_v63 }
 0x828   : > { %v9173_v46 = vpop.f32.mrf.mxu0 }
 0x829   : > { %v9174_v44 = vadd.f32 %v9173_v46, %v18154_v50 }
 0x82a   : > { %v9175_v10 = vpop.f32.mrf.mxu0 }
 0x82b   : > { %v9176_v56 = vadd.f32 %v9175_v10, %v18158_v57 }
 0x82c   : > { %v9177_v4 = vpop.f32.mrf.mxu0 }
 0x82d   : > { %v9178_v20 = vadd.f32 %v9177_v4, %v18154_v50 }
 0x82e   : > { %v9179_v23 = vpop.f32.mrf.mxu0 }
 0x82f   : > { %v9180_v19 = vadd.f32 %v9179_v23, %v18158_v57 }
 0x831   : > { %v9183_v42 = vpop.f32.mrf.mxu0 }
 0x832   : > { %v9184_v48 = vadd.f32 %v9183_v42, %v18154_v50 }
 0x833   : > { %v9185_v16 = vpop.f32.mrf.mxu0 }
 0x834   : > { %v9186_v10 = vadd.f32 %v9185_v16, %v18158_v57 }
 0x835   : > { %v9187_v1 = vpop.f32.mrf.mxu0 }
 0x836   : > { %v9188_v23 = vadd.f32 %v9187_v1, %v18154_v50 }
 0x837   : > { %v9189_v62 = vpop.f32.mrf.mxu0 }
 0x83c   : > { %v9193_v7 = vpop.f32.mrf.mxu0 }
 0x83d   : > { %v9194_v1 = vadd.f32 %v9193_v7, %v18154_v50 }
 0x85e   : > { %v9236_v12 = vpop.f32.mrf.mxu1 }
 0x85f   : > { %v18162_v34 = vadd.f32 %v9236_v12, %v9164_v55 }
 0x860   : > { %v9238_v15 = vpop.f32.mrf.mxu1 }
 0x861   : > { %v18166_v2 = vmul.f32 100.0, %v18162_v34  ;;  %v18168_v25 = vadd.f32 %v9238_v15, %v9166_v51  ;;  %v9195_v51 = vpop.f32.mrf.mxu0 }
 0x862   : > { %v9240_v59 = vpop.f32.mrf.mxu1 }
 0x863   : > { %v9485_v53 = vmin.f32 %v18166_v2, 20.0  ;;  %v18172_v26 = vmul.f32 100.0, %v18168_v25  ;;  %v18174_v32 = vadd.f32 %v9240_v59, %v9168_v60  ;;  %vm9453_vm13 = vcmp.gt.f32.partialorder %v18166_v2, 20.0  ;;  %v13943_v2 = vld [vmem:[#allocation7 + $0x18cc] ss:$16 sps:$4 sm:$0xff]  }
 0x864   : > { %v9242_v27 = vpop.f32.mrf.mxu1 }
 0x865   : > { %v9517_v58 = vmul.f32 1.442695, %v9485_v53  ;;  %v9486_v3 = vmin.f32 %v18172_v26, 20.0  ;;  %v18179_v37 = vmul.f32 100.0, %v18174_v32  ;;  %v18182_v30 = vadd.f32 %v9242_v27, %v9170_v31 }
 0x866   : > { %v9190_v31 = vadd.f32 %v9189_v62, %v18158_v57  ;;  %vm9454_vm2 = vcmp.gt.f32.partialorder %v18172_v26, 20.0 }
 0x867   : > { %v9246_v13 = vpop.f32.mrf.mxu1  ;;  %14844 = vpow2.f32 %v9517_v58  ;;  %v9519_v28 = vmul.f32 1.442695, %v9486_v3  ;;  %v9489_v18 = vmin.f32 %v18179_v37, 20.0  ;;  %v18187_v47 = vmul.f32 100.0, %v18182_v30 }
 0x868   : > { %v18189_v17 = vadd.f32 %v9246_v13, %v9174_v44  ;;  %vm9457_vm11 = vcmp.gt.f32.partialorder %v18179_v37, 20.0 }
 0x869   : > { %v9248_v41 = vpop.f32.mrf.mxu1  ;;  %14846 = vpow2.f32 %v9519_v28  ;;  %v9525_v22 = vmul.f32 1.442695, %v9489_v18  ;;  %v9490_v29 = vmin.f32 %v18187_v47, 20.0  ;;  %v9197_v28 = vpop.f32.mrf.mxu0  ;;  %vm9458_vm12 = vcmp.gt.f32.partialorder %v18187_v47, 20.0  ;;  %v13935_v47 = vld [vmem:[#allocation7 + $0x18e8] ss:$16 sps:$4 sm:$0xff]  }
 0x86a   : > { %v18192_v9 = vadd.f32 %v9248_v41, %v9176_v56  ;;  %v18196_v14 = vmul.f32 100.0, %v18189_v17 }
 0x86b   : > { %v9250_v21 = vpop.f32.mrf.mxu1  ;;  %14848 = vpow2.f32 %v9525_v22  ;;  %v9527_v40 = vmul.f32 1.442695, %v9490_v29  ;;  %v9196_v29 = vadd.f32 %v9195_v51, %v18158_v57 }
 0x86c   : > { %v18200_v39 = vmul.f32 100.0, %v18192_v9  ;;  %v18202_v36 = vadd.f32 %v9250_v21, %v9178_v20  ;;  %v9493_v33 = vmin.f32 %v18196_v14, 20.0  ;;  %vm9461_vm1 = vcmp.gt.f32.partialorder %v18196_v14, 20.0  ;;  %v13955_v14 = vld [vmem:[#allocation7 + $0x188c] ss:$16 sps:$4 sm:$0xff]  }
 0x86d   : > { %v9252_v5 = vpop.f32.mrf.mxu1  ;;  %14850 = vpow2.f32 %v9527_v40 }
 0x86e   : > { %v9494_v35 = vmin.f32 %v18200_v39, 20.0  ;;  %v18207_v52 = vmul.f32 100.0, %v18202_v36  ;;  %v18209_v54 = vadd.f32 %v9252_v5, %v9180_v19  ;;  %v9533_v6 = vmul.f32 1.442695, %v9493_v33 }
 0x86f   : > { %v9256_v24 = vpop.f32.mrf.mxu1  ;;  %vm9462_vm14 = vcmp.gt.f32.partialorder %v18200_v39, 20.0 }
 0x870   : > { %v9535_v49 = vmul.f32 1.442695, %v9494_v35  ;;  %v9497_v46 = vmin.f32 %v18207_v52, 20.0  ;;  %v18214_v0 = vmul.f32 100.0, %v18209_v54  ;;  %14852 = vpow2.f32 %v9533_v6 }
 0x871   : > { %v18217_v8 = vadd.f32 %v9256_v24, %v9184_v48  ;;  %v9258_v63 = vpop.f32.mrf.mxu1  ;;  %v9198_v35 = vadd.f32 %v9197_v28, %v18154_v50  ;;  %vm9465_vm15 = vcmp.gt.f32.partialorder %v18207_v52, 20.0 }
 0x872   : > { %14854 = vpow2.f32 %v9535_v49  ;;  %v9541_v38 = vmul.f32 1.442695, %v9497_v46  ;;  %v9498_v4 = vmin.f32 %v18214_v0, 20.0  ;;  %v18224_v12 = vadd.f32 %v9258_v63, %v9186_v10  ;;  %v9199_v49 = vpop.f32.mrf.mxu0 }
 0x873   : > { %v18222_v55 = vmul.f32 100.0, %v18217_v8  ;;  %v9260_v15 = vpop.f32.mrf.mxu1  ;;  %vm9466_vm0 = vcmp.gt.f32.partialorder %v18214_v0, 20.0  ;;  %v13947_v0 = vld [vmem:[#allocation7 + $0x18a8] ss:$16 sps:$4 sm:$0xff]  }
 0x874   : > { %14856 = vpow2.f32 %v9541_v38  ;;  %v9543_v42 = vmul.f32 1.442695, %v9498_v4  ;;  %v14845_v60 = vpop.eup %14844  ;;  %v18228_v16 = vmul.f32 100.0, %v18224_v12  ;;  %v18230_v53 = vadd.f32 %v9260_v15, %v9188_v23  ;;  %v18259_v23 = vpop.f32.mrf.mxu0 }
 0x875   : > { %v9501_v59 = vmin.f32 %v18222_v55, 20.0  ;;  %v9581_v27 = vadd.f32 1.0, %v14845_v60  ;;  %v9262_v58 = vpop.f32.mrf.mxu1  ;;  %vm9469_vm6 = vcmp.gt.f32.partialorder %v18222_v55, 20.0 }
 0x876   : > { %14858 = vpow2.f32 %v9543_v42  ;;  %v14847_v3 = vpop.eup %14846  ;;  %v9502_v13 = vmin.f32 %v18228_v16, 20.0  ;;  %v18235_v56 = vmul.f32 100.0, %v18230_v53  ;;  %v18238_v41 = vadd.f32 %v9262_v58, %v9190_v31 }
 0x877   : > { %v9549_v44 = vmul.f32 1.442695, %v9501_v59  ;;  %14860 = vlog2.f32 %v9581_v27  ;;  %v9582_v18 = vadd.f32 1.0, %v14847_v3  ;;  %v9200_v59 = vadd.f32 %v9199_v49, %v18158_v57 }
 0x878   : > { %v9266_v20 = vpop.f32.mrf.mxu1  ;;  %v14849_v22 = vpop.eup %14848  ;;  %v9551_v21 = vmul.f32 1.442695, %v9502_v13  ;;  %v9505_v19 = vmin.f32 %v18235_v56, 20.0  ;;  %v18243_v40 = vmul.f32 100.0, %v18238_v41  ;;  %vm9473_vm3 = vcmp.gt.f32.partialorder %v18235_v56, 20.0 }
 0x879   : > { %14862 = vpow2.f32 %v9549_v44  ;;  %v9585_v62 = vadd.f32 1.0, %v14849_v22  ;;  %v18245_v33 = vadd.f32 %v9266_v20, %v9194_v1  ;;  %vm9470_vm4 = vcmp.gt.f32.partialorder %v18228_v16, 20.0 }
 0x87a   : > { %14864 = vlog2.f32 %v9582_v18  ;;  %v9268_v5 = vpop.f32.mrf.mxu1  ;;  %v9557_v48 = vmul.f32 1.442695, %v9505_v19  ;;  %v14851_v7 = vpop.eup %14850  ;;  %v9506_v46 = vmin.f32 %v18243_v40, 20.0  ;;  %vm9474_vm5 = vcmp.gt.f32.partialorder %v18243_v40, 20.0 }
 0x87b   : > { %14866 = vpow2.f32 %v9551_v21  ;;  %v18248_v6 = vadd.f32 %v9268_v5, %v9196_v29  ;;  %v18252_v24 = vmul.f32 100.0, %v18245_v33  ;;  %v9586_v38 = vadd.f32 1.0, %v14851_v7  ;;  %v18269_v18 = vpop.f32.mrf.mxu0 }
 0x87c   : > { %14868 = vlog2.f32 %v9585_v62  ;;  %v9270_v10 = vpop.f32.mrf.mxu1  ;;  %v9559_v51 = vmul.f32 1.442695, %v9506_v46 }
 0x87d   : > { %14870 = vpow2.f32 %v9557_v48  ;;  %v18255_v4 = vmul.f32 100.0, %v18248_v6  ;;  %v18257_v63 = vadd.f32 %v9270_v10, %v9198_v35  ;;  %v14853_v50 = vpop.eup %14852  ;;  %v9509_v42 = vmin.f32 %v18252_v24, 20.0  ;;  %v18276_v48 = vpop.f32.mrf.mxu0 }
 0x87e   : > { %v9272_v15 = vpop.f32.mrf.mxu1  ;;  %14872 = vlog2.f32 %v9586_v38  ;;  %v9589_v31 = vadd.f32 1.0, %v14853_v50  ;;  %vm9477_vm7 = vcmp.gt.f32.partialorder %v18252_v24, 20.0  ;;  %v13985_v24 = vld [vmem:[#allocation7 + $0x19ec] ss:$16 sps:$4 sm:$0xff]  }
 0x87f   : > { %v14855_v60 = vpop.eup %14854  ;;  %v9510_v27 = vmin.f32 %v18255_v4, 20.0  ;;  %14874 = vpow2.f32 %v9559_v51  ;;  %v9565_v3 = vmul.f32 1.442695, %v9509_v42  ;;  %v18265_v44 = vmul.f32 100.0, %v18257_v63 }
 0x880   : > { %v9590_v58 = vadd.f32 1.0, %v14855_v60  ;;  %14876 = vlog2.f32 %v9589_v31  ;;  %v18267_v28 = vadd.f32 %v9272_v15, %v9200_v59  ;;  %v18278_v59 = vpop.f32.mrf.mxu0  ;;  %vm9478_vm8 = vcmp.gt.f32.partialorder %v18255_v4, 20.0 }
 0x881   : > { %v14857_v13 = vpop.eup %14856  ;;  %v9567_v1 = vmul.f32 1.442695, %v9510_v27  ;;  %v9513_v57 = vmin.f32 %v18265_v44, 20.0  ;;  %vm9481_vm9 = vcmp.gt.f32.partialorder %v18265_v44, 20.0 }
 0x882   : > { %14878 = vlog2.f32 %v9590_v58  ;;  %v9593_v20 = vadd.f32 1.0, %v14857_v13  ;;  %v18273_v29 = vmul.f32 100.0, %v18267_v28 }
 0x883   : > { %v14859_v22 = vpop.eup %14858  ;;  %14880 = vpow2.f32 %v9565_v3  ;;  %v9573_v19 = vmul.f32 1.442695, %v9513_v57 }
 0x884   : > { %14882 = vlog2.f32 %v9593_v20  ;;  %v9594_v21 = vadd.f32 1.0, %v14859_v22  ;;  %v14861_v62 = vpop.eup %14860  ;;  %v9514_v5 = vmin.f32 %v18273_v29, 20.0  ;;  %v18280_v22 = vpop.f32.mrf.mxu0  ;;  %vm9482_vm10 = vcmp.gt.f32.partialorder %v18273_v29, 20.0 }
 0x885   : > { %14884 = vpow2.f32 %v9567_v1  ;;  %v9614_v15 = vmul.f32 0.6931472, %v14861_v62 }
 0x886   : > { %v14863_v35 = vpop.eup %14862  ;;  %14886 = vlog2.f32 %v9594_v21  ;;  %v9575_v46 = vmul.f32 1.442695, %v9514_v5 }
 0x887   : > { %v14865_v7 = vpop.eup %14864  ;;  %v9597_v49 = vadd.f32 1.0, %v14863_v35  ;;  %14888 = vpow2.f32 %v9573_v19  ;;  %v9677_v57 = vmul.f32 0.01, %v9614_v15 }
 0x888   : > { %v14867_v10 = vpop.eup %14866  ;;  %v9616_v51 = vmul.f32 0.6931472, %v14865_v7 }
 0x889   : > { %v14869_v38 = vpop.eup %14868  ;;  %14890 = vlog2.f32 %v9597_v49  ;;  %v9598_v50 = vadd.f32 1.0, %v14867_v10  ;;  %v9709_v26 = vsel %vm9453_vm13, %v18162_v34, %v9677_v57 }
 0x88a   : > { %v14871_v42 = vpop.eup %14870  ;;  %v9622_v60 = vmul.f32 0.6931472, %v14869_v38  ;;  %14892 = vpow2.f32 %v9575_v46  ;;  %v9678_v1 = vmul.f32 0.01, %v9616_v51  ;;  %v18290_v51 = vpop.f32.mrf.mxu0 }
 0x88b   : > { %14894 = vlog2.f32 %v9598_v50  ;;  %v9601_v31 = vadd.f32 1.0, %v14871_v42  ;;  %v14873_v27 = vpop.eup %14872 }
 0x88c   : > { %v9681_v58 = vmul.f32 0.01, %v9622_v60  ;;  %v14875_v3 = vpop.eup %14874  ;;  %v9624_v13 = vmul.f32 0.6931472, %v14873_v27  ;;  %v9710_v10 = vsel %vm9454_vm2, %v18168_v25, %v9678_v1  ;;  %v18298_v1 = vpop.f32.mrf.mxu0 }
 0x88d   : > { %14896 = vlog2.f32 %v9601_v31  ;;  %v14877_v20 = vpop.eup %14876  ;;  %v9602_v21 = vadd.f32 1.0, %v14875_v3 }
 0x88e   : > { %v9682_v62 = vmul.f32 0.01, %v9624_v13  ;;  %v9713_v35 = vsel %vm9457_vm11, %v18174_v32, %v9681_v58  ;;  %v9630_v37 = vmul.f32 0.6931472, %v14877_v20  ;;  %v13941_v20 = vld [vmem:[#allocation7 + $0x18c8] ss:$16 sps:$4 sm:$0xff]  }
 0x88f   : > { %v14879_v19 = vpop.eup %14878  ;;  %14898 = vlog2.f32 %v9602_v21  ;;  %v18294_v60 = vpack.c.bf16 %v9713_v35, %v9709_v26  ;;  %v19276_v26 = vld [vmem:[#allocation22_spill] sm:$0xff] }
 0x890   : > { %v14881_v5 = vpop.eup %14880  ;;  %v9632_v7 = vmul.f32 0.6931472, %v14879_v19  ;;  %v9714_v38 = vsel %vm9458_vm12, %v18182_v30, %v9682_v62  ;;  %v9685_v13 = vmul.f32 0.01, %v9630_v37  ;;  %v13949_v19 = vld [vmem:[#allocation7 + $0x18ac] ss:$16 sps:$4 sm:$0xff]  }
 0x891   : > { %v14883_v49 = vpop.eup %14882  ;;  %v9605_v46 = vadd.f32 1.0, %v14881_v5  ;;  %v18292_v32 = vpack.c.bf16 %v9714_v38, %v9710_v10  ;;  %v9325_v10 = vpop.f32.mrf.mxu0 }
 0x892   : > { %v14885_v50 = vpop.eup %14884  ;;  %v9638_v42 = vmul.f32 0.6931472, %v14883_v49  ;;  %v9686_v30 = vmul.f32 0.01, %v9632_v7  ;;  %v9717_v52 = vsel %vm9461_vm1, %v18189_v17, %v9685_v13  ;;  %v18319_v17 = vrot.slane %v18150_v43, %v19276_v26 }
 0x893   : > { %v14887_v15 = vpop.eup %14886  ;;  %v9606_v31 = vadd.f32 1.0, %v14885_v50  ;;  %10581 = vmatprep.mubr.bf16.mxu0 %v18292_v32  ;;  %14900 = vlog2.f32 %v9605_v46 }
 0x894   : > { %v14889_v27 = vpop.eup %14888  ;;  %v9689_v58 = vmul.f32 0.01, %v9638_v42  ;;  %v9640_v25 = vmul.f32 0.6931472, %v14887_v15  ;;  %10582 = vmatmul.mubr.bf16.vlgmr.msra.gmra.mxu0 %v18294_v60  ;;  %v9718_v7 = vsel %vm9462_vm14, %v18192_v9, %v9686_v30  ;;  %v13953_v15 = vld [vmem:[#allocation7 + $0x1888] ss:$16 sps:$4 sm:$0xff]   ;;  %v9312_v30 = vadd.f32 %v18269_v18, %v18319_v17 }
 0x895   : > { %v9609_v34 = vadd.f32 1.0, %v14889_v27  ;;  %14902 = vlog2.f32 %v9606_v31  ;;  %10696 = vmatpush1.bf16.msra.mxu0 %v13935_v47  ;;  %v9329_v47 = vpop.f32.mrf.mxu0 }
 0x896   : > { %v14891_v3 = vpop.eup %14890  ;;  %v9690_v57 = vmul.f32 0.01, %v9640_v25  ;;  %10697 = vmatprep.subr.bf16.mxu0 %v13943_v2  ;;  %v9721_v5 = vsel %vm9465_vm15, %v18202_v36, %v9689_v58  ;;  %v18312_v36 = vrot.slane %v18150_v43, %v19275_v61  ;;  %v13961_v25 = vld [vmem:[#allocation7 + $0x186c] ss:$16 sps:$4 sm:$0xff]  }
 0x897   : > { %v14893_v21 = vpop.eup %14892  ;;  %14904 = vlog2.f32 %v9609_v34  ;;  %v18314_v50 = vpack.c.bf16 %v9721_v5, %v9717_v52  ;;  %v9646_v9 = vmul.f32 0.6931472, %v14891_v3  ;;  %v9316_v5 = vadd.f32 %v18278_v59, %v18319_v17 }
 0x898   : > { %v14895_v62 = vpop.eup %14894  ;;  %v9610_v35 = vadd.f32 1.0, %v14893_v21  ;;  %v9722_v49 = vsel %vm9466_vm0, %v18209_v54, %v9690_v57  ;;  %v9310_v27 = vadd.f32 %v18259_v23, %v18312_v36  ;;  %v9314_v23 = vadd.f32 %v18276_v48, %v18312_v36  ;;  %v9331_v57 = vpop.f32.mrf.mxu0  ;;  %v13959_v48 = vld [vmem:[#allocation7 + $0x1868] ss:$16 sps:$4 sm:$0xff]  }
 0x899   : > { %v18307_v46 = vpack.c.bf16 %v9722_v49, %v9718_v7  ;;  %10698 = vmatpush1.bf16.msra.mxu0 %v13941_v20  ;;  %v9648_v38 = vmul.f32 0.6931472, %v14895_v62  ;;  %v9693_v58 = vmul.f32 0.01, %v9646_v9  ;;  %v13967_v7 = vld [vmem:[#allocation7 + $0x184c] ss:$16 sps:$4 sm:$0xff]   ;;  %v9324_v49 = vadd.f32 %v18298_v1, %v18312_v36 }
 0x89a   : > { %v14897_v39 = vpop.eup %14896  ;;  %14906 = vlog2.f32 %v9610_v35  ;;  %10699 = vmatprep.subr.bf16.mxu0 %v13949_v19  ;;  %v18359_v52 = vadd.f32 %v9329_v47, %v18312_v36 }
 0x89b   : > { %v9654_v54 = vmul.f32 0.6931472, %v14897_v39  ;;  %10591 = vmatprep.mubr.bf16.mxu0 %v18307_v46  ;;  %v9694_v2 = vmul.f32 0.01, %v9648_v38  ;;  %v18356_v39 = vadd.f32 %v9325_v10, %v18319_v17 }
 0x89c   : > { %v14899_v37 = vpop.eup %14898  ;;  %10592 = vmatmul.mubr.bf16.gmra.mxu0 %v18314_v50 }
 0x89d   : > { %v9697_v42 = vmul.f32 0.01, %v9654_v54  ;;  %10700 = vmatpush1.bf16.msra.mxu0 %v13947_v0  ;;  %v9656_v31 = vmul.f32 0.6931472, %v14899_v37  ;;  %v9726_v56 = vsel %vm9470_vm4, %v18224_v12, %v9694_v2  ;;  %v9320_v12 = vadd.f32 %v18280_v22, %v18312_v36  ;;  %v13965_v22 = vld [vmem:[#allocation7 + $0x1848] ss:$16 sps:$4 sm:$0xff]   ;;  %v18366_v0 = vpop.f32.mrf.mxu0 }
 0x89e   : > { %10701 = vmatprep.subr.bf16.mxu0 %v13955_v14  ;;  %v13973_v54 = vld [vmem:[#allocation7 + $0x182c] ss:$16 sps:$4 sm:$0xff]  }
 0x89f   : > { %v9698_v34 = vmul.f32 0.01, %v9656_v31  ;;  %v9729_v3 = vsel %vm9473_vm3, %v18230_v53, %v9697_v42  ;;  %v9725_v53 = vsel %vm9469_vm6, %v18217_v8, %v9693_v58 }
 0x8a0   : > { %v9382_v43 = vpop.f32.mrf.mxu1  ;;  %v14901_v20 = vpop.eup %14900  ;;  %v18351_v8 = vpack.c.bf16 %v9729_v3, %v9725_v53  ;;  %v13979_v53 = vld [vmem:[#allocation7 + $0x180c] ss:$16 sps:$4 sm:$0xff]  }
 0x8a1   : > { %v18330_v13 = vadd.f32 %v9382_v43, %v9310_v27  ;;  %10702 = vmatpush1.bf16.msra.mxu0 %v13953_v15  ;;  %v9730_v21 = vsel %vm9474_vm5, %v18238_v41, %v9698_v34  ;;  %v9322_v41 = vadd.f32 %v18290_v51, %v18319_v17  ;;  %v18364_v51 = vadd.f32 %v9331_v57, %v18319_v17  ;;  %v13971_v43 = vld [vmem:[#allocation7 + $0x1828] ss:$16 sps:$4 sm:$0xff]   ;;  %v18387_v34 = vpop.f32.mrf.mxu0 }
 0x8a2   : > { %v9384_v18 = vpop.f32.mrf.mxu1  ;;  %v14903_v16 = vpop.eup %14902  ;;  %v18343_v62 = vpack.c.bf16 %v9730_v21, %v9726_v56  ;;  %10703 = vmatprep.subr.bf16.mxu0 %v13961_v25  ;;  %v9662_v15 = vmul.f32 0.6931472, %v14901_v20 }
 0x8a3   : > { %v18339_v40 = vmul.f32 100.0, %v18330_v13  ;;  %v18341_v19 = vadd.f32 %v9384_v18, %v9312_v30  ;;  %v9664_v47 = vmul.f32 0.6931472, %v14903_v16 }
 0x8a4   : > { %v14905_v55 = vpop.eup %14904  ;;  %v9386_v35 = vpop.f32.mrf.mxu1  ;;  %10601 = vmatprep.mubr.bf16.mxu0 %v18343_v62 }
 0x8a5   : > { %v9487_v59 = vmin.f32 %v18339_v40, 20.0  ;;  %v9670_v38 = vmul.f32 0.6931472, %v14905_v55  ;;  %v18369_v9 = vmul.f32 100.0, %v18341_v19  ;;  %v18371_v1 = vadd.f32 %v9386_v35, %v9314_v23  ;;  %10602 = vmatmul.mubr.bf16.gmra.mxu0 %v18351_v8 }
 0x8a6   : > { %v9388_v10 = vpop.f32.mrf.mxu1  ;;  %10704 = vmatpush1.bf16.msra.mxu0 %v13959_v48  ;;  %v9702_v16 = vmul.f32 0.01, %v9664_v47  ;;  %v9701_v48 = vmul.f32 0.01, %v9662_v15  ;;  %v13977_v15 = vld [vmem:[#allocation7 + $0x1808] ss:$16 sps:$4 sm:$0xff]  }
 0x8a7   : > { %v14907_v14 = vpop.eup %14906  ;;  %v9521_v37 = vmul.f32 1.442695, %v9487_v59  ;;  %v18375_v42 = vadd.f32 %v9388_v10, %v9316_v5  ;;  %v9488_v31 = vmin.f32 %v18369_v9, 20.0  ;;  %v18379_v2 = vmul.f32 100.0, %v18371_v1  ;;  %10705 = vmatprep.subr.bf16.mxu0 %v13967_v7 }
 0x8a8   : > { %v9392_v27 = vpop.f32.mrf.mxu1  ;;  %v9672_v58 = vmul.f32 0.6931472, %v14907_v14  ;;  %v9705_v3 = vmul.f32 0.01, %v9670_v38  ;;  %v9339_v38 = vpop.f32.mrf.mxu0  ;;  %v9733_v44 = vsel %vm9477_vm7, %v18245_v33, %v9701_v48  ;;  %v13991_v48 = vld [vmem:[#allocation7 + $0x19cc] ss:$16 sps:$4 sm:$0xff]  }
 0x8a9   : > { %14908 = vpow2.f32 %v9521_v37  ;;  %v18383_v25 = vmul.f32 100.0, %v18375_v42  ;;  %v18385_v30 = vadd.f32 %v9392_v27, %v9320_v12  ;;  %v9523_v20 = vmul.f32 1.442695, %v9488_v31 }
 0x8aa   : > { %v9491_v23 = vmin.f32 %v18379_v2, 20.0  ;;  %v9394_v57 = vpop.f32.mrf.mxu1  ;;  %10706 = vmatpush1.bf16.msra.mxu0 %v13965_v22  ;;  %v9706_v12 = vmul.f32 0.01, %v9672_v58  ;;  %v9734_v37 = vsel %vm9478_vm8, %v18248_v6, %v9702_v16  ;;  %v9341_v33 = vpop.f32.mrf.mxu0  ;;  %vm9455_vm2 = vcmp.gt.f32.partialorder %v18339_v40, 20.0 }
 0x8ab   : > { %v9492_v18 = vmin.f32 %v18383_v25, 20.0  ;;  %v18393_v56 = vmul.f32 100.0, %v18385_v30  ;;  %v18395_v21 = vadd.f32 %v9394_v57, %v9322_v41  ;;  %14910 = vpow2.f32 %v9523_v20  ;;  %10707 = vmatprep.subr.bf16.mxu0 %v13973_v54 }
 0x8ac   : > { %v9529_v55 = vmul.f32 1.442695, %v9491_v23  ;;  %v9396_v5 = vpop.f32.mrf.mxu1  ;;  %v9737_v41 = vsel %vm9481_vm9, %v18257_v63, %v9705_v3  ;;  %v9738_v10 = vsel %vm9482_vm10, %v18267_v28, %v9706_v12  ;;  %vm9456_vm11 = vcmp.gt.f32.partialorder %v18369_v9, 20.0 }
 0x8ad   : > { %v9531_v35 = vmul.f32 1.442695, %v9492_v18  ;;  %v9495_v7 = vmin.f32 %v18393_v56, 20.0  ;;  %v18400_v59 = vmul.f32 100.0, %v18395_v21  ;;  %v18405_v22 = vadd.f32 %v9396_v5, %v9324_v49  ;;  %v13983_v18 = vld [vmem:[#allocation7 + $0x19e8] ss:$16 sps:$4 sm:$0xff]   ;;  %v9343_v5 = vpop.f32.mrf.mxu0 }
 0x8ae   : > { %14912 = vpow2.f32 %v9529_v55  ;;  %v9398_v14 = vpop.f32.mrf.mxu1  ;;  %10708 = vmatpush1.bf16.msra.mxu0 %v13971_v43  ;;  %v18418_v49 = vpack.c.bf16 %v9738_v10, %v9734_v37  ;;  %v18423_v31 = vpack.c.bf16 %v9737_v41, %v9733_v44  ;;  %v9334_v43 = vadd.f32 %v18366_v0, %v18312_v36  ;;  %v13989_v37 = vld [vmem:[#allocation7 + $0x19c8] ss:$16 sps:$4 sm:$0xff]  }
 0x8af   : > { %14914 = vpow2.f32 %v9531_v35  ;;  %v9537_v54 = vmul.f32 1.442695, %v9495_v7  ;;  %v9496_v29 = vmin.f32 %v18400_v59, 20.0  ;;  %v18416_v63 = vmul.f32 100.0, %v18405_v22  ;;  %10709 = vmatprep.subr.bf16.mxu0 %v13979_v53 }
 0x8b0   : > { %v18421_v28 = vadd.f32 %v9398_v14, %v18356_v39  ;;  %v9402_v47 = vpop.f32.mrf.mxu1  ;;  %10611 = vmatprep.mubr.bf16.mxu0 %v18418_v49  ;;  %v9340_v35 = vadd.f32 %v9339_v38, %v18312_v36  ;;  %v9342_v44 = vadd.f32 %v9341_v33, %v18319_v17  ;;  %v13997_v38 = vld [vmem:[#allocation7 + $0x19ac] ss:$16 sps:$4 sm:$0xff]   ;;  %vm9459_vm12 = vcmp.gt.f32.partialorder %v18379_v2, 20.0 }
 0x8b1   : > { %14916 = vpow2.f32 %v9537_v54  ;;  %v9539_v6 = vmul.f32 1.442695, %v9496_v29  ;;  %v18426_v4 = vadd.f32 %v9402_v47, %v18359_v52  ;;  %v9499_v27 = vmin.f32 %v18416_v63, 20.0  ;;  %10612 = vmatmul.mubr.bf16.gmra.mxu0 %v18423_v31 }
 0x8b2   : > { %v18431_v58 = vmul.f32 100.0, %v18421_v28  ;;  %v9404_v39 = vpop.f32.mrf.mxu1  ;;  %10727 = vmatprep.mubr.bf16.mxu0 %v18292_v32  ;;  %10710 = vmatpush1.bf16.msra.mxu0 %v13977_v15  ;;  %vm9460_vm13 = vcmp.gt.f32.partialorder %v18383_v25, 20.0  ;;  %vm9467_vm14 = vcmp.gt.f32.partialorder %v18416_v63, 20.0  ;;  %vm9464_vm15 = vcmp.gt.f32.partialorder %v18400_v59, 20.0 }
 0x8b3   : > { %14918 = vpow2.f32 %v9539_v6  ;;  %v18437_v3 = vmul.f32 100.0, %v18426_v4  ;;  %v18440_v52 = vadd.f32 %v9404_v39, %v18364_v51  ;;  %v9545_v20 = vmul.f32 1.442695, %v9499_v27  ;;  %10711 = vmatprep.subr.bf16.mxu0 %v13985_v24  ;;  %v9345_v6 = vpop.f32.mrf.mxu0 }
 0x8b4   : > { %v9500_v23 = vmin.f32 %v18431_v58, 20.0  ;;  %v9406_v57 = vpop.f32.mrf.mxu1  ;;  %v9336_v51 = vadd.f32 %v18387_v34, %v18319_v17  ;;  %vm9468_vm0 = vcmp.gt.f32.partialorder %v18431_v58, 20.0  ;;  %vm9463_vm1 = vcmp.gt.f32.partialorder %v18393_v56, 20.0 }
 0x8b5   : > { %v9503_v16 = vmin.f32 %v18437_v3, 20.0  ;;  %v18446_v0 = vmul.f32 100.0, %v18440_v52  ;;  %v18448_v53 = vadd.f32 %v9406_v57, %v9334_v43  ;;  %14920 = vpow2.f32 %v9545_v20 }
 0x8b6   : > { %v14909_v55 = vpop.eup %14908  ;;  %v9547_v12 = vmul.f32 1.442695, %v9500_v23  ;;  %v9408_v32 = vpop.f32.mrf.mxu1  ;;  %10712 = vmatpush2.bf16.msra.mxu0 %v13983_v18  ;;  %v9344_v18 = vadd.f32 %v9343_v5, %v18312_v36  ;;  %vm9471_vm6 = vcmp.gt.f32.partialorder %v18437_v3, 20.0 }
 0x8b7   : > { %v9583_v7 = vadd.f32 1.0, %v14909_v55  ;;  %v9553_v41 = vmul.f32 1.442695, %v9503_v16  ;;  %v9504_v10 = vmin.f32 %v18446_v0, 20.0  ;;  %v18455_v14 = vmul.f32 100.0, %v18448_v53  ;;  %10713 = vmatprep.subr.bf16.mxu0 %v13991_v48 }
 0x8b8   : > { %14922 = vpow2.f32 %v9547_v12  ;;  %v18457_v54 = vadd.f32 %v9408_v32, %v9336_v51  ;;  %v9412_v29 = vpop.f32.mrf.mxu1  ;;  %v14911_v34 = vpop.eup %14910  ;;  %v13995_v51 = vld [vmem:[#allocation7 + $0x19a8] ss:$16 sps:$4 sm:$0xff]   ;;  %v9346_v12 = vadd.f32 %v9345_v6, %v18319_v17  ;;  %vm9472_vm4 = vcmp.gt.f32.partialorder %v18446_v0, 20.0 }
 0x8b9   : > { %14924 = vlog2.f32 %v9583_v7  ;;  %v9555_v47 = vmul.f32 1.442695, %v9504_v10  ;;  %v18460_v15 = vadd.f32 %v9412_v29, %v9340_v35  ;;  %v9584_v24 = vadd.f32 1.0, %v14911_v34  ;;  %v14003_v7 = vld [vmem:[#allocation7 + $0x198c] ss:$16 sps:$4 sm:$0xff]  }
 0x8ba   : > { %14926 = vpow2.f32 %v9553_v41  ;;  %v9507_v27 = vmin.f32 %v18455_v14, 20.0  ;;  %v9414_v39 = vpop.f32.mrf.mxu1  ;;  %v18464_v20 = vmul.f32 100.0, %v18457_v54  ;;  %10714 = vmatpush2.bf16.msra.mxu0 %v13989_v37  ;;  %v14001_v6 = vld [vmem:[#allocation7 + $0x1988] ss:$16 sps:$4 sm:$0xff]   ;;  %vm9475_vm3 = vcmp.gt.f32.partialorder %v18455_v14, 20.0 }
 0x8bb   : > { %v14913_v43 = vpop.eup %14912  ;;  %14928 = vpow2.f32 %v9555_v47  ;;  %v18467_v23 = vmul.f32 100.0, %v18460_v15  ;;  %v18469_v33 = vadd.f32 %v9414_v39, %v9342_v44  ;;  %10715 = vmatprep.subr.bf16.mxu0 %v13997_v38  ;;  %v14040_v0 = vld [vmem:[#allocation7 + $0x1a68] ss:$16 sps:$4 sm:$0xff]  }
 0x8bc   : > { %v14915_v57 = vpop.eup %14914  ;;  %14930 = vlog2.f32 %v9584_v24  ;;  %v9587_v16 = vadd.f32 1.0, %v14913_v43  ;;  %v9561_v48 = vmul.f32 1.442695, %v9507_v27  ;;  %v9416_v55 = vpop.f32.mrf.mxu1  ;;  %v9508_v35 = vmin.f32 %v18464_v20, 20.0  ;;  %v14009_v43 = vld [vmem:[#allocation7 + $0x196c] ss:$16 sps:$4 sm:$0xff]  }
 0x8bd   : > { %v9588_v32 = vadd.f32 1.0, %v14915_v57  ;;  %v9511_v10 = vmin.f32 %v18467_v23, 20.0  ;;  %v18476_v29 = vmul.f32 100.0, %v18469_v33  ;;  %v18478_v36 = vadd.f32 %v9416_v55, %v9344_v18 }
 0x8be   : > { %v14917_v41 = vpop.eup %14916  ;;  %14932 = vlog2.f32 %v9587_v16  ;;  %v9418_v5 = vpop.f32.mrf.mxu1  ;;  %v9563_v34 = vmul.f32 1.442695, %v9508_v35  ;;  %10716 = vmatpush2.bf16.msra.mxu0 %v13995_v51  ;;  %v14007_v51 = vld [vmem:[#allocation7 + $0x1968] ss:$16 sps:$4 sm:$0xff]   ;;  %v14015_v35 = vld [vmem:[#allocation7 + $0x194c] ss:$16 sps:$4 sm:$0xff]  }
 0x8bf   : > { %14934 = vlog2.f32 %v9588_v32  ;;  %v9591_v37 = vadd.f32 1.0, %v14917_v41  ;;  %v18480_v44 = vadd.f32 %v9418_v5, %v9346_v12  ;;  %v9569_v47 = vmul.f32 1.442695, %v9511_v10  ;;  %10717 = vmatprep.subr.bf16.mxu0 %v14003_v7 }
 0x8c0   : > { %v14919_v17 = vpop.eup %14918  ;;  %14936 = vpow2.f32 %v9561_v48  ;;  %v9512_v38 = vmin.f32 %v18476_v29, 20.0  ;;  %v18484_v27 = vmul.f32 100.0, %v18478_v36  ;;  %vm9476_vm5 = vcmp.gt.f32.partialorder %v18464_v20, 20.0  ;;  %v14045_v20 = vld [vmem:[#allocation7 + $0x1a4c] ss:$16 sps:$4 sm:$0xff]  }
 0x8c1   : > { %14938 = vlog2.f32 %v9591_v37  ;;  %v9592_v24 = vadd.f32 1.0, %v14919_v17  ;;  %v18487_v39 = vmul.f32 100.0, %v18480_v44  ;;  %vm9480_vm7 = vcmp.gt.f32.partialorder %v18476_v29, 20.0 }
 0x8c2   : > { %14940 = vpow2.f32 %v9563_v34  ;;  %v9571_v57 = vmul.f32 1.442695, %v9512_v38  ;;  %v14921_v18 = vpop.eup %14920  ;;  %v9515_v16 = vmin.f32 %v18484_v27, 20.0  ;;  %10718 = vmatpush2.bf16.msra.mxu0 %v14001_v6  ;;  %v14013_v34 = vld [vmem:[#allocation7 + $0x1948] ss:$16 sps:$4 sm:$0xff]   ;;  %vm9483_vm8 = vcmp.gt.f32.partialorder %v18484_v27, 20.0 }
 0x8c3   : > { %14942 = vlog2.f32 %v9592_v24  ;;  %v9595_v48 = vadd.f32 1.0, %v14921_v18  ;;  %v9516_v55 = vmin.f32 %v18487_v39, 20.0  ;;  %10719 = vmatprep.subr.bf16.mxu0 %v14009_v43  ;;  %v14021_v24 = vld [vmem:[#allocation7 + $0x192c] ss:$16 sps:$4 sm:$0xff]   ;;  %vm9484_vm9 = vcmp.gt.f32.partialorder %v18487_v39, 20.0 }
 0x8c4   : > { %14944 = vpow2.f32 %v9569_v47  ;;  %v9577_v32 = vmul.f32 1.442695, %v9515_v16  ;;  %vm9479_vm10 = vcmp.gt.f32.partialorder %v18467_v23, 20.0  ;;  %v14051_v27 = vld [vmem:[#allocation7 + $0x1a0c] ss:$16 sps:$4 sm:$0xff]  }
 0x8c5   : > { %v14923_v12 = vpop.eup %14922  ;;  %14946 = vpow2.f32 %v9571_v57  ;;  %v9579_v10 = vmul.f32 1.442695, %v9516_v55  ;;  %v14027_v55 = vld [vmem:[#allocation7 + $0x190c] ss:$16 sps:$4 sm:$0xff]   ;;  %v14052_v23 = vld [vmem:[#allocation7 + $0x1be8] ss:$16 sps:$4 sm:$0xff]  }
 0x8c6   : > { %v14925_v41 = vpop.eup %14924  ;;  %14948 = vlog2.f32 %v9595_v48  ;;  %v9596_v7 = vadd.f32 1.0, %v14923_v12  ;;  %10720 = vmatpush2.bf16.msra.mxu0 %v14007_v51  ;;  %v14019_v48 = vld [vmem:[#allocation7 + $0x1928] ss:$16 sps:$4 sm:$0xff]   ;;  %v14060_v39 = vld [vmem:[#allocation7 + $0x1bac] ss:$16 sps:$4 sm:$0xff]  }
 0x8c7   : > { %v14927_v5 = vpop.eup %14926  ;;  %14950 = vpow2.f32 %v9577_v32  ;;  %v9618_v47 = vmul.f32 0.6931472, %v14925_v41  ;;  %10721 = vmatprep.subr.bf16.mxu0 %v14015_v35 }
 0x8c8   : > { %v14929_v37 = vpop.eup %14928  ;;  %14952 = vlog2.f32 %v9596_v7  ;;  %v9599_v38 = vadd.f32 1.0, %v14927_v5 }
 0x8c9   : > { %v14931_v17 = vpop.eup %14930  ;;  %v9600_v6 = vadd.f32 1.0, %v14929_v37  ;;  %14954 = vpow2.f32 %v9579_v10  ;;  %v9679_v32 = vmul.f32 0.01, %v9618_v47 }
 0x8ca   : > { %v9620_v57 = vmul.f32 0.6931472, %v14931_v17  ;;  %10722 = vmatpush2.bf16.msra.mxu0 %v14013_v34 }
 0x8cb   : > { %v14933_v43 = vpop.eup %14932  ;;  %14956 = vlog2.f32 %v9600_v6  ;;  %10723 = vmatprep.subr.bf16.mxu0 %v14021_v24  ;;  %v9711_v24 = vsel %vm9455_vm2, %v18330_v13, %v9679_v32 }
 0x8cc   : > { %v14935_v18 = vpop.eup %14934  ;;  %v9626_v16 = vmul.f32 0.6931472, %v14933_v43  ;;  %14958 = vlog2.f32 %v9599_v38  ;;  %v9680_v7 = vmul.f32 0.01, %v9620_v57  ;;  %v14025_v38 = vld [vmem:[#allocation7 + $0x1908] ss:$16 sps:$4 sm:$0xff]  }
 0x8cd   : > { %v14937_v12 = vpop.eup %14936  ;;  %v9628_v51 = vmul.f32 0.6931472, %v14935_v18 }
 0x8ce   : > { %v14939_v41 = vpop.eup %14938  ;;  %v9683_v5 = vmul.f32 0.01, %v9626_v16  ;;  %v9603_v37 = vadd.f32 1.0, %v14937_v12  ;;  %10724 = vmatpush2.bf16.msra.mxu0 %v14019_v48  ;;  %v9712_v40 = vsel %vm9456_vm11, %v18341_v19, %v9680_v7 }
 0x8cf   : > { %v14941_v10 = vpop.eup %14940  ;;  %v9684_v35 = vmul.f32 0.01, %v9628_v51  ;;  %10725 = vmatprep.subr.bf16.mxu0 %v14027_v55  ;;  %v9634_v48 = vmul.f32 0.6931472, %v14939_v41  ;;  %v14033_v51 = vld [vmem:[#allocation7 + $0x1acc] ss:$16 sps:$4 sm:$0xff]  }
 0x8d0   : > { %v14943_v34 = vpop.eup %14942  ;;  %v9715_v17 = vsel %vm9459_vm12, %v18371_v1, %v9683_v5  ;;  %14960 = vlog2.f32 %v9603_v37  ;;  %v9604_v47 = vadd.f32 1.0, %v14941_v10  ;;  %v14028_v1 = vld [vmem:[#allocation7 + $0x1ae8] ss:$16 sps:$4 sm:$0xff]  }
 0x8d1   : > { %v14945_v6 = vpop.eup %14944  ;;  %v9716_v9 = vsel %vm9460_vm13, %v18375_v42, %v9684_v35  ;;  %v9636_v18 = vmul.f32 0.6931472, %v14943_v34  ;;  %v18501_v16 = vpack.c.bf16 %v9715_v17, %v9711_v24  ;;  %v14031_v55 = vld [vmem:[#allocation7 + $0x1ac8] ss:$16 sps:$4 sm:$0xff]   ;;  %v9687_v41 = vmul.f32 0.01, %v9634_v48 }
 0x8d2   : > { %v14947_v57 = vpop.eup %14946  ;;  %14962 = vlog2.f32 %v9604_v47  ;;  %v9607_v2 = vadd.f32 1.0, %v14945_v6  ;;  %v18499_v43 = vpack.c.bf16 %v9716_v9, %v9712_v40  ;;  %10726 = vmatpush2.bf16.msra.mxu0 %v14025_v38  ;;  %v14036_v34 = vld [vmem:[#allocation7 + $0x1aac] ss:$16 sps:$4 sm:$0xff]   ;;  %v14034_v40 = vld [vmem:[#allocation7 + $0x1aa8] ss:$16 sps:$4 sm:$0xff]  }
 0x8d3   : > { %v14949_v25 = vpop.eup %14948  ;;  %v9608_v12 = vadd.f32 1.0, %v14947_v57  ;;  %v9688_v10 = vmul.f32 0.01, %v9636_v18  ;;  %v9719_v63 = vsel %vm9463_vm1, %v18385_v30, %v9687_v41  ;;  %v14037_v30 = vld [vmem:[#allocation7 + $0x1a88] ss:$16 sps:$4 sm:$0xff]  }
 0x8d4   : > { %v14951_v5 = vpop.eup %14950  ;;  %v9642_v13 = vmul.f32 0.6931472, %v14949_v25  ;;  %14964 = vlog2.f32 %v9607_v2  ;;  %10654 = vmatprep.mubr.bf16.mxu1 %v18499_v43  ;;  %v14048_v41 = vld [vmem:[#allocation7 + $0x1a2c] ss:$16 sps:$4 sm:$0xff]  }
 0x8d5   : > { %v14953_v19 = vpop.eup %14952  ;;  %14966 = vlog2.f32 %v9608_v12  ;;  %v9611_v42 = vadd.f32 1.0, %v14951_v5  ;;  %10655 = vmatmul.mubr.bf16.vlgmr.msra.gmra.mxu1 %v18501_v16  ;;  %10728 = vmatmul.mubr.bf16.vlgmr.msra.gmra.mxu0 %v18294_v60  ;;  %v9720_v60 = vsel %vm9464_vm15, %v18395_v21, %v9688_v10 }
 0x8d6   : > { %v14955_v32 = vpop.eup %14954  ;;  %v9691_v7 = vmul.f32 0.01, %v9642_v13  ;;  %10769 = vmatpush1.bf16.msra.mxu1 %v14028_v1  ;;  %v9644_v37 = vmul.f32 0.6931472, %v14953_v19  ;;  %10737 = vmatprep.mubr.bf16.mxu0 %v18307_v46 }
 0x8d7   : > { %14968 = vlog2.f32 %v9611_v42  ;;  %v9612_v35 = vadd.f32 1.0, %v14955_v32  ;;  %10770 = vmatprep.subr.bf16.mxu1 %v14033_v51 }
 0x8d8   : > { %v9692_v17 = vmul.f32 0.01, %v9644_v37  ;;  %v14957_v47 = vpop.eup %14956  ;;  %v9723_v38 = vsel %vm9467_vm14, %v18405_v22, %v9691_v7  ;;  %v14039_v22 = vld [vmem:[#allocation7 + $0x1a8c] ss:$16 sps:$4 sm:$0xff]  }
 0x8d9   : > { %14970 = vlog2.f32 %v9612_v35  ;;  %v14959_v6 = vpop.eup %14958  ;;  %v18517_v59 = vpack.c.bf16 %v9723_v38, %v9719_v63  ;;  %v9652_v9 = vmul.f32 0.6931472, %v14957_v47  ;;  %v14046_v47 = vld [vmem:[#allocation7 + $0x1a28] ss:$16 sps:$4 sm:$0xff]  }
 0x8da   : > { %10771 = vmatpush1.bf16.msra.mxu1 %v14031_v55  ;;  %v9724_v24 = vsel %vm9468_vm0, %v18421_v28, %v9692_v17  ;;  %v9650_v57 = vmul.f32 0.6931472, %v14959_v6  ;;  %v14042_v28 = vld [vmem:[#allocation7 + $0x1a6c] ss:$16 sps:$4 sm:$0xff]   ;;  %v14058_v38 = vld [vmem:[#allocation7 + $0x1ba8] ss:$16 sps:$4 sm:$0xff]  }
 0x8db   : > { %v18515_v46 = vpack.c.bf16 %v9724_v24, %v9720_v60  ;;  %10772 = vmatprep.subr.bf16.mxu1 %v14036_v34  ;;  %v9696_v18 = vmul.f32 0.01, %v9652_v9  ;;  %v14063_v6 = vld [vmem:[#allocation7 + $0x1b8c] ss:$16 sps:$4 sm:$0xff]   ;;  %v14067_v63 = vld [vmem:[#allocation7 + $0x1b48] ss:$16 sps:$4 sm:$0xff]  }
 0x8dc   : > { %v9695_v48 = vmul.f32 0.01, %v9650_v57  ;;  %v14066_v60 = vld [vmem:[#allocation7 + $0x1b6c] ss:$16 sps:$4 sm:$0xff]   ;;  %v11192_v57 = vld [vmem:[%s19124_s6 + $0xf8] sm:$0xff] }
 0x8dd   : > { %v14961_v58 = vpop.eup %14960  ;;  %10664 = vmatprep.mubr.bf16.mxu1 %v18515_v46  ;;  %10738 = vmatmul.mubr.bf16.gmra.mxu0 %v18314_v50  ;;  %v14069_v24 = vld [vmem:[#allocation7 + $0x1b4c] ss:$16 sps:$4 sm:$0xff]  }
 0x8de   : > { %v9658_v56 = vmul.f32 0.6931472, %v14961_v58  ;;  %10665 = vmatmul.mubr.bf16.gmra.mxu1 %v18517_v59  ;;  %10747 = vmatprep.mubr.bf16.mxu0 %v18343_v62  ;;  %v9728_v62 = vsel %vm9472_vm4, %v18440_v52, %v9696_v18  ;;  %v9727_v42 = vsel %vm9471_vm6, %v18426_v4, %v9695_v48  ;;  %v14075_v9 = vld [vmem:[#allocation7 + $0x1b0c] ss:$16 sps:$4 sm:$0xff]   ;;  %v14073_v58 = vld [vmem:[#allocation7 + $0x1b08] ss:$16 sps:$4 sm:$0xff]  }
 0x8df   : > { %v14963_v21 = vpop.eup %14962  ;;  %10773 = vmatpush1.bf16.msra.mxu1 %v14034_v40  ;;  %v14072_v40 = vld [vmem:[#allocation7 + $0x1b2c] ss:$16 sps:$4 sm:$0xff]   ;;  %12523 = vmatprep.subr.mxu0 %v11192_v57  ;;  %v11186_v48 = vld [vmem:[%s19124_s6 + $0xc8] sm:$0xff]  ;;  %v11212_v57 = vld [vmem:[%s19124_s6 + $0x198] sm:$0xff] }
 0x8e0   : > { %v9699_v2 = vmul.f32 0.01, %v9658_v56  ;;  %10774 = vmatprep.subr.bf16.mxu1 %v14039_v22  ;;  %v9660_v1 = vmul.f32 0.6931472, %v14963_v21  ;;  %v14070_v22 = vld [vmem:[#allocation7 + $0x1b28] ss:$16 sps:$4 sm:$0xff]  }
 0x8e1   : > { %v14965_v25 = vpop.eup %14964  ;;  %v11176_v56 = vld [vmem:[%s19124_s6 + $0x78] sm:$0xff]  ;;  %v11174_v21 = vld [vmem:[%s19124_s6 + $0x68] sm:$0xff]  ;;  %v11187_v18 = vld [vmem:[%s19124_s6 + $0xd0] sm:$0xff] }
 0x8e2   : > { %v14967_v12 = vpop.eup %14966  ;;  %v9700_v51 = vmul.f32 0.01, %v9660_v1  ;;  %v9731_v5 = vsel %vm9475_vm3, %v18448_v53, %v9699_v2  ;;  %v9666_v14 = vmul.f32 0.6931472, %v14965_v25  ;;  %12524 = vmatpush3.msra.mxu0 %v11176_v56  ;;  %v11188_v2 = vld [vmem:[%s19124_s6 + $0xd8] sm:$0xff]  ;;  %v11171_v25 = vld [vmem:[%s19124_s6 + $0x50] sm:$0xff] }
 0x8e3   : > { %10775 = vmatpush1.bf16.msra.mxu1 %v14037_v30  ;;  %v9668_v50 = vmul.f32 0.6931472, %v14967_v12  ;;  %v18533_v7 = vpack.c.bf16 %v9731_v5, %v9727_v42  ;;  %v11189_v30 = vld [vmem:[%s19124_s6 + $0xe0] sm:$0xff]  ;;  %v11172_v1 = vld [vmem:[%s19124_s6 + $0x58] sm:$0xff]  ;;  %v11170_v12 = vld [vmem:[%s19124_s6 + $0x48] sm:$0xff] }
 0x8e4   : > { %v14969_v13 = vpop.eup %14968  ;;  %v9732_v19 = vsel %vm9476_vm5, %v18457_v54, %v9700_v51  ;;  %10776 = vmatprep.subr.bf16.mxu1 %v14042_v28  ;;  %v9703_v4 = vmul.f32 0.01, %v9666_v14  ;;  %v14043_v54 = vld [vmem:[#allocation7 + $0x1a48] ss:$16 sps:$4 sm:$0xff]  }
 0x8e5   : > { %v9674_v55 = vmul.f32 0.6931472, %v14969_v13  ;;  %v18531_v32 = vpack.c.bf16 %v9732_v19, %v9728_v62  ;;  %10748 = vmatmul.mubr.bf16.gmra.mxu0 %v18351_v8  ;;  %v9704_v52 = vmul.f32 0.01, %v9668_v50  ;;  %v11173_v28 = vld [vmem:[%s19124_s6 + $0x60] sm:$0xff]  ;;  %v11184_v50 = vld [vmem:[%s19124_s6 + $0xb8] sm:$0xff] }
 0x8e6   : > { %v14971_v53 = vpop.eup %14970  ;;  %10757 = vmatprep.mubr.bf16.mxu0 %v18418_v49  ;;  %v9735_v17 = vsel %vm9479_vm10, %v18460_v15, %v9703_v4  ;;  %v14055_v15 = vld [vmem:[#allocation7 + $0x1bc8] ss:$16 sps:$4 sm:$0xff]  }
 0x8e7   : > { %v9707_v37 = vmul.f32 0.01, %v9674_v55  ;;  %10674 = vmatprep.mubr.bf16.mxu1 %v18531_v32  ;;  %v9676_v3 = vmul.f32 0.6931472, %v14971_v53  ;;  %10777 = vmatpush1.bf16.msra.mxu1 %v14040_v0  ;;  %v9736_v35 = vsel %vm9480_vm7, %v18469_v33, %v9704_v52  ;;  %v14049_v33 = vld [vmem:[#allocation7 + $0x1a08] ss:$16 sps:$4 sm:$0xff]  }
 0x8e8   : > { %10675 = vmatmul.mubr.bf16.gmra.mxu1 %v18533_v7  ;;  %10778 = vmatprep.subr.bf16.mxu1 %v14045_v20  ;;  %v11185_v51 = vld [vmem:[%s19124_s6 + $0xc0] sm:$0xff]  ;;  %v11168_v13 = vld [vmem:[%s19124_s6 + $0x38] sm:$0xff]  ;;  %v11183_v62 = vld [vmem:[%s19124_s6 + $0xb0] sm:$0xff] }
 0x8e9   : > { %v9708_v10 = vmul.f32 0.01, %v9676_v3  ;;  %v9739_v8 = vsel %vm9483_vm8, %v18478_v36, %v9707_v37  ;;  %v14054_v36 = vld [vmem:[#allocation7 + $0x1bec] ss:$16 sps:$4 sm:$0xff]   ;;  %v11182_v42 = vld [vmem:[%s19124_s6 + $0xa8] sm:$0xff]  ;;  %v11180_v0 = vld [vmem:[%s19124_s6 + $0x98] sm:$0xff] }
 0x8ea   : > { %v9755_v29 = vpack.c.bf16 %v9739_v8, %v9735_v17  ;;  %v11169_v5 = vld [vmem:[%s19124_s6 + $0x40] sm:$0xff]  ;;  %v11167_v19 = vld [vmem:[%s19124_s6 + $0x30] sm:$0xff]  ;;  %v11166_v14 = vld [vmem:[%s19124_s6 + $0x28] sm:$0xff] }
 0x8eb   : > { %v9740_v34 = vsel %vm9484_vm9, %v18480_v44, %v9708_v10  ;;  %10779 = vmatpush1.bf16.msra.mxu1 %v14043_v54  ;;  %v14057_v44 = vld [vmem:[#allocation7 + $0x1bcc] ss:$16 sps:$4 sm:$0xff]   ;;  %v11164_v53 = vld [vmem:[%s19124_s6 + $0x18] sm:$0xff]  ;;  %v11178_v37 = vld [vmem:[%s19124_s6 + $0x88] sm:$0xff] }
 0x8ec   : > { %v9756_v49 = vpack.c.bf16 %v9740_v34, %v9736_v35  ;;  %10780 = vmatprep.subr.bf16.mxu1 %v14048_v41  ;;  %v11181_v55 = vld [vmem:[%s19124_s6 + $0xa0] sm:$0xff]  ;;  %v11163_v20 = vld [vmem:[%s19124_s6 + $0x10] sm:$0xff]  ;;  %v11162_v3 = vld [vmem:[%s19124_s6 + $0x8] sm:$0xff] }
 0x8ed   : > { %10758 = vmatmul.mubr.bf16.gmra.mxu0 %v18423_v31  ;;  %v14061_v31 = vld [vmem:[#allocation7 + $0x1b88] ss:$16 sps:$4 sm:$0xff]  }
 0x8ee   : > { %10684 = vmatprep.mubr.bf16.mxu1 %v9756_v49  ;;  %v11177_v52 = vld [vmem:[%s19124_s6 + $0x80] sm:$0xff]  ;;  %v11224_v54 = vld [vmem:[%s19124_s6 + $0x1f8] sm:$0xff]  ;;  %v11223_v41 = vld [vmem:[%s19124_s6 + $0x1f0] sm:$0xff] }
 0x8ef   : > { %10781 = vmatpush1.bf16.msra.mxu1 %v14046_v47  ;;  %v11161_v4 = vld [vmem:[%s19124_s6] sm:$0xff]  ;;  %v11208_v10 = vld [vmem:[%s19124_s6 + $0x178] sm:$0xff]  ;;  %v11207_v8 = vld [vmem:[%s19124_s6 + $0x170] sm:$0xff] }
 0x8f0   : > { %10685 = vmatmul.mubr.bf16.gmra.mxu1 %v9755_v29  ;;  %10782 = vmatprep.subr.bf16.mxu1 %v14051_v27  ;;  %v11222_v35 = vld [vmem:[%s19124_s6 + $0x1e8] sm:$0xff]  ;;  %v11205_v17 = vld [vmem:[%s19124_s6 + $0x160] sm:$0xff]  ;;  %v11220_v47 = vld [vmem:[%s19124_s6 + $0x1d8] sm:$0xff] }
 0x8f1   : > { %10800 = vmatprep.mubr.bf16.mxu1 %v18499_v43  ;;  %v14064_v43 = vld [vmem:[#allocation7 + $0x1b68] ss:$16 sps:$4 sm:$0xff]  }
 0x8f2   : > { %v11206_v34 = vld [vmem:[%s19124_s6 + $0x168] sm:$0xff]  ;;  %v11196_v56 = vld [vmem:[%s19124_s6 + $0x118] sm:$0xff] }
 0x8f3   : > { %10783 = vmatpush1.bf16.msra.mxu1 %v14049_v33  ;;  %v11219_v33 = vld [vmem:[%s19124_s6 + $0x1d0] sm:$0xff] }
 0x8f4   : > { %10784 = vmatprep.subr.bf16.mxu1 %v14054_v36  ;;  %v11203_v36 = vld [vmem:[%s19124_s6 + $0x150] sm:$0xff] }
 0x8f7   : > { %10785 = vmatpush2.bf16.msra.mxu1 %v14052_v23  ;;  %v11218_v23 = vld [vmem:[%s19124_s6 + $0x1c8] sm:$0xff] }
 0x8f8   : > { %10786 = vmatprep.subr.bf16.mxu1 %v14057_v44  ;;  %v11202_v44 = vld [vmem:[%s19124_s6 + $0x148] sm:$0xff] }
 0x8fb   : > { %10787 = vmatpush2.bf16.msra.mxu1 %v14055_v15 }
 0x8fc   : > { %10788 = vmatprep.subr.bf16.mxu1 %v14060_v39  ;;  %v11217_v39 = vld [vmem:[%s19124_s6 + $0x1c0] sm:$0xff] }
 0x8ff   : > { %10789 = vmatpush2.bf16.msra.mxu1 %v14058_v38  ;;  %v11201_v38 = vld [vmem:[%s19124_s6 + $0x140] sm:$0xff] }
 0x900   : > { %10790 = vmatprep.subr.bf16.mxu1 %v14063_v6  ;;  %v11216_v6 = vld [vmem:[%s19124_s6 + $0x1b8] sm:$0xff] }
 0x903   : > { %10791 = vmatpush2.bf16.msra.mxu1 %v14061_v31  ;;  %v11200_v31 = vld [vmem:[%s19124_s6 + $0x138] sm:$0xff] }
 0x904   : > { %10792 = vmatprep.subr.bf16.mxu1 %v14066_v60 }
 0x907   : > { %10793 = vmatpush2.bf16.msra.mxu1 %v14064_v43  ;;  %v11215_v43 = vld [vmem:[%s19124_s6 + $0x1b0] sm:$0xff] }
 0x908   : > { %10794 = vmatprep.subr.bf16.mxu1 %v14069_v24  ;;  %v11199_v24 = vld [vmem:[%s19124_s6 + $0x130] sm:$0xff] }
 0x90b   : > { %10795 = vmatpush2.bf16.msra.mxu1 %v14067_v63  ;;  %v11214_v63 = vld [vmem:[%s19124_s6 + $0x1a8] sm:$0xff] }
 0x90c   : > { %10796 = vmatprep.subr.bf16.mxu1 %v14072_v40  ;;  %v11198_v40 = vld [vmem:[%s19124_s6 + $0x128] sm:$0xff] }
 0x90f   : > { %10797 = vmatpush2.bf16.msra.mxu1 %v14070_v22 }
 0x910   : > { %10798 = vmatprep.subr.bf16.mxu1 %v14075_v9  ;;  %v11213_v9 = vld [vmem:[%s19124_s6 + $0x1a0] sm:$0xff] }
 0x913   : > { %10799 = vmatpush2.bf16.msra.mxu1 %v14073_v58  ;;  %v11197_v58 = vld [vmem:[%s19124_s6 + $0x120] sm:$0xff] }
 0x914   : > { %12579 = vmatprep.subr.mxu1 %v11224_v54 }
 0x916   : > { %10801 = vmatmul.mubr.bf16.vlgmr.msra.gmra.mxu1 %v18501_v16  ;;  %v11191_v16 = vld [vmem:[%s19124_s6 + $0xf0] sm:$0xff] }
 0x917   : > { %10810 = vmatprep.mubr.bf16.mxu1 %v18515_v46  ;;  %12525 = vmatprep.subr.mxu0 %v11191_v16  ;;  %v11175_v46 = vld [vmem:[%s19124_s6 + $0x70] sm:$0xff] }
 0x918   : > { %12526 = vmatpush3.msra.mxu0 %v11175_v46  ;;  %12580 = vmatpush3.msra.mxu1 %v11208_v10  ;;  %v11211_v46 = vld [vmem:[%s19124_s6 + $0x190] sm:$0xff] }
 0x919   : > { %12581 = vmatprep.subr.mxu1 %v11223_v41 }
 0x91a   : > { %12582 = vmatpush3.msra.mxu1 %v11207_v8 }
 0x91b   : > { %12583 = vmatprep.subr.mxu1 %v11222_v35 }
 0x91c   : > { %12584 = vmatpush3.msra.mxu1 %v11206_v34 }
 0x91e   : > { %10811 = vmatmul.mubr.bf16.gmra.mxu1 %v18517_v59  ;;  %v11190_v59 = vld [vmem:[%s19124_s6 + $0xe8] sm:$0xff] }
 0x91f   : > { %10820 = vmatprep.mubr.bf16.mxu1 %v18531_v32  ;;  %12527 = vmatprep.subr.mxu0 %v11190_v59  ;;  %v11165_v32 = vld [vmem:[%s19124_s6 + $0x20] sm:$0xff]  ;;  %v11195_v59 = vld [vmem:[%s19124_s6 + $0x110] sm:$0xff] }
 0x920   : > { %12528 = vmatpush3.msra.mxu0 %v11174_v21  ;;  %v11210_v21 = vld [vmem:[%s19124_s6 + $0x188] sm:$0xff] }
 0x921   : > { %12529 = vmatprep.subr.mxu0 %v11189_v30  ;;  %v11194_v30 = vld [vmem:[%s19124_s6 + $0x108] sm:$0xff] }
 0x922   : > { %12530 = vmatpush3.msra.mxu0 %v11173_v28 }
 0x923   : > { %12531 = vmatprep.subr.mxu0 %v11188_v2  ;;  %v11209_v2 = vld [vmem:[%s19124_s6 + $0x180] sm:$0xff] }
 0x924   : > { %12532 = vmatpush3.msra.mxu0 %v11172_v1  ;;  %v11193_v1 = vld [vmem:[%s19124_s6 + $0x100] sm:$0xff] }
 0x925   : > { %12533 = vmatprep.subr.mxu0 %v11187_v18  ;;  %v18746_v18 = vld [vmem:[#allocation8 + $0x18] sm:$0xf] }
 0x926   : > { %10821 = vmatmul.mubr.bf16.gmra.mxu1 %v18533_v7  ;;  %12534 = vmatpush3.msra.mxu0 %v11171_v25  ;;  %v11179_v7 = vld [vmem:[%s19124_s6 + $0x90] sm:$0xff] }
 0x927   : > { %10830 = vmatprep.mubr.bf16.mxu1 %v9756_v49  ;;  %12535 = vmatprep.subr.mxu0 %v11186_v48  ;;  %v11221_v49 = vld [vmem:[%s19124_s6 + $0x1e0] sm:$0xff]  ;;  %v18750_v48 = vrot.slane %v18746_v18, %v19273_v45 }
 0x928   : > { %12536 = vmatpush3.msra.mxu0 %v11170_v12  ;;  %12585 = vmatprep.subr.mxu1 %v11221_v49 }
 0x929   : > { %12537 = vmatprep.subr.mxu0 %v11185_v51  ;;  %12586 = vmatpush3.msra.mxu1 %v11205_v17  ;;  %v18754_v51 = vrot.slane %v18746_v18, %v19274_v11 }
 0x92a   : > { %12538 = vmatpush3.msra.mxu0 %v11169_v5  ;;  %12587 = vmatprep.subr.mxu1 %v11220_v47 }
 0x92b   : > { %12539 = vmatprep.subr.mxu0 %v11184_v50 }
 0x92c   : > { %12540 = vmatpush3.msra.mxu0 %v11168_v13 }
 0x92d   : > { %12541 = vmatprep.subr.mxu0 %v11183_v62 }
 0x92e   : > { %10831 = vmatmul.mubr.bf16.gmra.mxu1 %v9755_v29  ;;  %12542 = vmatpush3.msra.mxu0 %v11167_v19  ;;  %v11204_v29 = vld [vmem:[%s19124_s6 + $0x158] sm:$0xff] }
 0x92f   : > { %12543 = vmatprep.subr.mxu0 %v11182_v42  ;;  %12588 = vmatpush3.msra.mxu1 %v11204_v29 }
 0x930   : > { %12544 = vmatpush3.msra.mxu0 %v11166_v14  ;;  %12589 = vmatprep.subr.mxu1 %v11219_v33 }
 0x931   : > { %12545 = vmatprep.subr.mxu0 %v11181_v55  ;;  %12590 = vmatpush3.msra.mxu1 %v11203_v36 }
 0x932   : > { %12546 = vmatpush3.msra.mxu0 %v11165_v32  ;;  %12591 = vmatprep.subr.mxu1 %v11218_v23 }
 0x933   : > { %12547 = vmatprep.subr.mxu0 %v11180_v0  ;;  %12592 = vmatpush3.msra.mxu1 %v11202_v44 }
 0x934   : > { %12548 = vmatpush3.msra.mxu0 %v11164_v53  ;;  %12593 = vmatprep.subr.mxu1 %v11217_v39 }
 0x935   : > { %12549 = vmatprep.subr.mxu0 %v11179_v7  ;;  %12594 = vmatpush3.msra.mxu1 %v11201_v38 }
 0x936   : > { %12550 = vmatpush3.msra.mxu0 %v11163_v20  ;;  %12595 = vmatprep.subr.mxu1 %v11216_v6 }
 0x937   : > { %12551 = vmatprep.subr.mxu0 %v11178_v37  ;;  %12596 = vmatpush3.msra.mxu1 %v11200_v31 }
 0x938   : > { %12552 = vmatpush3.msra.mxu0 %v11162_v3  ;;  %12597 = vmatprep.subr.mxu1 %v11215_v43 }
 0x939   : > { %12553 = vmatprep.subr.mxu0 %v11177_v52  ;;  %12598 = vmatpush3.msra.mxu1 %v11199_v24 }
 0x93a   : > { %12554 = vmatpush3.msra.mxu0 %v11161_v4  ;;  %12599 = vmatprep.subr.mxu1 %v11214_v63 }
 0x93b   : > { %12600 = vmatpush3.msra.mxu1 %v11198_v40 }
 0x93c   : > { %12601 = vmatprep.subr.mxu1 %v11213_v9 }
 0x93d   : > { %12602 = vmatpush3.msra.mxu1 %v11197_v58 }
 0x93e   : > { %12603 = vmatprep.subr.mxu1 %v11212_v57 }
 0x93f   : > { %12604 = vmatpush3.msra.mxu1 %v11196_v56 }
 0x940   : > { %12605 = vmatprep.subr.mxu1 %v11211_v46 }
 0x941   : > { %12606 = vmatpush3.msra.mxu1 %v11195_v59 }
 0x942   : > { %12607 = vmatprep.subr.mxu1 %v11210_v21 }
 0x943   : > { %12608 = vmatpush3.msra.mxu1 %v11194_v30 }
 0x944   : > { %12609 = vmatprep.subr.mxu1 %v11209_v2 }
 0x945   : > { %12610 = vmatpush3.msra.mxu1 %v11193_v1 }
 0x954   : > { %v10583_v27 = vpop.f32.mrf.mxu0 }
 0x955   : > { %v10584_v5 = vadd.f32 %v10583_v27, %v18750_v48 }
 0x956   : > { %v10585_v15 = vpop.f32.mrf.mxu0 }
 0x957   : > { %v10586_v62 = vadd.f32 %v10585_v15, %v18754_v51 }
 0x958   : > { %v10587_v60 = vpop.f32.mrf.mxu0 }
 0x959   : > { %v10588_v45 = vadd.f32 %v10587_v60, %v18750_v48 }
 0x95a   : > { %v10589_v22 = vpop.f32.mrf.mxu0 }
 0x95b   : > { %v10590_v11 = vadd.f32 %v10589_v22, %v18754_v51 }
 0x95c   : > { %v10593_v16 = vpop.f32.mrf.mxu0 }
 0x95d   : > { %v10594_v54 = vadd.f32 %v10593_v16, %v18750_v48 }
 0x95e   : > { %v10595_v28 = vpop.f32.mrf.mxu0 }
 0x95f   : > { %v10596_v49 = vadd.f32 %v10595_v28, %v18754_v51 }
 0x960   : > { %v10597_v25 = vpop.f32.mrf.mxu0 }
 0x961   : > { %v10598_v15 = vadd.f32 %v10597_v25, %v18750_v48 }
 0x962   : > { %v10599_v12 = vpop.f32.mrf.mxu0 }
 0x963   : > { %v10600_v6 = vadd.f32 %v10599_v12, %v18754_v51 }
 0x965   : > { %v10603_v50 = vpop.f32.mrf.mxu0 }
 0x966   : > { %v10604_v57 = vadd.f32 %v10603_v50, %v18750_v48 }
 0x967   : > { %v10605_v32 = vpop.f32.mrf.mxu0 }
 0x968   : > { %v10606_v21 = vadd.f32 %v10605_v32, %v18754_v51 }
 0x969   : > { %v10607_v10 = vpop.f32.mrf.mxu0 }
 0x96b   : > { %v10609_v33 = vpop.f32.mrf.mxu0 }
 0x971   : > { %v10613_v63 = vpop.f32.mrf.mxu0 }
 0x973   : > { %v10615_v30 = vpop.f32.mrf.mxu0 }
 0x995   : > { %v10656_v13 = vpop.f32.mrf.mxu1 }
 0x996   : > { %v18758_v19 = vadd.f32 %v10656_v13, %v10584_v5 }
 0x997   : > { %v10658_v42 = vpop.f32.mrf.mxu1 }
 0x998   : > { %v18761_v14 = vmul.f32 100.0, %v18758_v19  ;;  %v18763_v55 = vadd.f32 %v10658_v42, %v10586_v62  ;;  %v10608_v62 = vadd.f32 %v10607_v10, %v18750_v48 }
 0x999   : > { %v10660_v0 = vpop.f32.mrf.mxu1 }
 0x99a   : > { %v10905_v53 = vmin.f32 %v18761_v14, 20.0  ;;  %v18769_v7 = vmul.f32 100.0, %v18763_v55  ;;  %v18771_v20 = vadd.f32 %v10660_v0, %v10588_v45  ;;  %v10610_v0 = vadd.f32 %v10609_v33, %v18754_v51 }
 0x99b   : > { %v10662_v37 = vpop.f32.mrf.mxu1  ;;  %vm10873_vm11 = vcmp.gt.f32.partialorder %v18761_v14, 20.0 }
 0x99c   : > { %v10937_v3 = vmul.f32 1.442695, %v10905_v53  ;;  %v10906_v52 = vmin.f32 %v18769_v7, 20.0  ;;  %v18774_v4 = vadd.f32 %v10662_v37, %v10590_v11  ;;  %v18778_v41 = vmul.f32 100.0, %v18771_v20  ;;  %v10617_v11 = vpop.f32.mrf.mxu0 }
 0x99d   : > { %vm10874_vm2 = vcmp.gt.f32.partialorder %v18769_v7, 20.0 }
 0x99e   : > { %14972 = vpow2.f32 %v10937_v3  ;;  %v10939_v8 = vmul.f32 1.442695, %v10906_v52  ;;  %v18781_v35 = vmul.f32 100.0, %v18774_v4  ;;  %v10666_v34 = vpop.f32.mrf.mxu1  ;;  %v10909_v17 = vmin.f32 %v18778_v41, 20.0 }
 0x99f   : > { %v18785_v47 = vadd.f32 %v10666_v34, %v10594_v54  ;;  %vm10877_vm13 = vcmp.gt.f32.partialorder %v18778_v41, 20.0 }
 0x9a0   : > { %14974 = vpow2.f32 %v10939_v8  ;;  %v10910_v29 = vmin.f32 %v18781_v35, 20.0  ;;  %v10668_v27 = vpop.f32.mrf.mxu1  ;;  %v10945_v36 = vmul.f32 1.442695, %v10909_v17  ;;  %v10614_v17 = vadd.f32 %v10613_v63, %v18750_v48 }
 0x9a1   : > { %v18789_v23 = vmul.f32 100.0, %v18785_v47  ;;  %v18791_v44 = vadd.f32 %v10668_v27, %v10596_v49  ;;  %vm10878_vm12 = vcmp.gt.f32.partialorder %v18781_v35, 20.0 }
 0x9a2   : > { %v10947_v39 = vmul.f32 1.442695, %v10910_v29  ;;  %v10670_v38 = vpop.f32.mrf.mxu1  ;;  %14976 = vpow2.f32 %v10945_v36  ;;  %v10616_v29 = vadd.f32 %v10615_v30, %v18754_v51 }
 0x9a3   : > { %v10913_v31 = vmin.f32 %v18789_v23, 20.0  ;;  %v18797_v60 = vmul.f32 100.0, %v18791_v44  ;;  %v18799_v43 = vadd.f32 %v10670_v38, %v10598_v15  ;;  %v10619_v15 = vpop.f32.mrf.mxu0  ;;  %vm10881_vm15 = vcmp.gt.f32.partialorder %v18789_v23, 20.0 }
 0x9a4   : > { %14978 = vpow2.f32 %v10947_v39  ;;  %v10672_v24 = vpop.f32.mrf.mxu1 }
 0x9a5   : > { %v10953_v40 = vmul.f32 1.442695, %v10913_v31  ;;  %v10914_v22 = vmin.f32 %v18797_v60, 20.0  ;;  %v18802_v9 = vadd.f32 %v10672_v24, %v10600_v6  ;;  %v18805_v58 = vmul.f32 100.0, %v18799_v43 }
 0x9a6   : > { %vm10882_vm14 = vcmp.gt.f32.partialorder %v18797_v60, 20.0 }
 0x9a7   : > { %14980 = vpow2.f32 %v10953_v40  ;;  %v10955_v56 = vmul.f32 1.442695, %v10914_v22  ;;  %v18809_v16 = vmul.f32 100.0, %v18802_v9  ;;  %v10917_v46 = vmin.f32 %v18805_v58, 20.0 }
 0x9a8   : > { %v10676_v59 = vpop.f32.mrf.mxu1  ;;  %v10618_v22 = vadd.f32 %v10617_v11, %v18750_v48  ;;  %vm10885_vm1 = vcmp.gt.f32.partialorder %v18805_v58, 20.0 }
 0x9a9   : > { %14982 = vpow2.f32 %v10955_v56  ;;  %v10918_v28 = vmin.f32 %v18809_v16, 20.0  ;;  %v18814_v2 = vadd.f32 %v10676_v59, %v10604_v57  ;;  %v10961_v1 = vmul.f32 1.442695, %v10917_v46 }
 0x9aa   : > { %v10678_v25 = vpop.f32.mrf.mxu1  ;;  %v10620_v59 = vadd.f32 %v10619_v15, %v18754_v51  ;;  %vm10886_vm0 = vcmp.gt.f32.partialorder %v18809_v16, 20.0 }
 0x9ab   : > { %v14973_v12 = vpop.eup %14972  ;;  %v10963_v5 = vmul.f32 1.442695, %v10918_v28  ;;  %v18817_v50 = vmul.f32 100.0, %v18814_v2  ;;  %v18819_v13 = vadd.f32 %v10678_v25, %v10606_v21  ;;  %14984 = vpow2.f32 %v10961_v1 }
 0x9ac   : > { %v11001_v42 = vadd.f32 1.0, %v14973_v12  ;;  %v10680_v45 = vpop.f32.mrf.mxu1 }
 0x9ad   : > { %v14975_v32 = vpop.eup %14974  ;;  %14986 = vpow2.f32 %v10963_v5  ;;  %v10921_v53 = vmin.f32 %v18817_v50, 20.0  ;;  %v18825_v37 = vmul.f32 100.0, %v18819_v13  ;;  %v18827_v52 = vadd.f32 %v10680_v45, %v10608_v62  ;;  %v18854_v5 = vpop.f32.mrf.mxu0 }
 0x9ae   : > { %14988 = vlog2.f32 %v11001_v42  ;;  %v11002_v3 = vadd.f32 1.0, %v14975_v32  ;;  %v10682_v54 = vpop.f32.mrf.mxu1  ;;  %vm10889_vm4 = vcmp.gt.f32.partialorder %v18817_v50, 20.0 }
 0x9af   : > { %v10969_v8 = vmul.f32 1.442695, %v10921_v53  ;;  %v10922_v10 = vmin.f32 %v18825_v37, 20.0  ;;  %v18830_v34 = vadd.f32 %v10682_v54, %v10610_v0  ;;  %v14977_v49 = vpop.eup %14976  ;;  %v18835_v27 = vmul.f32 100.0, %v18827_v52 }
 0x9b0   : > { %14990 = vlog2.f32 %v11002_v3  ;;  %v10686_v33 = vpop.f32.mrf.mxu1  ;;  %v11005_v39 = vadd.f32 1.0, %v14977_v49  ;;  %v18868_v49 = vpop.f32.mrf.mxu0  ;;  %vm10890_vm3 = vcmp.gt.f32.partialorder %v18825_v37, 20.0 }
 0x9b1   : > { %v14979_v36 = vpop.eup %14978  ;;  %14992 = vpow2.f32 %v10969_v8  ;;  %v10971_v38 = vmul.f32 1.442695, %v10922_v10  ;;  %v18838_v6 = vmul.f32 100.0, %v18830_v34  ;;  %v10925_v24 = vmin.f32 %v18835_v27, 20.0 }
 0x9b2   : > { %v11006_v31 = vadd.f32 1.0, %v14979_v36  ;;  %v18841_v40 = vadd.f32 %v10686_v33, %v10614_v17  ;;  %v10688_v63 = vpop.f32.mrf.mxu1  ;;  %14994 = vlog2.f32 %v11005_v39  ;;  %vm10893_vm6 = vcmp.gt.f32.partialorder %v18835_v27, 20.0 }
 0x9b3   : > { %v10926_v57 = vmin.f32 %v18838_v6, 20.0  ;;  %v18845_v56 = vadd.f32 %v10688_v63, %v10616_v29  ;;  %v10977_v21 = vmul.f32 1.442695, %v10925_v24  ;;  %vm10894_vm5 = vcmp.gt.f32.partialorder %v18838_v6, 20.0 }
 0x9b4   : > { %v14981_v46 = vpop.eup %14980  ;;  %14996 = vlog2.f32 %v11006_v31  ;;  %v18849_v30 = vmul.f32 100.0, %v18841_v40  ;;  %v10690_v28 = vpop.f32.mrf.mxu1 }
 0x9b5   : > { %v11009_v1 = vadd.f32 1.0, %v14981_v46  ;;  %14998 = vpow2.f32 %v10971_v38  ;;  %v10979_v25 = vmul.f32 1.442695, %v10926_v57  ;;  %v18852_v12 = vmul.f32 100.0, %v18845_v56 }
 0x9b6   : > { %v14983_v48 = vpop.eup %14982  ;;  %15000 = vpow2.f32 %v10977_v21  ;;  %v10929_v62 = vmin.f32 %v18849_v30, 20.0  ;;  %v18857_v42 = vadd.f32 %v10690_v28, %v10618_v22  ;;  %v10692_v51 = vpop.f32.mrf.mxu1  ;;  %vm10897_vm8 = vcmp.gt.f32.partialorder %v18849_v30, 20.0 }
 0x9b7   : > { %15002 = vlog2.f32 %v11009_v1  ;;  %v11010_v45 = vadd.f32 1.0, %v14983_v48  ;;  %v10930_v32 = vmin.f32 %v18852_v12, 20.0  ;;  %v18860_v0 = vadd.f32 %v10692_v51, %v10620_v59  ;;  %v18872_v22 = vpop.f32.mrf.mxu0 }
 0x9b8   : > { %15004 = vpow2.f32 %v10979_v25  ;;  %v10985_v11 = vmul.f32 1.442695, %v10929_v62  ;;  %v18863_v53 = vmul.f32 100.0, %v18857_v42  ;;  %v14985_v3 = vpop.eup %14984  ;;  %vm10898_vm7 = vcmp.gt.f32.partialorder %v18852_v12, 20.0 }
 0x9b9   : > { %15006 = vlog2.f32 %v11010_v45  ;;  %v10987_v54 = vmul.f32 1.442695, %v10930_v32  ;;  %v18866_v8 = vmul.f32 100.0, %v18860_v0  ;;  %v11013_v17 = vadd.f32 1.0, %v14985_v3  ;;  %v18876_v62 = vpop.f32.mrf.mxu0 }
 0x9ba   : > { %v14987_v10 = vpop.eup %14986  ;;  %15008 = vpow2.f32 %v10985_v11  ;;  %v10933_v29 = vmin.f32 %v18863_v53, 20.0  ;;  %vm10901_vm10 = vcmp.gt.f32.partialorder %v18863_v53, 20.0 }
 0x9bb   : > { %v14989_v33 = vpop.eup %14988  ;;  %v11014_v36 = vadd.f32 1.0, %v14987_v10  ;;  %15010 = vpow2.f32 %v10987_v54  ;;  %v10934_v15 = vmin.f32 %v18866_v8, 20.0  ;;  %vm10902_vm9 = vcmp.gt.f32.partialorder %v18866_v8, 20.0 }
 0x9bc   : > { %v11034_v39 = vmul.f32 0.6931472, %v14989_v33  ;;  %15012 = vlog2.f32 %v11013_v17  ;;  %v10993_v38 = vmul.f32 1.442695, %v10933_v29 }
 0x9bd   : > { %v14991_v31 = vpop.eup %14990  ;;  %15014 = vlog2.f32 %v11014_v36  ;;  %v10995_v24 = vmul.f32 1.442695, %v10934_v15 }
 0x9be   : > { %v14993_v63 = vpop.eup %14992  ;;  %15016 = vpow2.f32 %v10993_v38  ;;  %v11036_v57 = vmul.f32 0.6931472, %v14991_v31  ;;  %v11097_v46 = vmul.f32 0.01, %v11034_v39 }
 0x9bf   : > { %v11017_v59 = vadd.f32 1.0, %v14993_v63  ;;  %15018 = vpow2.f32 %v10995_v24  ;;  %v14995_v21 = vpop.eup %14994 }
 0x9c0   : > { %v11098_v28 = vmul.f32 0.01, %v11036_v57  ;;  %v11042_v25 = vmul.f32 0.6931472, %v14995_v21  ;;  %v11129_v11 = vsel %vm10873_vm11, %v18758_v19, %v11097_v46 }
 0x9c1   : > { %v14997_v1 = vpop.eup %14996  ;;  %15020 = vlog2.f32 %v11017_v59 }
 0x9c2   : > { %v14999_v48 = vpop.eup %14998  ;;  %v11130_v51 = vsel %vm10874_vm2, %v18763_v55, %v11098_v28  ;;  %v11044_v45 = vmul.f32 0.6931472, %v14997_v1  ;;  %v11101_v54 = vmul.f32 0.01, %v11042_v25  ;;  %v18882_v55 = vpop.f32.mrf.mxu0 }
 0x9c3   : > { %v15001_v32 = vpop.eup %15000  ;;  %v11018_v3 = vadd.f32 1.0, %v14999_v48  ;;  %11296 = vmatprep.mubr.f32.mxu0 %v11130_v51 }
 0x9c4   : > { %v15003_v10 = vpop.eup %15002  ;;  %v11021_v17 = vadd.f32 1.0, %v15001_v32  ;;  %11297 = vmatmul.mubr.f32.vlgmr.msra.gmra.mxu0 %v11129_v11  ;;  %v11102_v29 = vmul.f32 0.01, %v11044_v45  ;;  %v11133_v39 = vsel %vm10877_vm13, %v18771_v20, %v11101_v54  ;;  %v18886_v59 = vpop.f32.mrf.mxu0 }
 0x9c5   : > { %v15005_v7 = vpop.eup %15004  ;;  %15022 = vlog2.f32 %v11018_v3  ;;  %v11050_v14 = vmul.f32 0.6931472, %v15003_v10 }
 0x9c6   : > { %v15007_v33 = vpop.eup %15006  ;;  %15024 = vlog2.f32 %v11021_v17  ;;  %v11022_v36 = vadd.f32 1.0, %v15005_v7  ;;  %v11134_v19 = vsel %vm10878_vm12, %v18774_v4, %v11102_v29  ;;  %v18892_v3 = vpop.f32.mrf.mxu0  ;;  %v18902_v17 = vrot.slane %v18746_v18, %v19275_v61 }
 0x9c7   : > { %v15009_v15 = vpop.eup %15008  ;;  %11301 = vmatprep.mubr.f32.mxu0 %v11134_v19  ;;  %v11052_v38 = vmul.f32 0.6931472, %v15007_v33  ;;  %v11105_v35 = vmul.f32 0.01, %v11050_v14 }
 0x9c8   : > { %v15011_v31 = vpop.eup %15010  ;;  %15026 = vlog2.f32 %v11022_v36  ;;  %v11025_v24 = vadd.f32 1.0, %v15009_v15  ;;  %11302 = vmatmul.mubr.f32.gmra.mxu0 %v11133_v39  ;;  %v18898_v54 = vpop.f32.mrf.mxu0  ;;  %v10730_v19 = vadd.f32 %v18854_v5, %v18902_v17  ;;  %v10734_v50 = vadd.f32 %v18872_v22, %v18902_v17 }
 0x9c9   : > { %v15013_v63 = vpop.eup %15012  ;;  %v11026_v57 = vadd.f32 1.0, %v15011_v31  ;;  %v11106_v46 = vmul.f32 0.01, %v11052_v38  ;;  %v11137_v48 = vsel %vm10881_vm15, %v18785_v47, %v11105_v35 }
 0x9ca   : > { %v15015_v41 = vpop.eup %15014  ;;  %15028 = vlog2.f32 %v11025_v24  ;;  %v11058_v4 = vmul.f32 0.6931472, %v15013_v63 }
 0x9cb   : > { %v15017_v21 = vpop.eup %15016  ;;  %15030 = vlog2.f32 %v11026_v57  ;;  %v11138_v20 = vsel %vm10882_vm14, %v18791_v44, %v11106_v46  ;;  %v11060_v28 = vmul.f32 0.6931472, %v15015_v41 }
 0x9cc   : > { %v15019_v1 = vpop.eup %15018  ;;  %v11029_v25 = vadd.f32 1.0, %v15017_v21  ;;  %11306 = vmatprep.mubr.f32.mxu0 %v11138_v20  ;;  %v11109_v51 = vmul.f32 0.01, %v11058_v4 }
 0x9cd   : > { %v11030_v45 = vadd.f32 1.0, %v15019_v1  ;;  %11307 = vmatmul.mubr.f32.gmra.mxu0 %v11137_v48  ;;  %v11110_v32 = vmul.f32 0.01, %v11060_v28  ;;  %v10740_v1 = vadd.f32 %v18882_v55, %v18902_v17 }
 0x9ce   : > { %v15021_v11 = vpop.eup %15020  ;;  %15032 = vlog2.f32 %v11029_v25  ;;  %v11141_v44 = vsel %vm10885_vm1, %v18799_v43, %v11109_v51  ;;  %v18908_v43 = vpop.f32.mrf.mxu0 }
 0x9cf   : > { %15034 = vlog2.f32 %v11030_v45  ;;  %v11142_v23 = vsel %vm10886_vm0, %v18802_v9, %v11110_v32  ;;  %v11066_v60 = vmul.f32 0.6931472, %v15021_v11  ;;  %v18906_v9 = vrot.slane %v18746_v18, %v19276_v26 }
 0x9d0   : > { %11311 = vmatprep.mubr.f32.mxu0 %v11142_v23 }
 0x9d1   : > { %11312 = vmatmul.mubr.f32.gmra.mxu0 %v11141_v44  ;;  %v11113_v16 = vmul.f32 0.01, %v11066_v60  ;;  %v10732_v37 = vadd.f32 %v18868_v49, %v18906_v9  ;;  %v10736_v41 = vadd.f32 %v18876_v62, %v18906_v9  ;;  %v10742_v12 = vadd.f32 %v18886_v59, %v18906_v9 }
 0x9d2   : > { %v15023_v47 = vpop.eup %15022 }
 0x9d3   : > { %v15025_v10 = vpop.eup %15024  ;;  %v11068_v29 = vmul.f32 0.6931472, %v15023_v47  ;;  %v11145_v26 = vsel %vm10889_vm4, %v18814_v2, %v11113_v16  ;;  %v10744_v47 = vadd.f32 %v18892_v3, %v18902_v17 }
 0x9d4   : > { %v11074_v7 = vmul.f32 0.6931472, %v15025_v10 }
 0x9d5   : > { %v15027_v58 = vpop.eup %15026  ;;  %v11114_v14 = vmul.f32 0.01, %v11068_v29 }
 0x9d6   : > { %v11076_v33 = vmul.f32 0.6931472, %v15027_v58  ;;  %v10802_v39 = vpop.f32.mrf.mxu1  ;;  %v11117_v38 = vmul.f32 0.01, %v11074_v7 }
 0x9d7   : > { %v15029_v36 = vpop.eup %15028  ;;  %v11146_v61 = vsel %vm10890_vm3, %v18819_v13, %v11114_v14  ;;  %v18918_v24 = vadd.f32 %v10802_v39, %v10730_v19  ;;  %v18923_v13 = vpop.f32.mrf.mxu0 }
 0x9d8   : > { %v15031_v15 = vpop.eup %15030  ;;  %11316 = vmatprep.mubr.f32.mxu0 %v11146_v61  ;;  %v11118_v18 = vmul.f32 0.01, %v11076_v33  ;;  %v11082_v31 = vmul.f32 0.6931472, %v15029_v36  ;;  %v10804_v35 = vpop.f32.mrf.mxu1  ;;  %v11149_v4 = vsel %vm10893_vm6, %v18827_v52, %v11117_v38  ;;  %v10746_v36 = vadd.f32 %v18898_v54, %v18906_v9 }
 0x9d9   : > { %11317 = vmatmul.mubr.f32.gmra.mxu0 %v11145_v26  ;;  %v11084_v5 = vmul.f32 0.6931472, %v15031_v15  ;;  %v18928_v57 = vmul.f32 100.0, %v18918_v24  ;;  %v18930_v49 = vadd.f32 %v10804_v35, %v10732_v37  ;;  %v10753_v25 = vpop.f32.mrf.mxu0  ;;  %v10750_v54 = vadd.f32 %v18908_v43, %v18902_v17 }
 0x9da   : > { %v11150_v2 = vsel %vm10894_vm5, %v18830_v34, %v11118_v18  ;;  %v10806_v22 = vpop.f32.mrf.mxu1  ;;  %v11121_v21 = vmul.f32 0.01, %v11082_v31  ;;  %v10752_v37 = vadd.f32 %v18923_v13, %v18906_v9 }
 0x9db   : > { %v15033_v63 = vpop.eup %15032  ;;  %11321 = vmatprep.mubr.f32.mxu0 %v11150_v2  ;;  %v11122_v46 = vmul.f32 0.01, %v11084_v5  ;;  %v10907_v34 = vmin.f32 %v18928_v57, 20.0  ;;  %v18937_v27 = vmul.f32 100.0, %v18930_v49  ;;  %v18939_v28 = vadd.f32 %v10806_v22, %v10734_v50  ;;  %v10755_v10 = vpop.f32.mrf.mxu0 }
 0x9dc   : > { %v15035_v6 = vpop.eup %15034  ;;  %v11090_v20 = vmul.f32 0.6931472, %v15033_v63  ;;  %v10808_v62 = vpop.f32.mrf.mxu1  ;;  %v11153_v23 = vsel %vm10897_vm8, %v18841_v40, %v11121_v21  ;;  %v10754_v2 = vadd.f32 %v10753_v25, %v18902_v17  ;;  %v10756_v25 = vadd.f32 %v10755_v10, %v18906_v9 }
 0x9dd   : > { %11322 = vmatmul.mubr.f32.gmra.mxu0 %v11149_v4  ;;  %v11154_v52 = vsel %vm10898_vm7, %v18845_v56, %v11122_v46  ;;  %v11092_v48 = vmul.f32 0.6931472, %v15035_v6  ;;  %v10941_v51 = vmul.f32 1.442695, %v10907_v34  ;;  %v10908_v45 = vmin.f32 %v18937_v27, 20.0  ;;  %v10759_v19 = vpop.f32.mrf.mxu0 }
 0x9de   : > { %v18948_v32 = vmul.f32 100.0, %v18939_v28  ;;  %v18950_v11 = vadd.f32 %v10808_v62, %v10736_v41  ;;  %11326 = vmatprep.mubr.f32.mxu0 %v11154_v52  ;;  %v10812_v55 = vpop.f32.mrf.mxu1  ;;  %v11125_v44 = vmul.f32 0.01, %v11090_v20  ;;  %vm10876_vm2 = vcmp.gt.f32.partialorder %v18937_v27, 20.0 }
 0x9df   : > { %v11126_v30 = vmul.f32 0.01, %v11092_v48  ;;  %15036 = vpow2.f32 %v10941_v51  ;;  %v10943_v56 = vmul.f32 1.442695, %v10908_v45  ;;  %v18962_v59 = vadd.f32 %v10812_v55, %v10740_v1  ;;  %v10761_v63 = vpop.f32.mrf.mxu0 }
 0x9e0   : > { %v10911_v60 = vmin.f32 %v18948_v32, 20.0  ;;  %v18960_v29 = vmul.f32 100.0, %v18950_v11  ;;  %v10814_v16 = vpop.f32.mrf.mxu1  ;;  %v11157_v33 = vsel %vm10901_vm10, %v18857_v42, %v11125_v44  ;;  %vm10875_vm11 = vcmp.gt.f32.partialorder %v18928_v57, 20.0 }
 0x9e1   : > { %11327 = vmatmul.mubr.f32.gmra.mxu0 %v11153_v23  ;;  %v11158_v40 = vsel %vm10902_vm9, %v18860_v0, %v11126_v30  ;;  %15038 = vpow2.f32 %v10943_v56  ;;  %v18966_v58 = vadd.f32 %v10814_v16, %v10742_v12  ;;  %v18970_v3 = vmul.f32 100.0, %v18962_v59  ;;  %v10763_v62 = vpop.f32.mrf.mxu0 }
 0x9e2   : > { %v10949_v7 = vmul.f32 1.442695, %v10911_v60  ;;  %11331 = vmatprep.mubr.f32.mxu0 %v11158_v40  ;;  %v10912_v8 = vmin.f32 %v18960_v29, 20.0  ;;  %v10816_v14 = vpop.f32.mrf.mxu1  ;;  %v10760_v23 = vadd.f32 %v10759_v19, %v18902_v17  ;;  %v10762_v60 = vadd.f32 %v10761_v63, %v18906_v9 }
 0x9e3   : > { %v18976_v0 = vmul.f32 100.0, %v18966_v58  ;;  %v18978_v53 = vadd.f32 %v10816_v14, %v10744_v47  ;;  %v10915_v15 = vmin.f32 %v18970_v3, 20.0  ;;  %v10765_v40 = vpop.f32.mrf.mxu0  ;;  %vm10880_vm12 = vcmp.gt.f32.partialorder %v18960_v29, 20.0 }
 0x9e4   : > { %15040 = vpow2.f32 %v10949_v7  ;;  %v10951_v61 = vmul.f32 1.442695, %v10912_v8  ;;  %v10818_v39 = vpop.f32.mrf.mxu1  ;;  %vm10879_vm13 = vcmp.gt.f32.partialorder %v18948_v32, 20.0  ;;  %vm10883_vm15 = vcmp.gt.f32.partialorder %v18970_v3, 20.0 }
 0x9e5   : > { %11332 = vmatmul.mubr.f32.gmra.mxu0 %v11157_v33  ;;  %v10916_v26 = vmin.f32 %v18976_v0, 20.0  ;;  %v18983_v18 = vmul.f32 100.0, %v18978_v53  ;;  %v18985_v42 = vadd.f32 %v10818_v39, %v10746_v36  ;;  %v10957_v38 = vmul.f32 1.442695, %v10915_v15 }
 0x9e6   : > { %15042 = vpow2.f32 %v10951_v61  ;;  %v10822_v31 = vpop.f32.mrf.mxu1  ;;  %v10764_v36 = vadd.f32 %v10763_v62, %v18902_v17  ;;  %vm10884_vm14 = vcmp.gt.f32.partialorder %v18976_v0, 20.0 }
 0x9e7   : > { %v10959_v5 = vmul.f32 1.442695, %v10916_v26  ;;  %v10919_v50 = vmin.f32 %v18983_v18, 20.0  ;;  %v18993_v35 = vmul.f32 100.0, %v18985_v42  ;;  %15044 = vpow2.f32 %v10957_v38 }
 0x9e8   : > { %v18996_v46 = vadd.f32 %v10822_v31, %v10750_v54  ;;  %v10824_v6 = vpop.f32.mrf.mxu1  ;;  %v10766_v31 = vadd.f32 %v10765_v40, %v18906_v9  ;;  %vm10887_vm1 = vcmp.gt.f32.partialorder %v18983_v18, 20.0 }
 0x9e9   : > { %15046 = vpow2.f32 %v10959_v5  ;;  %v10965_v43 = vmul.f32 1.442695, %v10919_v50  ;;  %v10920_v41 = vmin.f32 %v18993_v35, 20.0  ;;  %v18999_v22 = vadd.f32 %v10824_v6, %v10752_v37 }
 0x9ea   : > { %v19002_v13 = vmul.f32 100.0, %v18996_v46  ;;  %v10826_v4 = vpop.f32.mrf.mxu1  ;;  %vm10888_vm0 = vcmp.gt.f32.partialorder %v18993_v35, 20.0 }
 0x9eb   : > { %15048 = vpow2.f32 %v10965_v43  ;;  %v10967_v21 = vmul.f32 1.442695, %v10920_v41  ;;  %v19005_v20 = vmul.f32 100.0, %v18999_v22  ;;  %v19007_v34 = vadd.f32 %v10826_v4, %v10754_v2 }
 0x9ec   : > { %v15037_v1 = vpop.eup %15036  ;;  %v10923_v52 = vmin.f32 %v19002_v13, 20.0  ;;  %v10828_v48 = vpop.f32.mrf.mxu1  ;;  %vm10891_vm4 = vcmp.gt.f32.partialorder %v19002_v13, 20.0 }
 0x9ed   : > { %v11003_v51 = vadd.f32 1.0, %v15037_v1  ;;  %15050 = vpow2.f32 %v10967_v21  ;;  %v10924_v45 = vmin.f32 %v19005_v20, 20.0  ;;  %v19013_v12 = vmul.f32 100.0, %v19007_v34 }
 0x9ee   : > { %v15039_v55 = vpop.eup %15038  ;;  %v10973_v30 = vmul.f32 1.442695, %v10923_v52  ;;  %v19016_v44 = vadd.f32 %v10828_v48, %v10756_v25  ;;  %v10832_v56 = vpop.f32.mrf.mxu1  ;;  %vm10892_vm3 = vcmp.gt.f32.partialorder %v19005_v20, 20.0 }
 0x9ef   : > { %15052 = vlog2.f32 %v11003_v51  ;;  %v11004_v47 = vadd.f32 1.0, %v15039_v55  ;;  %v10975_v10 = vmul.f32 1.442695, %v10924_v45  ;;  %v10927_v7 = vmin.f32 %v19013_v12, 20.0 }
 0x9f0   : > { %15054 = vpow2.f32 %v10973_v30  ;;  %v19021_v8 = vmul.f32 100.0, %v19016_v44  ;;  %v19023_v14 = vadd.f32 %v10832_v56, %v10760_v23  ;;  %v10834_v33 = vpop.f32.mrf.mxu1  ;;  %vm10895_vm6 = vcmp.gt.f32.partialorder %v19013_v12, 20.0 }
 0x9f1   : > { %v15041_v16 = vpop.eup %15040  ;;  %15056 = vlog2.f32 %v11004_v47  ;;  %v19026_v61 = vadd.f32 %v10834_v33, %v10762_v60  ;;  %v10981_v15 = vmul.f32 1.442695, %v10927_v7 }
 0x9f2   : > { %v11007_v19 = vadd.f32 1.0, %v15041_v16  ;;  %15058 = vpow2.f32 %v10975_v10  ;;  %v10928_v39 = vmin.f32 %v19021_v8, 20.0  ;;  %v19030_v26 = vmul.f32 100.0, %v19023_v14  ;;  %v10836_v54 = vpop.f32.mrf.mxu1 }
 0x9f3   : > { %v15043_v38 = vpop.eup %15042  ;;  %v19034_v37 = vmul.f32 100.0, %v19026_v61  ;;  %v19036_v17 = vadd.f32 %v10836_v54, %v10764_v36  ;;  %vm10896_vm5 = vcmp.gt.f32.partialorder %v19021_v8, 20.0 }
 0x9f4   : > { %15060 = vlog2.f32 %v11007_v19  ;;  %v11008_v5 = vadd.f32 1.0, %v15043_v38  ;;  %v10983_v50 = vmul.f32 1.442695, %v10928_v39  ;;  %v10838_v2 = vpop.f32.mrf.mxu1  ;;  %v15045_v63 = vpop.eup %15044  ;;  %v10931_v6 = vmin.f32 %v19030_v26, 20.0 }
 0x9f5   : > { %15062 = vpow2.f32 %v10981_v15  ;;  %v10932_v43 = vmin.f32 %v19034_v37, 20.0  ;;  %v19041_v41 = vmul.f32 100.0, %v19036_v17  ;;  %v19043_v4 = vadd.f32 %v10838_v2, %v10766_v31 }
 0x9f6   : > { %v15047_v9 = vpop.eup %15046  ;;  %15064 = vlog2.f32 %v11008_v5  ;;  %v11011_v21 = vadd.f32 1.0, %v15045_v63  ;;  %v10989_v25 = vmul.f32 1.442695, %v10931_v6  ;;  %vm10900_vm7 = vcmp.gt.f32.partialorder %v19034_v37, 20.0 }
 0x9f7   : > { %v11012_v1 = vadd.f32 1.0, %v15047_v9  ;;  %15066 = vpow2.f32 %v10983_v50  ;;  %v10991_v52 = vmul.f32 1.442695, %v10932_v43  ;;  %v10935_v48 = vmin.f32 %v19041_v41, 20.0 }
 0x9f8   : > { %v15049_v62 = vpop.eup %15048  ;;  %15068 = vlog2.f32 %v11011_v21  ;;  %v19047_v51 = vmul.f32 100.0, %v19043_v4  ;;  %vm10899_vm8 = vcmp.gt.f32.partialorder %v19030_v26, 20.0  ;;  %vm10903_vm10 = vcmp.gt.f32.partialorder %v19041_v41, 20.0 }
 0x9f9   : > { %15070 = vlog2.f32 %v11012_v1  ;;  %v11015_v45 = vadd.f32 1.0, %v15049_v62  ;;  %v10997_v23 = vmul.f32 1.442695, %v10935_v48 }
 0x9fa   : > { %v15051_v55 = vpop.eup %15050  ;;  %15072 = vpow2.f32 %v10989_v25  ;;  %v10936_v30 = vmin.f32 %v19047_v51, 20.0  ;;  %vm10904_vm9 = vcmp.gt.f32.partialorder %v19047_v51, 20.0 }
 0x9fb   : > { %15074 = vlog2.f32 %v11015_v45  ;;  %v11016_v56 = vadd.f32 1.0, %v15051_v55 }
 0x9fc   : > { %v15053_v60 = vpop.eup %15052  ;;  %15076 = vpow2.f32 %v10991_v52  ;;  %v10999_v47 = vmul.f32 1.442695, %v10936_v30 }
 0x9fd   : > { %v15055_v10 = vpop.eup %15054  ;;  %v11038_v16 = vmul.f32 0.6931472, %v15053_v60  ;;  %15078 = vlog2.f32 %v11016_v56 }
 0x9fe   : > { %v15057_v40 = vpop.eup %15056  ;;  %v11019_v7 = vadd.f32 1.0, %v15055_v10  ;;  %15080 = vpow2.f32 %v10997_v23 }
 0x9ff   : > { %v15059_v33 = vpop.eup %15058  ;;  %15082 = vpow2.f32 %v10999_v47  ;;  %v11040_v36 = vmul.f32 0.6931472, %v15057_v40  ;;  %v11099_v15 = vmul.f32 0.01, %v11038_v16 }
 0xa00   : > { %15084 = vlog2.f32 %v11019_v7  ;;  %v11020_v39 = vadd.f32 1.0, %v15059_v33 }
 0xa01   : > { %v15061_v19 = vpop.eup %15060  ;;  %v11100_v38 = vmul.f32 0.01, %v11040_v36  ;;  %v11131_v6 = vsel %vm10875_vm11, %v18918_v24, %v11099_v15 }
 0xa02   : > { %v15063_v54 = vpop.eup %15062  ;;  %v11046_v31 = vmul.f32 0.6931472, %v15061_v19  ;;  %15086 = vlog2.f32 %v11020_v39 }
 0xa03   : > { %v11023_v5 = vadd.f32 1.0, %v15063_v54  ;;  %v15065_v50 = vpop.eup %15064  ;;  %v11132_v2 = vsel %vm10876_vm2, %v18930_v49, %v11100_v38  ;;  %vm11450_vm2 = vcmask 7168  }
 0xa04   : > { %v15067_v63 = vpop.eup %15066  ;;  %11401 = vmatprep.mubr.f32.mxu1 %v11132_v2  ;;  %v11048_v43 = vmul.f32 0.6931472, %v15065_v50  ;;  %v11103_v1 = vmul.f32 0.01, %v11046_v31 }
 0xa05   : > { %15088 = vlog2.f32 %v11023_v5  ;;  %v15069_v9 = vpop.eup %15068  ;;  %v11024_v21 = vadd.f32 1.0, %v15067_v63  ;;  %11402 = vmatmul.mubr.f32.vlgmr.msra.gmra.mxu1 %v11131_v6 }
 0xa06   : > { %v15071_v25 = vpop.eup %15070  ;;  %v11104_v62 = vmul.f32 0.01, %v11048_v43  ;;  %v11054_v52 = vmul.f32 0.6931472, %v15069_v9  ;;  %v11135_v55 = vsel %vm10879_vm13, %v18939_v28, %v11103_v1 }
 0xa07   : > { %v15073_v48 = vpop.eup %15072  ;;  %15090 = vlog2.f32 %v11024_v21  ;;  %v11056_v57 = vmul.f32 0.6931472, %v15071_v25 }
 0xa08   : > { %v15075_v27 = vpop.eup %15074  ;;  %v11027_v49 = vadd.f32 1.0, %v15073_v48  ;;  %v11136_v24 = vsel %vm10880_vm12, %v18950_v11, %v11104_v62  ;;  %v11107_v30 = vmul.f32 0.01, %v11054_v52 }
 0xa09   : > { %v15077_v45 = vpop.eup %15076  ;;  %11406 = vmatprep.mubr.f32.mxu1 %v11136_v24  ;;  %v11108_v23 = vmul.f32 0.01, %v11056_v57  ;;  %v11062_v56 = vmul.f32 0.6931472, %v15075_v27 }
 0xa0a   : > { %v15079_v60 = vpop.eup %15078  ;;  %15092 = vlog2.f32 %v11027_v49  ;;  %v11028_v47 = vadd.f32 1.0, %v15077_v45  ;;  %11407 = vmatmul.mubr.f32.gmra.mxu1 %v11135_v55  ;;  %v11139_v7 = vsel %vm10883_vm15, %v18962_v59, %v11107_v30  ;;  %v19082_v45 = vld [vmem:[#allocation2] ss:$0 sm:$0xff] }
 0xa0b   : > { %v15081_v29 = vpop.eup %15080  ;;  %v11140_v10 = vsel %vm10884_vm14, %v18966_v58, %v11108_v23  ;;  %v11064_v32 = vmul.f32 0.6931472, %v15079_v60  ;;  %v11111_v36 = vmul.f32 0.01, %v11062_v56 }
 0xa0c   : > { %v15083_v16 = vpop.eup %15082  ;;  %15094 = vlog2.f32 %v11028_v47  ;;  %v11031_v11 = vadd.f32 1.0, %v15081_v29  ;;  %11411 = vmatprep.mubr.f32.mxu1 %v11140_v10 }
 0xa0d   : > { %v15085_v28 = vpop.eup %15084  ;;  %v11032_v40 = vadd.f32 1.0, %v15083_v16  ;;  %v11112_v33 = vmul.f32 0.01, %v11064_v32  ;;  %v11143_v39 = vsel %vm10887_vm1, %v18978_v53, %v11111_v36 }
 0xa0e   : > { %15096 = vlog2.f32 %v11031_v11  ;;  %11412 = vmatmul.mubr.f32.gmra.mxu1 %v11139_v7  ;;  %v11070_v0 = vmul.f32 0.6931472, %v15085_v28 }
 0xa0f   : > { %v15087_v19 = vpop.eup %15086  ;;  %15098 = vlog2.f32 %v11032_v40  ;;  %v11144_v58 = vsel %vm10888_vm0, %v18985_v42, %v11112_v33 }
 0xa10   : > { %11416 = vmatprep.mubr.f32.mxu1 %v11144_v58  ;;  %v11072_v3 = vmul.f32 0.6931472, %v15087_v19  ;;  %v11115_v54 = vmul.f32 0.01, %v11070_v0 }
 0xa12   : > { %v15089_v15 = vpop.eup %15088  ;;  %11417 = vmatmul.mubr.f32.gmra.mxu1 %v11143_v39  ;;  %v11116_v59 = vmul.f32 0.01, %v11072_v3  ;;  %v11147_v42 = vsel %vm10891_vm4, %v18996_v46, %v11115_v54 }
 0xa13   : > { %v11078_v38 = vmul.f32 0.6931472, %v15089_v15 }
 0xa14   : > { %v15091_v31 = vpop.eup %15090  ;;  %v11148_v35 = vsel %vm10892_vm3, %v18999_v22, %v11116_v59 }
 0xa15   : > { %11421 = vmatprep.mubr.f32.mxu1 %v11148_v35  ;;  %v11080_v18 = vmul.f32 0.6931472, %v15091_v31  ;;  %v11119_v5 = vmul.f32 0.01, %v11078_v38 }
 0xa16   : > { %11422 = vmatmul.mubr.f32.gmra.mxu1 %v11147_v42 }
 0xa17   : > { %v15093_v50 = vpop.eup %15092  ;;  %v11120_v2 = vmul.f32 0.01, %v11080_v18  ;;  %v11151_v13 = vsel %vm10895_vm6, %v19007_v34, %v11119_v5 }
 0xa18   : > { %v11086_v53 = vmul.f32 0.6931472, %v15093_v50 }
 0xa19   : > { %v15095_v63 = vpop.eup %15094  ;;  %v11152_v20 = vsel %vm10896_vm5, %v19016_v44, %v11120_v2 }
 0xa1a   : > { %11426 = vmatprep.mubr.f32.mxu1 %v11152_v20  ;;  %v11088_v22 = vmul.f32 0.6931472, %v15095_v63  ;;  %v11123_v46 = vmul.f32 0.01, %v11086_v53 }
 0xa1b   : > { %v15097_v6 = vpop.eup %15096  ;;  %11427 = vmatmul.mubr.f32.gmra.mxu1 %v11151_v13 }
 0xa1c   : > { %v15099_v43 = vpop.eup %15098  ;;  %v11124_v9 = vmul.f32 0.01, %v11088_v22  ;;  %v11094_v21 = vmul.f32 0.6931472, %v15097_v6  ;;  %v11155_v12 = vsel %vm10899_vm8, %v19023_v14, %v11123_v46 }
 0xa1d   : > { %v11096_v1 = vmul.f32 0.6931472, %v15099_v43 }
 0xa1e   : > { %v11156_v8 = vsel %vm10900_vm7, %v19026_v61, %v11124_v9  ;;  %v11127_v25 = vmul.f32 0.01, %v11094_v21 }
 0xa1f   : > { %11431 = vmatprep.mubr.f32.mxu1 %v11156_v8  ;;  %v11128_v44 = vmul.f32 0.01, %v11096_v1 }
 0xa20   : > { %11432 = vmatmul.mubr.f32.gmra.mxu1 %v11155_v12  ;;  %v11159_v37 = vsel %vm10903_vm10, %v19036_v17, %v11127_v25 }
 0xa21   : > { %v11160_v34 = vsel %vm10904_vm9, %v19043_v4, %v11128_v44 }
 0xa22   : > { %11436 = vmatprep.mubr.f32.mxu1 %v11160_v34 }
 0xa24   : > { %11437 = vmatmul.mubr.f32.gmra.mxu1 %v11159_v37 }
 0xa84   : > { %v12555_v62 = vpop.f32.mrf.mxu0 }
 0xa86   : > { %v12556_v26 = vpop.f32.mrf.mxu0 }
 0xa87   : > { %v12557_v49 = vadd.f32 %v12556_v26, %v12555_v62 }
 0xa88   : > { %v12558_v52 = vpop.f32.mrf.mxu0 }
 0xa89   : > { %v11299_v41 = vadd.f32 %v12557_v49, %v19082_v45 }
 0xa8a   : > { %v12559_v61 = vpop.f32.mrf.mxu0 }
 0xa8b   : > { %v12560_v17 = vadd.f32 %v12559_v61, %v12558_v52 }
 0xa8d   : > { %v12561_v48 = vpop.f32.mrf.mxu0  ;;  %v11304_v29 = vadd.f32 %v12560_v17, %v19082_v45 }
 0xa8f   : > { %v12562_v57 = vpop.f32.mrf.mxu0 }
 0xa90   : > { %v12563_v10 = vadd.f32 %v12562_v57, %v12561_v48 }
 0xa91   : > { %v12564_v14 = vpop.f32.mrf.mxu0 }
 0xa92   : > { %v11309_v7 = vadd.f32 %v12563_v10, %v19082_v45 }
 0xa93   : > { %v12565_v27 = vpop.f32.mrf.mxu0 }
 0xa94   : > { %v12566_v33 = vadd.f32 %v12565_v27, %v12564_v14 }
 0xa96   : > { %v11314_v15 = vadd.f32 %v12566_v33, %v19082_v45 }
 0xa99   : > { %v12567_v24 = vpop.f32.mrf.mxu0 }
 0xa9b   : > { %v12568_v55 = vpop.f32.mrf.mxu0 }
 0xa9c   : > { %v12569_v39 = vadd.f32 %v12568_v55, %v12567_v24 }
 0xa9d   : > { %v12570_v60 = vpop.f32.mrf.mxu0 }
 0xa9e   : > { %v11319_v18 = vadd.f32 %v12569_v39, %v19082_v45 }
 0xa9f   : > { %v12571_v28 = vpop.f32.mrf.mxu0 }
 0xaa0   : > { %v12572_v50 = vadd.f32 %v12571_v28, %v12570_v60 }
 0xaa1   : > { %v12573_v58 = vpop.f32.mrf.mxu0 }
 0xaa2   : > { %v11324_v22 = vadd.f32 %v12572_v50, %v19082_v45 }
 0xaa3   : > { %v12574_v31 = vpop.f32.mrf.mxu0 }
 0xaa4   : > { %v12575_v46 = vadd.f32 %v12574_v31, %v12573_v58 }
 0xaa5   : > { %v12576_v63 = vpop.f32.mrf.mxu0 }
 0xaa6   : > { %v11329_v12 = vadd.f32 %v12575_v46, %v19082_v45 }
 0xaa7   : > { %v12577_v43 = vpop.f32.mrf.mxu0 }
 0xaa8   : > { %v12578_v44 = vadd.f32 %v12577_v43, %v12576_v63 }
 0xaaa   : > { %v11334_v52 = vadd.f32 %v12578_v44, %v19082_v45 }
 0xac5   : > { %v12611_v51 = vpop.f32.mrf.mxu1 }
 0xac7   : > { %v12612_v4 = vpop.f32.mrf.mxu1 }
 0xac8   : > { %v12613_v23 = vadd.f32 %v12612_v4, %v12611_v51 }
 0xaca   : > { %v11404_v30 = vadd.f32 %v12613_v23, %v11299_v41  ;;  %v12614_v56 = vpop.f32.mrf.mxu1 }
 0xacc   : > { %15100 = vtanh.f32 %v11404_v30  ;;  %v12615_v47 = vpop.f32.mrf.mxu1 }
 0xacd   : > { %v12616_v32 = vadd.f32 %v12615_v47, %v12614_v56 }
 0xace   : > { %v12617_v16 = vpop.f32.mrf.mxu1 }
 0xacf   : > { %v11409_v11 = vadd.f32 %v12616_v32, %v11304_v29 }
 0xad0   : > { %v12618_v40 = vpop.f32.mrf.mxu1 }
 0xad1   : > { %15102 = vtanh.f32 %v11409_v11  ;;  %v12619_v36 = vadd.f32 %v12618_v40, %v12617_v16 }
 0xad2   : > { %v12620_v0 = vpop.f32.mrf.mxu1 }
 0xad3   : > { %v11414_v19 = vadd.f32 %v12619_v36, %v11309_v7 }
 0xad4   : > { %v12621_v3 = vpop.f32.mrf.mxu1 }
 0xad5   : > { %15104 = vtanh.f32 %v11414_v19  ;;  %v12622_v54 = vadd.f32 %v12621_v3, %v12620_v0 }
 0xad6   : > { %v12623_v59 = vpop.f32.mrf.mxu1 }
 0xad7   : > { %v11419_v38 = vadd.f32 %v12622_v54, %v11314_v15 }
 0xad8   : > { %v12624_v35 = vpop.f32.mrf.mxu1 }
 0xad9   : > { %v15101_v42 = vpop.eup %15100  ;;  %15106 = vtanh.f32 %v11419_v38  ;;  %v12625_v5 = vadd.f32 %v12624_v35, %v12623_v59 }
 0xada   : > { %11451 = vst.msk [vmem:[%s19093_s18] sm:$0xff] %vm11450_vm2, %v15101_v42 }
 0xadb   : > { %v11424_v2 = vadd.f32 %v12625_v5, %v11319_v18  ;;  %v12626_v53 = vpop.f32.mrf.mxu1 }
 0xadd   : > { %15108 = vtanh.f32 %v11424_v2  ;;  %v12627_v20 = vpop.f32.mrf.mxu1 }
 0xade   : > { %v15103_v13 = vpop.eup %15102  ;;  %v12628_v6 = vadd.f32 %v12627_v20, %v12626_v53 }
 0xadf   : > { %11452 = vst.msk [vmem:[%s19093_s18 + $0x8] sm:$0xff] %vm11450_vm2, %v15103_v13 }
 0xae0   : > { %v11429_v9 = vadd.f32 %v12628_v6, %v11324_v22  ;;  %v12629_v21 = vpop.f32.mrf.mxu1 }
 0xae2   : > { %v15105_v1 = vpop.eup %15104  ;;  %15110 = vtanh.f32 %v11429_v9  ;;  %v12630_v8 = vpop.f32.mrf.mxu1 }
 0xae3   : > { %11453 = vst.msk [vmem:[%s19093_s18 + $0x10] sm:$0xff] %vm11450_vm2, %v15105_v1  ;;  %v12631_v25 = vadd.f32 %v12630_v8, %v12629_v21 }
 0xae4   : > { %v12632_v34 = vpop.f32.mrf.mxu1 }
 0xae5   : > { %v11434_v37 = vadd.f32 %v12631_v25, %v11329_v12 }
 0xae6   : > { %v15107_v62 = vpop.eup %15106  ;;  %v12633_v26 = vpop.f32.mrf.mxu1 }
 0xae7   : > { %11454 = vst.msk [vmem:[%s19093_s18 + $0x18] sm:$0xff] %vm11450_vm2, %v15107_v62  ;;  %15112 = vtanh.f32 %v11434_v37  ;;  %v12634_v61 = vadd.f32 %v12633_v26, %v12632_v34 }
 0xae9   : > { %v11439_v48 = vadd.f32 %v12634_v61, %v11334_v52 }
 0xaea   : > { %v15109_v57 = vpop.eup %15108 }
 0xaeb   : > { %11455 = vst.msk [vmem:[%s19093_s18 + $0x20] sm:$0xff] %vm11450_vm2, %v15109_v57  ;;  %15114 = vtanh.f32 %v11439_v48 }
 0xaef   : > { %v15111_v14 = vpop.eup %15110 }
 0xaf0   : > { %11456 = vst.msk [vmem:[%s19093_s18 + $0x28] sm:$0xff] %vm11450_vm2, %v15111_v14 }
 0xaf4   : > { %v15113_v27 = vpop.eup %15112 }
 0xaf5   : > { %11457 = vst.msk [vmem:[%s19093_s18 + $0x30] sm:$0xff] %vm11450_vm2, %v15113_v27 }
 0xaf8   : > { %v15115_v49 = vpop.eup %15114 }
 0xaf9   : > { %11458 = vst.msk [vmem:[%s19093_s18 + $0x38] sm:$0xff] %vm11450_vm2, %v15115_v49 }
 0xafa PF: > { %s23_s29 = sadd.s32 1, %s15264_s29  }
 0xafb   : > { %p20_p2 = scmp.ge.s32.totalorder %s23_s29, 4  }
 0xafd   :  { %22 = sbr.rel (!%p20_p2) target bundleno = 6 (0x6), region = 115 }
 0xb02   :  { %11481 = vsyncpa [#allocation4], 1 }
 0xb03   :  { %11483 = vsyncpa [#allocation4 + $0x1], 1 }
 0xb04   :  { %11484 = vsyncpa [#allocation6], 1 }
 0xb05   :  { %11485 = vsyncpa [#allocation9], 1 }

</bundles_post_ra>
